<compile_context>
chip_gen: v6e
topology: v6e:2x2x1
jax: 0.10.0
libtpu: 0.0.40
codegen_flags: <defaults>
</compile_context>

<pallas_src>
import functools

import jax
import jax.numpy as jnp
from jax.experimental import pallas as pl
from jax.experimental.pallas import tpu as pltpu

TM_MAX = 512                 # max row tile (safe on v7x; could be 1024 on v5e/v6e)
SUB = 16                     # row-tile granularity (bf16 sublane packing)
LANE = 128                   # lane multiple (last-dim padding target)
BN_EPS = 1e-5
LEAKY_SLOPE = 0.2
# 32 MiB scoped VMEM: per-call footprint here is <~4 MiB even double-buffered;
# v7x only has 64 MiB physical, so do NOT blindly raise this when scaling ngf.
VMEM_LIMIT = 32 * 1024 * 1024


def _round_up(x, m):
    return ((x + m - 1) // m) * m


def _pick_tm(m):
    """Row tile: big tiles for HBM efficiency, and never split M into
    sub-128-row tiles just to create extra grid steps (per-step pipeline
    overhead would dominate the MXU time at these sizes)."""
    mp = _round_up(max(m, 1), SUB)
    if mp <= 2 * 128:
        return mp                              # single tile
    half = _round_up((mp + 1) // 2, SUB)
    return min(TM_MAX, half)


def _pad2d(x, rows, cols, dtype):
    """Cast + zero-pad to (rows, cols); skip the copy when already aligned."""
    x = x.astype(dtype)
    r, c = x.shape
    if (r, c) == (rows, cols):
        return x
    return jnp.zeros((rows, cols), dtype).at[:r, :c].set(x)


# ----------------------------- Pallas kernels -----------------------------

def _apply_act(x, act):
    if act == "leaky":
        return jnp.where(x > 0, x, LEAKY_SLOPE * x)
    if act == "relu":
        return jnp.maximum(x, 0.0)
    if act == "tanh":
        return jnp.tanh(x)
    return x


def _mm_kernel(a_ref, b_ref, o_ref, *, act):
    acc = jnp.dot(a_ref[...], b_ref[...], preferred_element_type=jnp.float32)
    o_ref[...] = _apply_act(acc, act).astype(o_ref.dtype)


def _mm_stats_kernel(a_ref, b_ref, o_ref, st_ref):
    """Matmul + fused per-tile BN partial statistics (bf16 main output).

    st block is (8, Np): row 0 = per-column sum, row 1 = per-column sum of
    squares, rows 2..7 = zeros (keeps the block (8,128)-aligned). Zero-padded
    rows contribute zero, so the reduced stats are exact batch statistics."""
    acc = jnp.dot(a_ref[...], b_ref[...], preferred_element_type=jnp.float32)
    o_ref[...] = acc.astype(o_ref.dtype)
    srow = jnp.sum(acc, axis=0, keepdims=True)
    sqrow = jnp.sum(acc * acc, axis=0, keepdims=True)
    rows = jax.lax.broadcasted_iota(jnp.int32, st_ref.shape, 0)
    st_ref[...] = jnp.where(rows == 0, srow, jnp.where(rows == 1, sqrow, 0.0))


def _stats_only_kernel(a_ref, b_ref, st_ref):
    """Matmul whose only output is the per-tile BN statistics (no activation
    writeback at all) — used for the decoder two-pass BN fusion."""
    acc = jnp.dot(a_ref[...], b_ref[...], preferred_element_type=jnp.float32)
    srow = jnp.sum(acc, axis=0, keepdims=True)
    sqrow = jnp.sum(acc * acc, axis=0, keepdims=True)
    rows = jax.lax.broadcasted_iota(jnp.int32, st_ref.shape, 0)
    st_ref[...] = jnp.where(rows == 0, srow, jnp.where(rows == 1, sqrow, 0.0))


def _mm_affine_kernel(a_ref, b_ref, sc_ref, sh_ref, o_ref, *, act):
    """Matmul with the BN affine (precomputed scale/shift) + activation fused
    into the epilogue: the normalized activation never round-trips HBM."""
    acc = jnp.dot(a_ref[...], b_ref[...], preferred_element_type=jnp.float32)
    y = acc * sc_ref[...] + sh_ref[...]
    o_ref[...] = _apply_act(y, act).astype(o_ref.dtype)


def _affine_kernel(x_ref, scale_ref, shift_ref, o_ref, *, act):
    y = x_ref[...].astype(jnp.float32) * scale_ref[...] + shift_ref[...]
    o_ref[...] = _apply_act(y, act).astype(o_ref.dtype)


# --------------------------- Pallas call wrappers --------------------------
# All wrappers take phase-batched operands:
#   a: (P, Mp, Kp) bf16,  b: (P, Kp, Np) bf16,  grid = (P, Mp // tm)
# The leading P axis (sub-pixel phases, or 1) is a Squeezed block dim, so one
# pallas_call covers all phases of a stride-2 deconv and both grid axes are
# "parallel" for megacore sharding.

def _grid_cp():
    return pltpu.CompilerParams(dimension_semantics=("parallel", "parallel"),
                                vmem_limit_bytes=VMEM_LIMIT)


def _ab_specs(tm, Kp, Np):
    return [pl.BlockSpec((pl.Squeezed(), tm, Kp), lambda p, i: (p, i, 0)),
            pl.BlockSpec((pl.Squeezed(), Kp, Np), lambda p, i: (p, 0, 0))]


def _out_spec(tm, Np):
    return pl.BlockSpec((pl.Squeezed(), tm, Np), lambda p, i: (p, i, 0))


def _reduce_stats(st, P, nt, Np):
    st = st.reshape(P * nt, 8, Np)
    return jnp.sum(st[:, 0, :], axis=0), jnp.sum(st[:, 1, :], axis=0)


def pallas_matmul_batched(a, b, *, tm, act="none", out_dtype=jnp.bfloat16):
    P, Mp, Kp = a.shape
    Np = b.shape[2]
    return pl.pallas_call(
        functools.partial(_mm_kernel, act=act),
        out_shape=jax.ShapeDtypeStruct((P, Mp, Np), out_dtype),
        grid=(P, Mp // tm),
        in_specs=_ab_specs(tm, Kp, Np),
        out_specs=_out_spec(tm, Np),
        compiler_params=_grid_cp(),
    )(a, b)


def pallas_matmul_stats_batched(a, b, *, tm, out_dtype=jnp.bfloat16):
    """Matmul output (bf16) + reduced BN batch sums / sums-of-squares (f32)."""
    P, Mp, Kp = a.shape
    Np = b.shape[2]
    nt = Mp // tm
    out, st = pl.pallas_call(
        _mm_stats_kernel,
        out_shape=(jax.ShapeDtypeStruct((P, Mp, Np), out_dtype),
                   jax.ShapeDtypeStruct((P, nt * 8, Np), jnp.float32)),
        grid=(P, nt),
        in_specs=_ab_specs(tm, Kp, Np),
        out_specs=(_out_spec(tm, Np),
                   pl.BlockSpec((pl.Squeezed(), 8, Np), lambda p, i: (p, i, 0))),
        compiler_params=_grid_cp(),
    )(a, b)
    s, sq = _reduce_stats(st, P, nt, Np)
    return out, s, sq


def pallas_matmul_stats_only(a, b, *, tm):
    """Pass 1 of the decoder BN fusion: only the (8, Np) per-tile stats hit HBM."""
    P, Mp, Kp = a.shape
    Np = b.shape[2]
    nt = Mp // tm
    st = pl.pallas_call(
        _stats_only_kernel,
        out_shape=jax.ShapeDtypeStruct((P, nt * 8, Np), jnp.float32),
        grid=(P, nt),
        in_specs=_ab_specs(tm, Kp, Np),
        out_specs=pl.BlockSpec((pl.Squeezed(), 8, Np), lambda p, i: (p, i, 0)),
        compiler_params=_grid_cp(),
    )(a, b)
    return _reduce_stats(st, P, nt, Np)


def pallas_matmul_affine_batched(a, b, scale, shift, *, tm, act,
                                 out_dtype=jnp.bfloat16):
    """Pass 2 of the decoder BN fusion: matmul + scale/shift + act, one write."""
    P, Mp, Kp = a.shape
    Np = b.shape[2]
    return pl.pallas_call(
        functools.partial(_mm_affine_kernel, act=act),
        out_shape=jax.ShapeDtypeStruct((P, Mp, Np), out_dtype),
        grid=(P, Mp // tm),
        in_specs=_ab_specs(tm, Kp, Np)
                 + [pl.BlockSpec((1, Np), lambda p, i: (0, 0)),
                    pl.BlockSpec((1, Np), lambda p, i: (0, 0))],
        out_specs=_out_spec(tm, Np),
        compiler_params=_grid_cp(),
    )(a, b, scale, shift)


def pallas_affine_act_batched(yp, scale, shift, *, tm, act, out_dtype):
    """Elementwise y*scale + shift + activation on the padded (P, Mp, Np) tensor
    (encoder path, where re-reading the wide im2col matrix would cost more than
    the bf16 activation round trip)."""
    P, Mp, Np = yp.shape
    return pl.pallas_call(
        functools.partial(_affine_kernel, act=act),
        out_shape=jax.ShapeDtypeStruct((P, Mp, Np), out_dtype),
        grid=(P, Mp // tm),
        in_specs=[_out_spec(tm, Np),
                  pl.BlockSpec((1, Np), lambda p, i: (0, 0)),
                  pl.BlockSpec((1, Np), lambda p, i: (0, 0))],
        out_specs=_out_spec(tm, Np),
        compiler_params=_grid_cp(),
    )(yp, scale, shift)


def _bn_scale_shift(s, sq, count, gamma, beta):
    """Training-mode BatchNorm (batch stats, biased variance), all in f32.
    Padded channels get gamma=0 -> scale=shift=0 (they are sliced off anyway)."""
    npad = s.shape[0]
    c = gamma.shape[0]
    mean = s / count
    var = jnp.maximum(sq / count - mean * mean, 0.0)   # clamp tiny negatives
    g = jnp.zeros((npad,), jnp.float32).at[:c].set(gamma.astype(jnp.float32))
    b = jnp.zeros((npad,), jnp.float32).at[:c].set(beta.astype(jnp.float32))
    scale = g * jax.lax.rsqrt(var + BN_EPS)
    shift = b - mean * scale
    return scale.reshape(1, npad), shift.reshape(1, npad)


# ------------------------------- conv glue --------------------------------
# TODO(synk): im2col patch extraction and the sub-pixel interleave are pure
# data movement and stay in plain JAX; the next structural step is fusing
# patch extraction into the matmul (tap-group grid axis + strided/Element
# index_map) so the im2col matrix never hits HBM.

def _im2col3d_cl(x, ksize, stride, padding):
    """x: (N, T, H, W, C) -> (N*To*Ho*Wo, kt*kh*kw*C), taps-major / C-minor."""
    kt, kh, kw = ksize
    st, sh, sw = stride
    (pt0, pt1), (ph0, ph1), (pw0, pw1) = padding
    x = jnp.pad(x, ((0, 0), (pt0, pt1), (ph0, ph1), (pw0, pw1), (0, 0)))
    n, t, h, w, c = x.shape
    to = (t - kt) // st + 1
    ho = (h - kh) // sh + 1
    wo = (w - kw) // sw + 1
    cols = []
    for dt in range(kt):
        for dy in range(kh):
            for dx in range(kw):
                cols.append(x[:, dt:dt + (to - 1) * st + 1:st,
                              dy:dy + (ho - 1) * sh + 1:sh,
                              dx:dx + (wo - 1) * sw + 1:sw, :])
    cols = jnp.stack(cols, axis=4)                    # (N, To, Ho, Wo, taps, C)
    return cols.reshape(n * to * ho * wo, kt * kh * kw * c), (to, ho, wo)


def _im2col2d_cl(x, ksize, stride, padding):
    """x: (N, H, W, C), padding = ((top, bot), (left, right))."""
    kh, kw = ksize
    sh, sw = stride
    (ph0, ph1), (pw0, pw1) = padding
    x = jnp.pad(x, ((0, 0), (ph0, ph1), (pw0, pw1), (0, 0)))
    n, h, w, c = x.shape
    ho = (h - kh) // sh + 1
    wo = (w - kw) // sw + 1
    cols = []
    for dy in range(kh):
        for dx in range(kw):
            cols.append(x[:, dy:dy + (ho - 1) * sh + 1:sh,
                          dx:dx + (wo - 1) * sw + 1:sw, :])
    cols = jnp.stack(cols, axis=3)                    # (N, Ho, Wo, taps, C)
    return cols.reshape(n * ho * wo, kh * kw * c), (ho, wo)


def _pad_operands(cols_list, wmat_list, tm):
    m, kdim = cols_list[0].shape
    cout = wmat_list[0].shape[1]
    Mp = _round_up(m, tm)
    Kp = _round_up(kdim, LANE)
    Np = _round_up(cout, LANE)
    a = jnp.stack([_pad2d(c, Mp, Kp, jnp.bfloat16) for c in cols_list])
    b = jnp.stack([_pad2d(w, Kp, Np, jnp.bfloat16) for w in wmat_list])
    return a, b


def _conv_core(cols, wmat, cout, act, bn, out_dtype):
    """Single-phase conv: matmul (+fused BN stats) + affine + act -> (M, cout)."""
    m = cols.shape[0]
    tm = _pick_tm(m)
    a, b = _pad_operands([cols], [wmat], tm)
    if bn is None:
        out = pallas_matmul_batched(a, b, tm=tm, act=act, out_dtype=out_dtype)
        return out[0, :m, :cout]
    # Encoder BN: stats fused into the matmul epilogue; intermediate kept in
    # bf16 (halves the HBM round trip vs. the previous f32 version).
    yp, s, sq = pallas_matmul_stats_batched(a, b, tm=tm, out_dtype=jnp.bfloat16)
    scale, shift = _bn_scale_shift(s, sq, m, *bn)
    out = pallas_affine_act_batched(yp, scale, shift, tm=tm, act=act,
                                    out_dtype=out_dtype)
    return out[0, :m, :cout]


def conv3d_cl(x, w, stride, padding, act="none", bn=None, out_dtype=jnp.bfloat16):
    """x: (N, T, H, W, Cin) channels-last; w: (Cout, Cin, kt, kh, kw). No bias."""
    n = x.shape[0]
    cout = w.shape[0]
    pt, ph, pw = padding
    cols, (to, ho, wo) = _im2col3d_cl(x, w.shape[2:], stride,
                                      ((pt, pt), (ph, ph), (pw, pw)))
    wmat = w.transpose(2, 3, 4, 1, 0).reshape(-1, cout)
    y = _conv_core(cols, wmat, cout, act, bn, out_dtype)
    return y.reshape(n, to, ho, wo, cout)


def conv2d_cl(x, w, stride, padding, act="none", bn=None, out_dtype=jnp.bfloat16):
    """x: (N, H, W, Cin); w: (Cout, Cin, kh, kw); padding=((top,bot),(l,r))."""
    n = x.shape[0]
    cout = w.shape[0]
    cols, (ho, wo) = _im2col2d_cl(x, w.shape[2:], (stride, stride), padding)
    wmat = w.transpose(2, 3, 1, 0).reshape(-1, cout)
    y = _conv_core(cols, wmat, cout, act, bn, out_dtype)
    return y.reshape(n, ho, wo, cout)


def _subpixel_phase(w, ry, rx, s, p):
    """Sub-kernel + asymmetric pads for output phase (ry, rx) of a stride-s
    ConvTranspose2d: each phase is an ordinary stride-1 conv on the raw input
    (no zero dilation, so no MXU MACs wasted on inserted zeros)."""
    def one(r, k):
        c = (r + p) % s
        d = (r + p) // s
        q = -(-(k - c) // s)                          # ceil((k - c) / s) taps
        taps = [s * (q - 1 - t) + c for t in range(q)]
        return taps, (q - 1 - d, d)                   # (pad_lo, pad_hi)

    ty, pads_y = one(ry, w.shape[2])
    tx, pads_x = one(rx, w.shape[3])
    w_sub = w[:, :, ty, :][:, :, :, tx].transpose(1, 0, 2, 3)   # (Cout,Cin,Qy,Qx)
    return w_sub, (pads_y, pads_x)


def conv_transpose2d_cl(x, w, stride, padding, act="none", bn=None,
                        out_dtype=jnp.bfloat16):
    """PyTorch ConvTranspose2d (bias=False), channels-last. w: (Cin,Cout,kh,kw).
    stride==1 -> flipped-kernel conv; stride==2 -> sub-pixel decomposition with
    all 4 output phases merged into single pallas_calls (grid axis P=4)."""
    # TODO(synk): assumes square kernels (true for this model).
    n = x.shape[0]
    cout = w.shape[1]
    k = w.shape[2]

    if stride == 1:
        w_conv = jnp.flip(w, axis=(2, 3)).transpose(1, 0, 2, 3)
        pad = k - 1 - padding
        return conv2d_cl(x, w_conv, 1, ((pad, pad), (pad, pad)), act, bn, out_dtype)

    assert stride == 2, "only stride 1 / 2 are used by this model"
    colss, wmats, dims = [], [], []
    for ry in range(stride):
        for rx in range(stride):
            w_sub, pads = _subpixel_phase(w, ry, rx, stride, padding)
            cols, (ho, wo) = _im2col2d_cl(x, w_sub.shape[2:], (1, 1), pads)
            colss.append(cols)
            wmats.append(w_sub.transpose(2, 3, 1, 0).reshape(-1, cout))
            dims.append((ho, wo))

    # For k=4 / s=2 / p=1 every phase has identical (M, K) and (ho, wo), which
    # is what lets us stack them on one "parallel" grid axis.
    assert all(c.shape == colss[0].shape for c in colss)
    assert all(d == dims[0] for d in dims)
    m = colss[0].shape[0]
    ho, wo = dims[0]

    tm = _pick_tm(m)
    a, b = _pad_operands(colss, wmats, tm)            # (4, Mp, Kp), (4, Kp, Np)

    if bn is None:
        out = pallas_matmul_batched(a, b, tm=tm, act=act, out_dtype=out_dtype)
    else:
        # Two-pass BN fusion: pass 1 emits only the tiny per-tile stats, pass 2
        # re-runs the (cheap, K<=256) matmul with scale/shift + act fused, so
        # the padded (Mp, Np) intermediate never touches HBM.
        s, sq = pallas_matmul_stats_only(a, b, tm=tm)
        scale, shift = _bn_scale_shift(s, sq, 4 * m, *bn)
        out = pallas_matmul_affine_batched(a, b, scale, shift, tm=tm, act=act,
                                           out_dtype=out_dtype)

    # Interleave the 2x2 output phases: y[:, 2i+ry, 2j+rx] = phase[ry][rx][i, j].
    # TODO(synk): could be consumed phase-wise by the next layer's im2col to
    # avoid this extra full-tensor pass.
    y = out[:, :m, :cout].reshape(2, 2, n, ho, wo, cout)
    y = jnp.transpose(y, (2, 3, 0, 4, 1, 5)).reshape(n, 2 * ho, 2 * wo, cout)
    return y


# ----------------------------- model / forward ----------------------------

def init_params(key, n_channels, dim_z, ngf):
    ks = jax.random.split(key, 10)

    def w(k, shape):
        return jax.random.normal(k, shape, jnp.float32) * 0.02

    params = dict(
        e1=w(ks[0], (ngf, n_channels, 3, 4, 4)),
        e2=w(ks[1], (ngf * 2, ngf, 3, 4, 4)),
        e3=w(ks[2], (ngf * 4, ngf * 2, 3, 4, 4)),
        e4=w(ks[3], (ngf * 8, ngf * 4, 3, 4, 4)),
        e5=w(ks[4], (dim_z, ngf * 8, 2, 4, 4)),
        d1=w(ks[5], (dim_z, ngf * 8, 4, 4)),
        d2=w(ks[6], (ngf * 8, ngf * 4, 4, 4)),
        d3=w(ks[7], (ngf * 4, ngf * 2, 4, 4)),
        d4=w(ks[8], (ngf * 2, ngf, 4, 4)),
        d5=w(ks[9], (ngf, n_channels, 4, 4)),
    )
    # BatchNorm affine params (PyTorch defaults: gamma=1, beta=0).
    for name, c in [("bn_e2", ngf * 2), ("bn_e3", ngf * 4), ("bn_e4", ngf * 8),
                    ("bn_d1", ngf * 8), ("bn_d2", ngf * 4), ("bn_d3", ngf * 2),
                    ("bn_d4", ngf)]:
        params[name] = (jnp.ones((c,), jnp.float32),
                        jnp.zeros((c,), jnp.float32))
    return params


def video_reconstructor_forward(params, x, dim_z):
    # NCDHW -> channels-last NDHWC, bf16 activations for the MXU.
    h = jnp.transpose(x, (0, 2, 3, 4, 1)).astype(jnp.bfloat16)
    # ---- encoder (Conv3d stack) ----
    h = conv3d_cl(h, params["e1"], (1, 2, 2), (0, 1, 1), act="leaky")
    h = conv3d_cl(h, params["e2"], (1, 2, 2), (0, 1, 1), act="leaky",
                  bn=params["bn_e2"])
    h = conv3d_cl(h, params["e3"], (1, 2, 2), (0, 1, 1), act="leaky",
                  bn=params["bn_e3"])
    h = conv3d_cl(h, params["e4"], (1, 2, 2), (0, 1, 1), act="leaky",
                  bn=params["bn_e4"])
    h = conv3d_cl(h, params["e5"], (1, 1, 1), (0, 0, 0), act="none")
    # h: (N, 1, 1, 1, dim_z) -> PyTorch h.view(-1, dim_z, 1, 1) == NHWC (N,1,1,dim_z)
    h = h.reshape(-1, 1, 1, dim_z)
    # ---- decoder (ConvTranspose2d stack) ----
    h = conv_transpose2d_cl(h, params["d1"], 1, 0, act="relu", bn=params["bn_d1"])
    h = conv_transpose2d_cl(h, params["d2"], 2, 1, act="relu", bn=params["bn_d2"])
    h = conv_transpose2d_cl(h, params["d3"], 2, 1, act="relu", bn=params["bn_d3"])
    h = conv_transpose2d_cl(h, params["d4"], 2, 1, act="relu", bn=params["bn_d4"])
    out = conv_transpose2d_cl(h, params["d5"], 2, 1, act="tanh",
                              out_dtype=jnp.float32)
    return jnp.transpose(out, (0, 3, 1, 2))           # NHWC -> NCHW, f32


if __name__ == "__main__":
    # Smallest shapes consistent with the architecture: four stride-2 spatial
    # halvings + final 4x4 valid conv require H = W = 64; the temporal kernels
    # (3,3,3,3,2 with no temporal padding) require video_len = 10.
    n_channels, video_len, dim_z, ngf = 3, 10, 16, 8
    batch, spatial = 2, 64

    key = jax.random.PRNGKey(0)
    kp, kx = jax.random.split(key)
    params = init_params(kp, n_channels, dim_z, ngf)
    x = jax.random.normal(kx, (batch, n_channels, video_len, spatial, spatial),
                          jnp.float32)

    fwd = jax.jit(functools.partial(video_reconstructor_forward, dim_z=dim_z))
    out = jax.block_until_ready(fwd(params, x))

    assert out.shape == (batch, n_channels, spatial, spatial), out.shape
    assert out.dtype == jnp.float32
    print("KERNEL_OK")
</pallas_src>

<mosaic_0001>
module attributes {stable_mosaic.version = 11 : i64} {
  func.func @_mm_kernel(%arg0: i32, %arg1: i32, %arg2: memref<1x512x256xbf16, #tpu.memory_space<vmem>>, %arg3: memref<1x256x128xbf16, #tpu.memory_space<vmem>>, %arg4: memref<1x512x128xbf16, #tpu.memory_space<vmem>>) attributes {dimension_semantics = [#tpu.dimension_semantics<parallel>, #tpu.dimension_semantics<parallel>], iteration_bounds = array<i64: 1, 32>, scalar_prefetch = 0 : i64, scratch_operands = 0 : i64, tpu.core_type = #tpu.core_type<tc>, window_params = [{transform_indices = @transform_0, window_bounds = array<i64: 1, 512, 256>}, {transform_indices = @transform_1, window_bounds = array<i64: 1, 256, 128>}, {transform_indices = @transform_2, window_bounds = array<i64: 1, 512, 128>}]} {
    %c0 = arith.constant 0 : index
    %c0_0 = arith.constant 0 : index
    %c0_1 = arith.constant 0 : index
    %0 = vector.load %arg2[%c0, %c0_0, %c0_1] : memref<1x512x256xbf16, #tpu.memory_space<vmem>>, vector<1x512x256xbf16>
    %1 = vector.shape_cast %0 : vector<1x512x256xbf16> to vector<512x256xbf16>
    %c0_2 = arith.constant 0 : index
    %c0_3 = arith.constant 0 : index
    %c0_4 = arith.constant 0 : index
    %2 = vector.load %arg3[%c0_2, %c0_3, %c0_4] : memref<1x256x128xbf16, #tpu.memory_space<vmem>>, vector<1x256x128xbf16>
    %3 = vector.shape_cast %2 : vector<1x256x128xbf16> to vector<256x128xbf16>
    %cst = arith.constant dense<0.000000e+00> : vector<512x128xf32>
    %4 = tpu.matmul %1, %3, %cst {dimension_numbers = #tpu.dot_dimension_numbers<[1], [0], [0], [1], [0, 0, 1, 1], [], []>} : vector<512x256xbf16>, vector<256x128xbf16>, vector<512x128xf32> -> vector<512x128xf32>
    %cst_5 = arith.constant 0.000000e+00 : f32
    %5 = vector.broadcast %cst_5 : f32 to vector<512x128xf32>
    %6 = arith.cmpf ogt, %4, %5 : vector<512x128xf32>
    %cst_6 = arith.constant 2.000000e-01 : f32
    %7 = vector.broadcast %cst_6 : f32 to vector<512x128xf32>
    %8 = arith.mulf %7, %4 : vector<512x128xf32>
    %9 = arith.select %6, %4, %8 : vector<512x128xi1>, vector<512x128xf32>
    %10 = arith.truncf %9 : vector<512x128xf32> to vector<512x128xbf16>
    %c0_7 = arith.constant 0 : index
    %c0_8 = arith.constant 0 : index
    %c0_9 = arith.constant 0 : index
    %11 = vector.load %arg4[%c0_7, %c0_8, %c0_9] : memref<1x512x128xbf16, #tpu.memory_space<vmem>>, vector<1x512x128xbf16>
    %12 = vector.shape_cast %11 : vector<1x512x128xbf16> to vector<512x128xbf16>
    %13 = vector.shape_cast %10 : vector<512x128xbf16> to vector<1x512x128xbf16>
    tpu.vector_store %arg4[%c0_7, %c0_8, %c0_9], %13 {strides = array<i32>} : memref<1x512x128xbf16, #tpu.memory_space<vmem>>, vector<1x512x128xbf16>,
    return
  }
  func.func @transform_0(%arg0: i32, %arg1: i32) -> (i32, i32, i32) {
    %c0_i32 = arith.constant 0 : i32
    %c0_i32_0 = arith.constant 0 : i32
    return %arg0, %arg1, %c0_i32 : i32, i32, i32
  }
  func.func @transform_1(%arg0: i32, %arg1: i32) -> (i32, i32, i32) {
    %c0_i32 = arith.constant 0 : i32
    %c0_i32_0 = arith.constant 0 : i32
    %c0_i32_1 = arith.constant 0 : i32
    return %arg0, %c0_i32, %c0_i32_0 : i32, i32, i32
  }
  func.func @transform_2(%arg0: i32, %arg1: i32) -> (i32, i32, i32) {
    %c0_i32 = arith.constant 0 : i32
    %c0_i32_0 = arith.constant 0 : i32
    return %arg0, %arg1, %c0_i32 : i32, i32, i32
  }
}

module attributes {stable_mosaic.version = 11 : i64} {
  func.func @_mm_stats_kernel(%arg0: i32, %arg1: i32, %arg2: memref<1x512x384xbf16, #tpu.memory_space<vmem>>, %arg3: memref<1x384x128xbf16, #tpu.memory_space<vmem>>, %arg4: memref<1x512x128xbf16, #tpu.memory_space<vmem>>, %arg5: memref<1x8x128xf32, #tpu.memory_space<vmem>>) attributes {dimension_semantics = [#tpu.dimension_semantics<parallel>, #tpu.dimension_semantics<parallel>], iteration_bounds = array<i64: 1, 6>, scalar_prefetch = 0 : i64, scratch_operands = 0 : i64, tpu.core_type = #tpu.core_type<tc>, window_params = [{transform_indices = @transform_0, window_bounds = array<i64: 1, 512, 384>}, {transform_indices = @transform_1, window_bounds = array<i64: 1, 384, 128>}, {transform_indices = @transform_2, window_bounds = array<i64: 1, 512, 128>}, {transform_indices = @transform_3, window_bounds = array<i64: 1, 8, 128>}]} {
    %c0 = arith.constant 0 : index
    %c0_0 = arith.constant 0 : index
    %c0_1 = arith.constant 0 : index
    %0 = vector.load %arg2[%c0, %c0_0, %c0_1] : memref<1x512x384xbf16, #tpu.memory_space<vmem>>, vector<1x512x384xbf16>
    %1 = vector.shape_cast %0 : vector<1x512x384xbf16> to vector<512x384xbf16>
    %c0_2 = arith.constant 0 : index
    %c0_3 = arith.constant 0 : index
    %c0_4 = arith.constant 0 : index
    %2 = vector.load %arg3[%c0_2, %c0_3, %c0_4] : memref<1x384x128xbf16, #tpu.memory_space<vmem>>, vector<1x384x128xbf16>
    %3 = vector.shape_cast %2 : vector<1x384x128xbf16> to vector<384x128xbf16>
    %cst = arith.constant dense<0.000000e+00> : vector<512x128xf32>
    %4 = tpu.matmul %1, %3, %cst {dimension_numbers = #tpu.dot_dimension_numbers<[1], [0], [0], [1], [0, 0, 1, 1], [], []>} : vector<512x384xbf16>, vector<384x128xbf16>, vector<512x128xf32> -> vector<512x128xf32>
    %5 = arith.truncf %4 : vector<512x128xf32> to vector<512x128xbf16>
    %c0_5 = arith.constant 0 : index
    %c0_6 = arith.constant 0 : index
    %c0_7 = arith.constant 0 : index
    %6 = vector.load %arg4[%c0_5, %c0_6, %c0_7] : memref<1x512x128xbf16, #tpu.memory_space<vmem>>, vector<1x512x128xbf16>
    %7 = vector.shape_cast %6 : vector<1x512x128xbf16> to vector<512x128xbf16>
    %8 = vector.shape_cast %5 : vector<512x128xbf16> to vector<1x512x128xbf16>
    tpu.vector_store %arg4[%c0_5, %c0_6, %c0_7], %8 {strides = array<i32>} : memref<1x512x128xbf16, #tpu.memory_space<vmem>>, vector<1x512x128xbf16>,
    %cst_8 = arith.constant dense<0.000000e+00> : vector<128xf32>
    %9 = vector.multi_reduction <add>, %4, %cst_8 [0] : vector<512x128xf32> to vector<128xf32>
    %10 = vector.shape_cast %9 : vector<128xf32> to vector<1x128xf32>
    %11 = arith.mulf %4, %4 : vector<512x128xf32>
    %cst_9 = arith.constant dense<0.000000e+00> : vector<128xf32>
    %12 = vector.multi_reduction <add>, %11, %cst_9 [0] : vector<512x128xf32> to vector<128xf32>
    %13 = vector.shape_cast %12 : vector<128xf32> to vector<1x128xf32>
    %14 = tpu.iota {dimensions = array<i32: 0>} : vector<8x128xi32>
    %c0_i32 = arith.constant 0 : i32
    %15 = vector.broadcast %c0_i32 : i32 to vector<8x128xi32>
    %16 = arith.cmpi eq, %14, %15 : vector<8x128xi32>
    %c1_i32 = arith.constant 1 : i32
    %17 = vector.broadcast %c1_i32 : i32 to vector<8x128xi32>
    %18 = arith.cmpi eq, %14, %17 : vector<8x128xi32>
    %cst_10 = arith.constant 0.000000e+00 : f32
    %19 = vector.shape_cast %13 : vector<1x128xf32> to vector<1x128xf32>
    %20 = vector.broadcast %19 : vector<1x128xf32> to vector<8x128xf32>
    %21 = vector.broadcast %cst_10 : f32 to vector<8x128xf32>
    %22 = arith.select %18, %20, %21 : vector<8x128xi1>, vector<8x128xf32>
    %23 = vector.shape_cast %10 : vector<1x128xf32> to vector<1x128xf32>
    %24 = vector.broadcast %23 : vector<1x128xf32> to vector<8x128xf32>
    %25 = arith.select %16, %24, %22 : vector<8x128xi1>, vector<8x128xf32>
    %c0_11 = arith.constant 0 : index
    %c0_12 = arith.constant 0 : index
    %c0_13 = arith.constant 0 : index
    %26 = vector.load %arg5[%c0_11, %c0_12, %c0_13] : memref<1x8x128xf32, #tpu.memory_space<vmem>>, vector<1x8x128xf32>
    %27 = vector.shape_cast %26 : vector<1x8x128xf32> to vector<8x128xf32>
    %28 = vector.shape_cast %25 : vector<8x128xf32> to vector<1x8x128xf32>
    tpu.vector_store %arg5[%c0_11, %c0_12, %c0_13], %28 {strides = array<i32>} : memref<1x8x128xf32, #tpu.memory_space<vmem>>, vector<1x8x128xf32>,
    return
  }
  func.func @transform_0(%arg0: i32, %arg1: i32) -> (i32, i32, i32) {
    %c0_i32 = arith.constant 0 : i32
    %c0_i32_0 = arith.constant 0 : i32
    return %arg0, %arg1, %c0_i32 : i32, i32, i32
  }
  func.func @transform_1(%arg0: i32, %arg1: i32) -> (i32, i32, i32) {
    %c0_i32 = arith.constant 0 : i32
    %c0_i32_0 = arith.constant 0 : i32
    %c0_i32_1 = arith.constant 0 : i32
    return %arg0, %c0_i32, %c0_i32_0 : i32, i32, i32
  }
  func.func @transform_2(%arg0: i32, %arg1: i32) -> (i32, i32, i32) {
    %c0_i32 = arith.constant 0 : i32
    %c0_i32_0 = arith.constant 0 : i32
    return %arg0, %arg1, %c0_i32 : i32, i32, i32
  }
  func.func @transform_3(%arg0: i32, %arg1: i32) -> (i32, i32, i32) {
    %c0_i32 = arith.constant 0 : i32
    %c0_i32_0 = arith.constant 0 : i32
    return %arg0, %arg1, %c0_i32 : i32, i32, i32
  }
}

module attributes {stable_mosaic.version = 11 : i64} {
  func.func @_affine_kernel(%arg0: i32, %arg1: i32, %arg2: memref<1x512x128xbf16, #tpu.memory_space<vmem>>, %arg3: memref<1x128xf32, #tpu.memory_space<vmem>>, %arg4: memref<1x128xf32, #tpu.memory_space<vmem>>, %arg5: memref<1x512x128xbf16, #tpu.memory_space<vmem>>) attributes {dimension_semantics = [#tpu.dimension_semantics<parallel>, #tpu.dimension_semantics<parallel>], iteration_bounds = array<i64: 1, 6>, scalar_prefetch = 0 : i64, scratch_operands = 0 : i64, tpu.core_type = #tpu.core_type<tc>, window_params = [{transform_indices = @transform_0, window_bounds = array<i64: 1, 512, 128>}, {pipeline_mode = #tpu.pipeline_mode<synchronous>, transform_indices = @transform_1, window_bounds = array<i64: 1, 128>}, {pipeline_mode = #tpu.pipeline_mode<synchronous>, transform_indices = @transform_2, window_bounds = array<i64: 1, 128>}, {transform_indices = @transform_3, window_bounds = array<i64: 1, 512, 128>}]} {
    %c0 = arith.constant 0 : index
    %c0_0 = arith.constant 0 : index
    %c0_1 = arith.constant 0 : index
    %0 = vector.load %arg2[%c0, %c0_0, %c0_1] : memref<1x512x128xbf16, #tpu.memory_space<vmem>>, vector<1x512x128xbf16>
    %1 = vector.shape_cast %0 : vector<1x512x128xbf16> to vector<512x128xbf16>
    %2 = arith.extf %1 : vector<512x128xbf16> to vector<512x128xf32>
    %c0_2 = arith.constant 0 : index
    %c0_3 = arith.constant 0 : index
    %3 = vector.load %arg3[%c0_2, %c0_3] : memref<1x128xf32, #tpu.memory_space<vmem>>, vector<1x128xf32>
    %4 = vector.broadcast %3 : vector<1x128xf32> to vector<512x128xf32>
    %5 = arith.mulf %2, %4 : vector<512x128xf32>
    %c0_4 = arith.constant 0 : index
    %c0_5 = arith.constant 0 : index
    %6 = vector.load %arg4[%c0_4, %c0_5] : memref<1x128xf32, #tpu.memory_space<vmem>>, vector<1x128xf32>
    %7 = vector.broadcast %6 : vector<1x128xf32> to vector<512x128xf32>
    %8 = arith.addf %5, %7 : vector<512x128xf32>
    %cst = arith.constant 0.000000e+00 : f32
    %9 = vector.broadcast %cst : f32 to vector<512x128xf32>
    %10 = arith.cmpf ogt, %8, %9 : vector<512x128xf32>
    %cst_6 = arith.constant 2.000000e-01 : f32
    %11 = vector.broadcast %cst_6 : f32 to vector<512x128xf32>
    %12 = arith.mulf %11, %8 : vector<512x128xf32>
    %13 = arith.select %10, %8, %12 : vector<512x128xi1>, vector<512x128xf32>
    %14 = arith.truncf %13 : vector<512x128xf32> to vector<512x128xbf16>
    %c0_7 = arith.constant 0 : index
    %c0_8 = arith.constant 0 : index
    %c0_9 = arith.constant 0 : index
    %15 = vector.load %arg5[%c0_7, %c0_8, %c0_9] : memref<1x512x128xbf16, #tpu.memory_space<vmem>>, vector<1x512x128xbf16>
    %16 = vector.shape_cast %15 : vector<1x512x128xbf16> to vector<512x128xbf16>
    %17 = vector.shape_cast %14 : vector<512x128xbf16> to vector<1x512x128xbf16>
    tpu.vector_store %arg5[%c0_7, %c0_8, %c0_9], %17 {strides = array<i32>} : memref<1x512x128xbf16, #tpu.memory_space<vmem>>, vector<1x512x128xbf16>,
    return
  }
  func.func @transform_0(%arg0: i32, %arg1: i32) -> (i32, i32, i32) {
    %c0_i32 = arith.constant 0 : i32
    %c0_i32_0 = arith.constant 0 : i32
    return %arg0, %arg1, %c0_i32 : i32, i32, i32
  }
  func.func @transform_1(%arg0: i32, %arg1: i32) -> (i32, i32) {
    %c0_i32 = arith.constant 0 : i32
    %c0_i32_0 = arith.constant 0 : i32
    %c0_i32_1 = arith.constant 0 : i32
    return %c0_i32, %c0_i32_0 : i32, i32
  }
  func.func @transform_2(%arg0: i32, %arg1: i32) -> (i32, i32) {
    %c0_i32 = arith.constant 0 : i32
    %c0_i32_0 = arith.constant 0 : i32
    %c0_i32_1 = arith.constant 0 : i32
    return %c0_i32, %c0_i32_0 : i32, i32
  }
  func.func @transform_3(%arg0: i32, %arg1: i32) -> (i32, i32, i32) {
    %c0_i32 = arith.constant 0 : i32
    %c0_i32_0 = arith.constant 0 : i32
    return %arg0, %arg1, %c0_i32 : i32, i32, i32
  }
}

module attributes {stable_mosaic.version = 11 : i64} {
  func.func @_mm_stats_kernel(%arg0: i32, %arg1: i32, %arg2: memref<1x256x768xbf16, #tpu.memory_space<vmem>>, %arg3: memref<1x768x128xbf16, #tpu.memory_space<vmem>>, %arg4: memref<1x256x128xbf16, #tpu.memory_space<vmem>>, %arg5: memref<1x8x128xf32, #tpu.memory_space<vmem>>) attributes {dimension_semantics = [#tpu.dimension_semantics<parallel>, #tpu.dimension_semantics<parallel>], iteration_bounds = array<i64: 1, 2>, scalar_prefetch = 0 : i64, scratch_operands = 0 : i64, tpu.core_type = #tpu.core_type<tc>, window_params = [{transform_indices = @transform_0, window_bounds = array<i64: 1, 256, 768>}, {transform_indices = @transform_1, window_bounds = array<i64: 1, 768, 128>}, {transform_indices = @transform_2, window_bounds = array<i64: 1, 256, 128>}, {transform_indices = @transform_3, window_bounds = array<i64: 1, 8, 128>}]} {
    %c0 = arith.constant 0 : index
    %c0_0 = arith.constant 0 : index
    %c0_1 = arith.constant 0 : index
    %0 = vector.load %arg2[%c0, %c0_0, %c0_1] : memref<1x256x768xbf16, #tpu.memory_space<vmem>>, vector<1x256x768xbf16>
    %1 = vector.shape_cast %0 : vector<1x256x768xbf16> to vector<256x768xbf16>
    %c0_2 = arith.constant 0 : index
    %c0_3 = arith.constant 0 : index
    %c0_4 = arith.constant 0 : index
    %2 = vector.load %arg3[%c0_2, %c0_3, %c0_4] : memref<1x768x128xbf16, #tpu.memory_space<vmem>>, vector<1x768x128xbf16>
    %3 = vector.shape_cast %2 : vector<1x768x128xbf16> to vector<768x128xbf16>
    %cst = arith.constant dense<0.000000e+00> : vector<256x128xf32>
    %4 = tpu.matmul %1, %3, %cst {dimension_numbers = #tpu.dot_dimension_numbers<[1], [0], [0], [1], [0, 0, 1, 1], [], []>} : vector<256x768xbf16>, vector<768x128xbf16>, vector<256x128xf32> -> vector<256x128xf32>
    %5 = arith.truncf %4 : vector<256x128xf32> to vector<256x128xbf16>
    %c0_5 = arith.constant 0 : index
    %c0_6 = arith.constant 0 : index
    %c0_7 = arith.constant 0 : index
    %6 = vector.load %arg4[%c0_5, %c0_6, %c0_7] : memref<1x256x128xbf16, #tpu.memory_space<vmem>>, vector<1x256x128xbf16>
    %7 = vector.shape_cast %6 : vector<1x256x128xbf16> to vector<256x128xbf16>
    %8 = vector.shape_cast %5 : vector<256x128xbf16> to vector<1x256x128xbf16>
    tpu.vector_store %arg4[%c0_5, %c0_6, %c0_7], %8 {strides = array<i32>} : memref<1x256x128xbf16, #tpu.memory_space<vmem>>, vector<1x256x128xbf16>,
    %cst_8 = arith.constant dense<0.000000e+00> : vector<128xf32>
    %9 = vector.multi_reduction <add>, %4, %cst_8 [0] : vector<256x128xf32> to vector<128xf32>
    %10 = vector.shape_cast %9 : vector<128xf32> to vector<1x128xf32>
    %11 = arith.mulf %4, %4 : vector<256x128xf32>
    %cst_9 = arith.constant dense<0.000000e+00> : vector<128xf32>
    %12 = vector.multi_reduction <add>, %11, %cst_9 [0] : vector<256x128xf32> to vector<128xf32>
    %13 = vector.shape_cast %12 : vector<128xf32> to vector<1x128xf32>
    %14 = tpu.iota {dimensions = array<i32: 0>} : vector<8x128xi32>
    %c0_i32 = arith.constant 0 : i32
    %15 = vector.broadcast %c0_i32 : i32 to vector<8x128xi32>
    %16 = arith.cmpi eq, %14, %15 : vector<8x128xi32>
    %c1_i32 = arith.constant 1 : i32
    %17 = vector.broadcast %c1_i32 : i32 to vector<8x128xi32>
    %18 = arith.cmpi eq, %14, %17 : vector<8x128xi32>
    %cst_10 = arith.constant 0.000000e+00 : f32
    %19 = vector.shape_cast %13 : vector<1x128xf32> to vector<1x128xf32>
    %20 = vector.broadcast %19 : vector<1x128xf32> to vector<8x128xf32>
    %21 = vector.broadcast %cst_10 : f32 to vector<8x128xf32>
    %22 = arith.select %18, %20, %21 : vector<8x128xi1>, vector<8x128xf32>
    %23 = vector.shape_cast %10 : vector<1x128xf32> to vector<1x128xf32>
    %24 = vector.broadcast %23 : vector<1x128xf32> to vector<8x128xf32>
    %25 = arith.select %16, %24, %22 : vector<8x128xi1>, vector<8x128xf32>
    %c0_11 = arith.constant 0 : index
    %c0_12 = arith.constant 0 : index
    %c0_13 = arith.constant 0 : index
    %26 = vector.load %arg5[%c0_11, %c0_12, %c0_13] : memref<1x8x128xf32, #tpu.memory_space<vmem>>, vector<1x8x128xf32>
    %27 = vector.shape_cast %26 : vector<1x8x128xf32> to vector<8x128xf32>
    %28 = vector.shape_cast %25 : vector<8x128xf32> to vector<1x8x128xf32>
    tpu.vector_store %arg5[%c0_11, %c0_12, %c0_13], %28 {strides = array<i32>} : memref<1x8x128xf32, #tpu.memory_space<vmem>>, vector<1x8x128xf32>,
    return
  }
  func.func @transform_0(%arg0: i32, %arg1: i32) -> (i32, i32, i32) {
    %c0_i32 = arith.constant 0 : i32
    %c0_i32_0 = arith.constant 0 : i32
    return %arg0, %arg1, %c0_i32 : i32, i32, i32
  }
  func.func @transform_1(%arg0: i32, %arg1: i32) -> (i32, i32, i32) {
    %c0_i32 = arith.constant 0 : i32
    %c0_i32_0 = arith.constant 0 : i32
    %c0_i32_1 = arith.constant 0 : i32
    return %arg0, %c0_i32, %c0_i32_0 : i32, i32, i32
  }
  func.func @transform_2(%arg0: i32, %arg1: i32) -> (i32, i32, i32) {
    %c0_i32 = arith.constant 0 : i32
    %c0_i32_0 = arith.constant 0 : i32
    return %arg0, %arg1, %c0_i32 : i32, i32, i32
  }
  func.func @transform_3(%arg0: i32, %arg1: i32) -> (i32, i32, i32) {
    %c0_i32 = arith.constant 0 : i32
    %c0_i32_0 = arith.constant 0 : i32
    return %arg0, %arg1, %c0_i32 : i32, i32, i32
  }
}

module attributes {stable_mosaic.version = 11 : i64} {
  func.func @_affine_kernel(%arg0: i32, %arg1: i32, %arg2: memref<1x256x128xbf16, #tpu.memory_space<vmem>>, %arg3: memref<1x128xf32, #tpu.memory_space<vmem>>, %arg4: memref<1x128xf32, #tpu.memory_space<vmem>>, %arg5: memref<1x256x128xbf16, #tpu.memory_space<vmem>>) attributes {dimension_semantics = [#tpu.dimension_semantics<parallel>, #tpu.dimension_semantics<parallel>], iteration_bounds = array<i64: 1, 2>, scalar_prefetch = 0 : i64, scratch_operands = 0 : i64, tpu.core_type = #tpu.core_type<tc>, window_params = [{transform_indices = @transform_0, window_bounds = array<i64: 1, 256, 128>}, {pipeline_mode = #tpu.pipeline_mode<synchronous>, transform_indices = @transform_1, window_bounds = array<i64: 1, 128>}, {pipeline_mode = #tpu.pipeline_mode<synchronous>, transform_indices = @transform_2, window_bounds = array<i64: 1, 128>}, {transform_indices = @transform_3, window_bounds = array<i64: 1, 256, 128>}]} {
    %c0 = arith.constant 0 : index
    %c0_0 = arith.constant 0 : index
    %c0_1 = arith.constant 0 : index
    %0 = vector.load %arg2[%c0, %c0_0, %c0_1] : memref<1x256x128xbf16, #tpu.memory_space<vmem>>, vector<1x256x128xbf16>
    %1 = vector.shape_cast %0 : vector<1x256x128xbf16> to vector<256x128xbf16>
    %2 = arith.extf %1 : vector<256x128xbf16> to vector<256x128xf32>
    %c0_2 = arith.constant 0 : index
    %c0_3 = arith.constant 0 : index
    %3 = vector.load %arg3[%c0_2, %c0_3] : memref<1x128xf32, #tpu.memory_space<vmem>>, vector<1x128xf32>
    %4 = vector.broadcast %3 : vector<1x128xf32> to vector<256x128xf32>
    %5 = arith.mulf %2, %4 : vector<256x128xf32>
    %c0_4 = arith.constant 0 : index
    %c0_5 = arith.constant 0 : index
    %6 = vector.load %arg4[%c0_4, %c0_5] : memref<1x128xf32, #tpu.memory_space<vmem>>, vector<1x128xf32>
    %7 = vector.broadcast %6 : vector<1x128xf32> to vector<256x128xf32>
    %8 = arith.addf %5, %7 : vector<256x128xf32>
    %cst = arith.constant 0.000000e+00 : f32
    %9 = vector.broadcast %cst : f32 to vector<256x128xf32>
    %10 = arith.cmpf ogt, %8, %9 : vector<256x128xf32>
    %cst_6 = arith.constant 2.000000e-01 : f32
    %11 = vector.broadcast %cst_6 : f32 to vector<256x128xf32>
    %12 = arith.mulf %11, %8 : vector<256x128xf32>
    %13 = arith.select %10, %8, %12 : vector<256x128xi1>, vector<256x128xf32>
    %14 = arith.truncf %13 : vector<256x128xf32> to vector<256x128xbf16>
    %c0_7 = arith.constant 0 : index
    %c0_8 = arith.constant 0 : index
    %c0_9 = arith.constant 0 : index
    %15 = vector.load %arg5[%c0_7, %c0_8, %c0_9] : memref<1x256x128xbf16, #tpu.memory_space<vmem>>, vector<1x256x128xbf16>
    %16 = vector.shape_cast %15 : vector<1x256x128xbf16> to vector<256x128xbf16>
    %17 = vector.shape_cast %14 : vector<256x128xbf16> to vector<1x256x128xbf16>
    tpu.vector_store %arg5[%c0_7, %c0_8, %c0_9], %17 {strides = array<i32>} : memref<1x256x128xbf16, #tpu.memory_space<vmem>>, vector<1x256x128xbf16>,
    return
  }
  func.func @transform_0(%arg0: i32, %arg1: i32) -> (i32, i32, i32) {
    %c0_i32 = arith.constant 0 : i32
    %c0_i32_0 = arith.constant 0 : i32
    return %arg0, %arg1, %c0_i32 : i32, i32, i32
  }
  func.func @transform_1(%arg0: i32, %arg1: i32) -> (i32, i32) {
    %c0_i32 = arith.constant 0 : i32
    %c0_i32_0 = arith.constant 0 : i32
    %c0_i32_1 = arith.constant 0 : i32
    return %c0_i32, %c0_i32_0 : i32, i32
  }
  func.func @transform_2(%arg0: i32, %arg1: i32) -> (i32, i32) {
    %c0_i32 = arith.constant 0 : i32
    %c0_i32_0 = arith.constant 0 : i32
    %c0_i32_1 = arith.constant 0 : i32
    return %c0_i32, %c0_i32_0 : i32, i32
  }
  func.func @transform_3(%arg0: i32, %arg1: i32) -> (i32, i32, i32) {
    %c0_i32 = arith.constant 0 : i32
    %c0_i32_0 = arith.constant 0 : i32
    return %arg0, %arg1, %c0_i32 : i32, i32, i32
  }
}

module attributes {stable_mosaic.version = 11 : i64} {
  func.func @_mm_stats_kernel(%arg0: i32, %arg1: i32, %arg2: memref<1x64x1536xbf16, #tpu.memory_space<vmem>>, %arg3: memref<1x1536x128xbf16, #tpu.memory_space<vmem>>, %arg4: memref<1x64x128xbf16, #tpu.memory_space<vmem>>, %arg5: memref<1x8x128xf32, #tpu.memory_space<vmem>>) attributes {dimension_semantics = [#tpu.dimension_semantics<parallel>, #tpu.dimension_semantics<parallel>], iteration_bounds = array<i64: 1, 1>, scalar_prefetch = 0 : i64, scratch_operands = 0 : i64, tpu.core_type = #tpu.core_type<tc>, window_params = [{transform_indices = @transform_0, window_bounds = array<i64: 1, 64, 1536>}, {transform_indices = @transform_1, window_bounds = array<i64: 1, 1536, 128>}, {transform_indices = @transform_2, window_bounds = array<i64: 1, 64, 128>}, {transform_indices = @transform_3, window_bounds = array<i64: 1, 8, 128>}]} {
    %c0 = arith.constant 0 : index
    %c0_0 = arith.constant 0 : index
    %c0_1 = arith.constant 0 : index
    %0 = vector.load %arg2[%c0, %c0_0, %c0_1] : memref<1x64x1536xbf16, #tpu.memory_space<vmem>>, vector<1x64x1536xbf16>
    %1 = vector.shape_cast %0 : vector<1x64x1536xbf16> to vector<64x1536xbf16>
    %c0_2 = arith.constant 0 : index
    %c0_3 = arith.constant 0 : index
    %c0_4 = arith.constant 0 : index
    %2 = vector.load %arg3[%c0_2, %c0_3, %c0_4] : memref<1x1536x128xbf16, #tpu.memory_space<vmem>>, vector<1x1536x128xbf16>
    %3 = vector.shape_cast %2 : vector<1x1536x128xbf16> to vector<1536x128xbf16>
    %cst = arith.constant dense<0.000000e+00> : vector<64x128xf32>
    %4 = tpu.matmul %1, %3, %cst {dimension_numbers = #tpu.dot_dimension_numbers<[1], [0], [0], [1], [0, 0, 1, 1], [], []>} : vector<64x1536xbf16>, vector<1536x128xbf16>, vector<64x128xf32> -> vector<64x128xf32>
    %5 = arith.truncf %4 : vector<64x128xf32> to vector<64x128xbf16>
    %c0_5 = arith.constant 0 : index
    %c0_6 = arith.constant 0 : index
    %c0_7 = arith.constant 0 : index
    %6 = vector.load %arg4[%c0_5, %c0_6, %c0_7] : memref<1x64x128xbf16, #tpu.memory_space<vmem>>, vector<1x64x128xbf16>
    %7 = vector.shape_cast %6 : vector<1x64x128xbf16> to vector<64x128xbf16>
    %8 = vector.shape_cast %5 : vector<64x128xbf16> to vector<1x64x128xbf16>
    tpu.vector_store %arg4[%c0_5, %c0_6, %c0_7], %8 {strides = array<i32>} : memref<1x64x128xbf16, #tpu.memory_space<vmem>>, vector<1x64x128xbf16>,
    %cst_8 = arith.constant dense<0.000000e+00> : vector<128xf32>
    %9 = vector.multi_reduction <add>, %4, %cst_8 [0] : vector<64x128xf32> to vector<128xf32>
    %10 = vector.shape_cast %9 : vector<128xf32> to vector<1x128xf32>
    %11 = arith.mulf %4, %4 : vector<64x128xf32>
    %cst_9 = arith.constant dense<0.000000e+00> : vector<128xf32>
    %12 = vector.multi_reduction <add>, %11, %cst_9 [0] : vector<64x128xf32> to vector<128xf32>
    %13 = vector.shape_cast %12 : vector<128xf32> to vector<1x128xf32>
    %14 = tpu.iota {dimensions = array<i32: 0>} : vector<8x128xi32>
    %c0_i32 = arith.constant 0 : i32
    %15 = vector.broadcast %c0_i32 : i32 to vector<8x128xi32>
    %16 = arith.cmpi eq, %14, %15 : vector<8x128xi32>
    %c1_i32 = arith.constant 1 : i32
    %17 = vector.broadcast %c1_i32 : i32 to vector<8x128xi32>
    %18 = arith.cmpi eq, %14, %17 : vector<8x128xi32>
    %cst_10 = arith.constant 0.000000e+00 : f32
    %19 = vector.shape_cast %13 : vector<1x128xf32> to vector<1x128xf32>
    %20 = vector.broadcast %19 : vector<1x128xf32> to vector<8x128xf32>
    %21 = vector.broadcast %cst_10 : f32 to vector<8x128xf32>
    %22 = arith.select %18, %20, %21 : vector<8x128xi1>, vector<8x128xf32>
    %23 = vector.shape_cast %10 : vector<1x128xf32> to vector<1x128xf32>
    %24 = vector.broadcast %23 : vector<1x128xf32> to vector<8x128xf32>
    %25 = arith.select %16, %24, %22 : vector<8x128xi1>, vector<8x128xf32>
    %c0_11 = arith.constant 0 : index
    %c0_12 = arith.constant 0 : index
    %c0_13 = arith.constant 0 : index
    %26 = vector.load %arg5[%c0_11, %c0_12, %c0_13] : memref<1x8x128xf32, #tpu.memory_space<vmem>>, vector<1x8x128xf32>
    %27 = vector.shape_cast %26 : vector<1x8x128xf32> to vector<8x128xf32>
    %28 = vector.shape_cast %25 : vector<8x128xf32> to vector<1x8x128xf32>
    tpu.vector_store %arg5[%c0_11, %c0_12, %c0_13], %28 {strides = array<i32>} : memref<1x8x128xf32, #tpu.memory_space<vmem>>, vector<1x8x128xf32>,
    return
  }
  func.func @transform_0(%arg0: i32, %arg1: i32) -> (i32, i32, i32) {
    %c0_i32 = arith.constant 0 : i32
    %c0_i32_0 = arith.constant 0 : i32
    return %arg0, %arg1, %c0_i32 : i32, i32, i32
  }
  func.func @transform_1(%arg0: i32, %arg1: i32) -> (i32, i32, i32) {
    %c0_i32 = arith.constant 0 : i32
    %c0_i32_0 = arith.constant 0 : i32
    %c0_i32_1 = arith.constant 0 : i32
    return %arg0, %c0_i32, %c0_i32_0 : i32, i32, i32
  }
  func.func @transform_2(%arg0: i32, %arg1: i32) -> (i32, i32, i32) {
    %c0_i32 = arith.constant 0 : i32
    %c0_i32_0 = arith.constant 0 : i32
    return %arg0, %arg1, %c0_i32 : i32, i32, i32
  }
  func.func @transform_3(%arg0: i32, %arg1: i32) -> (i32, i32, i32) {
    %c0_i32 = arith.constant 0 : i32
    %c0_i32_0 = arith.constant 0 : i32
    return %arg0, %arg1, %c0_i32 : i32, i32, i32
  }
}

module attributes {stable_mosaic.version = 11 : i64} {
  func.func @_affine_kernel(%arg0: i32, %arg1: i32, %arg2: memref<1x64x128xbf16, #tpu.memory_space<vmem>>, %arg3: memref<1x128xf32, #tpu.memory_space<vmem>>, %arg4: memref<1x128xf32, #tpu.memory_space<vmem>>, %arg5: memref<1x64x128xbf16, #tpu.memory_space<vmem>>) attributes {dimension_semantics = [#tpu.dimension_semantics<parallel>, #tpu.dimension_semantics<parallel>], iteration_bounds = array<i64: 1, 1>, scalar_prefetch = 0 : i64, scratch_operands = 0 : i64, tpu.core_type = #tpu.core_type<tc>, window_params = [{transform_indices = @transform_0, window_bounds = array<i64: 1, 64, 128>}, {pipeline_mode = #tpu.pipeline_mode<synchronous>, transform_indices = @transform_1, window_bounds = array<i64: 1, 128>}, {pipeline_mode = #tpu.pipeline_mode<synchronous>, transform_indices = @transform_2, window_bounds = array<i64: 1, 128>}, {transform_indices = @transform_3, window_bounds = array<i64: 1, 64, 128>}]} {
    %c0 = arith.constant 0 : index
    %c0_0 = arith.constant 0 : index
    %c0_1 = arith.constant 0 : index
    %0 = vector.load %arg2[%c0, %c0_0, %c0_1] : memref<1x64x128xbf16, #tpu.memory_space<vmem>>, vector<1x64x128xbf16>
    %1 = vector.shape_cast %0 : vector<1x64x128xbf16> to vector<64x128xbf16>
    %2 = arith.extf %1 : vector<64x128xbf16> to vector<64x128xf32>
    %c0_2 = arith.constant 0 : index
    %c0_3 = arith.constant 0 : index
    %3 = vector.load %arg3[%c0_2, %c0_3] : memref<1x128xf32, #tpu.memory_space<vmem>>, vector<1x128xf32>
    %4 = vector.broadcast %3 : vector<1x128xf32> to vector<64x128xf32>
    %5 = arith.mulf %2, %4 : vector<64x128xf32>
    %c0_4 = arith.constant 0 : index
    %c0_5 = arith.constant 0 : index
    %6 = vector.load %arg4[%c0_4, %c0_5] : memref<1x128xf32, #tpu.memory_space<vmem>>, vector<1x128xf32>
    %7 = vector.broadcast %6 : vector<1x128xf32> to vector<64x128xf32>
    %8 = arith.addf %5, %7 : vector<64x128xf32>
    %cst = arith.constant 0.000000e+00 : f32
    %9 = vector.broadcast %cst : f32 to vector<64x128xf32>
    %10 = arith.cmpf ogt, %8, %9 : vector<64x128xf32>
    %cst_6 = arith.constant 2.000000e-01 : f32
    %11 = vector.broadcast %cst_6 : f32 to vector<64x128xf32>
    %12 = arith.mulf %11, %8 : vector<64x128xf32>
    %13 = arith.select %10, %8, %12 : vector<64x128xi1>, vector<64x128xf32>
    %14 = arith.truncf %13 : vector<64x128xf32> to vector<64x128xbf16>
    %c0_7 = arith.constant 0 : index
    %c0_8 = arith.constant 0 : index
    %c0_9 = arith.constant 0 : index
    %15 = vector.load %arg5[%c0_7, %c0_8, %c0_9] : memref<1x64x128xbf16, #tpu.memory_space<vmem>>, vector<1x64x128xbf16>
    %16 = vector.shape_cast %15 : vector<1x64x128xbf16> to vector<64x128xbf16>
    %17 = vector.shape_cast %14 : vector<64x128xbf16> to vector<1x64x128xbf16>
    tpu.vector_store %arg5[%c0_7, %c0_8, %c0_9], %17 {strides = array<i32>} : memref<1x64x128xbf16, #tpu.memory_space<vmem>>, vector<1x64x128xbf16>,
    return
  }
  func.func @transform_0(%arg0: i32, %arg1: i32) -> (i32, i32, i32) {
    %c0_i32 = arith.constant 0 : i32
    %c0_i32_0 = arith.constant 0 : i32
    return %arg0, %arg1, %c0_i32 : i32, i32, i32
  }
  func.func @transform_1(%arg0: i32, %arg1: i32) -> (i32, i32) {
    %c0_i32 = arith.constant 0 : i32
    %c0_i32_0 = arith.constant 0 : i32
    %c0_i32_1 = arith.constant 0 : i32
    return %c0_i32, %c0_i32_0 : i32, i32
  }
  func.func @transform_2(%arg0: i32, %arg1: i32) -> (i32, i32) {
    %c0_i32 = arith.constant 0 : i32
    %c0_i32_0 = arith.constant 0 : i32
    %c0_i32_1 = arith.constant 0 : i32
    return %c0_i32, %c0_i32_0 : i32, i32
  }
  func.func @transform_3(%arg0: i32, %arg1: i32) -> (i32, i32, i32) {
    %c0_i32 = arith.constant 0 : i32
    %c0_i32_0 = arith.constant 0 : i32
    return %arg0, %arg1, %c0_i32 : i32, i32, i32
  }
}

module attributes {stable_mosaic.version = 11 : i64} {
  func.func @_mm_kernel(%arg0: i32, %arg1: i32, %arg2: memref<1x16x2048xbf16, #tpu.memory_space<vmem>>, %arg3: memref<1x2048x128xbf16, #tpu.memory_space<vmem>>, %arg4: memref<1x16x128xbf16, #tpu.memory_space<vmem>>) attributes {dimension_semantics = [#tpu.dimension_semantics<parallel>, #tpu.dimension_semantics<parallel>], iteration_bounds = array<i64: 1, 1>, scalar_prefetch = 0 : i64, scratch_operands = 0 : i64, tpu.core_type = #tpu.core_type<tc>, window_params = [{transform_indices = @transform_0, window_bounds = array<i64: 1, 16, 2048>}, {transform_indices = @transform_1, window_bounds = array<i64: 1, 2048, 128>}, {transform_indices = @transform_2, window_bounds = array<i64: 1, 16, 128>}]} {
    %c0 = arith.constant 0 : index
    %c0_0 = arith.constant 0 : index
    %c0_1 = arith.constant 0 : index
    %0 = vector.load %arg2[%c0, %c0_0, %c0_1] : memref<1x16x2048xbf16, #tpu.memory_space<vmem>>, vector<1x16x2048xbf16>
    %1 = vector.shape_cast %0 : vector<1x16x2048xbf16> to vector<16x2048xbf16>
    %c0_2 = arith.constant 0 : index
    %c0_3 = arith.constant 0 : index
    %c0_4 = arith.constant 0 : index
    %2 = vector.load %arg3[%c0_2, %c0_3, %c0_4] : memref<1x2048x128xbf16, #tpu.memory_space<vmem>>, vector<1x2048x128xbf16>
    %3 = vector.shape_cast %2 : vector<1x2048x128xbf16> to vector<2048x128xbf16>
    %cst = arith.constant dense<0.000000e+00> : vector<16x128xf32>
    %4 = tpu.matmul %1, %3, %cst {dimension_numbers = #tpu.dot_dimension_numbers<[1], [0], [0], [1], [0, 0, 1, 1], [], []>} : vector<16x2048xbf16>, vector<2048x128xbf16>, vector<16x128xf32> -> vector<16x128xf32>
    %5 = arith.truncf %4 : vector<16x128xf32> to vector<16x128xbf16>
    %c0_5 = arith.constant 0 : index
    %c0_6 = arith.constant 0 : index
    %c0_7 = arith.constant 0 : index
    %6 = vector.load %arg4[%c0_5, %c0_6, %c0_7] : memref<1x16x128xbf16, #tpu.memory_space<vmem>>, vector<1x16x128xbf16>
    %7 = vector.shape_cast %6 : vector<1x16x128xbf16> to vector<16x128xbf16>
    %8 = vector.shape_cast %5 : vector<16x128xbf16> to vector<1x16x128xbf16>
    tpu.vector_store %arg4[%c0_5, %c0_6, %c0_7], %8 {strides = array<i32>} : memref<1x16x128xbf16, #tpu.memory_space<vmem>>, vector<1x16x128xbf16>,
    return
  }
  func.func @transform_0(%arg0: i32, %arg1: i32) -> (i32, i32, i32) {
    %c0_i32 = arith.constant 0 : i32
    %c0_i32_0 = arith.constant 0 : i32
    return %arg0, %arg1, %c0_i32 : i32, i32, i32
  }
  func.func @transform_1(%arg0: i32, %arg1: i32) -> (i32, i32, i32) {
    %c0_i32 = arith.constant 0 : i32
    %c0_i32_0 = arith.constant 0 : i32
    %c0_i32_1 = arith.constant 0 : i32
    return %arg0, %c0_i32, %c0_i32_0 : i32, i32, i32
  }
  func.func @transform_2(%arg0: i32, %arg1: i32) -> (i32, i32, i32) {
    %c0_i32 = arith.constant 0 : i32
    %c0_i32_0 = arith.constant 0 : i32
    return %arg0, %arg1, %c0_i32 : i32, i32, i32
  }
}

module attributes {stable_mosaic.version = 11 : i64} {
  func.func @_mm_stats_kernel(%arg0: i32, %arg1: i32, %arg2: memref<1x32x256xbf16, #tpu.memory_space<vmem>>, %arg3: memref<1x256x128xbf16, #tpu.memory_space<vmem>>, %arg4: memref<1x32x128xbf16, #tpu.memory_space<vmem>>, %arg5: memref<1x8x128xf32, #tpu.memory_space<vmem>>) attributes {dimension_semantics = [#tpu.dimension_semantics<parallel>, #tpu.dimension_semantics<parallel>], iteration_bounds = array<i64: 1, 1>, scalar_prefetch = 0 : i64, scratch_operands = 0 : i64, tpu.core_type = #tpu.core_type<tc>, window_params = [{transform_indices = @transform_0, window_bounds = array<i64: 1, 32, 256>}, {transform_indices = @transform_1, window_bounds = array<i64: 1, 256, 128>}, {transform_indices = @transform_2, window_bounds = array<i64: 1, 32, 128>}, {transform_indices = @transform_3, window_bounds = array<i64: 1, 8, 128>}]} {
    %c0 = arith.constant 0 : index
    %c0_0 = arith.constant 0 : index
    %c0_1 = arith.constant 0 : index
    %0 = vector.load %arg2[%c0, %c0_0, %c0_1] : memref<1x32x256xbf16, #tpu.memory_space<vmem>>, vector<1x32x256xbf16>
    %1 = vector.shape_cast %0 : vector<1x32x256xbf16> to vector<32x256xbf16>
    %c0_2 = arith.constant 0 : index
    %c0_3 = arith.constant 0 : index
    %c0_4 = arith.constant 0 : index
    %2 = vector.load %arg3[%c0_2, %c0_3, %c0_4] : memref<1x256x128xbf16, #tpu.memory_space<vmem>>, vector<1x256x128xbf16>
    %3 = vector.shape_cast %2 : vector<1x256x128xbf16> to vector<256x128xbf16>
    %cst = arith.constant dense<0.000000e+00> : vector<32x128xf32>
    %4 = tpu.matmul %1, %3, %cst {dimension_numbers = #tpu.dot_dimension_numbers<[1], [0], [0], [1], [0, 0, 1, 1], [], []>} : vector<32x256xbf16>, vector<256x128xbf16>, vector<32x128xf32> -> vector<32x128xf32>
    %5 = arith.truncf %4 : vector<32x128xf32> to vector<32x128xbf16>
    %c0_5 = arith.constant 0 : index
    %c0_6 = arith.constant 0 : index
    %c0_7 = arith.constant 0 : index
    %6 = vector.load %arg4[%c0_5, %c0_6, %c0_7] : memref<1x32x128xbf16, #tpu.memory_space<vmem>>, vector<1x32x128xbf16>
    %7 = vector.shape_cast %6 : vector<1x32x128xbf16> to vector<32x128xbf16>
    %8 = vector.shape_cast %5 : vector<32x128xbf16> to vector<1x32x128xbf16>
    tpu.vector_store %arg4[%c0_5, %c0_6, %c0_7], %8 {strides = array<i32>} : memref<1x32x128xbf16, #tpu.memory_space<vmem>>, vector<1x32x128xbf16>,
    %cst_8 = arith.constant dense<0.000000e+00> : vector<128xf32>
    %9 = vector.multi_reduction <add>, %4, %cst_8 [0] : vector<32x128xf32> to vector<128xf32>
    %10 = vector.shape_cast %9 : vector<128xf32> to vector<1x128xf32>
    %11 = arith.mulf %4, %4 : vector<32x128xf32>
    %cst_9 = arith.constant dense<0.000000e+00> : vector<128xf32>
    %12 = vector.multi_reduction <add>, %11, %cst_9 [0] : vector<32x128xf32> to vector<128xf32>
    %13 = vector.shape_cast %12 : vector<128xf32> to vector<1x128xf32>
    %14 = tpu.iota {dimensions = array<i32: 0>} : vector<8x128xi32>
    %c0_i32 = arith.constant 0 : i32
    %15 = vector.broadcast %c0_i32 : i32 to vector<8x128xi32>
    %16 = arith.cmpi eq, %14, %15 : vector<8x128xi32>
    %c1_i32 = arith.constant 1 : i32
    %17 = vector.broadcast %c1_i32 : i32 to vector<8x128xi32>
    %18 = arith.cmpi eq, %14, %17 : vector<8x128xi32>
    %cst_10 = arith.constant 0.000000e+00 : f32
    %19 = vector.shape_cast %13 : vector<1x128xf32> to vector<1x128xf32>
    %20 = vector.broadcast %19 : vector<1x128xf32> to vector<8x128xf32>
    %21 = vector.broadcast %cst_10 : f32 to vector<8x128xf32>
    %22 = arith.select %18, %20, %21 : vector<8x128xi1>, vector<8x128xf32>
    %23 = vector.shape_cast %10 : vector<1x128xf32> to vector<1x128xf32>
    %24 = vector.broadcast %23 : vector<1x128xf32> to vector<8x128xf32>
    %25 = arith.select %16, %24, %22 : vector<8x128xi1>, vector<8x128xf32>
    %c0_11 = arith.constant 0 : index
    %c0_12 = arith.constant 0 : index
    %c0_13 = arith.constant 0 : index
    %26 = vector.load %arg5[%c0_11, %c0_12, %c0_13] : memref<1x8x128xf32, #tpu.memory_space<vmem>>, vector<1x8x128xf32>
    %27 = vector.shape_cast %26 : vector<1x8x128xf32> to vector<8x128xf32>
    %28 = vector.shape_cast %25 : vector<8x128xf32> to vector<1x8x128xf32>
    tpu.vector_store %arg5[%c0_11, %c0_12, %c0_13], %28 {strides = array<i32>} : memref<1x8x128xf32, #tpu.memory_space<vmem>>, vector<1x8x128xf32>,
    return
  }
  func.func @transform_0(%arg0: i32, %arg1: i32) -> (i32, i32, i32) {
    %c0_i32 = arith.constant 0 : i32
    %c0_i32_0 = arith.constant 0 : i32
    return %arg0, %arg1, %c0_i32 : i32, i32, i32
  }
  func.func @transform_1(%arg0: i32, %arg1: i32) -> (i32, i32, i32) {
    %c0_i32 = arith.constant 0 : i32
    %c0_i32_0 = arith.constant 0 : i32
    %c0_i32_1 = arith.constant 0 : i32
    return %arg0, %c0_i32, %c0_i32_0 : i32, i32, i32
  }
  func.func @transform_2(%arg0: i32, %arg1: i32) -> (i32, i32, i32) {
    %c0_i32 = arith.constant 0 : i32
    %c0_i32_0 = arith.constant 0 : i32
    return %arg0, %arg1, %c0_i32 : i32, i32, i32
  }
  func.func @transform_3(%arg0: i32, %arg1: i32) -> (i32, i32, i32) {
    %c0_i32 = arith.constant 0 : i32
    %c0_i32_0 = arith.constant 0 : i32
    return %arg0, %arg1, %c0_i32 : i32, i32, i32
  }
}

module attributes {stable_mosaic.version = 11 : i64} {
  func.func @_affine_kernel(%arg0: i32, %arg1: i32, %arg2: memref<1x32x128xbf16, #tpu.memory_space<vmem>>, %arg3: memref<1x128xf32, #tpu.memory_space<vmem>>, %arg4: memref<1x128xf32, #tpu.memory_space<vmem>>, %arg5: memref<1x32x128xbf16, #tpu.memory_space<vmem>>) attributes {dimension_semantics = [#tpu.dimension_semantics<parallel>, #tpu.dimension_semantics<parallel>], iteration_bounds = array<i64: 1, 1>, scalar_prefetch = 0 : i64, scratch_operands = 0 : i64, tpu.core_type = #tpu.core_type<tc>, window_params = [{transform_indices = @transform_0, window_bounds = array<i64: 1, 32, 128>}, {pipeline_mode = #tpu.pipeline_mode<synchronous>, transform_indices = @transform_1, window_bounds = array<i64: 1, 128>}, {pipeline_mode = #tpu.pipeline_mode<synchronous>, transform_indices = @transform_2, window_bounds = array<i64: 1, 128>}, {transform_indices = @transform_3, window_bounds = array<i64: 1, 32, 128>}]} {
    %c0 = arith.constant 0 : index
    %c0_0 = arith.constant 0 : index
    %c0_1 = arith.constant 0 : index
    %0 = vector.load %arg2[%c0, %c0_0, %c0_1] : memref<1x32x128xbf16, #tpu.memory_space<vmem>>, vector<1x32x128xbf16>
    %1 = vector.shape_cast %0 : vector<1x32x128xbf16> to vector<32x128xbf16>
    %2 = arith.extf %1 : vector<32x128xbf16> to vector<32x128xf32>
    %c0_2 = arith.constant 0 : index
    %c0_3 = arith.constant 0 : index
    %3 = vector.load %arg3[%c0_2, %c0_3] : memref<1x128xf32, #tpu.memory_space<vmem>>, vector<1x128xf32>
    %4 = vector.broadcast %3 : vector<1x128xf32> to vector<32x128xf32>
    %5 = arith.mulf %2, %4 : vector<32x128xf32>
    %c0_4 = arith.constant 0 : index
    %c0_5 = arith.constant 0 : index
    %6 = vector.load %arg4[%c0_4, %c0_5] : memref<1x128xf32, #tpu.memory_space<vmem>>, vector<1x128xf32>
    %7 = vector.broadcast %6 : vector<1x128xf32> to vector<32x128xf32>
    %8 = arith.addf %5, %7 : vector<32x128xf32>
    %cst = arith.constant 0.000000e+00 : f32
    %9 = vector.broadcast %cst : f32 to vector<32x128xf32>
    %10 = arith.maximumf %8, %9 : vector<32x128xf32>
    %11 = arith.truncf %10 : vector<32x128xf32> to vector<32x128xbf16>
    %c0_6 = arith.constant 0 : index
    %c0_7 = arith.constant 0 : index
    %c0_8 = arith.constant 0 : index
    %12 = vector.load %arg5[%c0_6, %c0_7, %c0_8] : memref<1x32x128xbf16, #tpu.memory_space<vmem>>, vector<1x32x128xbf16>
    %13 = vector.shape_cast %12 : vector<1x32x128xbf16> to vector<32x128xbf16>
    %14 = vector.shape_cast %11 : vector<32x128xbf16> to vector<1x32x128xbf16>
    tpu.vector_store %arg5[%c0_6, %c0_7, %c0_8], %14 {strides = array<i32>} : memref<1x32x128xbf16, #tpu.memory_space<vmem>>, vector<1x32x128xbf16>,
    return
  }
  func.func @transform_0(%arg0: i32, %arg1: i32) -> (i32, i32, i32) {
    %c0_i32 = arith.constant 0 : i32
    %c0_i32_0 = arith.constant 0 : i32
    return %arg0, %arg1, %c0_i32 : i32, i32, i32
  }
  func.func @transform_1(%arg0: i32, %arg1: i32) -> (i32, i32) {
    %c0_i32 = arith.constant 0 : i32
    %c0_i32_0 = arith.constant 0 : i32
    %c0_i32_1 = arith.constant 0 : i32
    return %c0_i32, %c0_i32_0 : i32, i32
  }
  func.func @transform_2(%arg0: i32, %arg1: i32) -> (i32, i32) {
    %c0_i32 = arith.constant 0 : i32
    %c0_i32_0 = arith.constant 0 : i32
    %c0_i32_1 = arith.constant 0 : i32
    return %c0_i32, %c0_i32_0 : i32, i32
  }
  func.func @transform_3(%arg0: i32, %arg1: i32) -> (i32, i32, i32) {
    %c0_i32 = arith.constant 0 : i32
    %c0_i32_0 = arith.constant 0 : i32
    return %arg0, %arg1, %c0_i32 : i32, i32, i32
  }
}

module attributes {stable_mosaic.version = 11 : i64} {
  func.func @_stats_only_kernel(%arg0: i32, %arg1: i32, %arg2: memref<1x32x256xbf16, #tpu.memory_space<vmem>>, %arg3: memref<1x256x128xbf16, #tpu.memory_space<vmem>>, %arg4: memref<1x8x128xf32, #tpu.memory_space<vmem>>) attributes {dimension_semantics = [#tpu.dimension_semantics<parallel>, #tpu.dimension_semantics<parallel>], iteration_bounds = array<i64: 4, 1>, scalar_prefetch = 0 : i64, scratch_operands = 0 : i64, tpu.core_type = #tpu.core_type<tc>, window_params = [{transform_indices = @transform_0, window_bounds = array<i64: 1, 32, 256>}, {transform_indices = @transform_1, window_bounds = array<i64: 1, 256, 128>}, {transform_indices = @transform_2, window_bounds = array<i64: 1, 8, 128>}]} {
    %c0 = arith.constant 0 : index
    %c0_0 = arith.constant 0 : index
    %c0_1 = arith.constant 0 : index
    %0 = vector.load %arg2[%c0, %c0_0, %c0_1] : memref<1x32x256xbf16, #tpu.memory_space<vmem>>, vector<1x32x256xbf16>
    %1 = vector.shape_cast %0 : vector<1x32x256xbf16> to vector<32x256xbf16>
    %c0_2 = arith.constant 0 : index
    %c0_3 = arith.constant 0 : index
    %c0_4 = arith.constant 0 : index
    %2 = vector.load %arg3[%c0_2, %c0_3, %c0_4] : memref<1x256x128xbf16, #tpu.memory_space<vmem>>, vector<1x256x128xbf16>
    %3 = vector.shape_cast %2 : vector<1x256x128xbf16> to vector<256x128xbf16>
    %cst = arith.constant dense<0.000000e+00> : vector<32x128xf32>
    %4 = tpu.matmul %1, %3, %cst {dimension_numbers = #tpu.dot_dimension_numbers<[1], [0], [0], [1], [0, 0, 1, 1], [], []>} : vector<32x256xbf16>, vector<256x128xbf16>, vector<32x128xf32> -> vector<32x128xf32>
    %cst_5 = arith.constant dense<0.000000e+00> : vector<128xf32>
    %5 = vector.multi_reduction <add>, %4, %cst_5 [0] : vector<32x128xf32> to vector<128xf32>
    %6 = vector.shape_cast %5 : vector<128xf32> to vector<1x128xf32>
    %7 = arith.mulf %4, %4 : vector<32x128xf32>
    %cst_6 = arith.constant dense<0.000000e+00> : vector<128xf32>
    %8 = vector.multi_reduction <add>, %7, %cst_6 [0] : vector<32x128xf32> to vector<128xf32>
    %9 = vector.shape_cast %8 : vector<128xf32> to vector<1x128xf32>
    %10 = tpu.iota {dimensions = array<i32: 0>} : vector<8x128xi32>
    %c0_i32 = arith.constant 0 : i32
    %11 = vector.broadcast %c0_i32 : i32 to vector<8x128xi32>
    %12 = arith.cmpi eq, %10, %11 : vector<8x128xi32>
    %c1_i32 = arith.constant 1 : i32
    %13 = vector.broadcast %c1_i32 : i32 to vector<8x128xi32>
    %14 = arith.cmpi eq, %10, %13 : vector<8x128xi32>
    %cst_7 = arith.constant 0.000000e+00 : f32
    %15 = vector.shape_cast %9 : vector<1x128xf32> to vector<1x128xf32>
    %16 = vector.broadcast %15 : vector<1x128xf32> to vector<8x128xf32>
    %17 = vector.broadcast %cst_7 : f32 to vector<8x128xf32>
    %18 = arith.select %14, %16, %17 : vector<8x128xi1>, vector<8x128xf32>
    %19 = vector.shape_cast %6 : vector<1x128xf32> to vector<1x128xf32>
    %20 = vector.broadcast %19 : vector<1x128xf32> to vector<8x128xf32>
    %21 = arith.select %12, %20, %18 : vector<8x128xi1>, vector<8x128xf32>
    %c0_8 = arith.constant 0 : index
    %c0_9 = arith.constant 0 : index
    %c0_10 = arith.constant 0 : index
    %22 = vector.load %arg4[%c0_8, %c0_9, %c0_10] : memref<1x8x128xf32, #tpu.memory_space<vmem>>, vector<1x8x128xf32>
    %23 = vector.shape_cast %22 : vector<1x8x128xf32> to vector<8x128xf32>
    %24 = vector.shape_cast %21 : vector<8x128xf32> to vector<1x8x128xf32>
    tpu.vector_store %arg4[%c0_8, %c0_9, %c0_10], %24 {strides = array<i32>} : memref<1x8x128xf32, #tpu.memory_space<vmem>>, vector<1x8x128xf32>,
    return
  }
  func.func @transform_0(%arg0: i32, %arg1: i32) -> (i32, i32, i32) {
    %c0_i32 = arith.constant 0 : i32
    %c0_i32_0 = arith.constant 0 : i32
    return %arg0, %arg1, %c0_i32 : i32, i32, i32
  }
  func.func @transform_1(%arg0: i32, %arg1: i32) -> (i32, i32, i32) {
    %c0_i32 = arith.constant 0 : i32
    %c0_i32_0 = arith.constant 0 : i32
    %c0_i32_1 = arith.constant 0 : i32
    return %arg0, %c0_i32, %c0_i32_0 : i32, i32, i32
  }
  func.func @transform_2(%arg0: i32, %arg1: i32) -> (i32, i32, i32) {
    %c0_i32 = arith.constant 0 : i32
    %c0_i32_0 = arith.constant 0 : i32
    return %arg0, %arg1, %c0_i32 : i32, i32, i32
  }
}

module attributes {stable_mosaic.version = 11 : i64} {
  func.func @_mm_affine_kernel(%arg0: i32, %arg1: i32, %arg2: memref<1x32x256xbf16, #tpu.memory_space<vmem>>, %arg3: memref<1x256x128xbf16, #tpu.memory_space<vmem>>, %arg4: memref<1x128xf32, #tpu.memory_space<vmem>>, %arg5: memref<1x128xf32, #tpu.memory_space<vmem>>, %arg6: memref<1x32x128xbf16, #tpu.memory_space<vmem>>) attributes {dimension_semantics = [#tpu.dimension_semantics<parallel>, #tpu.dimension_semantics<parallel>], iteration_bounds = array<i64: 4, 1>, scalar_prefetch = 0 : i64, scratch_operands = 0 : i64, tpu.core_type = #tpu.core_type<tc>, window_params = [{transform_indices = @transform_0, window_bounds = array<i64: 1, 32, 256>}, {transform_indices = @transform_1, window_bounds = array<i64: 1, 256, 128>}, {pipeline_mode = #tpu.pipeline_mode<synchronous>, transform_indices = @transform_2, window_bounds = array<i64: 1, 128>}, {pipeline_mode = #tpu.pipeline_mode<synchronous>, transform_indices = @transform_3, window_bounds = array<i64: 1, 128>}, {transform_indices = @transform_4, window_bounds = array<i64: 1, 32, 128>}]} {
    %c0 = arith.constant 0 : index
    %c0_0 = arith.constant 0 : index
    %c0_1 = arith.constant 0 : index
    %0 = vector.load %arg2[%c0, %c0_0, %c0_1] : memref<1x32x256xbf16, #tpu.memory_space<vmem>>, vector<1x32x256xbf16>
    %1 = vector.shape_cast %0 : vector<1x32x256xbf16> to vector<32x256xbf16>
    %c0_2 = arith.constant 0 : index
    %c0_3 = arith.constant 0 : index
    %c0_4 = arith.constant 0 : index
    %2 = vector.load %arg3[%c0_2, %c0_3, %c0_4] : memref<1x256x128xbf16, #tpu.memory_space<vmem>>, vector<1x256x128xbf16>
    %3 = vector.shape_cast %2 : vector<1x256x128xbf16> to vector<256x128xbf16>
    %cst = arith.constant dense<0.000000e+00> : vector<32x128xf32>
    %4 = tpu.matmul %1, %3, %cst {dimension_numbers = #tpu.dot_dimension_numbers<[1], [0], [0], [1], [0, 0, 1, 1], [], []>} : vector<32x256xbf16>, vector<256x128xbf16>, vector<32x128xf32> -> vector<32x128xf32>
    %c0_5 = arith.constant 0 : index
    %c0_6 = arith.constant 0 : index
    %5 = vector.load %arg4[%c0_5, %c0_6] : memref<1x128xf32, #tpu.memory_space<vmem>>, vector<1x128xf32>
    %6 = vector.broadcast %5 : vector<1x128xf32> to vector<32x128xf32>
    %7 = arith.mulf %4, %6 : vector<32x128xf32>
    %c0_7 = arith.constant 0 : index
    %c0_8 = arith.constant 0 : index
    %8 = vector.load %arg5[%c0_7, %c0_8] : memref<1x128xf32, #tpu.memory_space<vmem>>, vector<1x128xf32>
    %9 = vector.broadcast %8 : vector<1x128xf32> to vector<32x128xf32>
    %10 = arith.addf %7, %9 : vector<32x128xf32>
    %cst_9 = arith.constant 0.000000e+00 : f32
    %11 = vector.broadcast %cst_9 : f32 to vector<32x128xf32>
    %12 = arith.maximumf %10, %11 : vector<32x128xf32>
    %13 = arith.truncf %12 : vector<32x128xf32> to vector<32x128xbf16>
    %c0_10 = arith.constant 0 : index
    %c0_11 = arith.constant 0 : index
    %c0_12 = arith.constant 0 : index
    %14 = vector.load %arg6[%c0_10, %c0_11, %c0_12] : memref<1x32x128xbf16, #tpu.memory_space<vmem>>, vector<1x32x128xbf16>
    %15 = vector.shape_cast %14 : vector<1x32x128xbf16> to vector<32x128xbf16>
    %16 = vector.shape_cast %13 : vector<32x128xbf16> to vector<1x32x128xbf16>
    tpu.vector_store %arg6[%c0_10, %c0_11, %c0_12], %16 {strides = array<i32>} : memref<1x32x128xbf16, #tpu.memory_space<vmem>>, vector<1x32x128xbf16>,
    return
  }
  func.func @transform_0(%arg0: i32, %arg1: i32) -> (i32, i32, i32) {
    %c0_i32 = arith.constant 0 : i32
    %c0_i32_0 = arith.constant 0 : i32
    return %arg0, %arg1, %c0_i32 : i32, i32, i32
  }
  func.func @transform_1(%arg0: i32, %arg1: i32) -> (i32, i32, i32) {
    %c0_i32 = arith.constant 0 : i32
    %c0_i32_0 = arith.constant 0 : i32
    %c0_i32_1 = arith.constant 0 : i32
    return %arg0, %c0_i32, %c0_i32_0 : i32, i32, i32
  }
  func.func @transform_2(%arg0: i32, %arg1: i32) -> (i32, i32) {
    %c0_i32 = arith.constant 0 : i32
    %c0_i32_0 = arith.constant 0 : i32
    %c0_i32_1 = arith.constant 0 : i32
    return %c0_i32, %c0_i32_0 : i32, i32
  }
  func.func @transform_3(%arg0: i32, %arg1: i32) -> (i32, i32) {
    %c0_i32 = arith.constant 0 : i32
    %c0_i32_0 = arith.constant 0 : i32
    %c0_i32_1 = arith.constant 0 : i32
    return %c0_i32, %c0_i32_0 : i32, i32
  }
  func.func @transform_4(%arg0: i32, %arg1: i32) -> (i32, i32, i32) {
    %c0_i32 = arith.constant 0 : i32
    %c0_i32_0 = arith.constant 0 : i32
    return %arg0, %arg1, %c0_i32 : i32, i32, i32
  }
}

module attributes {stable_mosaic.version = 11 : i64} {
  func.func @_stats_only_kernel(%arg0: i32, %arg1: i32, %arg2: memref<1x128x128xbf16, #tpu.memory_space<vmem>>, %arg3: memref<1x128x128xbf16, #tpu.memory_space<vmem>>, %arg4: memref<1x8x128xf32, #tpu.memory_space<vmem>>) attributes {dimension_semantics = [#tpu.dimension_semantics<parallel>, #tpu.dimension_semantics<parallel>], iteration_bounds = array<i64: 4, 1>, scalar_prefetch = 0 : i64, scratch_operands = 0 : i64, tpu.core_type = #tpu.core_type<tc>, window_params = [{transform_indices = @transform_0, window_bounds = array<i64: 1, 128, 128>}, {transform_indices = @transform_1, window_bounds = array<i64: 1, 128, 128>}, {transform_indices = @transform_2, window_bounds = array<i64: 1, 8, 128>}]} {
    %c0 = arith.constant 0 : index
    %c0_0 = arith.constant 0 : index
    %c0_1 = arith.constant 0 : index
    %0 = vector.load %arg2[%c0, %c0_0, %c0_1] : memref<1x128x128xbf16, #tpu.memory_space<vmem>>, vector<1x128x128xbf16>
    %1 = vector.shape_cast %0 : vector<1x128x128xbf16> to vector<128x128xbf16>
    %c0_2 = arith.constant 0 : index
    %c0_3 = arith.constant 0 : index
    %c0_4 = arith.constant 0 : index
    %2 = vector.load %arg3[%c0_2, %c0_3, %c0_4] : memref<1x128x128xbf16, #tpu.memory_space<vmem>>, vector<1x128x128xbf16>
    %3 = vector.shape_cast %2 : vector<1x128x128xbf16> to vector<128x128xbf16>
    %cst = arith.constant dense<0.000000e+00> : vector<128x128xf32>
    %4 = tpu.matmul %1, %3, %cst {dimension_numbers = #tpu.dot_dimension_numbers<[1], [0], [0], [1], [0, 0, 1, 1], [], []>} : vector<128x128xbf16>, vector<128x128xbf16>, vector<128x128xf32> -> vector<128x128xf32>
    %cst_5 = arith.constant dense<0.000000e+00> : vector<128xf32>
    %5 = vector.multi_reduction <add>, %4, %cst_5 [0] : vector<128x128xf32> to vector<128xf32>
    %6 = vector.shape_cast %5 : vector<128xf32> to vector<1x128xf32>
    %7 = arith.mulf %4, %4 : vector<128x128xf32>
    %cst_6 = arith.constant dense<0.000000e+00> : vector<128xf32>
    %8 = vector.multi_reduction <add>, %7, %cst_6 [0] : vector<128x128xf32> to vector<128xf32>
    %9 = vector.shape_cast %8 : vector<128xf32> to vector<1x128xf32>
    %10 = tpu.iota {dimensions = array<i32: 0>} : vector<8x128xi32>
    %c0_i32 = arith.constant 0 : i32
    %11 = vector.broadcast %c0_i32 : i32 to vector<8x128xi32>
    %12 = arith.cmpi eq, %10, %11 : vector<8x128xi32>
    %c1_i32 = arith.constant 1 : i32
    %13 = vector.broadcast %c1_i32 : i32 to vector<8x128xi32>
    %14 = arith.cmpi eq, %10, %13 : vector<8x128xi32>
    %cst_7 = arith.constant 0.000000e+00 : f32
    %15 = vector.shape_cast %9 : vector<1x128xf32> to vector<1x128xf32>
    %16 = vector.broadcast %15 : vector<1x128xf32> to vector<8x128xf32>
    %17 = vector.broadcast %cst_7 : f32 to vector<8x128xf32>
    %18 = arith.select %14, %16, %17 : vector<8x128xi1>, vector<8x128xf32>
    %19 = vector.shape_cast %6 : vector<1x128xf32> to vector<1x128xf32>
    %20 = vector.broadcast %19 : vector<1x128xf32> to vector<8x128xf32>
    %21 = arith.select %12, %20, %18 : vector<8x128xi1>, vector<8x128xf32>
    %c0_8 = arith.constant 0 : index
    %c0_9 = arith.constant 0 : index
    %c0_10 = arith.constant 0 : index
    %22 = vector.load %arg4[%c0_8, %c0_9, %c0_10] : memref<1x8x128xf32, #tpu.memory_space<vmem>>, vector<1x8x128xf32>
    %23 = vector.shape_cast %22 : vector<1x8x128xf32> to vector<8x128xf32>
    %24 = vector.shape_cast %21 : vector<8x128xf32> to vector<1x8x128xf32>
    tpu.vector_store %arg4[%c0_8, %c0_9, %c0_10], %24 {strides = array<i32>} : memref<1x8x128xf32, #tpu.memory_space<vmem>>, vector<1x8x128xf32>,
    return
  }
  func.func @transform_0(%arg0: i32, %arg1: i32) -> (i32, i32, i32) {
    %c0_i32 = arith.constant 0 : i32
    %c0_i32_0 = arith.constant 0 : i32
    return %arg0, %arg1, %c0_i32 : i32, i32, i32
  }
  func.func @transform_1(%arg0: i32, %arg1: i32) -> (i32, i32, i32) {
    %c0_i32 = arith.constant 0 : i32
    %c0_i32_0 = arith.constant 0 : i32
    %c0_i32_1 = arith.constant 0 : i32
    return %arg0, %c0_i32, %c0_i32_0 : i32, i32, i32
  }
  func.func @transform_2(%arg0: i32, %arg1: i32) -> (i32, i32, i32) {
    %c0_i32 = arith.constant 0 : i32
    %c0_i32_0 = arith.constant 0 : i32
    return %arg0, %arg1, %c0_i32 : i32, i32, i32
  }
}

module attributes {stable_mosaic.version = 11 : i64} {
  func.func @_mm_affine_kernel(%arg0: i32, %arg1: i32, %arg2: memref<1x128x128xbf16, #tpu.memory_space<vmem>>, %arg3: memref<1x128x128xbf16, #tpu.memory_space<vmem>>, %arg4: memref<1x128xf32, #tpu.memory_space<vmem>>, %arg5: memref<1x128xf32, #tpu.memory_space<vmem>>, %arg6: memref<1x128x128xbf16, #tpu.memory_space<vmem>>) attributes {dimension_semantics = [#tpu.dimension_semantics<parallel>, #tpu.dimension_semantics<parallel>], iteration_bounds = array<i64: 4, 1>, scalar_prefetch = 0 : i64, scratch_operands = 0 : i64, tpu.core_type = #tpu.core_type<tc>, window_params = [{transform_indices = @transform_0, window_bounds = array<i64: 1, 128, 128>}, {transform_indices = @transform_1, window_bounds = array<i64: 1, 128, 128>}, {pipeline_mode = #tpu.pipeline_mode<synchronous>, transform_indices = @transform_2, window_bounds = array<i64: 1, 128>}, {pipeline_mode = #tpu.pipeline_mode<synchronous>, transform_indices = @transform_3, window_bounds = array<i64: 1, 128>}, {transform_indices = @transform_4, window_bounds = array<i64: 1, 128, 128>}]} {
    %c0 = arith.constant 0 : index
    %c0_0 = arith.constant 0 : index
    %c0_1 = arith.constant 0 : index
    %0 = vector.load %arg2[%c0, %c0_0, %c0_1] : memref<1x128x128xbf16, #tpu.memory_space<vmem>>, vector<1x128x128xbf16>
    %1 = vector.shape_cast %0 : vector<1x128x128xbf16> to vector<128x128xbf16>
    %c0_2 = arith.constant 0 : index
    %c0_3 = arith.constant 0 : index
    %c0_4 = arith.constant 0 : index
    %2 = vector.load %arg3[%c0_2, %c0_3, %c0_4] : memref<1x128x128xbf16, #tpu.memory_space<vmem>>, vector<1x128x128xbf16>
    %3 = vector.shape_cast %2 : vector<1x128x128xbf16> to vector<128x128xbf16>
    %cst = arith.constant dense<0.000000e+00> : vector<128x128xf32>
    %4 = tpu.matmul %1, %3, %cst {dimension_numbers = #tpu.dot_dimension_numbers<[1], [0], [0], [1], [0, 0, 1, 1], [], []>} : vector<128x128xbf16>, vector<128x128xbf16>, vector<128x128xf32> -> vector<128x128xf32>
    %c0_5 = arith.constant 0 : index
    %c0_6 = arith.constant 0 : index
    %5 = vector.load %arg4[%c0_5, %c0_6] : memref<1x128xf32, #tpu.memory_space<vmem>>, vector<1x128xf32>
    %6 = vector.broadcast %5 : vector<1x128xf32> to vector<128x128xf32>
    %7 = arith.mulf %4, %6 : vector<128x128xf32>
    %c0_7 = arith.constant 0 : index
    %c0_8 = arith.constant 0 : index
    %8 = vector.load %arg5[%c0_7, %c0_8] : memref<1x128xf32, #tpu.memory_space<vmem>>, vector<1x128xf32>
    %9 = vector.broadcast %8 : vector<1x128xf32> to vector<128x128xf32>
    %10 = arith.addf %7, %9 : vector<128x128xf32>
    %cst_9 = arith.constant 0.000000e+00 : f32
    %11 = vector.broadcast %cst_9 : f32 to vector<128x128xf32>
    %12 = arith.maximumf %10, %11 : vector<128x128xf32>
    %13 = arith.truncf %12 : vector<128x128xf32> to vector<128x128xbf16>
    %c0_10 = arith.constant 0 : index
    %c0_11 = arith.constant 0 : index
    %c0_12 = arith.constant 0 : index
    %14 = vector.load %arg6[%c0_10, %c0_11, %c0_12] : memref<1x128x128xbf16, #tpu.memory_space<vmem>>, vector<1x128x128xbf16>
    %15 = vector.shape_cast %14 : vector<1x128x128xbf16> to vector<128x128xbf16>
    %16 = vector.shape_cast %13 : vector<128x128xbf16> to vector<1x128x128xbf16>
    tpu.vector_store %arg6[%c0_10, %c0_11, %c0_12], %16 {strides = array<i32>} : memref<1x128x128xbf16, #tpu.memory_space<vmem>>, vector<1x128x128xbf16>,
    return
  }
  func.func @transform_0(%arg0: i32, %arg1: i32) -> (i32, i32, i32) {
    %c0_i32 = arith.constant 0 : i32
    %c0_i32_0 = arith.constant 0 : i32
    return %arg0, %arg1, %c0_i32 : i32, i32, i32
  }
  func.func @transform_1(%arg0: i32, %arg1: i32) -> (i32, i32, i32) {
    %c0_i32 = arith.constant 0 : i32
    %c0_i32_0 = arith.constant 0 : i32
    %c0_i32_1 = arith.constant 0 : i32
    return %arg0, %c0_i32, %c0_i32_0 : i32, i32, i32
  }
  func.func @transform_2(%arg0: i32, %arg1: i32) -> (i32, i32) {
    %c0_i32 = arith.constant 0 : i32
    %c0_i32_0 = arith.constant 0 : i32
    %c0_i32_1 = arith.constant 0 : i32
    return %c0_i32, %c0_i32_0 : i32, i32
  }
  func.func @transform_3(%arg0: i32, %arg1: i32) -> (i32, i32) {
    %c0_i32 = arith.constant 0 : i32
    %c0_i32_0 = arith.constant 0 : i32
    %c0_i32_1 = arith.constant 0 : i32
    return %c0_i32, %c0_i32_0 : i32, i32
  }
  func.func @transform_4(%arg0: i32, %arg1: i32) -> (i32, i32, i32) {
    %c0_i32 = arith.constant 0 : i32
    %c0_i32_0 = arith.constant 0 : i32
    return %arg0, %arg1, %c0_i32 : i32, i32, i32
  }
}

module attributes {stable_mosaic.version = 11 : i64} {
  func.func @_mm_affine_kernel(%arg0: i32, %arg1: i32, %arg2: memref<1x256x128xbf16, #tpu.memory_space<vmem>>, %arg3: memref<1x128x128xbf16, #tpu.memory_space<vmem>>, %arg4: memref<1x128xf32, #tpu.memory_space<vmem>>, %arg5: memref<1x128xf32, #tpu.memory_space<vmem>>, %arg6: memref<1x256x128xbf16, #tpu.memory_space<vmem>>) attributes {dimension_semantics = [#tpu.dimension_semantics<parallel>, #tpu.dimension_semantics<parallel>], iteration_bounds = array<i64: 4, 2>, scalar_prefetch = 0 : i64, scratch_operands = 0 : i64, tpu.core_type = #tpu.core_type<tc>, window_params = [{transform_indices = @transform_0, window_bounds = array<i64: 1, 256, 128>}, {transform_indices = @transform_1, window_bounds = array<i64: 1, 128, 128>}, {pipeline_mode = #tpu.pipeline_mode<synchronous>, transform_indices = @transform_2, window_bounds = array<i64: 1, 128>}, {pipeline_mode = #tpu.pipeline_mode<synchronous>, transform_indices = @transform_3, window_bounds = array<i64: 1, 128>}, {transform_indices = @transform_4, window_bounds = array<i64: 1, 256, 128>}]} {
    %c0 = arith.constant 0 : index
    %c0_0 = arith.constant 0 : index
    %c0_1 = arith.constant 0 : index
    %0 = vector.load %arg2[%c0, %c0_0, %c0_1] : memref<1x256x128xbf16, #tpu.memory_space<vmem>>, vector<1x256x128xbf16>
    %1 = vector.shape_cast %0 : vector<1x256x128xbf16> to vector<256x128xbf16>
    %c0_2 = arith.constant 0 : index
    %c0_3 = arith.constant 0 : index
    %c0_4 = arith.constant 0 : index
    %2 = vector.load %arg3[%c0_2, %c0_3, %c0_4] : memref<1x128x128xbf16, #tpu.memory_space<vmem>>, vector<1x128x128xbf16>
    %3 = vector.shape_cast %2 : vector<1x128x128xbf16> to vector<128x128xbf16>
    %cst = arith.constant dense<0.000000e+00> : vector<256x128xf32>
    %4 = tpu.matmul %1, %3, %cst {dimension_numbers = #tpu.dot_dimension_numbers<[1], [0], [0], [1], [0, 0, 1, 1], [], []>} : vector<256x128xbf16>, vector<128x128xbf16>, vector<256x128xf32> -> vector<256x128xf32>
    %c0_5 = arith.constant 0 : index
    %c0_6 = arith.constant 0 : index
    %5 = vector.load %arg4[%c0_5, %c0_6] : memref<1x128xf32, #tpu.memory_space<vmem>>, vector<1x128xf32>
    %6 = vector.broadcast %5 : vector<1x128xf32> to vector<256x128xf32>
    %7 = arith.mulf %4, %6 : vector<256x128xf32>
    %c0_7 = arith.constant 0 : index
    %c0_8 = arith.constant 0 : index
    %8 = vector.load %arg5[%c0_7, %c0_8] : memref<1x128xf32, #tpu.memory_space<vmem>>, vector<1x128xf32>
    %9 = vector.broadcast %8 : vector<1x128xf32> to vector<256x128xf32>
    %10 = arith.addf %7, %9 : vector<256x128xf32>
    %cst_9 = arith.constant 0.000000e+00 : f32
    %11 = vector.broadcast %cst_9 : f32 to vector<256x128xf32>
    %12 = arith.maximumf %10, %11 : vector<256x128xf32>
    %13 = arith.truncf %12 : vector<256x128xf32> to vector<256x128xbf16>
    %c0_10 = arith.constant 0 : index
    %c0_11 = arith.constant 0 : index
    %c0_12 = arith.constant 0 : index
    %14 = vector.load %arg6[%c0_10, %c0_11, %c0_12] : memref<1x256x128xbf16, #tpu.memory_space<vmem>>, vector<1x256x128xbf16>
    %15 = vector.shape_cast %14 : vector<1x256x128xbf16> to vector<256x128xbf16>
    %16 = vector.shape_cast %13 : vector<256x128xbf16> to vector<1x256x128xbf16>
    tpu.vector_store %arg6[%c0_10, %c0_11, %c0_12], %16 {strides = array<i32>} : memref<1x256x128xbf16, #tpu.memory_space<vmem>>, vector<1x256x128xbf16>,
    return
  }
  func.func @transform_0(%arg0: i32, %arg1: i32) -> (i32, i32, i32) {
    %c0_i32 = arith.constant 0 : i32
    %c0_i32_0 = arith.constant 0 : i32
    return %arg0, %arg1, %c0_i32 : i32, i32, i32
  }
  func.func @transform_1(%arg0: i32, %arg1: i32) -> (i32, i32, i32) {
    %c0_i32 = arith.constant 0 : i32
    %c0_i32_0 = arith.constant 0 : i32
    %c0_i32_1 = arith.constant 0 : i32
    return %arg0, %c0_i32, %c0_i32_0 : i32, i32, i32
  }
  func.func @transform_2(%arg0: i32, %arg1: i32) -> (i32, i32) {
    %c0_i32 = arith.constant 0 : i32
    %c0_i32_0 = arith.constant 0 : i32
    %c0_i32_1 = arith.constant 0 : i32
    return %c0_i32, %c0_i32_0 : i32, i32
  }
  func.func @transform_3(%arg0: i32, %arg1: i32) -> (i32, i32) {
    %c0_i32 = arith.constant 0 : i32
    %c0_i32_0 = arith.constant 0 : i32
    %c0_i32_1 = arith.constant 0 : i32
    return %c0_i32, %c0_i32_0 : i32, i32
  }
  func.func @transform_4(%arg0: i32, %arg1: i32) -> (i32, i32, i32) {
    %c0_i32 = arith.constant 0 : i32
    %c0_i32_0 = arith.constant 0 : i32
    return %arg0, %arg1, %c0_i32 : i32, i32, i32
  }
}

module attributes {stable_mosaic.version = 11 : i64} {
  func.func @_stats_only_kernel(%arg0: i32, %arg1: i32, %arg2: memref<1x256x128xbf16, #tpu.memory_space<vmem>>, %arg3: memref<1x128x128xbf16, #tpu.memory_space<vmem>>, %arg4: memref<1x8x128xf32, #tpu.memory_space<vmem>>) attributes {dimension_semantics = [#tpu.dimension_semantics<parallel>, #tpu.dimension_semantics<parallel>], iteration_bounds = array<i64: 4, 2>, scalar_prefetch = 0 : i64, scratch_operands = 0 : i64, tpu.core_type = #tpu.core_type<tc>, window_params = [{transform_indices = @transform_0, window_bounds = array<i64: 1, 256, 128>}, {transform_indices = @transform_1, window_bounds = array<i64: 1, 128, 128>}, {transform_indices = @transform_2, window_bounds = array<i64: 1, 8, 128>}]} {
    %c0 = arith.constant 0 : index
    %c0_0 = arith.constant 0 : index
    %c0_1 = arith.constant 0 : index
    %0 = vector.load %arg2[%c0, %c0_0, %c0_1] : memref<1x256x128xbf16, #tpu.memory_space<vmem>>, vector<1x256x128xbf16>
    %1 = vector.shape_cast %0 : vector<1x256x128xbf16> to vector<256x128xbf16>
    %c0_2 = arith.constant 0 : index
    %c0_3 = arith.constant 0 : index
    %c0_4 = arith.constant 0 : index
    %2 = vector.load %arg3[%c0_2, %c0_3, %c0_4] : memref<1x128x128xbf16, #tpu.memory_space<vmem>>, vector<1x128x128xbf16>
    %3 = vector.shape_cast %2 : vector<1x128x128xbf16> to vector<128x128xbf16>
    %cst = arith.constant dense<0.000000e+00> : vector<256x128xf32>
    %4 = tpu.matmul %1, %3, %cst {dimension_numbers = #tpu.dot_dimension_numbers<[1], [0], [0], [1], [0, 0, 1, 1], [], []>} : vector<256x128xbf16>, vector<128x128xbf16>, vector<256x128xf32> -> vector<256x128xf32>
    %cst_5 = arith.constant dense<0.000000e+00> : vector<128xf32>
    %5 = vector.multi_reduction <add>, %4, %cst_5 [0] : vector<256x128xf32> to vector<128xf32>
    %6 = vector.shape_cast %5 : vector<128xf32> to vector<1x128xf32>
    %7 = arith.mulf %4, %4 : vector<256x128xf32>
    %cst_6 = arith.constant dense<0.000000e+00> : vector<128xf32>
    %8 = vector.multi_reduction <add>, %7, %cst_6 [0] : vector<256x128xf32> to vector<128xf32>
    %9 = vector.shape_cast %8 : vector<128xf32> to vector<1x128xf32>
    %10 = tpu.iota {dimensions = array<i32: 0>} : vector<8x128xi32>
    %c0_i32 = arith.constant 0 : i32
    %11 = vector.broadcast %c0_i32 : i32 to vector<8x128xi32>
    %12 = arith.cmpi eq, %10, %11 : vector<8x128xi32>
    %c1_i32 = arith.constant 1 : i32
    %13 = vector.broadcast %c1_i32 : i32 to vector<8x128xi32>
    %14 = arith.cmpi eq, %10, %13 : vector<8x128xi32>
    %cst_7 = arith.constant 0.000000e+00 : f32
    %15 = vector.shape_cast %9 : vector<1x128xf32> to vector<1x128xf32>
    %16 = vector.broadcast %15 : vector<1x128xf32> to vector<8x128xf32>
    %17 = vector.broadcast %cst_7 : f32 to vector<8x128xf32>
    %18 = arith.select %14, %16, %17 : vector<8x128xi1>, vector<8x128xf32>
    %19 = vector.shape_cast %6 : vector<1x128xf32> to vector<1x128xf32>
    %20 = vector.broadcast %19 : vector<1x128xf32> to vector<8x128xf32>
    %21 = arith.select %12, %20, %18 : vector<8x128xi1>, vector<8x128xf32>
    %c0_8 = arith.constant 0 : index
    %c0_9 = arith.constant 0 : index
    %c0_10 = arith.constant 0 : index
    %22 = vector.load %arg4[%c0_8, %c0_9, %c0_10] : memref<1x8x128xf32, #tpu.memory_space<vmem>>, vector<1x8x128xf32>
    %23 = vector.shape_cast %22 : vector<1x8x128xf32> to vector<8x128xf32>
    %24 = vector.shape_cast %21 : vector<8x128xf32> to vector<1x8x128xf32>
    tpu.vector_store %arg4[%c0_8, %c0_9, %c0_10], %24 {strides = array<i32>} : memref<1x8x128xf32, #tpu.memory_space<vmem>>, vector<1x8x128xf32>,
    return
  }
  func.func @transform_0(%arg0: i32, %arg1: i32) -> (i32, i32, i32) {
    %c0_i32 = arith.constant 0 : i32
    %c0_i32_0 = arith.constant 0 : i32
    return %arg0, %arg1, %c0_i32 : i32, i32, i32
  }
  func.func @transform_1(%arg0: i32, %arg1: i32) -> (i32, i32, i32) {
    %c0_i32 = arith.constant 0 : i32
    %c0_i32_0 = arith.constant 0 : i32
    %c0_i32_1 = arith.constant 0 : i32
    return %arg0, %c0_i32, %c0_i32_0 : i32, i32, i32
  }
  func.func @transform_2(%arg0: i32, %arg1: i32) -> (i32, i32, i32) {
    %c0_i32 = arith.constant 0 : i32
    %c0_i32_0 = arith.constant 0 : i32
    return %arg0, %arg1, %c0_i32 : i32, i32, i32
  }
}

module attributes {stable_mosaic.version = 11 : i64} {
  func.func @_mm_kernel(%arg0: i32, %arg1: i32, %arg2: memref<1x512x128xbf16, #tpu.memory_space<vmem>>, %arg3: memref<1x128x128xbf16, #tpu.memory_space<vmem>>, %arg4: memref<1x512x128xf32, #tpu.memory_space<vmem>>) attributes {dimension_semantics = [#tpu.dimension_semantics<parallel>, #tpu.dimension_semantics<parallel>], iteration_bounds = array<i64: 4, 4>, scalar_prefetch = 0 : i64, scratch_operands = 0 : i64, tpu.core_type = #tpu.core_type<tc>, window_params = [{transform_indices = @transform_0, window_bounds = array<i64: 1, 512, 128>}, {transform_indices = @transform_1, window_bounds = array<i64: 1, 128, 128>}, {transform_indices = @transform_2, window_bounds = array<i64: 1, 512, 128>}]} {
    %c0 = arith.constant 0 : index
    %c0_0 = arith.constant 0 : index
    %c0_1 = arith.constant 0 : index
    %0 = vector.load %arg2[%c0, %c0_0, %c0_1] : memref<1x512x128xbf16, #tpu.memory_space<vmem>>, vector<1x512x128xbf16>
    %1 = vector.shape_cast %0 : vector<1x512x128xbf16> to vector<512x128xbf16>
    %c0_2 = arith.constant 0 : index
    %c0_3 = arith.constant 0 : index
    %c0_4 = arith.constant 0 : index
    %2 = vector.load %arg3[%c0_2, %c0_3, %c0_4] : memref<1x128x128xbf16, #tpu.memory_space<vmem>>, vector<1x128x128xbf16>
    %3 = vector.shape_cast %2 : vector<1x128x128xbf16> to vector<128x128xbf16>
    %cst = arith.constant dense<0.000000e+00> : vector<512x128xf32>
    %4 = tpu.matmul %1, %3, %cst {dimension_numbers = #tpu.dot_dimension_numbers<[1], [0], [0], [1], [0, 0, 1, 1], [], []>} : vector<512x128xbf16>, vector<128x128xbf16>, vector<512x128xf32> -> vector<512x128xf32>
    %5 = math.tanh %4 : vector<512x128xf32>
    %c0_5 = arith.constant 0 : index
    %c0_6 = arith.constant 0 : index
    %c0_7 = arith.constant 0 : index
    %6 = vector.load %arg4[%c0_5, %c0_6, %c0_7] : memref<1x512x128xf32, #tpu.memory_space<vmem>>, vector<1x512x128xf32>
    %7 = vector.shape_cast %6 : vector<1x512x128xf32> to vector<512x128xf32>
    %8 = vector.shape_cast %5 : vector<512x128xf32> to vector<1x512x128xf32>
    tpu.vector_store %arg4[%c0_5, %c0_6, %c0_7], %8 {strides = array<i32>} : memref<1x512x128xf32, #tpu.memory_space<vmem>>, vector<1x512x128xf32>,
    return
  }
  func.func @transform_0(%arg0: i32, %arg1: i32) -> (i32, i32, i32) {
    %c0_i32 = arith.constant 0 : i32
    %c0_i32_0 = arith.constant 0 : i32
    return %arg0, %arg1, %c0_i32 : i32, i32, i32
  }
  func.func @transform_1(%arg0: i32, %arg1: i32) -> (i32, i32, i32) {
    %c0_i32 = arith.constant 0 : i32
    %c0_i32_0 = arith.constant 0 : i32
    %c0_i32_1 = arith.constant 0 : i32
    return %arg0, %c0_i32, %c0_i32_0 : i32, i32, i32
  }
  func.func @transform_2(%arg0: i32, %arg1: i32) -> (i32, i32, i32) {
    %c0_i32 = arith.constant 0 : i32
    %c0_i32_0 = arith.constant 0 : i32
    return %arg0, %arg1, %c0_i32 : i32, i32, i32
  }
}

</mosaic_0001>

<bundles_post_ra>
// kernel: video_reconstructor_forward.17
= control target key start
LH: loop header
LB: loop body
LE: loop exit
PB: predicated region body
PF: predicated region fallthrough
CT: control target
= control target key end

     0   :  { %s2247_s9 = smov 0   ;;  %s2249_s10 = smov 0   ;;  %s2464_s0 = inlined_call_operand.vmem [shape: bf16[1,16384,256], index: 0, kind: input, shape index: {}]   ;;  %s2465_s1 = inlined_call_operand.vmem [shape: bf16[1,256,128], index: 1, kind: input, shape index: {}]   ;;  %s2466_s2 = inlined_call_operand.vmem [shape: bf16[1,16384,128], index: 2, kind: output, shape index: {}]  }
   0x1   :  { %s2251_s11 = smov 0  }
   0x2 LB: > { %s21_s12 = sadd.s32 1, %s2225_s10  ;;  %p1630_p0 = scmp.ge.s32.totalorder %s2229_s11, 1  ;;  %s2229_s11 = sphi %s2251_s11, %s12_s11   ;;  %s2225_s10 = sphi %s2249_s10, %s2468_s10   ;;  %s2221_s9 = sphi %s2247_s9, %s2467_s9  }
   0x3   : > { %p22_p1 = scmp.ge.s32.totalorder %s21_s12, 32  ;;  %p144_p2 = scmp.lt.s32.totalorder %s2229_s11, 33 }
   0x5   : > { %s2470_s12 = smov (%p22_p1, %s21_s12), 0  ;;  %p145_p3 = pnand %p1630_p0, %p144_p2 }
   0x6   : > { %s1631_s15 = sshll.u32 (!%p145_p3), %s2221_s9, 6 }
   0x7   : > { %148 = sbr.rel (%p145_p3) target bundleno = 400 (0x190), region = 28  ;;  %p183_p4 = scmp.lt.s32.totalorder (!%p145_p3), %s1631_s15, 2047 }
   0xc   : > { %v2095_v0 = vld [vmem:[%s2465_s1 + $0x38] sm:$0xff]   ;;  %v2231_v1 = vmov 0   ;;  %v2096_v2 = vld [vmem:[%s2465_s1 + $0x30] sm:$0xff]   ;;  %v2097_v3 = vld [vmem:[%s2465_s1 + $0x28] sm:$0xff]   ;;  %s2472_s15 = smov (!%p183_p4, %s1631_s15), 2047 }
   0xd   : > { %719 = vmatprep.subr.bf16.mxu0 %v2231_v1  ;;  %2038 = vmatprep.subr.bf16.mxu1 %v2231_v1  ;;  %v2098_v4 = vld [vmem:[%s2465_s1 + $0x20] sm:$0xff]   ;;  %s1782_s22 = sshll.u32 %s2472_s15, 3  ;;  %v2099_v5 = vld [vmem:[%s2465_s1 + $0x18] sm:$0xff]   ;;  %v2100_v7 = vld [vmem:[%s2465_s1 + $0x10] sm:$0xff]   ;;  %s1635_s26 = sshll.u32 %s2472_s15, 2 }
   0xe   : > { %720 = vmatpush1.bf16.msra.mxu0 %v2095_v0  ;;  %2054 = vmatpush1.bf16.msra.mxu1 %v2095_v0  ;;  %s2294_s27 = scalar_lea.vmem %s2464_s0, %s1782_s22  ;;  %v2101_v9 = vld [vmem:[%s2465_s1 + $0x8] sm:$0xff]   ;;  %v2102_v10 = vld [vmem:[%s2465_s1] sm:$0xff]   ;;  %v2103_v11 = vld [vmem:[%s2465_s1 + $0x78] sm:$0xff]   ;;  %s2421_s29 = scalar_lea.vmem %s2466_s2, %s1635_s26 }
   0xf   : > { %721 = vmatprep.subr.bf16.mxu0 %v2231_v1  ;;  %2039 = vmatprep.subr.bf16.mxu1 %v2231_v1  ;;  %v2113_v6 = vld [vmem:[%s2294_s27 + $0x4] ss:$8 sps:$4 sm:$0xff]   ;;  %v2104_v12 = vld [vmem:[%s2465_s1 + $0x70] sm:$0xff]   ;;  %v2107_v15 = vld [vmem:[%s2465_s1 + $0x58] sm:$0xff]  }
  0x10   : > { %v2116_v8 = vld [vmem:[%s2294_s27 + $0x104] ss:$8 sps:$4 sm:$0xff]   ;;  %751 = vmatprep.mubr.bf16.mxu0 %v2113_v6  ;;  %v2108_v16 = vld [vmem:[%s2465_s1 + $0x50] sm:$0xff]   ;;  %v2111_v19 = vld [vmem:[%s2294_s27] ss:$8 sps:$4 sm:$0xff]  }
  0x11   : > { %879 = vmatprep.mubr.bf16.mxu1 %v2116_v8  ;;  %v2105_v13 = vld [vmem:[%s2465_s1 + $0x68] sm:$0xff]   ;;  %v2106_v14 = vld [vmem:[%s2465_s1 + $0x60] sm:$0xff]   ;;  %v2117_v21 = vld [vmem:[%s2294_s27 + $0x14] ss:$8 sps:$4 sm:$0xff]  }
  0x12   : > { %722 = vmatpush1.bf16.msra.mxu0 %v2096_v2  ;;  %2055 = vmatpush1.bf16.msra.mxu1 %v2096_v2  ;;  %v2109_v17 = vld [vmem:[%s2465_s1 + $0x48] sm:$0xff]   ;;  %v2110_v18 = vld [vmem:[%s2465_s1 + $0x40] sm:$0xff]   ;;  %v2119_v22 = vld [vmem:[%s2294_s27 + $0x114] ss:$8 sps:$4 sm:$0xff]  }
  0x13   : > { %723 = vmatprep.subr.bf16.mxu0 %v2231_v1  ;;  %2040 = vmatprep.subr.bf16.mxu1 %v2231_v1  ;;  %v2114_v20 = vld [vmem:[%s2294_s27 + $0x100] ss:$8 sps:$4 sm:$0xff]   ;;  %v2121_v23 = vld [vmem:[%s2294_s27 + $0x10] ss:$8 sps:$4 sm:$0xff]   ;;  %v2123_v25 = vld [vmem:[%s2294_s27 + $0x24] ss:$8 sps:$4 sm:$0xff]  }
  0x14   : > { %v2122_v24 = vld [vmem:[%s2294_s27 + $0x110] ss:$8 sps:$4 sm:$0xff]   ;;  %v2125_v26 = vld [vmem:[%s2294_s27 + $0x124] ss:$8 sps:$4 sm:$0xff]   ;;  %v2127_v27 = vld [vmem:[%s2294_s27 + $0x20] ss:$8 sps:$4 sm:$0xff]  }
  0x15   : > { %v2128_v28 = vld [vmem:[%s2294_s27 + $0x120] ss:$8 sps:$4 sm:$0xff]   ;;  %v2129_v29 = vld [vmem:[%s2294_s27 + $0x34] ss:$8 sps:$4 sm:$0xff]   ;;  %v2133_v31 = vld [vmem:[%s2294_s27 + $0x30] ss:$8 sps:$4 sm:$0xff]  }
  0x16   : > { %724 = vmatpush1.bf16.msra.mxu0 %v2097_v3  ;;  %2056 = vmatpush1.bf16.msra.mxu1 %v2097_v3  ;;  %v2131_v30 = vld [vmem:[%s2294_s27 + $0x134] ss:$8 sps:$4 sm:$0xff]   ;;  %v2134_v32 = vld [vmem:[%s2294_s27 + $0x130] ss:$8 sps:$4 sm:$0xff]   ;;  %v2135_v33 = vld [vmem:[%s2294_s27 + $0x44] ss:$8 sps:$4 sm:$0xff]  }
  0x17   : > { %725 = vmatprep.subr.bf16.mxu0 %v2231_v1  ;;  %2041 = vmatprep.subr.bf16.mxu1 %v2231_v1  ;;  %v2137_v34 = vld [vmem:[%s2294_s27 + $0x144] ss:$8 sps:$4 sm:$0xff]   ;;  %v2139_v35 = vld [vmem:[%s2294_s27 + $0x40] ss:$8 sps:$4 sm:$0xff]   ;;  %v2141_v37 = vld [vmem:[%s2294_s27 + $0x54] ss:$8 sps:$4 sm:$0xff]  }
  0x18   : > { %v2140_v36 = vld [vmem:[%s2294_s27 + $0x140] ss:$8 sps:$4 sm:$0xff]   ;;  %v2143_v38 = vld [vmem:[%s2294_s27 + $0x154] ss:$8 sps:$4 sm:$0xff]   ;;  %v2145_v39 = vld [vmem:[%s2294_s27 + $0x50] ss:$8 sps:$4 sm:$0xff]  }
  0x19   : > { %v2146_v40 = vld [vmem:[%s2294_s27 + $0x150] ss:$8 sps:$4 sm:$0xff]   ;;  %v2147_v41 = vld [vmem:[%s2294_s27 + $0x64] ss:$8 sps:$4 sm:$0xff]   ;;  %v2151_v43 = vld [vmem:[%s2294_s27 + $0x60] ss:$8 sps:$4 sm:$0xff]  }
  0x1a   : > { %726 = vmatpush1.bf16.msra.mxu0 %v2098_v4  ;;  %2057 = vmatpush1.bf16.msra.mxu1 %v2098_v4  ;;  %v2149_v42 = vld [vmem:[%s2294_s27 + $0x164] ss:$8 sps:$4 sm:$0xff]   ;;  %v2152_v44 = vld [vmem:[%s2294_s27 + $0x160] ss:$8 sps:$4 sm:$0xff]   ;;  %v2153_v45 = vld [vmem:[%s2294_s27 + $0x74] ss:$8 sps:$4 sm:$0xff]  }
  0x1b   : > { %727 = vmatprep.subr.bf16.mxu0 %v2231_v1  ;;  %2042 = vmatprep.subr.bf16.mxu1 %v2231_v1  ;;  %v2155_v46 = vld [vmem:[%s2294_s27 + $0x174] ss:$8 sps:$4 sm:$0xff]   ;;  %v2157_v47 = vld [vmem:[%s2294_s27 + $0x70] ss:$8 sps:$4 sm:$0xff]   ;;  %v2159_v49 = vld [vmem:[%s2294_s27 + $0x84] ss:$8 sps:$4 sm:$0xff]  }
  0x1c   : > { %v2158_v48 = vld [vmem:[%s2294_s27 + $0x170] ss:$8 sps:$4 sm:$0xff]   ;;  %v2161_v50 = vld [vmem:[%s2294_s27 + $0x184] ss:$8 sps:$4 sm:$0xff]   ;;  %v2163_v51 = vld [vmem:[%s2294_s27 + $0x80] ss:$8 sps:$4 sm:$0xff]  }
  0x1d   : > { %v2164_v52 = vld [vmem:[%s2294_s27 + $0x180] ss:$8 sps:$4 sm:$0xff]   ;;  %v2165_v53 = vld [vmem:[%s2294_s27 + $0x94] ss:$8 sps:$4 sm:$0xff]   ;;  %v2169_v55 = vld [vmem:[%s2294_s27 + $0x90] ss:$8 sps:$4 sm:$0xff]  }
  0x1e   : > { %728 = vmatpush1.bf16.msra.mxu0 %v2099_v5  ;;  %2058 = vmatpush1.bf16.msra.mxu1 %v2099_v5  ;;  %v2167_v54 = vld [vmem:[%s2294_s27 + $0x194] ss:$8 sps:$4 sm:$0xff]   ;;  %v2170_v56 = vld [vmem:[%s2294_s27 + $0x190] ss:$8 sps:$4 sm:$0xff]   ;;  %v2171_v57 = vld [vmem:[%s2294_s27 + $0xa4] ss:$8 sps:$4 sm:$0xff]  }
  0x1f   : > { %729 = vmatprep.subr.bf16.mxu0 %v2231_v1  ;;  %2043 = vmatprep.subr.bf16.mxu1 %v2231_v1  ;;  %v2173_v58 = vld [vmem:[%s2294_s27 + $0x1a4] ss:$8 sps:$4 sm:$0xff]   ;;  %v2175_v59 = vld [vmem:[%s2294_s27 + $0xa0] ss:$8 sps:$4 sm:$0xff]   ;;  %v2177_v61 = vld [vmem:[%s2294_s27 + $0xb4] ss:$8 sps:$4 sm:$0xff]  }
  0x20   : > { %v2176_v60 = vld [vmem:[%s2294_s27 + $0x1a0] ss:$8 sps:$4 sm:$0xff]   ;;  %v2179_v62 = vld [vmem:[%s2294_s27 + $0x1b4] ss:$8 sps:$4 sm:$0xff]   ;;  %v2181_v63 = vld [vmem:[%s2294_s27 + $0xb0] ss:$8 sps:$4 sm:$0xff]  }
  0x21   : > { %v2182_v0 = vld [vmem:[%s2294_s27 + $0x1b0] ss:$8 sps:$4 sm:$0xff]   ;;  %v2185_v2 = vld [vmem:[%s2294_s27 + $0x1c4] ss:$8 sps:$4 sm:$0xff]   ;;  %v2187_v3 = vld [vmem:[%s2294_s27 + $0xc0] ss:$8 sps:$4 sm:$0xff]  }
  0x22   : > { %730 = vmatpush1.bf16.msra.mxu0 %v2100_v7  ;;  %2059 = vmatpush1.bf16.msra.mxu1 %v2100_v7  ;;  %v2188_v4 = vld [vmem:[%s2294_s27 + $0x1c0] ss:$8 sps:$4 sm:$0xff]   ;;  %v2189_v5 = vld [vmem:[%s2294_s27 + $0xd4] ss:$8 sps:$4 sm:$0xff]   ;;  %v2193_v7 = vld [vmem:[%s2294_s27 + $0xd0] ss:$8 sps:$4 sm:$0xff]  }
  0x23   : > { %731 = vmatprep.subr.bf16.mxu0 %v2231_v1  ;;  %2044 = vmatprep.subr.bf16.mxu1 %v2231_v1  ;;  %v2191_v6 = vld [vmem:[%s2294_s27 + $0x1d4] ss:$8 sps:$4 sm:$0xff]   ;;  %v2194_v8 = vld [vmem:[%s2294_s27 + $0x1d0] ss:$8 sps:$4 sm:$0xff]  }
  0x26   : > { %732 = vmatpush1.bf16.msra.mxu0 %v2101_v9  ;;  %2060 = vmatpush1.bf16.msra.mxu1 %v2101_v9  ;;  %v2195_v9 = vld [vmem:[%s2294_s27 + $0xe4] ss:$8 sps:$4 sm:$0xff]  }
  0x27   : > { %733 = vmatprep.subr.bf16.mxu0 %v2231_v1  ;;  %2045 = vmatprep.subr.bf16.mxu1 %v2231_v1 }
  0x2a   : > { %734 = vmatpush1.bf16.msra.mxu0 %v2102_v10  ;;  %2061 = vmatpush1.bf16.msra.mxu1 %v2102_v10  ;;  %v2197_v10 = vld [vmem:[%s2294_s27 + $0x1e4] ss:$8 sps:$4 sm:$0xff]  }
  0x2b   : > { %735 = vmatprep.subr.bf16.mxu0 %v2231_v1  ;;  %2046 = vmatprep.subr.bf16.mxu1 %v2231_v1 }
  0x2e   : > { %736 = vmatpush2.bf16.msra.mxu0 %v2103_v11  ;;  %2062 = vmatpush2.bf16.msra.mxu1 %v2103_v11  ;;  %v2199_v11 = vld [vmem:[%s2294_s27 + $0xe0] ss:$8 sps:$4 sm:$0xff]  }
  0x2f   : > { %737 = vmatprep.subr.bf16.mxu0 %v2231_v1  ;;  %2047 = vmatprep.subr.bf16.mxu1 %v2231_v1 }
  0x32   : > { %738 = vmatpush2.bf16.msra.mxu0 %v2104_v12  ;;  %2063 = vmatpush2.bf16.msra.mxu1 %v2104_v12  ;;  %v2200_v12 = vld [vmem:[%s2294_s27 + $0x1e0] ss:$8 sps:$4 sm:$0xff]  }
  0x33   : > { %739 = vmatprep.subr.bf16.mxu0 %v2231_v1  ;;  %2048 = vmatprep.subr.bf16.mxu1 %v2231_v1 }
  0x36   : > { %740 = vmatpush2.bf16.msra.mxu0 %v2105_v13  ;;  %2064 = vmatpush2.bf16.msra.mxu1 %v2105_v13  ;;  %v2201_v13 = vld [vmem:[%s2294_s27 + $0xf4] ss:$8 sps:$4 sm:$0xff]  }
  0x37   : > { %741 = vmatprep.subr.bf16.mxu0 %v2231_v1  ;;  %2049 = vmatprep.subr.bf16.mxu1 %v2231_v1 }
  0x3a   : > { %742 = vmatpush2.bf16.msra.mxu0 %v2106_v14  ;;  %2065 = vmatpush2.bf16.msra.mxu1 %v2106_v14  ;;  %v2203_v14 = vld [vmem:[%s2294_s27 + $0x1f4] ss:$8 sps:$4 sm:$0xff]  }
  0x3b   : > { %743 = vmatprep.subr.bf16.mxu0 %v2231_v1  ;;  %2050 = vmatprep.subr.bf16.mxu1 %v2231_v1 }
  0x3e   : > { %744 = vmatpush2.bf16.msra.mxu0 %v2107_v15  ;;  %2066 = vmatpush2.bf16.msra.mxu1 %v2107_v15  ;;  %v2205_v15 = vld [vmem:[%s2294_s27 + $0xf0] ss:$8 sps:$4 sm:$0xff]  }
  0x3f   : > { %745 = vmatprep.subr.bf16.mxu0 %v2231_v1  ;;  %2051 = vmatprep.subr.bf16.mxu1 %v2231_v1 }
  0x42   : > { %746 = vmatpush2.bf16.msra.mxu0 %v2108_v16  ;;  %2067 = vmatpush2.bf16.msra.mxu1 %v2108_v16  ;;  %v2206_v16 = vld [vmem:[%s2294_s27 + $0x1f0] ss:$8 sps:$4 sm:$0xff]  }
  0x43   : > { %747 = vmatprep.subr.bf16.mxu0 %v2231_v1  ;;  %2052 = vmatprep.subr.bf16.mxu1 %v2231_v1 }
  0x46   : > { %748 = vmatpush2.bf16.msra.mxu0 %v2109_v17  ;;  %2068 = vmatpush2.bf16.msra.mxu1 %v2109_v17 }
  0x47   : > { %749 = vmatprep.subr.bf16.mxu0 %v2231_v1  ;;  %2053 = vmatprep.subr.bf16.mxu1 %v2231_v1  ;;  %v2183_v1 = vld [vmem:[%s2294_s27 + $0xc4] ss:$8 sps:$4 sm:$0xff]  }
  0x4a   : > { %750 = vmatpush2.bf16.msra.mxu0 %v2110_v18  ;;  %2069 = vmatpush2.bf16.msra.mxu1 %v2110_v18 }
  0x4d   : > { %752 = vmatmul.mubr.bf16.vlgmr.msra.gmra.mxu0 %v2111_v19  ;;  %880 = vmatmul.mubr.bf16.vlgmr.msra.gmra.mxu1 %v2114_v20 }
  0x4e   : > { %759 = vmatprep.mubr.bf16.mxu0 %v2117_v21  ;;  %887 = vmatprep.mubr.bf16.mxu1 %v2119_v22 }
  0x55   : > { %760 = vmatmul.mubr.bf16.gmra.mxu0 %v2121_v23  ;;  %888 = vmatmul.mubr.bf16.gmra.mxu1 %v2122_v24 }
  0x56   : > { %767 = vmatprep.mubr.bf16.mxu0 %v2123_v25  ;;  %895 = vmatprep.mubr.bf16.mxu1 %v2125_v26 }
  0x5d   : > { %768 = vmatmul.mubr.bf16.gmra.mxu0 %v2127_v27  ;;  %896 = vmatmul.mubr.bf16.gmra.mxu1 %v2128_v28 }
  0x5e   : > { %775 = vmatprep.mubr.bf16.mxu0 %v2129_v29  ;;  %903 = vmatprep.mubr.bf16.mxu1 %v2131_v30 }
  0x65   : > { %776 = vmatmul.mubr.bf16.gmra.mxu0 %v2133_v31  ;;  %904 = vmatmul.mubr.bf16.gmra.mxu1 %v2134_v32 }
  0x66   : > { %783 = vmatprep.mubr.bf16.mxu0 %v2135_v33  ;;  %911 = vmatprep.mubr.bf16.mxu1 %v2137_v34 }
  0x6d   : > { %784 = vmatmul.mubr.bf16.gmra.mxu0 %v2139_v35  ;;  %912 = vmatmul.mubr.bf16.gmra.mxu1 %v2140_v36 }
  0x6e   : > { %791 = vmatprep.mubr.bf16.mxu0 %v2141_v37  ;;  %919 = vmatprep.mubr.bf16.mxu1 %v2143_v38 }
  0x75   : > { %792 = vmatmul.mubr.bf16.gmra.mxu0 %v2145_v39  ;;  %920 = vmatmul.mubr.bf16.gmra.mxu1 %v2146_v40 }
  0x76   : > { %799 = vmatprep.mubr.bf16.mxu0 %v2147_v41  ;;  %927 = vmatprep.mubr.bf16.mxu1 %v2149_v42 }
  0x7d   : > { %800 = vmatmul.mubr.bf16.gmra.mxu0 %v2151_v43  ;;  %928 = vmatmul.mubr.bf16.gmra.mxu1 %v2152_v44 }
  0x7e   : > { %807 = vmatprep.mubr.bf16.mxu0 %v2153_v45  ;;  %935 = vmatprep.mubr.bf16.mxu1 %v2155_v46 }
  0x85   : > { %808 = vmatmul.mubr.bf16.gmra.mxu0 %v2157_v47  ;;  %936 = vmatmul.mubr.bf16.gmra.mxu1 %v2158_v48 }
  0x86   : > { %815 = vmatprep.mubr.bf16.mxu0 %v2159_v49  ;;  %943 = vmatprep.mubr.bf16.mxu1 %v2161_v50 }
  0x8d   : > { %816 = vmatmul.mubr.bf16.gmra.mxu0 %v2163_v51  ;;  %944 = vmatmul.mubr.bf16.gmra.mxu1 %v2164_v52 }
  0x8e   : > { %823 = vmatprep.mubr.bf16.mxu0 %v2165_v53  ;;  %951 = vmatprep.mubr.bf16.mxu1 %v2167_v54 }
  0x95   : > { %824 = vmatmul.mubr.bf16.gmra.mxu0 %v2169_v55  ;;  %952 = vmatmul.mubr.bf16.gmra.mxu1 %v2170_v56 }
  0x96   : > { %831 = vmatprep.mubr.bf16.mxu0 %v2171_v57  ;;  %959 = vmatprep.mubr.bf16.mxu1 %v2173_v58 }
  0x9d   : > { %832 = vmatmul.mubr.bf16.gmra.mxu0 %v2175_v59  ;;  %960 = vmatmul.mubr.bf16.gmra.mxu1 %v2176_v60 }
  0x9e   : > { %839 = vmatprep.mubr.bf16.mxu0 %v2177_v61  ;;  %967 = vmatprep.mubr.bf16.mxu1 %v2179_v62 }
  0xa5   : > { %840 = vmatmul.mubr.bf16.gmra.mxu0 %v2181_v63  ;;  %968 = vmatmul.mubr.bf16.gmra.mxu1 %v2182_v0 }
  0xa6   : > { %847 = vmatprep.mubr.bf16.mxu0 %v2183_v1  ;;  %975 = vmatprep.mubr.bf16.mxu1 %v2185_v2 }
  0xad   : > { %848 = vmatmul.mubr.bf16.gmra.mxu0 %v2187_v3  ;;  %976 = vmatmul.mubr.bf16.gmra.mxu1 %v2188_v4 }
  0xae   : > { %855 = vmatprep.mubr.bf16.mxu0 %v2189_v5  ;;  %983 = vmatprep.mubr.bf16.mxu1 %v2191_v6 }
  0xb5   : > { %856 = vmatmul.mubr.bf16.gmra.mxu0 %v2193_v7  ;;  %984 = vmatmul.mubr.bf16.gmra.mxu1 %v2194_v8 }
  0xb6   : > { %863 = vmatprep.mubr.bf16.mxu0 %v2195_v9  ;;  %991 = vmatprep.mubr.bf16.mxu1 %v2197_v10 }
  0xbd   : > { %864 = vmatmul.mubr.bf16.gmra.mxu0 %v2199_v11  ;;  %992 = vmatmul.mubr.bf16.gmra.mxu1 %v2200_v12 }
  0xbe   : > { %871 = vmatprep.mubr.bf16.mxu0 %v2201_v13  ;;  %999 = vmatprep.mubr.bf16.mxu1 %v2203_v14 }
  0xc5   : > { %872 = vmatmul.mubr.bf16.gmra.mxu0 %v2205_v15  ;;  %1000 = vmatmul.mubr.bf16.gmra.mxu1 %v2206_v16 }
 0x10d   : > { %v753_v17 = vpop.f32.mrf.mxu0  ;;  %v881_v18 = vpop.f32.mrf.mxu1 }
 0x10e   : > { %v1072_v21 = vmul.f32 0.2, %v753_v17  ;;  %v1104_v22 = vmul.f32 0.2, %v881_v18  ;;  %vm1008_vm0 = vcmp.gt.f32.partialorder %v753_v17, 0.0  ;;  %vm1040_vm1 = vcmp.gt.f32.partialorder %v881_v18, 0.0 }
 0x10f   : > { %v755_v19 = vpop.f32.mrf.mxu0  ;;  %v883_v20 = vpop.f32.mrf.mxu1 }
 0x110   : > { %v1136_v29 = vsel %vm1008_vm0, %v753_v17, %v1072_v21  ;;  %v1168_v30 = vsel %vm1040_vm1, %v881_v18, %v1104_v22 }
 0x111   : > { %v756_v23 = vpop.f32.mrf.mxu0  ;;  %v884_v24 = vpop.f32.mrf.mxu1 }
 0x112   : > { %vm1009_vm2 = vcmp.gt.f32.partialorder %v756_v23, 0.0  ;;  %v1073_v25 = vmul.f32 0.2, %v756_v23  ;;  %vm1041_vm3 = vcmp.gt.f32.partialorder %v884_v24, 0.0  ;;  %v1105_v26 = vmul.f32 0.2, %v884_v24 }
 0x113   : > { %v758_v27 = vpop.f32.mrf.mxu0  ;;  %v886_v28 = vpop.f32.mrf.mxu1 }
 0x114   : > { %v1137_v31 = vsel %vm1009_vm2, %v756_v23, %v1073_v25  ;;  %v1169_v32 = vsel %vm1041_vm3, %v884_v24, %v1105_v26 }
 0x115   : > { %v1850_v33 = vpack.c.bf16 %v1137_v31, %v1136_v29  ;;  %v1930_v34 = vpack.c.bf16 %v1169_v32, %v1168_v30  ;;  %v761_v35 = vpop.f32.mrf.mxu0  ;;  %v889_v36 = vpop.f32.mrf.mxu1 }
 0x116   : > { %v1074_v39 = vmul.f32 0.2, %v761_v35  ;;  %v1106_v40 = vmul.f32 0.2, %v889_v36  ;;  %vm1010_vm4 = vcmp.gt.f32.partialorder %v761_v35, 0.0  ;;  %vm1042_vm5 = vcmp.gt.f32.partialorder %v889_v36, 0.0 }
 0x117   : > { %1851 = vst [vmem:[%s2421_s29] sm:$0xff] %v1850_v33   ;;  %2022 = vst [vmem:[%s2421_s29 + $0x80] sm:$0xff] %v1930_v34   ;;  %v763_v37 = vpop.f32.mrf.mxu0  ;;  %v891_v38 = vpop.f32.mrf.mxu1 }
 0x118   : > { %v1138_v47 = vsel %vm1010_vm4, %v761_v35, %v1074_v39  ;;  %v1170_v48 = vsel %vm1042_vm5, %v889_v36, %v1106_v40 }
 0x119   : > { %v764_v41 = vpop.f32.mrf.mxu0  ;;  %v892_v42 = vpop.f32.mrf.mxu1 }
 0x11a   : > { %vm1011_vm6 = vcmp.gt.f32.partialorder %v764_v41, 0.0  ;;  %v1075_v43 = vmul.f32 0.2, %v764_v41  ;;  %vm1043_vm7 = vcmp.gt.f32.partialorder %v892_v42, 0.0  ;;  %v1107_v44 = vmul.f32 0.2, %v892_v42 }
 0x11b   : > { %v766_v45 = vpop.f32.mrf.mxu0  ;;  %v894_v46 = vpop.f32.mrf.mxu1 }
 0x11c   : > { %v1139_v49 = vsel %vm1011_vm6, %v764_v41, %v1075_v43  ;;  %v1171_v50 = vsel %vm1043_vm7, %v892_v42, %v1107_v44 }
 0x11d   : > { %v1855_v51 = vpack.c.bf16 %v1139_v49, %v1138_v47  ;;  %v1935_v52 = vpack.c.bf16 %v1171_v50, %v1170_v48  ;;  %v769_v53 = vpop.f32.mrf.mxu0  ;;  %v897_v54 = vpop.f32.mrf.mxu1 }
 0x11e   : > { %v1076_v57 = vmul.f32 0.2, %v769_v53  ;;  %v1108_v58 = vmul.f32 0.2, %v897_v54  ;;  %vm1012_vm8 = vcmp.gt.f32.partialorder %v769_v53, 0.0  ;;  %vm1044_vm9 = vcmp.gt.f32.partialorder %v897_v54, 0.0 }
 0x11f   : > { %2007 = vst [vmem:[%s2421_s29 + $0x8] sm:$0xff] %v1855_v51   ;;  %2023 = vst [vmem:[%s2421_s29 + $0x88] sm:$0xff] %v1935_v52   ;;  %v771_v55 = vpop.f32.mrf.mxu0  ;;  %v899_v56 = vpop.f32.mrf.mxu1 }
 0x120   : > { %v1140_v1 = vsel %vm1012_vm8, %v769_v53, %v1076_v57  ;;  %v1172_v2 = vsel %vm1044_vm9, %v897_v54, %v1108_v58 }
 0x121   : > { %v772_v59 = vpop.f32.mrf.mxu0  ;;  %v900_v60 = vpop.f32.mrf.mxu1 }
 0x122   : > { %vm1013_vm10 = vcmp.gt.f32.partialorder %v772_v59, 0.0  ;;  %v1077_v61 = vmul.f32 0.2, %v772_v59  ;;  %vm1045_vm11 = vcmp.gt.f32.partialorder %v900_v60, 0.0  ;;  %v1109_v62 = vmul.f32 0.2, %v900_v60 }
 0x123   : > { %v774_v63 = vpop.f32.mrf.mxu0  ;;  %v902_v0 = vpop.f32.mrf.mxu1 }
 0x124   : > { %v1141_v3 = vsel %vm1013_vm10, %v772_v59, %v1077_v61  ;;  %v1173_v4 = vsel %vm1045_vm11, %v900_v60, %v1109_v62 }
 0x125   : > { %v1860_v5 = vpack.c.bf16 %v1141_v3, %v1140_v1  ;;  %v1940_v6 = vpack.c.bf16 %v1173_v4, %v1172_v2  ;;  %v777_v7 = vpop.f32.mrf.mxu0  ;;  %v905_v8 = vpop.f32.mrf.mxu1 }
 0x126   : > { %v1078_v11 = vmul.f32 0.2, %v777_v7  ;;  %v1110_v12 = vmul.f32 0.2, %v905_v8  ;;  %vm1014_vm12 = vcmp.gt.f32.partialorder %v777_v7, 0.0  ;;  %vm1046_vm13 = vcmp.gt.f32.partialorder %v905_v8, 0.0 }
 0x127   : > { %2008 = vst [vmem:[%s2421_s29 + $0x10] sm:$0xff] %v1860_v5   ;;  %2024 = vst [vmem:[%s2421_s29 + $0x90] sm:$0xff] %v1940_v6   ;;  %v779_v9 = vpop.f32.mrf.mxu0  ;;  %v907_v10 = vpop.f32.mrf.mxu1 }
 0x128   : > { %v1142_v19 = vsel %vm1014_vm12, %v777_v7, %v1078_v11  ;;  %v1174_v20 = vsel %vm1046_vm13, %v905_v8, %v1110_v12 }
 0x129   : > { %v780_v13 = vpop.f32.mrf.mxu0  ;;  %v908_v14 = vpop.f32.mrf.mxu1 }
 0x12a   : > { %vm1015_vm14 = vcmp.gt.f32.partialorder %v780_v13, 0.0  ;;  %v1079_v15 = vmul.f32 0.2, %v780_v13  ;;  %vm1047_vm15 = vcmp.gt.f32.partialorder %v908_v14, 0.0  ;;  %v1111_v16 = vmul.f32 0.2, %v908_v14 }
 0x12b   : > { %v782_v17 = vpop.f32.mrf.mxu0  ;;  %v910_v18 = vpop.f32.mrf.mxu1 }
 0x12c   : > { %v1143_v21 = vsel %vm1015_vm14, %v780_v13, %v1079_v15  ;;  %v1175_v22 = vsel %vm1047_vm15, %v908_v14, %v1111_v16 }
 0x12d   : > { %v1865_v23 = vpack.c.bf16 %v1143_v21, %v1142_v19  ;;  %v1945_v24 = vpack.c.bf16 %v1175_v22, %v1174_v20  ;;  %v785_v25 = vpop.f32.mrf.mxu0  ;;  %v913_v26 = vpop.f32.mrf.mxu1 }
 0x12e   : > { %v1080_v29 = vmul.f32 0.2, %v785_v25  ;;  %v1112_v30 = vmul.f32 0.2, %v913_v26  ;;  %vm1016_vm0 = vcmp.gt.f32.partialorder %v785_v25, 0.0  ;;  %vm1048_vm1 = vcmp.gt.f32.partialorder %v913_v26, 0.0 }
 0x12f   : > { %2009 = vst [vmem:[%s2421_s29 + $0x18] sm:$0xff] %v1865_v23   ;;  %2025 = vst [vmem:[%s2421_s29 + $0x98] sm:$0xff] %v1945_v24   ;;  %v787_v27 = vpop.f32.mrf.mxu0  ;;  %v915_v28 = vpop.f32.mrf.mxu1 }
 0x130   : > { %v1144_v37 = vsel %vm1016_vm0, %v785_v25, %v1080_v29  ;;  %v1176_v38 = vsel %vm1048_vm1, %v913_v26, %v1112_v30 }
 0x131   : > { %v788_v31 = vpop.f32.mrf.mxu0  ;;  %v916_v32 = vpop.f32.mrf.mxu1 }
 0x132   : > { %vm1017_vm2 = vcmp.gt.f32.partialorder %v788_v31, 0.0  ;;  %v1081_v33 = vmul.f32 0.2, %v788_v31  ;;  %vm1049_vm3 = vcmp.gt.f32.partialorder %v916_v32, 0.0  ;;  %v1113_v34 = vmul.f32 0.2, %v916_v32 }
 0x133   : > { %v790_v35 = vpop.f32.mrf.mxu0  ;;  %v918_v36 = vpop.f32.mrf.mxu1 }
 0x134   : > { %v1145_v39 = vsel %vm1017_vm2, %v788_v31, %v1081_v33  ;;  %v1177_v40 = vsel %vm1049_vm3, %v916_v32, %v1113_v34 }
 0x135   : > { %v1870_v41 = vpack.c.bf16 %v1145_v39, %v1144_v37  ;;  %v1950_v42 = vpack.c.bf16 %v1177_v40, %v1176_v38  ;;  %v793_v43 = vpop.f32.mrf.mxu0  ;;  %v921_v44 = vpop.f32.mrf.mxu1 }
 0x136   : > { %v1082_v47 = vmul.f32 0.2, %v793_v43  ;;  %v1114_v48 = vmul.f32 0.2, %v921_v44  ;;  %vm1018_vm4 = vcmp.gt.f32.partialorder %v793_v43, 0.0  ;;  %vm1050_vm5 = vcmp.gt.f32.partialorder %v921_v44, 0.0 }
 0x137   : > { %2010 = vst [vmem:[%s2421_s29 + $0x20] sm:$0xff] %v1870_v41   ;;  %2026 = vst [vmem:[%s2421_s29 + $0xa0] sm:$0xff] %v1950_v42   ;;  %v795_v45 = vpop.f32.mrf.mxu0  ;;  %v923_v46 = vpop.f32.mrf.mxu1 }
 0x138   : > { %v1146_v55 = vsel %vm1018_vm4, %v793_v43, %v1082_v47  ;;  %v1178_v56 = vsel %vm1050_vm5, %v921_v44, %v1114_v48 }
 0x139   : > { %v796_v49 = vpop.f32.mrf.mxu0  ;;  %v924_v50 = vpop.f32.mrf.mxu1 }
 0x13a   : > { %vm1019_vm6 = vcmp.gt.f32.partialorder %v796_v49, 0.0  ;;  %v1083_v51 = vmul.f32 0.2, %v796_v49  ;;  %vm1051_vm7 = vcmp.gt.f32.partialorder %v924_v50, 0.0  ;;  %v1115_v52 = vmul.f32 0.2, %v924_v50 }
 0x13b   : > { %v798_v53 = vpop.f32.mrf.mxu0  ;;  %v926_v54 = vpop.f32.mrf.mxu1 }
 0x13c   : > { %v1147_v57 = vsel %vm1019_vm6, %v796_v49, %v1083_v51  ;;  %v1179_v58 = vsel %vm1051_vm7, %v924_v50, %v1115_v52 }
 0x13d   : > { %v1875_v59 = vpack.c.bf16 %v1147_v57, %v1146_v55  ;;  %v1955_v60 = vpack.c.bf16 %v1179_v58, %v1178_v56  ;;  %v801_v61 = vpop.f32.mrf.mxu0  ;;  %v929_v62 = vpop.f32.mrf.mxu1 }
 0x13e   : > { %v1084_v1 = vmul.f32 0.2, %v801_v61  ;;  %v1116_v2 = vmul.f32 0.2, %v929_v62  ;;  %vm1020_vm8 = vcmp.gt.f32.partialorder %v801_v61, 0.0  ;;  %vm1052_vm9 = vcmp.gt.f32.partialorder %v929_v62, 0.0 }
 0x13f   : > { %2011 = vst [vmem:[%s2421_s29 + $0x28] sm:$0xff] %v1875_v59   ;;  %2027 = vst [vmem:[%s2421_s29 + $0xa8] sm:$0xff] %v1955_v60   ;;  %v803_v63 = vpop.f32.mrf.mxu0  ;;  %v931_v0 = vpop.f32.mrf.mxu1 }
 0x140   : > { %v1148_v9 = vsel %vm1020_vm8, %v801_v61, %v1084_v1  ;;  %v1180_v10 = vsel %vm1052_vm9, %v929_v62, %v1116_v2 }
 0x141   : > { %v804_v3 = vpop.f32.mrf.mxu0  ;;  %v932_v4 = vpop.f32.mrf.mxu1 }
 0x142   : > { %vm1021_vm10 = vcmp.gt.f32.partialorder %v804_v3, 0.0  ;;  %v1085_v5 = vmul.f32 0.2, %v804_v3  ;;  %vm1053_vm11 = vcmp.gt.f32.partialorder %v932_v4, 0.0  ;;  %v1117_v6 = vmul.f32 0.2, %v932_v4 }
 0x143   : > { %v806_v7 = vpop.f32.mrf.mxu0  ;;  %v934_v8 = vpop.f32.mrf.mxu1 }
 0x144   : > { %v1149_v11 = vsel %vm1021_vm10, %v804_v3, %v1085_v5  ;;  %v1181_v12 = vsel %vm1053_vm11, %v932_v4, %v1117_v6 }
 0x145   : > { %v1880_v13 = vpack.c.bf16 %v1149_v11, %v1148_v9  ;;  %v1960_v14 = vpack.c.bf16 %v1181_v12, %v1180_v10  ;;  %v809_v15 = vpop.f32.mrf.mxu0  ;;  %v937_v16 = vpop.f32.mrf.mxu1 }
 0x146   : > { %v1086_v19 = vmul.f32 0.2, %v809_v15  ;;  %v1118_v20 = vmul.f32 0.2, %v937_v16  ;;  %vm1022_vm12 = vcmp.gt.f32.partialorder %v809_v15, 0.0  ;;  %vm1054_vm13 = vcmp.gt.f32.partialorder %v937_v16, 0.0 }
 0x147   : > { %2012 = vst [vmem:[%s2421_s29 + $0x30] sm:$0xff] %v1880_v13   ;;  %2028 = vst [vmem:[%s2421_s29 + $0xb0] sm:$0xff] %v1960_v14   ;;  %v811_v17 = vpop.f32.mrf.mxu0  ;;  %v939_v18 = vpop.f32.mrf.mxu1 }
 0x148   : > { %v1150_v27 = vsel %vm1022_vm12, %v809_v15, %v1086_v19  ;;  %v1182_v28 = vsel %vm1054_vm13, %v937_v16, %v1118_v20 }
 0x149   : > { %v812_v21 = vpop.f32.mrf.mxu0  ;;  %v940_v22 = vpop.f32.mrf.mxu1 }
 0x14a   : > { %vm1023_vm14 = vcmp.gt.f32.partialorder %v812_v21, 0.0  ;;  %v1087_v23 = vmul.f32 0.2, %v812_v21  ;;  %vm1055_vm15 = vcmp.gt.f32.partialorder %v940_v22, 0.0  ;;  %v1119_v24 = vmul.f32 0.2, %v940_v22 }
 0x14b   : > { %v814_v25 = vpop.f32.mrf.mxu0  ;;  %v942_v26 = vpop.f32.mrf.mxu1 }
 0x14c   : > { %v1151_v29 = vsel %vm1023_vm14, %v812_v21, %v1087_v23  ;;  %v1183_v30 = vsel %vm1055_vm15, %v940_v22, %v1119_v24 }
 0x14d   : > { %v1885_v31 = vpack.c.bf16 %v1151_v29, %v1150_v27  ;;  %v1965_v32 = vpack.c.bf16 %v1183_v30, %v1182_v28  ;;  %v817_v33 = vpop.f32.mrf.mxu0  ;;  %v945_v34 = vpop.f32.mrf.mxu1 }
 0x14e   : > { %v1088_v37 = vmul.f32 0.2, %v817_v33  ;;  %v1120_v38 = vmul.f32 0.2, %v945_v34  ;;  %vm1024_vm0 = vcmp.gt.f32.partialorder %v817_v33, 0.0  ;;  %vm1056_vm1 = vcmp.gt.f32.partialorder %v945_v34, 0.0 }
 0x14f   : > { %2013 = vst [vmem:[%s2421_s29 + $0x38] sm:$0xff] %v1885_v31   ;;  %2029 = vst [vmem:[%s2421_s29 + $0xb8] sm:$0xff] %v1965_v32   ;;  %v819_v35 = vpop.f32.mrf.mxu0  ;;  %v947_v36 = vpop.f32.mrf.mxu1 }
 0x150   : > { %v1152_v45 = vsel %vm1024_vm0, %v817_v33, %v1088_v37  ;;  %v1184_v46 = vsel %vm1056_vm1, %v945_v34, %v1120_v38 }
 0x151   : > { %v820_v39 = vpop.f32.mrf.mxu0  ;;  %v948_v40 = vpop.f32.mrf.mxu1 }
 0x152   : > { %vm1025_vm2 = vcmp.gt.f32.partialorder %v820_v39, 0.0  ;;  %v1089_v41 = vmul.f32 0.2, %v820_v39  ;;  %vm1057_vm3 = vcmp.gt.f32.partialorder %v948_v40, 0.0  ;;  %v1121_v42 = vmul.f32 0.2, %v948_v40 }
 0x153   : > { %v822_v43 = vpop.f32.mrf.mxu0  ;;  %v950_v44 = vpop.f32.mrf.mxu1 }
 0x154   : > { %v1153_v47 = vsel %vm1025_vm2, %v820_v39, %v1089_v41  ;;  %v1185_v48 = vsel %vm1057_vm3, %v948_v40, %v1121_v42 }
 0x155   : > { %v1890_v49 = vpack.c.bf16 %v1153_v47, %v1152_v45  ;;  %v1970_v50 = vpack.c.bf16 %v1185_v48, %v1184_v46  ;;  %v825_v51 = vpop.f32.mrf.mxu0  ;;  %v953_v52 = vpop.f32.mrf.mxu1 }
 0x156   : > { %v1090_v55 = vmul.f32 0.2, %v825_v51  ;;  %v1122_v56 = vmul.f32 0.2, %v953_v52  ;;  %vm1026_vm4 = vcmp.gt.f32.partialorder %v825_v51, 0.0  ;;  %vm1058_vm5 = vcmp.gt.f32.partialorder %v953_v52, 0.0 }
 0x157   : > { %2014 = vst [vmem:[%s2421_s29 + $0x40] sm:$0xff] %v1890_v49   ;;  %2030 = vst [vmem:[%s2421_s29 + $0xc0] sm:$0xff] %v1970_v50   ;;  %v827_v53 = vpop.f32.mrf.mxu0  ;;  %v955_v54 = vpop.f32.mrf.mxu1 }
 0x158   : > { %v1154_v63 = vsel %vm1026_vm4, %v825_v51, %v1090_v55  ;;  %v1186_v0 = vsel %vm1058_vm5, %v953_v52, %v1122_v56 }
 0x159   : > { %v828_v57 = vpop.f32.mrf.mxu0  ;;  %v956_v58 = vpop.f32.mrf.mxu1 }
 0x15a   : > { %vm1027_vm6 = vcmp.gt.f32.partialorder %v828_v57, 0.0  ;;  %v1091_v59 = vmul.f32 0.2, %v828_v57  ;;  %vm1059_vm7 = vcmp.gt.f32.partialorder %v956_v58, 0.0  ;;  %v1123_v60 = vmul.f32 0.2, %v956_v58 }
 0x15b   : > { %v830_v61 = vpop.f32.mrf.mxu0  ;;  %v958_v62 = vpop.f32.mrf.mxu1 }
 0x15c   : > { %v1155_v1 = vsel %vm1027_vm6, %v828_v57, %v1091_v59  ;;  %v1187_v2 = vsel %vm1059_vm7, %v956_v58, %v1123_v60 }
 0x15d   : > { %v1895_v3 = vpack.c.bf16 %v1155_v1, %v1154_v63  ;;  %v1975_v4 = vpack.c.bf16 %v1187_v2, %v1186_v0  ;;  %v833_v5 = vpop.f32.mrf.mxu0  ;;  %v961_v6 = vpop.f32.mrf.mxu1 }
 0x15e   : > { %v1092_v9 = vmul.f32 0.2, %v833_v5  ;;  %v1124_v10 = vmul.f32 0.2, %v961_v6  ;;  %vm1028_vm8 = vcmp.gt.f32.partialorder %v833_v5, 0.0  ;;  %vm1060_vm9 = vcmp.gt.f32.partialorder %v961_v6, 0.0 }
 0x15f   : > { %2015 = vst [vmem:[%s2421_s29 + $0x48] sm:$0xff] %v1895_v3   ;;  %2031 = vst [vmem:[%s2421_s29 + $0xc8] sm:$0xff] %v1975_v4   ;;  %v835_v7 = vpop.f32.mrf.mxu0  ;;  %v963_v8 = vpop.f32.mrf.mxu1 }
 0x160   : > { %v1156_v17 = vsel %vm1028_vm8, %v833_v5, %v1092_v9  ;;  %v1188_v18 = vsel %vm1060_vm9, %v961_v6, %v1124_v10 }
 0x161   : > { %v836_v11 = vpop.f32.mrf.mxu0  ;;  %v964_v12 = vpop.f32.mrf.mxu1 }
 0x162   : > { %vm1029_vm10 = vcmp.gt.f32.partialorder %v836_v11, 0.0  ;;  %v1093_v13 = vmul.f32 0.2, %v836_v11  ;;  %vm1061_vm11 = vcmp.gt.f32.partialorder %v964_v12, 0.0  ;;  %v1125_v14 = vmul.f32 0.2, %v964_v12 }
 0x163   : > { %v838_v15 = vpop.f32.mrf.mxu0  ;;  %v966_v16 = vpop.f32.mrf.mxu1 }
 0x164   : > { %v1157_v19 = vsel %vm1029_vm10, %v836_v11, %v1093_v13  ;;  %v1189_v20 = vsel %vm1061_vm11, %v964_v12, %v1125_v14 }
 0x165   : > { %v1900_v21 = vpack.c.bf16 %v1157_v19, %v1156_v17  ;;  %v1980_v22 = vpack.c.bf16 %v1189_v20, %v1188_v18  ;;  %v841_v23 = vpop.f32.mrf.mxu0  ;;  %v969_v24 = vpop.f32.mrf.mxu1 }
 0x166   : > { %v1094_v27 = vmul.f32 0.2, %v841_v23  ;;  %v1126_v28 = vmul.f32 0.2, %v969_v24  ;;  %vm1030_vm12 = vcmp.gt.f32.partialorder %v841_v23, 0.0  ;;  %vm1062_vm13 = vcmp.gt.f32.partialorder %v969_v24, 0.0 }
 0x167   : > { %2016 = vst [vmem:[%s2421_s29 + $0x50] sm:$0xff] %v1900_v21   ;;  %2032 = vst [vmem:[%s2421_s29 + $0xd0] sm:$0xff] %v1980_v22   ;;  %v843_v25 = vpop.f32.mrf.mxu0  ;;  %v971_v26 = vpop.f32.mrf.mxu1 }
 0x168   : > { %v1158_v35 = vsel %vm1030_vm12, %v841_v23, %v1094_v27  ;;  %v1190_v36 = vsel %vm1062_vm13, %v969_v24, %v1126_v28 }
 0x169   : > { %v844_v29 = vpop.f32.mrf.mxu0  ;;  %v972_v30 = vpop.f32.mrf.mxu1 }
 0x16a   : > { %vm1031_vm14 = vcmp.gt.f32.partialorder %v844_v29, 0.0  ;;  %v1095_v31 = vmul.f32 0.2, %v844_v29  ;;  %vm1063_vm15 = vcmp.gt.f32.partialorder %v972_v30, 0.0  ;;  %v1127_v32 = vmul.f32 0.2, %v972_v30 }
 0x16b   : > { %v846_v33 = vpop.f32.mrf.mxu0  ;;  %v974_v34 = vpop.f32.mrf.mxu1 }
 0x16c   : > { %v1159_v37 = vsel %vm1031_vm14, %v844_v29, %v1095_v31  ;;  %v1191_v38 = vsel %vm1063_vm15, %v972_v30, %v1127_v32 }
 0x16d   : > { %v1905_v39 = vpack.c.bf16 %v1159_v37, %v1158_v35  ;;  %v1985_v40 = vpack.c.bf16 %v1191_v38, %v1190_v36  ;;  %v849_v41 = vpop.f32.mrf.mxu0  ;;  %v977_v42 = vpop.f32.mrf.mxu1 }
 0x16e   : > { %v1096_v45 = vmul.f32 0.2, %v849_v41  ;;  %v1128_v46 = vmul.f32 0.2, %v977_v42  ;;  %vm1032_vm0 = vcmp.gt.f32.partialorder %v849_v41, 0.0  ;;  %vm1064_vm1 = vcmp.gt.f32.partialorder %v977_v42, 0.0 }
 0x16f   : > { %2017 = vst [vmem:[%s2421_s29 + $0x58] sm:$0xff] %v1905_v39   ;;  %2033 = vst [vmem:[%s2421_s29 + $0xd8] sm:$0xff] %v1985_v40   ;;  %v851_v43 = vpop.f32.mrf.mxu0  ;;  %v979_v44 = vpop.f32.mrf.mxu1 }
 0x170   : > { %v1160_v53 = vsel %vm1032_vm0, %v849_v41, %v1096_v45  ;;  %v1192_v54 = vsel %vm1064_vm1, %v977_v42, %v1128_v46 }
 0x171   : > { %v852_v47 = vpop.f32.mrf.mxu0  ;;  %v980_v48 = vpop.f32.mrf.mxu1 }
 0x172   : > { %vm1033_vm2 = vcmp.gt.f32.partialorder %v852_v47, 0.0  ;;  %v1097_v49 = vmul.f32 0.2, %v852_v47  ;;  %vm1065_vm3 = vcmp.gt.f32.partialorder %v980_v48, 0.0  ;;  %v1129_v50 = vmul.f32 0.2, %v980_v48 }
 0x173   : > { %v854_v51 = vpop.f32.mrf.mxu0  ;;  %v982_v52 = vpop.f32.mrf.mxu1 }
 0x174   : > { %v1161_v55 = vsel %vm1033_vm2, %v852_v47, %v1097_v49  ;;  %v1193_v56 = vsel %vm1065_vm3, %v980_v48, %v1129_v50 }
 0x175   : > { %v1910_v57 = vpack.c.bf16 %v1161_v55, %v1160_v53  ;;  %v1990_v58 = vpack.c.bf16 %v1193_v56, %v1192_v54  ;;  %v857_v59 = vpop.f32.mrf.mxu0  ;;  %v985_v60 = vpop.f32.mrf.mxu1 }
 0x176   : > { %v1098_v63 = vmul.f32 0.2, %v857_v59  ;;  %v1130_v0 = vmul.f32 0.2, %v985_v60  ;;  %vm1034_vm4 = vcmp.gt.f32.partialorder %v857_v59, 0.0  ;;  %vm1066_vm5 = vcmp.gt.f32.partialorder %v985_v60, 0.0 }
 0x177   : > { %2018 = vst [vmem:[%s2421_s29 + $0x60] sm:$0xff] %v1910_v57   ;;  %2034 = vst [vmem:[%s2421_s29 + $0xe0] sm:$0xff] %v1990_v58   ;;  %v859_v61 = vpop.f32.mrf.mxu0  ;;  %v987_v62 = vpop.f32.mrf.mxu1 }
 0x178   : > { %v1162_v7 = vsel %vm1034_vm4, %v857_v59, %v1098_v63  ;;  %v1194_v8 = vsel %vm1066_vm5, %v985_v60, %v1130_v0 }
 0x179   : > { %v860_v1 = vpop.f32.mrf.mxu0  ;;  %v988_v2 = vpop.f32.mrf.mxu1 }
 0x17a   : > { %vm1035_vm6 = vcmp.gt.f32.partialorder %v860_v1, 0.0  ;;  %v1099_v3 = vmul.f32 0.2, %v860_v1  ;;  %vm1067_vm7 = vcmp.gt.f32.partialorder %v988_v2, 0.0  ;;  %v1131_v4 = vmul.f32 0.2, %v988_v2 }
 0x17b   : > { %v862_v5 = vpop.f32.mrf.mxu0  ;;  %v990_v6 = vpop.f32.mrf.mxu1 }
 0x17c   : > { %v1163_v9 = vsel %vm1035_vm6, %v860_v1, %v1099_v3  ;;  %v1195_v10 = vsel %vm1067_vm7, %v988_v2, %v1131_v4 }
 0x17d   : > { %v1915_v11 = vpack.c.bf16 %v1163_v9, %v1162_v7  ;;  %v1995_v12 = vpack.c.bf16 %v1195_v10, %v1194_v8  ;;  %v865_v13 = vpop.f32.mrf.mxu0  ;;  %v993_v14 = vpop.f32.mrf.mxu1 }
 0x17e   : > { %v1100_v17 = vmul.f32 0.2, %v865_v13  ;;  %v1132_v18 = vmul.f32 0.2, %v993_v14  ;;  %vm1036_vm8 = vcmp.gt.f32.partialorder %v865_v13, 0.0  ;;  %vm1068_vm9 = vcmp.gt.f32.partialorder %v993_v14, 0.0 }
 0x17f   : > { %2019 = vst [vmem:[%s2421_s29 + $0x68] sm:$0xff] %v1915_v11   ;;  %2035 = vst [vmem:[%s2421_s29 + $0xe8] sm:$0xff] %v1995_v12   ;;  %v867_v15 = vpop.f32.mrf.mxu0  ;;  %v995_v16 = vpop.f32.mrf.mxu1 }
 0x180   : > { %v1164_v25 = vsel %vm1036_vm8, %v865_v13, %v1100_v17  ;;  %v1196_v26 = vsel %vm1068_vm9, %v993_v14, %v1132_v18 }
 0x181   : > { %v868_v19 = vpop.f32.mrf.mxu0  ;;  %v996_v20 = vpop.f32.mrf.mxu1 }
 0x182   : > { %vm1037_vm10 = vcmp.gt.f32.partialorder %v868_v19, 0.0  ;;  %v1101_v21 = vmul.f32 0.2, %v868_v19  ;;  %vm1069_vm11 = vcmp.gt.f32.partialorder %v996_v20, 0.0  ;;  %v1133_v22 = vmul.f32 0.2, %v996_v20 }
 0x183   : > { %v870_v23 = vpop.f32.mrf.mxu0  ;;  %v998_v24 = vpop.f32.mrf.mxu1 }
 0x184   : > { %v1165_v27 = vsel %vm1037_vm10, %v868_v19, %v1101_v21  ;;  %v1197_v28 = vsel %vm1069_vm11, %v996_v20, %v1133_v22 }
 0x185   : > { %v1920_v29 = vpack.c.bf16 %v1165_v27, %v1164_v25  ;;  %v2000_v30 = vpack.c.bf16 %v1197_v28, %v1196_v26  ;;  %v873_v31 = vpop.f32.mrf.mxu0  ;;  %v1001_v32 = vpop.f32.mrf.mxu1 }
 0x186   : > { %v1102_v35 = vmul.f32 0.2, %v873_v31  ;;  %v1134_v36 = vmul.f32 0.2, %v1001_v32  ;;  %vm1038_vm12 = vcmp.gt.f32.partialorder %v873_v31, 0.0  ;;  %vm1070_vm13 = vcmp.gt.f32.partialorder %v1001_v32, 0.0 }
 0x187   : > { %2020 = vst [vmem:[%s2421_s29 + $0x70] sm:$0xff] %v1920_v29   ;;  %2036 = vst [vmem:[%s2421_s29 + $0xf0] sm:$0xff] %v2000_v30   ;;  %v875_v33 = vpop.f32.mrf.mxu0  ;;  %v1003_v34 = vpop.f32.mrf.mxu1 }
 0x188   : > { %v1166_v43 = vsel %vm1038_vm12, %v873_v31, %v1102_v35  ;;  %v1198_v44 = vsel %vm1070_vm13, %v1001_v32, %v1134_v36 }
 0x189   : > { %v876_v37 = vpop.f32.mrf.mxu0  ;;  %v1004_v38 = vpop.f32.mrf.mxu1 }
 0x18a   : > { %vm1039_vm14 = vcmp.gt.f32.partialorder %v876_v37, 0.0  ;;  %v1103_v39 = vmul.f32 0.2, %v876_v37  ;;  %vm1071_vm15 = vcmp.gt.f32.partialorder %v1004_v38, 0.0  ;;  %v1135_v40 = vmul.f32 0.2, %v1004_v38 }
 0x18b   : > { %v878_v41 = vpop.f32.mrf.mxu0  ;;  %v1006_v42 = vpop.f32.mrf.mxu1 }
 0x18c   : > { %v1167_v45 = vsel %vm1039_vm14, %v876_v37, %v1103_v39  ;;  %v1199_v46 = vsel %vm1071_vm15, %v1004_v38, %v1135_v40 }
 0x18d   : > { %v1925_v47 = vpack.c.bf16 %v1167_v45, %v1166_v43  ;;  %v2005_v48 = vpack.c.bf16 %v1199_v46, %v1198_v44 }
 0x18f   : > { %2021 = vst [vmem:[%s2421_s29 + $0x78] sm:$0xff] %v1925_v47   ;;  %2037 = vst [vmem:[%s2421_s29 + $0xf8] sm:$0xff] %v2005_v48  }
 0x190 PF: > { %s12_s11 = sadd.s32 1, %s2229_s11   ;;  %s2467_s9 = smov %s2225_s10 }
 0x191   : > { %p9_p5 = scmp.ge.s32.totalorder %s12_s11, 34   ;;  %s2468_s10 = smov %s2470_s12 }
 0x193   :  { %11 = sbr.rel (!%p9_p5) target bundleno = 2 (0x2), region = 61 }

// kernel: video_reconstructor_forward.18
= control target key start
LH: loop header
LB: loop body
LE: loop exit
PB: predicated region body
PF: predicated region fallthrough
CT: control target
= control target key end

     0   :  { %s3173_s12 = smov 0   ;;  %s3175_s13 = smov 0   ;;  %s3652_s0 = inlined_call_operand.vmem [shape: bf16[1,3072,384], index: 0, kind: input, shape index: {}]   ;;  %s3653_s1 = inlined_call_operand.vmem [shape: bf16[1,384,128], index: 1, kind: input, shape index: {}]   ;;  %s3654_s2 = inlined_call_operand.vmem [shape: bf16[1,3072,128], index: 2, kind: output, shape index: {0}]   ;;  %s3655_s3 = inlined_call_operand.vmem [shape: f32[1,48,128], index: 3, kind: output, shape index: {1}]  }
   0x1   :  { %s3177_s14 = smov 0  }
   0x2 LB: > { %s23_s15 = sadd.s32 1, %s3146_s13  ;;  %p2351_p0 = scmp.ge.s32.totalorder %s3150_s14, 1  ;;  %s3150_s14 = sphi %s3177_s14, %s14_s14   ;;  %s3146_s13 = sphi %s3175_s13, %s3657_s13   ;;  %s3142_s12 = sphi %s3173_s12, %s3656_s12  }
   0x3   : > { %p24_p1 = scmp.ge.s32.totalorder %s23_s15, 6  ;;  %p174_p2 = scmp.lt.s32.totalorder %s3150_s14, 7 }
   0x5   : > { %s3659_s15 = smov (%p24_p1, %s23_s15), 0  ;;  %p175_p3 = pnand %p2351_p0, %p174_p2 }
   0x6   : > { %s2352_s18 = sshll.u32 (!%p175_p3), %s3142_s12, 6  ;;  %p248_p5 = scmp.lt.s32.totalorder (!%p175_p3), %s3142_s12, 5 }
   0x7   : > { %178 = sbr.rel (%p175_p3) target bundleno = 511 (0x1ff), region = 28  ;;  %p223_p4 = scmp.lt.s32.totalorder (!%p175_p3), %s2352_s18, 383 }
   0xc   : > { %v2976_v0 = vld [vmem:[%s3653_s1 + $0x38] sm:$0xff]   ;;  %v3152_v1 = vmov 0   ;;  %v2977_v2 = vld [vmem:[%s3653_s1 + $0x30] sm:$0xff]   ;;  %v2978_v3 = vld [vmem:[%s3653_s1 + $0x28] sm:$0xff]   ;;  %s3661_s18 = smov (!%p223_p4, %s2352_s18), 383  ;;  %s3663_s12 = smov (!%p248_p5, %s3142_s12), 5 }
   0xd   : > { %1087 = vmatprep.subr.bf16.mxu0 %v3152_v1  ;;  %2918 = vmatprep.subr.bf16.mxu1 %v3152_v1  ;;  %v2979_v4 = vld [vmem:[%s3653_s1 + $0x20] sm:$0xff]   ;;  %s2950_s25 = smul.u32 12, %s3661_s18  ;;  %v2980_v5 = vld [vmem:[%s3653_s1 + $0x18] sm:$0xff]   ;;  %v2981_v7 = vld [vmem:[%s3653_s1 + $0x10] sm:$0xff]  }
   0xe   : > { %1088 = vmatpush1.bf16.msra.mxu0 %v2976_v0  ;;  %2934 = vmatpush1.bf16.msra.mxu1 %v2976_v0  ;;  %v2982_v9 = vld [vmem:[%s3653_s1 + $0x8] sm:$0xff]   ;;  %v2983_v10 = vld [vmem:[%s3653_s1] sm:$0xff]   ;;  %v2984_v11 = vld [vmem:[%s3653_s1 + $0x78] sm:$0xff]  }
   0xf   : > { %1089 = vmatprep.subr.bf16.mxu0 %v3152_v1  ;;  %2919 = vmatprep.subr.bf16.mxu1 %v3152_v1  ;;  %s3223_s30 = scalar_lea.vmem %s3652_s0, %s2950_s25  ;;  %v2985_v12 = vld [vmem:[%s3653_s1 + $0x70] sm:$0xff]   ;;  %v2986_v13 = vld [vmem:[%s3653_s1 + $0x68] sm:$0xff]   ;;  %v2987_v14 = vld [vmem:[%s3653_s1 + $0x60] sm:$0xff]  }
  0x10   : > { %v2994_v6 = vld [vmem:[%s3223_s30 + $0x4] ss:$12 sps:$4 sm:$0xff]   ;;  %v2988_v15 = vld [vmem:[%s3653_s1 + $0x58] sm:$0xff]   ;;  %v2990_v17 = vld [vmem:[%s3653_s1 + $0x48] sm:$0xff]  }
  0x11   : > { %v2997_v8 = vld [vmem:[%s3223_s30 + $0x244] ss:$12 sps:$4 sm:$0xff]   ;;  %1119 = vmatprep.mubr.bf16.mxu0 %v2994_v6  ;;  %v3016_v19 = vld [vmem:[%s3653_s1 + $0xb8] sm:$0xff]   ;;  %v2992_v20 = vld [vmem:[%s3223_s30] ss:$12 sps:$4 sm:$0xff]  }
  0x12   : > { %1090 = vmatpush1.bf16.msra.mxu0 %v2977_v2  ;;  %2935 = vmatpush1.bf16.msra.mxu1 %v2977_v2  ;;  %v2989_v16 = vld [vmem:[%s3653_s1 + $0x50] sm:$0xff]   ;;  %v2991_v18 = vld [vmem:[%s3653_s1 + $0x40] sm:$0xff]   ;;  %v2998_v22 = vld [vmem:[%s3223_s30 + $0x1c] ss:$12 sps:$4 sm:$0xff]  }
  0x13   : > { %1091 = vmatprep.subr.bf16.mxu0 %v3152_v1  ;;  %2920 = vmatprep.subr.bf16.mxu1 %v3152_v1  ;;  %v2995_v21 = vld [vmem:[%s3223_s30 + $0x240] ss:$12 sps:$4 sm:$0xff]   ;;  %v3000_v23 = vld [vmem:[%s3223_s30 + $0x25c] ss:$12 sps:$4 sm:$0xff]   ;;  %v3023_v24 = vld [vmem:[%s3653_s1 + $0xb0] sm:$0xff]  }
  0x14   : > { %1311 = vmatprep.mubr.bf16.mxu1 %v2997_v8  ;;  %v3002_v25 = vld [vmem:[%s3223_s30 + $0x18] ss:$12 sps:$4 sm:$0xff]   ;;  %v3030_v26 = vld [vmem:[%s3653_s1 + $0xa8] sm:$0xff]   ;;  %v3004_v28 = vld [vmem:[%s3223_s30 + $0x34] ss:$12 sps:$4 sm:$0xff]  }
  0x15   : > { %v3003_v27 = vld [vmem:[%s3223_s30 + $0x258] ss:$12 sps:$4 sm:$0xff]   ;;  %v3006_v29 = vld [vmem:[%s3223_s30 + $0x274] ss:$12 sps:$4 sm:$0xff]   ;;  %v3008_v31 = vld [vmem:[%s3223_s30 + $0x30] ss:$12 sps:$4 sm:$0xff]  }
  0x16   : > { %1092 = vmatpush1.bf16.msra.mxu0 %v2978_v3  ;;  %2936 = vmatpush1.bf16.msra.mxu1 %v2978_v3  ;;  %v3031_v30 = vld [vmem:[%s3653_s1 + $0xa0] sm:$0xff]   ;;  %v3038_v32 = vld [vmem:[%s3653_s1 + $0x98] sm:$0xff]   ;;  %v3039_v36 = vld [vmem:[%s3653_s1 + $0x90] sm:$0xff]  }
  0x17   : > { %1093 = vmatprep.subr.bf16.mxu0 %v3152_v1  ;;  %2921 = vmatprep.subr.bf16.mxu1 %v3152_v1  ;;  %v3009_v33 = vld [vmem:[%s3223_s30 + $0x270] ss:$12 sps:$4 sm:$0xff]   ;;  %v3010_v34 = vld [vmem:[%s3223_s30 + $0x4c] ss:$12 sps:$4 sm:$0xff]   ;;  %v3014_v37 = vld [vmem:[%s3223_s30 + $0x48] ss:$12 sps:$4 sm:$0xff]  }
  0x18   : > { %v3012_v35 = vld [vmem:[%s3223_s30 + $0x28c] ss:$12 sps:$4 sm:$0xff]   ;;  %v3015_v38 = vld [vmem:[%s3223_s30 + $0x288] ss:$12 sps:$4 sm:$0xff]   ;;  %v3017_v39 = vld [vmem:[%s3223_s30 + $0x64] ss:$12 sps:$4 sm:$0xff]  }
  0x19   : > { %v3019_v40 = vld [vmem:[%s3223_s30 + $0x2a4] ss:$12 sps:$4 sm:$0xff]   ;;  %v3046_v41 = vld [vmem:[%s3653_s1 + $0x88] sm:$0xff]   ;;  %v3032_v49 = vld [vmem:[%s3223_s30 + $0x94] ss:$12 sps:$4 sm:$0xff]  }
  0x1a   : > { %1094 = vmatpush1.bf16.msra.mxu0 %v2979_v4  ;;  %2937 = vmatpush1.bf16.msra.mxu1 %v2979_v4  ;;  %v3047_v42 = vld [vmem:[%s3653_s1 + $0x80] sm:$0xff]   ;;  %v3024_v45 = vld [vmem:[%s3223_s30 + $0x7c] ss:$12 sps:$4 sm:$0xff]   ;;  %v3040_v53 = vld [vmem:[%s3223_s30 + $0xac] ss:$12 sps:$4 sm:$0xff]  }
  0x1b   : > { %1095 = vmatprep.subr.bf16.mxu0 %v3152_v1  ;;  %2922 = vmatprep.subr.bf16.mxu1 %v3152_v1  ;;  %v3021_v43 = vld [vmem:[%s3223_s30 + $0x60] ss:$12 sps:$4 sm:$0xff]   ;;  %v3026_v46 = vld [vmem:[%s3223_s30 + $0x2bc] ss:$12 sps:$4 sm:$0xff]   ;;  %v3028_v47 = vld [vmem:[%s3223_s30 + $0x78] ss:$12 sps:$4 sm:$0xff]  }
  0x1c   : > { %v3022_v44 = vld [vmem:[%s3223_s30 + $0x2a0] ss:$12 sps:$4 sm:$0xff]   ;;  %v3029_v48 = vld [vmem:[%s3223_s30 + $0x2b8] ss:$12 sps:$4 sm:$0xff]   ;;  %v3036_v51 = vld [vmem:[%s3223_s30 + $0x90] ss:$12 sps:$4 sm:$0xff]  }
  0x1d   : > { %v3034_v50 = vld [vmem:[%s3223_s30 + $0x2d4] ss:$12 sps:$4 sm:$0xff]   ;;  %v3037_v52 = vld [vmem:[%s3223_s30 + $0x2d0] ss:$12 sps:$4 sm:$0xff]   ;;  %v3042_v54 = vld [vmem:[%s3223_s30 + $0x2ec] ss:$12 sps:$4 sm:$0xff]  }
  0x1e   : > { %1096 = vmatpush1.bf16.msra.mxu0 %v2980_v5  ;;  %2938 = vmatpush1.bf16.msra.mxu1 %v2980_v5  ;;  %v3044_v55 = vld [vmem:[%s3223_s30 + $0xa8] ss:$12 sps:$4 sm:$0xff]   ;;  %v3048_v57 = vld [vmem:[%s3223_s30 + $0xc4] ss:$12 sps:$4 sm:$0xff]   ;;  %v3051_v59 = vld [vmem:[%s3223_s30 + $0xc0] ss:$12 sps:$4 sm:$0xff]  }
  0x1f   : > { %1097 = vmatprep.subr.bf16.mxu0 %v3152_v1  ;;  %2923 = vmatprep.subr.bf16.mxu1 %v3152_v1  ;;  %v3045_v56 = vld [vmem:[%s3223_s30 + $0x2e8] ss:$12 sps:$4 sm:$0xff]   ;;  %v3052_v60 = vld [vmem:[%s3223_s30 + $0x20] ss:$12 sps:$4 sm:$0xff]   ;;  %v3055_v62 = vld [vmem:[%s3223_s30 + $0x38] ss:$12 sps:$4 sm:$0xff]  }
  0x20   : > { %v3050_v58 = vld [vmem:[%s3223_s30 + $0x8] ss:$12 sps:$4 sm:$0xff]   ;;  %v3056_v63 = vld [vmem:[%s3223_s30 + $0xd8] ss:$12 sps:$4 sm:$0xff]   ;;  %v3057_v0 = vld [vmem:[%s3223_s30 + $0x50] ss:$12 sps:$4 sm:$0xff]  }
  0x21   : > { %v3053_v61 = vld [vmem:[%s3223_s30 + $0xdc] ss:$12 sps:$4 sm:$0xff]   ;;  %v3062_v4 = vld [vmem:[%s3223_s30 + $0x80] ss:$12 sps:$4 sm:$0xff]   ;;  %v3065_v6 = vld [vmem:[%s3223_s30 + $0x98] ss:$12 sps:$4 sm:$0xff]  }
  0x22   : > { %1098 = vmatpush1.bf16.msra.mxu0 %v2981_v7  ;;  %2939 = vmatpush1.bf16.msra.mxu1 %v2981_v7  ;;  %v3060_v2 = vld [vmem:[%s3223_s30 + $0x68] ss:$12 sps:$4 sm:$0xff]   ;;  %v3061_v3 = vld [vmem:[%s3223_s30 + $0xf0] ss:$12 sps:$4 sm:$0xff]   ;;  %v3063_v5 = vld [vmem:[%s3223_s30 + $0x10c] ss:$12 sps:$4 sm:$0xff]  }
  0x23   : > { %1099 = vmatprep.subr.bf16.mxu0 %v3152_v1  ;;  %2924 = vmatprep.subr.bf16.mxu1 %v3152_v1  ;;  %v3066_v7 = vld [vmem:[%s3223_s30 + $0x108] ss:$12 sps:$4 sm:$0xff]   ;;  %v3067_v8 = vld [vmem:[%s3223_s30 + $0xb0] ss:$12 sps:$4 sm:$0xff]  }
  0x26   : > { %1100 = vmatpush1.bf16.msra.mxu0 %v2982_v9  ;;  %2940 = vmatpush1.bf16.msra.mxu1 %v2982_v9  ;;  %v3068_v9 = vld [vmem:[%s3223_s30 + $0x124] ss:$12 sps:$4 sm:$0xff]  }
  0x27   : > { %1101 = vmatprep.subr.bf16.mxu0 %v3152_v1  ;;  %2925 = vmatprep.subr.bf16.mxu1 %v3152_v1 }
  0x2a   : > { %1102 = vmatpush1.bf16.msra.mxu0 %v2983_v10  ;;  %2941 = vmatpush1.bf16.msra.mxu1 %v2983_v10  ;;  %v3070_v10 = vld [vmem:[%s3223_s30 + $0xc8] ss:$12 sps:$4 sm:$0xff]  }
  0x2b   : > { %1103 = vmatprep.subr.bf16.mxu0 %v3152_v1  ;;  %2926 = vmatprep.subr.bf16.mxu1 %v3152_v1 }
  0x2e   : > { %1104 = vmatpush2.bf16.msra.mxu0 %v2984_v11  ;;  %2942 = vmatpush2.bf16.msra.mxu1 %v2984_v11  ;;  %v3071_v11 = vld [vmem:[%s3223_s30 + $0x120] ss:$12 sps:$4 sm:$0xff]  }
  0x2f   : > { %1105 = vmatprep.subr.bf16.mxu0 %v3152_v1  ;;  %2927 = vmatprep.subr.bf16.mxu1 %v3152_v1 }
  0x32   : > { %1106 = vmatpush2.bf16.msra.mxu0 %v2985_v12  ;;  %2943 = vmatpush2.bf16.msra.mxu1 %v2985_v12  ;;  %v3072_v12 = vld [vmem:[%s3223_s30 + $0xe0] ss:$12 sps:$4 sm:$0xff]  }
  0x33   : > { %1107 = vmatprep.subr.bf16.mxu0 %v3152_v1  ;;  %2928 = vmatprep.subr.bf16.mxu1 %v3152_v1 }
  0x36   : > { %1108 = vmatpush2.bf16.msra.mxu0 %v2986_v13  ;;  %2944 = vmatpush2.bf16.msra.mxu1 %v2986_v13  ;;  %v3073_v13 = vld [vmem:[%s3223_s30 + $0x13c] ss:$12 sps:$4 sm:$0xff]  }
  0x37   : > { %1109 = vmatprep.subr.bf16.mxu0 %v3152_v1  ;;  %2929 = vmatprep.subr.bf16.mxu1 %v3152_v1 }
  0x3a   : > { %1110 = vmatpush2.bf16.msra.mxu0 %v2987_v14  ;;  %2945 = vmatpush2.bf16.msra.mxu1 %v2987_v14  ;;  %v3075_v14 = vld [vmem:[%s3223_s30 + $0xf8] ss:$12 sps:$4 sm:$0xff]  }
  0x3b   : > { %1111 = vmatprep.subr.bf16.mxu0 %v3152_v1  ;;  %2930 = vmatprep.subr.bf16.mxu1 %v3152_v1 }
  0x3e   : > { %1112 = vmatpush2.bf16.msra.mxu0 %v2988_v15  ;;  %2946 = vmatpush2.bf16.msra.mxu1 %v2988_v15  ;;  %v3076_v15 = vld [vmem:[%s3223_s30 + $0x138] ss:$12 sps:$4 sm:$0xff]  }
  0x3f   : > { %1113 = vmatprep.subr.bf16.mxu0 %v3152_v1  ;;  %2931 = vmatprep.subr.bf16.mxu1 %v3152_v1 }
  0x42   : > { %1114 = vmatpush2.bf16.msra.mxu0 %v2989_v16  ;;  %2947 = vmatpush2.bf16.msra.mxu1 %v2989_v16  ;;  %v3077_v16 = vld [vmem:[%s3223_s30 + $0x110] ss:$12 sps:$4 sm:$0xff]  }
  0x43   : > { %1115 = vmatprep.subr.bf16.mxu0 %v3152_v1  ;;  %2932 = vmatprep.subr.bf16.mxu1 %v3152_v1 }
  0x46   : > { %1116 = vmatpush2.bf16.msra.mxu0 %v2990_v17  ;;  %2948 = vmatpush2.bf16.msra.mxu1 %v2990_v17  ;;  %v3078_v17 = vld [vmem:[%s3223_s30 + $0x154] ss:$12 sps:$4 sm:$0xff]  }
  0x47   : > { %1117 = vmatprep.subr.bf16.mxu0 %v3152_v1  ;;  %2933 = vmatprep.subr.bf16.mxu1 %v3152_v1  ;;  %v3058_v1 = vld [vmem:[%s3223_s30 + $0xf4] ss:$12 sps:$4 sm:$0xff]  }
  0x4a   : > { %1118 = vmatpush2.bf16.msra.mxu0 %v2991_v18  ;;  %2949 = vmatpush2.bf16.msra.mxu1 %v2991_v18  ;;  %v3080_v18 = vld [vmem:[%s3223_s30 + $0x128] ss:$12 sps:$4 sm:$0xff]  }
  0x4b   : > { %2838 = vmatprep.subr.bf16.mxu1 %v3016_v19 }
  0x4d   : > { %1120 = vmatmul.mubr.bf16.vlgmr.msra.gmra.mxu0 %v2992_v20  ;;  %1312 = vmatmul.mubr.bf16.vlgmr.msra.gmra.mxu1 %v2995_v21  ;;  %v3082_v20 = vld [vmem:[%s3223_s30 + $0x140] ss:$12 sps:$4 sm:$0xff]  }
  0x4e   : > { %1127 = vmatprep.mubr.bf16.mxu0 %v2998_v22  ;;  %1319 = vmatprep.mubr.bf16.mxu1 %v3000_v23  ;;  %v3083_v21 = vld [vmem:[%s3223_s30 + $0x16c] ss:$12 sps:$4 sm:$0xff]   ;;  %v3086_v23 = vld [vmem:[%s3223_s30 + $0x168] ss:$12 sps:$4 sm:$0xff]  }
  0x4f   : > { %2839 = vmatpush3.bf16.msra.mxu1 %v3016_v19  ;;  %v3081_v19 = vld [vmem:[%s3223_s30 + $0x150] ss:$12 sps:$4 sm:$0xff]   ;;  %v3085_v22 = vld [vmem:[%s3223_s30 + $0x158] ss:$12 sps:$4 sm:$0xff]  }
  0x50   : > { %2840 = vmatprep.subr.bf16.mxu1 %v3023_v24 }
  0x53   : > { %2841 = vmatpush3.bf16.msra.mxu1 %v3023_v24  ;;  %v3087_v24 = vld [vmem:[%s3223_s30 + $0x170] ss:$12 sps:$4 sm:$0xff]  }
  0x54   : > { %2842 = vmatprep.subr.bf16.mxu1 %v3030_v26 }
  0x55   : > { %1128 = vmatmul.mubr.bf16.gmra.mxu0 %v3002_v25  ;;  %1320 = vmatmul.mubr.bf16.gmra.mxu1 %v3003_v27  ;;  %v3088_v25 = vld [vmem:[%s3223_s30 + $0x184] ss:$12 sps:$4 sm:$0xff]   ;;  %v3091_v27 = vld [vmem:[%s3223_s30 + $0x180] ss:$12 sps:$4 sm:$0xff]  }
  0x56   : > { %1135 = vmatprep.mubr.bf16.mxu0 %v3004_v28  ;;  %1327 = vmatprep.mubr.bf16.mxu1 %v3006_v29  ;;  %v3092_v28 = vld [vmem:[%s3223_s30 + $0x1a0] ss:$12 sps:$4 sm:$0xff]   ;;  %v3093_v29 = vld [vmem:[%s3223_s30 + $0x19c] ss:$12 sps:$4 sm:$0xff]  }
  0x57   : > { %2843 = vmatpush3.bf16.msra.mxu1 %v3030_v26  ;;  %v3090_v26 = vld [vmem:[%s3223_s30 + $0x188] ss:$12 sps:$4 sm:$0xff]  }
  0x58   : > { %2844 = vmatprep.subr.bf16.mxu1 %v3031_v30 }
  0x5b   : > { %2845 = vmatpush3.bf16.msra.mxu1 %v3031_v30  ;;  %v3095_v30 = vld [vmem:[%s3223_s30 + $0x1b8] ss:$12 sps:$4 sm:$0xff]  }
  0x5c   : > { %2846 = vmatprep.subr.bf16.mxu1 %v3038_v32 }
  0x5d   : > { %1136 = vmatmul.mubr.bf16.gmra.mxu0 %v3008_v31  ;;  %1328 = vmatmul.mubr.bf16.gmra.mxu1 %v3009_v33  ;;  %v3096_v31 = vld [vmem:[%s3223_s30 + $0x198] ss:$12 sps:$4 sm:$0xff]   ;;  %v3098_v33 = vld [vmem:[%s3223_s30 + $0x1b4] ss:$12 sps:$4 sm:$0xff]  }
  0x5e   : > { %1143 = vmatprep.mubr.bf16.mxu0 %v3010_v34  ;;  %1335 = vmatprep.mubr.bf16.mxu1 %v3012_v35  ;;  %v3100_v34 = vld [vmem:[%s3223_s30 + $0x1e8] ss:$12 sps:$4 sm:$0xff]   ;;  %v3101_v35 = vld [vmem:[%s3223_s30 + $0x1b0] ss:$12 sps:$4 sm:$0xff]  }
  0x5f   : > { %2847 = vmatpush3.bf16.msra.mxu1 %v3038_v32  ;;  %v3097_v32 = vld [vmem:[%s3223_s30 + $0x1d0] ss:$12 sps:$4 sm:$0xff]  }
  0x60   : > { %2848 = vmatprep.subr.bf16.mxu1 %v3039_v36 }
  0x63   : > { %2849 = vmatpush3.bf16.msra.mxu1 %v3039_v36  ;;  %v3102_v36 = vld [vmem:[%s3223_s30 + $0x200] ss:$12 sps:$4 sm:$0xff]  }
  0x64   : > { %2850 = vmatprep.subr.bf16.mxu1 %v3046_v41 }
  0x65   : > { %1144 = vmatmul.mubr.bf16.gmra.mxu0 %v3014_v37  ;;  %1336 = vmatmul.mubr.bf16.gmra.mxu1 %v3015_v38  ;;  %v3103_v37 = vld [vmem:[%s3223_s30 + $0x1cc] ss:$12 sps:$4 sm:$0xff]  }
  0x66   : > { %1151 = vmatprep.mubr.bf16.mxu0 %v3017_v39  ;;  %1343 = vmatprep.mubr.bf16.mxu1 %v3019_v40  ;;  %v3105_v38 = vld [vmem:[%s3223_s30 + $0x218] ss:$12 sps:$4 sm:$0xff]   ;;  %v3106_v39 = vld [vmem:[%s3223_s30 + $0x1c8] ss:$12 sps:$4 sm:$0xff]   ;;  %v3107_v40 = vld [vmem:[%s3223_s30 + $0x230] ss:$12 sps:$4 sm:$0xff]  }
  0x67   : > { %2851 = vmatpush3.bf16.msra.mxu1 %v3046_v41  ;;  %v3108_v41 = vld [vmem:[%s3223_s30 + $0x1e4] ss:$12 sps:$4 sm:$0xff]  }
  0x68   : > { %2852 = vmatprep.subr.bf16.mxu1 %v3047_v42 }
  0x6b   : > { %2853 = vmatpush3.bf16.msra.mxu1 %v3047_v42  ;;  %v3110_v42 = vld [vmem:[%s3223_s30 + $0x248] ss:$12 sps:$4 sm:$0xff]  }
  0x6d   : > { %1152 = vmatmul.mubr.bf16.gmra.mxu0 %v3021_v43  ;;  %1344 = vmatmul.mubr.bf16.gmra.mxu1 %v3022_v44  ;;  %v3111_v43 = vld [vmem:[%s3223_s30 + $0x1e0] ss:$12 sps:$4 sm:$0xff]  }
  0x6e   : > { %1159 = vmatprep.mubr.bf16.mxu0 %v3024_v45  ;;  %1351 = vmatprep.mubr.bf16.mxu1 %v3026_v46  ;;  %v3112_v44 = vld [vmem:[%s3223_s30 + $0x260] ss:$12 sps:$4 sm:$0xff]   ;;  %v3113_v45 = vld [vmem:[%s3223_s30 + $0x1fc] ss:$12 sps:$4 sm:$0xff]   ;;  %v3115_v46 = vld [vmem:[%s3223_s30 + $0x278] ss:$12 sps:$4 sm:$0xff]  }
  0x75   : > { %1160 = vmatmul.mubr.bf16.gmra.mxu0 %v3028_v47  ;;  %1352 = vmatmul.mubr.bf16.gmra.mxu1 %v3029_v48  ;;  %v3116_v47 = vld [vmem:[%s3223_s30 + $0x1f8] ss:$12 sps:$4 sm:$0xff]   ;;  %v3117_v48 = vld [vmem:[%s3223_s30 + $0x290] ss:$12 sps:$4 sm:$0xff]  }
  0x76   : > { %1167 = vmatprep.mubr.bf16.mxu0 %v3032_v49  ;;  %1359 = vmatprep.mubr.bf16.mxu1 %v3034_v50  ;;  %v3118_v49 = vld [vmem:[%s3223_s30 + $0x214] ss:$12 sps:$4 sm:$0xff]  }
  0x77   : > { %v3120_v50 = vld [vmem:[%s3223_s30 + $0x2a8] ss:$12 sps:$4 sm:$0xff]  }
  0x7d   : > { %1168 = vmatmul.mubr.bf16.gmra.mxu0 %v3036_v51  ;;  %1360 = vmatmul.mubr.bf16.gmra.mxu1 %v3037_v52  ;;  %v3121_v51 = vld [vmem:[%s3223_s30 + $0x210] ss:$12 sps:$4 sm:$0xff]   ;;  %v3122_v52 = vld [vmem:[%s3223_s30 + $0x2c0] ss:$12 sps:$4 sm:$0xff]  }
  0x7e   : > { %1175 = vmatprep.mubr.bf16.mxu0 %v3040_v53  ;;  %1367 = vmatprep.mubr.bf16.mxu1 %v3042_v54  ;;  %v3123_v53 = vld [vmem:[%s3223_s30 + $0x22c] ss:$12 sps:$4 sm:$0xff]  }
  0x7f   : > { %v3125_v54 = vld [vmem:[%s3223_s30 + $0x2d8] ss:$12 sps:$4 sm:$0xff]  }
  0x85   : > { %1176 = vmatmul.mubr.bf16.gmra.mxu0 %v3044_v55  ;;  %1368 = vmatmul.mubr.bf16.gmra.mxu1 %v3045_v56  ;;  %v3126_v55 = vld [vmem:[%s3223_s30 + $0x228] ss:$12 sps:$4 sm:$0xff]   ;;  %v3127_v56 = vld [vmem:[%s3223_s30 + $0x2f0] ss:$12 sps:$4 sm:$0xff]   ;;  %s2355_s30 = sshll.u32 %s3661_s18, 2  ;;  %s2356_s18 = sshll.u32 %s3663_s12, 3 }
  0x86   : > { %1183 = vmatprep.mubr.bf16.mxu0 %v3048_v57  ;;  %2854 = vmatprep.mubr.bf16.mxu1 %v3050_v58  ;;  %s3474_s28 = scalar_lea.vmem %s3654_s2, %s2355_s30  ;;  %s253_s5 = scalar_lea.vmem %s3655_s3, %s2356_s18 }
  0x8d   : > { %1184 = vmatmul.mubr.bf16.gmra.mxu0 %v3051_v59  ;;  %2855 = vmatmul.mubr.bf16.vlgmr.msra.gmra.mxu1 %v3052_v60 }
  0x8e   : > { %1191 = vmatprep.mubr.bf16.mxu0 %v3053_v61  ;;  %2858 = vmatprep.mubr.bf16.mxu1 %v3055_v62 }
  0x95   : > { %1192 = vmatmul.mubr.bf16.gmra.mxu0 %v3056_v63  ;;  %2859 = vmatmul.mubr.bf16.gmra.mxu1 %v3057_v0 }
  0x96   : > { %1199 = vmatprep.mubr.bf16.mxu0 %v3058_v1  ;;  %2862 = vmatprep.mubr.bf16.mxu1 %v3060_v2 }
  0x9d   : > { %1200 = vmatmul.mubr.bf16.gmra.mxu0 %v3061_v3  ;;  %2863 = vmatmul.mubr.bf16.gmra.mxu1 %v3062_v4 }
  0x9e   : > { %1207 = vmatprep.mubr.bf16.mxu0 %v3063_v5  ;;  %2866 = vmatprep.mubr.bf16.mxu1 %v3065_v6 }
  0xa5   : > { %1208 = vmatmul.mubr.bf16.gmra.mxu0 %v3066_v7  ;;  %2867 = vmatmul.mubr.bf16.gmra.mxu1 %v3067_v8 }
  0xa6   : > { %1215 = vmatprep.mubr.bf16.mxu0 %v3068_v9  ;;  %2870 = vmatprep.mubr.bf16.mxu1 %v3070_v10 }
  0xad   : > { %1216 = vmatmul.mubr.bf16.gmra.mxu0 %v3071_v11  ;;  %2871 = vmatmul.mubr.bf16.gmra.mxu1 %v3072_v12 }
  0xae   : > { %1223 = vmatprep.mubr.bf16.mxu0 %v3073_v13  ;;  %2874 = vmatprep.mubr.bf16.mxu1 %v3075_v14 }
  0xb5   : > { %1224 = vmatmul.mubr.bf16.gmra.mxu0 %v3076_v15  ;;  %2875 = vmatmul.mubr.bf16.gmra.mxu1 %v3077_v16 }
  0xb6   : > { %1231 = vmatprep.mubr.bf16.mxu0 %v3078_v17  ;;  %2878 = vmatprep.mubr.bf16.mxu1 %v3080_v18 }
  0xbd   : > { %1232 = vmatmul.mubr.bf16.gmra.mxu0 %v3081_v19  ;;  %2879 = vmatmul.mubr.bf16.gmra.mxu1 %v3082_v20 }
  0xbe   : > { %1239 = vmatprep.mubr.bf16.mxu0 %v3083_v21  ;;  %2882 = vmatprep.mubr.bf16.mxu1 %v3085_v22 }
  0xc5   : > { %1240 = vmatmul.mubr.bf16.gmra.mxu0 %v3086_v23  ;;  %2883 = vmatmul.mubr.bf16.gmra.mxu1 %v3087_v24 }
  0xc6   : > { %1247 = vmatprep.mubr.bf16.mxu0 %v3088_v25  ;;  %2886 = vmatprep.mubr.bf16.mxu1 %v3090_v26 }
  0xcd   : > { %1248 = vmatmul.mubr.bf16.gmra.mxu0 %v3091_v27  ;;  %2887 = vmatmul.mubr.bf16.gmra.mxu1 %v3092_v28 }
  0xce   : > { %1255 = vmatprep.mubr.bf16.mxu0 %v3093_v29  ;;  %2890 = vmatprep.mubr.bf16.mxu1 %v3095_v30 }
  0xd5   : > { %1256 = vmatmul.mubr.bf16.gmra.mxu0 %v3096_v31  ;;  %2891 = vmatmul.mubr.bf16.gmra.mxu1 %v3097_v32 }
  0xd6   : > { %1263 = vmatprep.mubr.bf16.mxu0 %v3098_v33  ;;  %2894 = vmatprep.mubr.bf16.mxu1 %v3100_v34 }
  0xdd   : > { %1264 = vmatmul.mubr.bf16.gmra.mxu0 %v3101_v35  ;;  %2895 = vmatmul.mubr.bf16.gmra.mxu1 %v3102_v36 }
  0xde   : > { %1271 = vmatprep.mubr.bf16.mxu0 %v3103_v37  ;;  %2898 = vmatprep.mubr.bf16.mxu1 %v3105_v38 }
  0xe5   : > { %1272 = vmatmul.mubr.bf16.gmra.mxu0 %v3106_v39  ;;  %2899 = vmatmul.mubr.bf16.gmra.mxu1 %v3107_v40 }
  0xe6   : > { %1279 = vmatprep.mubr.bf16.mxu0 %v3108_v41  ;;  %2902 = vmatprep.mubr.bf16.mxu1 %v3110_v42 }
  0xed   : > { %1280 = vmatmul.mubr.bf16.gmra.mxu0 %v3111_v43  ;;  %2903 = vmatmul.mubr.bf16.gmra.mxu1 %v3112_v44 }
  0xee   : > { %1287 = vmatprep.mubr.bf16.mxu0 %v3113_v45  ;;  %2906 = vmatprep.mubr.bf16.mxu1 %v3115_v46 }
  0xf5   : > { %1288 = vmatmul.mubr.bf16.gmra.mxu0 %v3116_v47  ;;  %2907 = vmatmul.mubr.bf16.gmra.mxu1 %v3117_v48 }
  0xf6   : > { %1295 = vmatprep.mubr.bf16.mxu0 %v3118_v49  ;;  %2910 = vmatprep.mubr.bf16.mxu1 %v3120_v50 }
  0xfd   : > { %1296 = vmatmul.mubr.bf16.gmra.mxu0 %v3121_v51  ;;  %2911 = vmatmul.mubr.bf16.gmra.mxu1 %v3122_v52 }
  0xfe   : > { %1303 = vmatprep.mubr.bf16.mxu0 %v3123_v53  ;;  %2914 = vmatprep.mubr.bf16.mxu1 %v3125_v54 }
 0x105   : > { %1304 = vmatmul.mubr.bf16.gmra.mxu0 %v3126_v55  ;;  %2915 = vmatmul.mubr.bf16.gmra.mxu1 %v3127_v56 }
 0x10d   : > { %v3402_v57 = vpop.f32.mrf.mxu0  ;;  %v3404_v58 = vpop.f32.mrf.mxu1 }
 0x10f   : > { %v1123_v59 = vpop.f32.mrf.mxu0  ;;  %v1315_v60 = vpop.f32.mrf.mxu1 }
 0x111   : > { %v3406_v61 = vpop.f32.mrf.mxu0  ;;  %v3408_v62 = vpop.f32.mrf.mxu1 }
 0x113   : > { %v1126_v63 = vpop.f32.mrf.mxu0  ;;  %v1318_v0 = vpop.f32.mrf.mxu1 }
 0x115   : > { %v3410_v1 = vpop.f32.mrf.mxu0  ;;  %v3412_v2 = vpop.f32.mrf.mxu1 }
 0x117   : > { %v1131_v3 = vpop.f32.mrf.mxu0  ;;  %v1323_v4 = vpop.f32.mrf.mxu1 }
 0x119   : > { %v1132_v5 = vpop.f32.mrf.mxu0  ;;  %v3414_v6 = vpop.f32.mrf.mxu1 }
 0x11b   : > { %v1134_v7 = vpop.f32.mrf.mxu0  ;;  %v1326_v8 = vpop.f32.mrf.mxu1 }
 0x11d   : > { %v3416_v9 = vpop.f32.mrf.mxu0  ;;  %v3418_v10 = vpop.f32.mrf.mxu1 }
 0x11f   : > { %v1139_v11 = vpop.f32.mrf.mxu0  ;;  %v1331_v12 = vpop.f32.mrf.mxu1 }
 0x121   : > { %v3420_v13 = vpop.f32.mrf.mxu0  ;;  %v3422_v14 = vpop.f32.mrf.mxu1 }
 0x123   : > { %v1142_v15 = vpop.f32.mrf.mxu0  ;;  %v1334_v16 = vpop.f32.mrf.mxu1 }
 0x125   : > { %v3424_v17 = vpop.f32.mrf.mxu0  ;;  %v3426_v18 = vpop.f32.mrf.mxu1 }
 0x127   : > { %v1147_v19 = vpop.f32.mrf.mxu0  ;;  %v1339_v20 = vpop.f32.mrf.mxu1 }
 0x129   : > { %v3428_v21 = vpop.f32.mrf.mxu0  ;;  %v3430_v22 = vpop.f32.mrf.mxu1 }
 0x12b   : > { %v1150_v23 = vpop.f32.mrf.mxu0  ;;  %v1342_v24 = vpop.f32.mrf.mxu1 }
 0x12d   : > { %v3432_v25 = vpop.f32.mrf.mxu0  ;;  %v3434_v26 = vpop.f32.mrf.mxu1 }
 0x12f   : > { %v1155_v27 = vpop.f32.mrf.mxu0  ;;  %v1347_v28 = vpop.f32.mrf.mxu1 }
 0x131   : > { %v3436_v29 = vpop.f32.mrf.mxu0  ;;  %v3438_v30 = vpop.f32.mrf.mxu1 }
 0x133   : > { %v1158_v31 = vpop.f32.mrf.mxu0  ;;  %v1350_v32 = vpop.f32.mrf.mxu1 }
 0x135   : > { %v3440_v33 = vpop.f32.mrf.mxu0  ;;  %v3442_v34 = vpop.f32.mrf.mxu1 }
 0x137   : > { %v1163_v35 = vpop.f32.mrf.mxu0  ;;  %v1355_v36 = vpop.f32.mrf.mxu1 }
 0x139   : > { %v3444_v37 = vpop.f32.mrf.mxu0  ;;  %v3446_v38 = vpop.f32.mrf.mxu1 }
 0x13b   : > { %v1166_v39 = vpop.f32.mrf.mxu0  ;;  %v1358_v40 = vpop.f32.mrf.mxu1 }
 0x13d   : > { %v3448_v41 = vpop.f32.mrf.mxu0  ;;  %v3450_v42 = vpop.f32.mrf.mxu1 }
 0x13f   : > { %v1171_v43 = vpop.f32.mrf.mxu0  ;;  %v1363_v44 = vpop.f32.mrf.mxu1 }
 0x141   : > { %v3452_v45 = vpop.f32.mrf.mxu0  ;;  %v3454_v46 = vpop.f32.mrf.mxu1 }
 0x143   : > { %v1174_v47 = vpop.f32.mrf.mxu0  ;;  %v1366_v48 = vpop.f32.mrf.mxu1 }
 0x145   : > { %v3456_v49 = vpop.f32.mrf.mxu0  ;;  %v3458_v50 = vpop.f32.mrf.mxu1 }
 0x147   : > { %v1179_v51 = vpop.f32.mrf.mxu0  ;;  %v1371_v52 = vpop.f32.mrf.mxu1 }
 0x149   : > { %v3460_v53 = vpop.f32.mrf.mxu0  ;;  %v3462_v54 = vpop.f32.mrf.mxu1 }
 0x14b   : > { %v1182_v55 = vpop.f32.mrf.mxu0  ;;  %v1374_v56 = vpop.f32.mrf.mxu1 }
 0x14d   : > { %v3464_v59 = vpop.f32.mrf.mxu0  ;;  %v2856_v60 = vpop.f32.mrf.mxu1 }
 0x14e   : > { %v1419_v7 = vadd.f32 %v2856_v60, %v3410_v1 }
 0x14f   : > { %v1187_v63 = vpop.f32.mrf.mxu0  ;;  %v1410_v0 = vpop.f32.mrf.mxu1 }
 0x150   : > { %v1411_v8 = vadd.f32 %v1410_v0, %v3402_v57  ;;  %v2056_v31 = vmul.f32 %v1419_v7, %v1419_v7 }
 0x151   : > { %v3467_v3 = vpop.f32.mrf.mxu0  ;;  %v2857_v4 = vpop.f32.mrf.mxu1 }
 0x152   : > { %v1422_v11 = vadd.f32 %v2857_v4, %v1132_v5  ;;  %v2054_v24 = vmul.f32 %v1411_v8, %v1411_v8 }
 0x153   : > { %v1190_v12 = vpop.f32.mrf.mxu0  ;;  %v1413_v15 = vpop.f32.mrf.mxu1 }
 0x154   : > { %v2615_v16 = vpack.c.bf16 %v1422_v11, %v1419_v7  ;;  %v1414_v19 = vadd.f32 %v1413_v15, %v3406_v61  ;;  %v2057_v39 = vmul.f32 %v1422_v11, %v1422_v11 }
 0x155   : > { %v3477_v20 = vpop.f32.mrf.mxu0  ;;  %v2860_v23 = vpop.f32.mrf.mxu1 }
 0x156   : > { %2767 = vst [vmem:[%s3474_s28 + $0x8] sm:$0xff] %v2615_v16   ;;  %v2610_v1 = vpack.c.bf16 %v1414_v19, %v1411_v8  ;;  %v1985_v57 = vadd.f32 %v1414_v19, %v1411_v8  ;;  %v2055_v5 = vmul.f32 %v1414_v19, %v1414_v19  ;;  %v1435_v44 = vadd.f32 %v2860_v23, %v3424_v17 }
 0x157   : > { %v1195_v27 = vpop.f32.mrf.mxu0  ;;  %v1426_v28 = vpop.f32.mrf.mxu1 }
 0x158   : > { %2611 = vst [vmem:[%s3474_s28] sm:$0xff] %v2610_v1   ;;  %v1986_v32 = vadd.f32 %v1985_v57, %v1419_v7  ;;  %v2118_v35 = vadd.f32 %v2055_v5, %v2054_v24  ;;  %v1427_v36 = vadd.f32 %v1426_v28, %v3416_v9 }
 0x159   : > { %v3482_v40 = vpop.f32.mrf.mxu0  ;;  %v2861_v61 = vpop.f32.mrf.mxu1 }
 0x15a   : > { %v2119_v43 = vadd.f32 %v2118_v35, %v2056_v31  ;;  %v1987_v47 = vadd.f32 %v1986_v32, %v1422_v11  ;;  %v1438_v48 = vadd.f32 %v2861_v61, %v3428_v21  ;;  %v2058_v56 = vmul.f32 %v1427_v36, %v1427_v36 }
 0x15b   : > { %v1198_v51 = vpop.f32.mrf.mxu0  ;;  %v1429_v52 = vpop.f32.mrf.mxu1  ;;  %v2060_v21 = vmul.f32 %v1435_v44, %v1435_v44 }
 0x15c   : > { %v1988_v55 = vadd.f32 %v1987_v47, %v1427_v36  ;;  %v2120_v60 = vadd.f32 %v2119_v43, %v2057_v39  ;;  %v2625_v63 = vpack.c.bf16 %v1438_v48, %v1435_v44  ;;  %v1430_v9 = vadd.f32 %v1429_v52, %v3420_v13 }
 0x15d   : > { %v3487_v0 = vpop.f32.mrf.mxu0  ;;  %v2864_v4 = vpop.f32.mrf.mxu1  ;;  %v2061_v5 = vmul.f32 %v1438_v48, %v1438_v48 }
 0x15e   : > { %v2121_v7 = vadd.f32 %v2120_v60, %v2058_v56  ;;  %2769 = vst [vmem:[%s3474_s28 + $0x18] sm:$0xff] %v2625_v63   ;;  %v2620_v8 = vpack.c.bf16 %v1430_v9, %v1427_v36  ;;  %v1989_v12 = vadd.f32 %v1988_v55, %v1430_v9  ;;  %v2059_v17 = vmul.f32 %v1430_v9, %v1430_v9 }
 0x15f   : > { %v1203_v11 = vpop.f32.mrf.mxu0  ;;  %v1442_v15 = vpop.f32.mrf.mxu1  ;;  %v1451_v1 = vadd.f32 %v2864_v4, %v3440_v33 }
 0x160   : > { %2768 = vst [vmem:[%s3474_s28 + $0x10] sm:$0xff] %v2620_v8   ;;  %v1990_v16 = vadd.f32 %v1989_v12, %v1435_v44  ;;  %v2122_v19 = vadd.f32 %v2121_v7, %v2059_v17  ;;  %v1443_v23 = vadd.f32 %v1442_v15, %v3432_v25 }
 0x161   : > { %v3492_v24 = vpop.f32.mrf.mxu0  ;;  %v2865_v13 = vpop.f32.mrf.mxu1 }
 0x162   : > { %v1454_v57 = vadd.f32 %v2865_v13, %v3444_v37  ;;  %v2123_v27 = vadd.f32 %v2122_v19, %v2060_v21  ;;  %v1991_v28 = vadd.f32 %v1990_v16, %v1438_v48  ;;  %v2062_v61 = vmul.f32 %v1443_v23, %v1443_v23 }
 0x163   : > { %v1206_v31 = vpop.f32.mrf.mxu0  ;;  %v1445_v32 = vpop.f32.mrf.mxu1  ;;  %v2064_v48 = vmul.f32 %v1451_v1, %v1451_v1 }
 0x164   : > { %v2635_v35 = vpack.c.bf16 %v1454_v57, %v1451_v1  ;;  %v1446_v36 = vadd.f32 %v1445_v32, %v3436_v29  ;;  %v1992_v39 = vadd.f32 %v1991_v28, %v1443_v23  ;;  %v2124_v25 = vadd.f32 %v2123_v27, %v2061_v5 }
 0x165   : > { %v3497_v43 = vpop.f32.mrf.mxu0  ;;  %v2868_v44 = vpop.f32.mrf.mxu1  ;;  %v2065_v8 = vmul.f32 %v1454_v57, %v1454_v57 }
 0x166   : > { %2771 = vst [vmem:[%s3474_s28 + $0x28] sm:$0xff] %v2635_v35   ;;  %v2630_v47 = vpack.c.bf16 %v1446_v36, %v1443_v23  ;;  %v2063_v33 = vmul.f32 %v1446_v36, %v1446_v36  ;;  %v2125_v51 = vadd.f32 %v2124_v25, %v2062_v61  ;;  %v1993_v37 = vadd.f32 %v1992_v39, %v1446_v36 }
 0x167   : > { %v1211_v52 = vpop.f32.mrf.mxu0  ;;  %v1458_v55 = vpop.f32.mrf.mxu1  ;;  %v1467_v4 = vadd.f32 %v2868_v44, %v3456_v49 }
 0x168   : > { %2770 = vst [vmem:[%s3474_s28 + $0x20] sm:$0xff] %v2630_v47   ;;  %v1994_v56 = vadd.f32 %v1993_v37, %v1451_v1  ;;  %v2126_v60 = vadd.f32 %v2125_v51, %v2063_v33  ;;  %v1459_v63 = vadd.f32 %v1458_v55, %v3448_v41 }
 0x169   : > { %v1212_v29 = vpop.f32.mrf.mxu0  ;;  %v2869_v9 = vpop.f32.mrf.mxu1 }
 0x16a   : > { %v1470_v7 = vadd.f32 %v2869_v9, %v3460_v53  ;;  %v2127_v12 = vadd.f32 %v2126_v60, %v2064_v48  ;;  %v1995_v17 = vadd.f32 %v1994_v56, %v1454_v57  ;;  %v2066_v23 = vmul.f32 %v1459_v63, %v1459_v63 }
 0x16b   : > { %v1214_v11 = vpop.f32.mrf.mxu0  ;;  %v1461_v15 = vpop.f32.mrf.mxu1  ;;  %v2068_v57 = vmul.f32 %v1467_v4, %v1467_v4 }
 0x16c   : > { %v2645_v21 = vpack.c.bf16 %v1470_v7, %v1467_v4  ;;  %v1462_v16 = vadd.f32 %v1461_v15, %v3452_v45  ;;  %v1996_v19 = vadd.f32 %v1995_v17, %v1459_v63  ;;  %v2128_v13 = vadd.f32 %v2127_v12, %v2065_v8 }
 0x16d   : > { %v3505_v41 = vpop.f32.mrf.mxu0  ;;  %v2872_v1 = vpop.f32.mrf.mxu1  ;;  %v2069_v44 = vmul.f32 %v1470_v7, %v1470_v7 }
 0x16e   : > { %2773 = vst [vmem:[%s3474_s28 + $0x38] sm:$0xff] %v2645_v21   ;;  %v2640_v5 = vpack.c.bf16 %v1462_v16, %v1459_v63  ;;  %v2067_v49 = vmul.f32 %v1462_v16, %v1462_v16  ;;  %v2129_v27 = vadd.f32 %v2128_v13, %v2066_v23  ;;  %v1997_v53 = vadd.f32 %v1996_v19, %v1462_v16 }
 0x16f   : > { %v1219_v28 = vpop.f32.mrf.mxu0  ;;  %v1474_v31 = vpop.f32.mrf.mxu1  ;;  %v1483_v61 = vadd.f32 %v2872_v1, %v3477_v20 }
 0x170   : > { %2772 = vst [vmem:[%s3474_s28 + $0x30] sm:$0xff] %v2640_v5   ;;  %v1998_v32 = vadd.f32 %v1997_v53, %v1467_v4  ;;  %v2130_v35 = vadd.f32 %v2129_v27, %v2067_v49  ;;  %v1475_v36 = vadd.f32 %v1474_v31, %v3464_v59 }
 0x171   : > { %v3510_v45 = vpop.f32.mrf.mxu0  ;;  %v2873_v39 = vpop.f32.mrf.mxu1 }
 0x172   : > { %v1486_v25 = vadd.f32 %v2873_v39, %v3482_v40  ;;  %v2131_v47 = vadd.f32 %v2130_v35, %v2068_v57  ;;  %v1999_v33 = vadd.f32 %v1998_v32, %v1470_v7  ;;  %v2070_v56 = vmul.f32 %v1475_v36, %v1475_v36 }
 0x173   : > { %v1222_v51 = vpop.f32.mrf.mxu0  ;;  %v1477_v37 = vpop.f32.mrf.mxu1  ;;  %v2072_v7 = vmul.f32 %v1483_v61, %v1483_v61 }
 0x174   : > { %v2655_v52 = vpack.c.bf16 %v1486_v25, %v1483_v61  ;;  %v1478_v55 = vadd.f32 %v1477_v37, %v3467_v3  ;;  %v2000_v48 = vadd.f32 %v1999_v33, %v1475_v36  ;;  %v2132_v59 = vadd.f32 %v2131_v47, %v2069_v44 }
 0x175   : > { %v1225_v60 = vpop.f32.mrf.mxu0  ;;  %v2876_v63 = vpop.f32.mrf.mxu1  ;;  %v2073_v23 = vmul.f32 %v1486_v25, %v1486_v25 }
 0x176   : > { %2775 = vst [vmem:[%s3474_s28 + $0x48] sm:$0xff] %v2655_v52   ;;  %v2650_v9 = vpack.c.bf16 %v1478_v55, %v1475_v36  ;;  %v2071_v4 = vmul.f32 %v1478_v55, %v1478_v55  ;;  %v2133_v20 = vadd.f32 %v2132_v59, %v2070_v56  ;;  %v2001_v8 = vadd.f32 %v2000_v48, %v1478_v55 }
 0x177   : > { %v1227_v40 = vpop.f32.mrf.mxu0  ;;  %v1490_v12 = vpop.f32.mrf.mxu1  ;;  %v1499_v16 = vadd.f32 %v2876_v63, %v3497_v43 }
 0x178   : > { %2774 = vst [vmem:[%s3474_s28 + $0x40] sm:$0xff] %v2650_v9   ;;  %v2002_v17 = vadd.f32 %v2001_v8, %v1483_v61  ;;  %v2134_v11 = vadd.f32 %v2133_v20, %v2071_v4  ;;  %v1491_v15 = vadd.f32 %v1490_v12, %v3487_v0 }
 0x179   : > { %v1228_v21 = vpop.f32.mrf.mxu0  ;;  %v2877_v3 = vpop.f32.mrf.mxu1 }
 0x17a   : > { %v1502_v19 = vadd.f32 %v2877_v3, %v1212_v29  ;;  %v2135_v13 = vadd.f32 %v2134_v11, %v2072_v7  ;;  %v2003_v1 = vadd.f32 %v2002_v17, %v1486_v25  ;;  %v2074_v31 = vmul.f32 %v1491_v15, %v1491_v15 }
 0x17b   : > { %v1230_v5 = vpop.f32.mrf.mxu0  ;;  %v1493_v49 = vpop.f32.mrf.mxu1  ;;  %v2076_v25 = vmul.f32 %v1499_v16, %v1499_v16 }
 0x17c   : > { %v2665_v27 = vpack.c.bf16 %v1502_v19, %v1499_v16  ;;  %v1494_v53 = vadd.f32 %v1493_v49, %v3492_v24  ;;  %v2004_v28 = vadd.f32 %v2003_v1, %v1491_v15  ;;  %v2136_v57 = vadd.f32 %v2135_v13, %v2073_v23 }
 0x17d   : > { %v1233_v32 = vpop.f32.mrf.mxu0  ;;  %v2880_v0 = vpop.f32.mrf.mxu1  ;;  %v2077_v52 = vmul.f32 %v1502_v19, %v1502_v19 }
 0x17e   : > { %2777 = vst [vmem:[%s3474_s28 + $0x58] sm:$0xff] %v2665_v27   ;;  %v2660_v35 = vpack.c.bf16 %v1494_v53, %v1491_v15  ;;  %v2075_v36 = vmul.f32 %v1494_v53, %v1494_v53  ;;  %v2137_v39 = vadd.f32 %v2136_v57, %v2074_v31  ;;  %v2005_v43 = vadd.f32 %v2004_v28, %v1494_v53 }
 0x17f   : > { %v1235_v29 = vpop.f32.mrf.mxu0  ;;  %v1506_v61 = vpop.f32.mrf.mxu1  ;;  %v1515_v24 = vadd.f32 %v2880_v0, %v1225_v60 }
 0x180   : > { %2776 = vst [vmem:[%s3474_s28 + $0x50] sm:$0xff] %v2660_v35   ;;  %v2006_v44 = vadd.f32 %v2005_v43, %v1499_v16  ;;  %v2138_v47 = vadd.f32 %v2137_v39, %v2075_v36  ;;  %v1507_v48 = vadd.f32 %v1506_v61, %v3505_v41 }
 0x181   : > { %v1236_v33 = vpop.f32.mrf.mxu0  ;;  %v2881_v51 = vpop.f32.mrf.mxu1  ;;  %v2080_v57 = vmul.f32 %v1515_v24, %v1515_v24 }
 0x182   : > { %v1518_v37 = vadd.f32 %v2881_v51, %v1228_v21  ;;  %v2139_v55 = vadd.f32 %v2138_v47, %v2076_v25  ;;  %v2007_v4 = vadd.f32 %v2006_v44, %v1502_v19  ;;  %v2078_v7 = vmul.f32 %v1507_v48, %v1507_v48 }
 0x183   : > { %v1238_v56 = vpop.f32.mrf.mxu0  ;;  %v1509_v59 = vpop.f32.mrf.mxu1 }
 0x184   : > { %v2675_v63 = vpack.c.bf16 %v1518_v37, %v1515_v24  ;;  %v1510_v9 = vadd.f32 %v1509_v59, %v3510_v45  ;;  %v2140_v20 = vadd.f32 %v2139_v55, %v2077_v52  ;;  %v2008_v11 = vadd.f32 %v2007_v4, %v1507_v48 }
 0x185   : > { %v1241_v8 = vpop.f32.mrf.mxu0  ;;  %v2884_v40 = vpop.f32.mrf.mxu1  ;;  %v2081_v61 = vmul.f32 %v1518_v37, %v1518_v37 }
 0x186   : > { %2779 = vst [vmem:[%s3474_s28 + $0x68] sm:$0xff] %v2675_v63   ;;  %v2670_v12 = vpack.c.bf16 %v1510_v9, %v1507_v48  ;;  %v2141_v15 = vadd.f32 %v2140_v20, %v2078_v7  ;;  %v2079_v21 = vmul.f32 %v1510_v9, %v1510_v9  ;;  %v1531_v16 = vadd.f32 %v2884_v40, %v1241_v8 }
 0x187   : > { %v1243_v17 = vpop.f32.mrf.mxu0  ;;  %v1522_v60 = vpop.f32.mrf.mxu1  ;;  %v2009_v49 = vadd.f32 %v2008_v11, %v1510_v9 }
 0x188   : > { %2778 = vst [vmem:[%s3474_s28 + $0x60] sm:$0xff] %v2670_v12   ;;  %v1523_v13 = vadd.f32 %v1522_v60, %v1233_v32  ;;  %v2142_v27 = vadd.f32 %v2141_v15, %v2079_v21 }
 0x189   : > { %v1244_v41 = vpop.f32.mrf.mxu0  ;;  %v2885_v3 = vpop.f32.mrf.mxu1  ;;  %v2010_v36 = vadd.f32 %v2009_v49, %v1515_v24 }
 0x18a   : > { %v1534_v23 = vadd.f32 %v2885_v3, %v1244_v41  ;;  %v2143_v39 = vadd.f32 %v2142_v27, %v2080_v57  ;;  %v2082_v56 = vmul.f32 %v1523_v13, %v1523_v13  ;;  %v2084_v41 = vmul.f32 %v1531_v16, %v1531_v16 }
 0x18b   : > { %v1246_v45 = vpop.f32.mrf.mxu0  ;;  %v1525_v19 = vpop.f32.mrf.mxu1 }
 0x18c   : > { %v2685_v1 = vpack.c.bf16 %v1534_v23, %v1531_v16  ;;  %v1526_v5 = vadd.f32 %v1525_v19, %v1236_v33  ;;  %v2011_v33 = vadd.f32 %v2010_v36, %v1518_v37  ;;  %v2144_v51 = vadd.f32 %v2143_v39, %v2081_v61 }
 0x18d   : > { %v1249_v53 = vpop.f32.mrf.mxu0  ;;  %v2888_v28 = vpop.f32.mrf.mxu1 }
 0x18e   : > { %2781 = vst [vmem:[%s3474_s28 + $0x78] sm:$0xff] %v2685_v1   ;;  %v2680_v31 = vpack.c.bf16 %v1526_v5, %v1523_v13  ;;  %v2012_v24 = vadd.f32 %v2011_v33, %v1523_v13  ;;  %v2145_v9 = vadd.f32 %v2144_v51, %v2082_v56  ;;  %v2083_v4 = vmul.f32 %v1526_v5, %v1526_v5 }
 0x18f   : > { %v1251_v0 = vpop.f32.mrf.mxu0  ;;  %v1538_v35 = vpop.f32.mrf.mxu1 }
 0x190   : > { %2780 = vst [vmem:[%s3474_s28 + $0x70] sm:$0xff] %v2680_v31   ;;  %v1539_v44 = vadd.f32 %v1538_v35, %v1249_v53  ;;  %v2013_v37 = vadd.f32 %v2012_v24, %v1526_v5  ;;  %v2146_v11 = vadd.f32 %v2145_v9, %v2083_v4 }
 0x191   : > { %v1252_v43 = vpop.f32.mrf.mxu0  ;;  %v2889_v29 = vpop.f32.mrf.mxu1 }
 0x192   : > { %v2014_v19 = vadd.f32 %v2013_v37, %v1531_v16  ;;  %v2147_v13 = vadd.f32 %v2146_v11, %v2084_v41 }
 0x193   : > { %v1254_v25 = vpop.f32.mrf.mxu0  ;;  %v1541_v32 = vpop.f32.mrf.mxu1 }
 0x194   : > { %v1542_v47 = vadd.f32 %v1541_v32, %v1252_v43  ;;  %v2015_v0 = vadd.f32 %v2014_v19, %v1534_v23  ;;  %v2086_v43 = vmul.f32 %v1539_v44, %v1539_v44 }
 0x195   : > { %v1257_v52 = vpop.f32.mrf.mxu0  ;;  %v2892_v55 = vpop.f32.mrf.mxu1 }
 0x196   : > { %v2690_v48 = vpack.c.bf16 %v1542_v47, %v1539_v44  ;;  %v1547_v40 = vadd.f32 %v2888_v28, %v1257_v52  ;;  %v2085_v28 = vmul.f32 %v1534_v23, %v1534_v23  ;;  %v2016_v16 = vadd.f32 %v2015_v0, %v1539_v44 }
 0x197   : > { %v1259_v59 = vpop.f32.mrf.mxu0  ;;  %v1554_v63 = vpop.f32.mrf.mxu1  ;;  %v2087_v32 = vmul.f32 %v1542_v47, %v1542_v47 }
 0x198   : > { %2782 = vst [vmem:[%s3474_s28 + $0x80] sm:$0xff] %v2690_v48   ;;  %v2148_v35 = vadd.f32 %v2147_v13, %v2085_v28  ;;  %v2088_v9 = vmul.f32 %v1547_v40, %v1547_v40 }
 0x199   : > { %v1260_v20 = vpop.f32.mrf.mxu0  ;;  %v2893_v8 = vpop.f32.mrf.mxu1 }
 0x19a   : > { %v1550_v12 = vadd.f32 %v2889_v29, %v1260_v20  ;;  %v2149_v25 = vadd.f32 %v2148_v35, %v2086_v43 }
 0x19b   : > { %v1262_v7 = vpop.f32.mrf.mxu0  ;;  %v1557_v17 = vpop.f32.mrf.mxu1 }
 0x19c   : > { %v2695_v60 = vpack.c.bf16 %v1550_v12, %v1547_v40  ;;  %v2150_v24 = vadd.f32 %v2149_v25, %v2087_v32  ;;  %v2089_v44 = vmul.f32 %v1550_v12, %v1550_v12 }
 0x19d   : > { %v1265_v15 = vpop.f32.mrf.mxu0  ;;  %v3529_v21 = vpop.f32.mrf.mxu1 }
 0x19e   : > { %2783 = vst [vmem:[%s3474_s28 + $0x88] sm:$0xff] %v2695_v60   ;;  %v1555_v27 = vadd.f32 %v1554_v63, %v1265_v15  ;;  %v2017_v63 = vadd.f32 %v2016_v16, %v1542_v47  ;;  %v2151_v37 = vadd.f32 %v2150_v24, %v2088_v9 }
 0x19f   : > { %v1267_v3 = vpop.f32.mrf.mxu0  ;;  %v1570_v45 = vpop.f32.mrf.mxu1 }
 0x1a0   : > { %v2018_v60 = vadd.f32 %v2017_v63, %v1547_v40  ;;  %v2090_v19 = vmul.f32 %v1555_v27, %v1555_v27  ;;  %v2152_v28 = vadd.f32 %v2151_v37, %v2089_v44 }
 0x1a1   : > { %v1268_v1 = vpop.f32.mrf.mxu0  ;;  %v3532_v49 = vpop.f32.mrf.mxu1 }
 0x1a2   : > { %v1558_v53 = vadd.f32 %v1557_v17, %v1268_v1  ;;  %v2019_v3 = vadd.f32 %v2018_v60, %v1550_v12  ;;  %v2153_v12 = vadd.f32 %v2152_v28, %v2090_v19 }
 0x1a3   : > { %v1270_v31 = vpop.f32.mrf.mxu0  ;;  %v1573_v57 = vpop.f32.mrf.mxu1 }
 0x1a4   : > { %v2700_v5 = vpack.c.bf16 %v1558_v53, %v1555_v27 }
 0x1a5   : > { %v1273_v36 = vpop.f32.mrf.mxu0  ;;  %v3534_v39 = vpop.f32.mrf.mxu1 }
 0x1a6   : > { %2784 = vst [vmem:[%s3474_s28 + $0x90] sm:$0xff] %v2700_v5   ;;  %v1563_v52 = vadd.f32 %v2892_v55, %v1273_v36  ;;  %v2020_v5 = vadd.f32 %v2019_v3, %v1555_v27 }
 0x1a7   : > { %v1275_v29 = vpop.f32.mrf.mxu0  ;;  %v3537_v61 = vpop.f32.mrf.mxu1 }
 0x1a8   : > { %v2021_v35 = vadd.f32 %v2020_v5, %v1558_v53  ;;  %v2092_v36 = vmul.f32 %v1563_v52, %v1563_v52 }
 0x1a9   : > { %v1276_v33 = vpop.f32.mrf.mxu0  ;;  %v3539_v51 = vpop.f32.mrf.mxu1 }
 0x1aa   : > { %v1566_v48 = vadd.f32 %v2893_v8, %v1276_v33  ;;  %v2022_v25 = vadd.f32 %v2021_v35, %v1563_v52 }
 0x1ab   : > { %v1278_v56 = vpop.f32.mrf.mxu0  ;;  %v3541_v23 = vpop.f32.mrf.mxu1 }
 0x1ac   : > { %v2705_v59 = vpack.c.bf16 %v1566_v48, %v1563_v52  ;;  %v2093_v32 = vmul.f32 %v1566_v48, %v1566_v48 }
 0x1ad   : > { %v1281_v4 = vpop.f32.mrf.mxu0  ;;  %v2904_v20 = vpop.f32.mrf.mxu1 }
 0x1ae   : > { %2785 = vst [vmem:[%s3474_s28 + $0x98] sm:$0xff] %v2705_v59   ;;  %v1571_v41 = vadd.f32 %v1570_v45, %v1281_v4  ;;  %v3545_v55 = vadd.f32 %v2904_v20, %v3412_v2  ;;  %v2091_v45 = vmul.f32 %v1558_v53, %v1558_v53  ;;  %v2023_v4 = vadd.f32 %v2022_v25, %v1566_v48 }
 0x1af   : > { %v1283_v7 = vpop.f32.mrf.mxu0  ;;  %v1602_v17 = vpop.f32.mrf.mxu1 }
 0x1b0   : > { %v3553_v2 = vadd.f32 %v1602_v17, %v3404_v58  ;;  %v2154_v16 = vadd.f32 %v2153_v12, %v2091_v45  ;;  %v2094_v24 = vmul.f32 %v1571_v41, %v1571_v41  ;;  %v2024_v60 = vadd.f32 %v2023_v4, %v1571_v41 }
 0x1b1   : > { %v1284_v11 = vpop.f32.mrf.mxu0  ;;  %v2905_v15 = vpop.f32.mrf.mxu1 }
 0x1b2   : > { %v1574_v8 = vadd.f32 %v1573_v57, %v1284_v11  ;;  %v3548_v47 = vadd.f32 %v2905_v15, %v3414_v6  ;;  %v2155_v63 = vadd.f32 %v2154_v16, %v2092_v36 }
 0x1b3   : > { %v1286_v13 = vpop.f32.mrf.mxu0  ;;  %v1605_v1 = vpop.f32.mrf.mxu1 }
 0x1b4   : > { %v2710_v31 = vpack.c.bf16 %v1574_v8, %v1571_v41  ;;  %v2735_v40 = vpack.c.bf16 %v3548_v47, %v3545_v55  ;;  %v3556_v57 = vadd.f32 %v1605_v1, %v3408_v62  ;;  %v2095_v17 = vmul.f32 %v1574_v8, %v1574_v8 }
 0x1b5   : > { %v1289_v6 = vpop.f32.mrf.mxu0  ;;  %v2908_v0 = vpop.f32.mrf.mxu1 }
 0x1b6   : > { %2786 = vst [vmem:[%s3474_s28 + $0xa0] sm:$0xff] %v2710_v31   ;;  %2791 = vst [vmem:[%s3474_s28 + $0xc8] sm:$0xff] %v2735_v40   ;;  %v2730_v43 = vpack.c.bf16 %v3556_v57, %v3553_v2  ;;  %v1579_v62 = vadd.f32 %v3529_v21, %v1289_v6  ;;  %v3565_v56 = vadd.f32 %v2908_v0, %v3426_v18 }
 0x1b7   : > { %v1291_v29 = vpop.f32.mrf.mxu0  ;;  %v1618_v27 = vpop.f32.mrf.mxu1  ;;  %v2156_v21 = vadd.f32 %v2155_v63, %v2093_v32 }
 0x1b8   : > { %2790 = vst [vmem:[%s3474_s28 + $0xc0] sm:$0xff] %v2730_v43   ;;  %v3574_v18 = vadd.f32 %v1618_v27, %v3418_v10  ;;  %v2096_v48 = vmul.f32 %v1579_v62, %v1579_v62  ;;  %v2025_v10 = vadd.f32 %v2024_v60, %v1574_v8 }
 0x1b9   : > { %v1292_v58 = vpop.f32.mrf.mxu0  ;;  %v2909_v33 = vpop.f32.mrf.mxu1  ;;  %v2157_v37 = vadd.f32 %v2156_v21, %v2094_v24 }
 0x1ba   : > { %v1582_v59 = vadd.f32 %v3532_v49, %v1292_v58  ;;  %v3569_v53 = vadd.f32 %v2909_v33, %v3430_v22  ;;  %v2026_v31 = vadd.f32 %v2025_v10, %v1579_v62  ;;  %v2105_v10 = vmul.f32 %v3548_v47, %v3548_v47 }
 0x1bb   : > { %v1294_v9 = vpop.f32.mrf.mxu0  ;;  %v1621_v52 = vpop.f32.mrf.mxu1  ;;  %v2158_v13 = vadd.f32 %v2157_v37, %v2095_v17 }
 0x1bc   : > { %v2715_v20 = vpack.c.bf16 %v1582_v59, %v1579_v62  ;;  %v2745_v7 = vpack.c.bf16 %v3569_v53, %v3565_v56  ;;  %v3577_v49 = vadd.f32 %v1621_v52, %v3422_v14  ;;  %v2097_v1 = vmul.f32 %v1582_v59, %v1582_v59 }
 0x1bd   : > { %v1297_v22 = vpop.f32.mrf.mxu0  ;;  %v2912_v44 = vpop.f32.mrf.mxu1  ;;  %v2027_v0 = vadd.f32 %v2026_v31, %v1582_v59 }
 0x1be   : > { %2787 = vst [vmem:[%s3474_s28 + $0xa8] sm:$0xff] %v2715_v20   ;;  %2793 = vst [vmem:[%s3474_s28 + $0xd8] sm:$0xff] %v2745_v7   ;;  %v2740_v11 = vpack.c.bf16 %v3577_v49, %v3574_v18  ;;  %v1587_v15 = vadd.f32 %v3537_v61, %v1297_v22  ;;  %v3586_v41 = vadd.f32 %v2912_v44, %v3442_v34 }
 0x1bf   : > { %v1299_v3 = vpop.f32.mrf.mxu0  ;;  %v1634_v19 = vpop.f32.mrf.mxu1  ;;  %v2159_v61 = vadd.f32 %v2158_v13, %v2096_v48 }
 0x1c0   : > { %2792 = vst [vmem:[%s3474_s28 + $0xd0] sm:$0xff] %v2740_v11   ;;  %v2098_v45 = vmul.f32 %v1587_v15, %v1587_v15  ;;  %v1635_v34 = vadd.f32 %v1634_v19, %v3434_v26  ;;  %v2028_v27 = vadd.f32 %v2027_v0, %v1587_v15  ;;  %v2103_v11 = vmul.f32 %v3556_v57, %v3556_v57 }
 0x1c1   : > { %v1300_v14 = vpop.f32.mrf.mxu0  ;;  %v2913_v28 = vpop.f32.mrf.mxu1  ;;  %v2160_v36 = vadd.f32 %v2159_v61, %v2097_v1  ;;  %v2106_v1 = vmul.f32 %v3574_v18, %v3574_v18 }
 0x1c2   : > { %v1590_v40 = vadd.f32 %v3541_v23, %v1300_v14  ;;  %v3590_v5 = vadd.f32 %v2913_v28, %v3446_v38  ;;  %v2107_v28 = vmul.f32 %v3577_v49, %v3577_v49 }
 0x1c3   : > { %v1302_v6 = vpop.f32.mrf.mxu0  ;;  %v1637_v8 = vpop.f32.mrf.mxu1  ;;  %v2161_v25 = vadd.f32 %v2160_v36, %v2098_v45 }
 0x1c4   : > { %v2720_v12 = vpack.c.bf16 %v1590_v40, %v1587_v15  ;;  %v2755_v35 = vpack.c.bf16 %v3590_v5, %v3586_v41  ;;  %v2099_v43 = vmul.f32 %v1590_v40, %v1590_v40  ;;  %v1638_v23 = vadd.f32 %v1637_v8, %v3438_v30 }
 0x1c5   : > { %v1305_v29 = vpop.f32.mrf.mxu0  ;;  %v2916_v38 = vpop.f32.mrf.mxu1  ;;  %v2029_v62 = vadd.f32 %v2028_v27, %v1590_v40 }
 0x1c6   : > { %2788 = vst [vmem:[%s3474_s28 + $0xb0] sm:$0xff] %v2720_v12   ;;  %2795 = vst [vmem:[%s3474_s28 + $0xe8] sm:$0xff] %v2755_v35   ;;  %v1595_v16 = vadd.f32 %v3534_v39, %v1305_v29  ;;  %v2750_v32 = vpack.c.bf16 %v1638_v23, %v1635_v34  ;;  %v2162_v63 = vadd.f32 %v2161_v25, %v2099_v43 }
 0x1c7   : > { %v1307_v58 = vpop.f32.mrf.mxu0  ;;  %v1650_v33 = vpop.f32.mrf.mxu1  ;;  %v1659_v30 = vadd.f32 %v2916_v38, %v3458_v50  ;;  %v2102_v50 = vmul.f32 %v3553_v2, %v3553_v2  ;;  %v2111_v35 = vmul.f32 %v1638_v23, %v1638_v23 }
 0x1c8   : > { %v2100_v59 = vmul.f32 %v1595_v16, %v1595_v16  ;;  %2794 = vst [vmem:[%s3474_s28 + $0xe0] sm:$0xff] %v2750_v32   ;;  %v2030_v9 = vadd.f32 %v2029_v62, %v1595_v16  ;;  %v1651_v60 = vadd.f32 %v1650_v33, %v3450_v42  ;;  %v2104_v42 = vmul.f32 %v3545_v55, %v3545_v55 }
 0x1c9   : > { %v1308_v26 = vpop.f32.mrf.mxu0  ;;  %v2917_v24 = vpop.f32.mrf.mxu1  ;;  %v2116_v33 = vmul.f32 %v1659_v30, %v1659_v30 }
 0x1ca   : > { %v1598_v52 = vadd.f32 %v3539_v51, %v1308_v26  ;;  %v1662_v4 = vadd.f32 %v2917_v24, %v3462_v54  ;;  %v2163_v39 = vadd.f32 %v2162_v63, %v2100_v59 }
 0x1cb   : > { %v1310_v20 = vpop.f32.mrf.mxu0  ;;  %v1653_v7 = vpop.f32.mrf.mxu1 }
 0x1cc   : > { %v2725_v21 = vpack.c.bf16 %v1598_v52, %v1595_v16  ;;  %v2031_v17 = vadd.f32 %v2030_v9, %v1598_v52  ;;  %v2101_v22 = vmul.f32 %v1598_v52, %v1598_v52  ;;  %v2765_v44 = vpack.c.bf16 %v1662_v4, %v1659_v30 }
 0x1cd   : > { %v1654_v37 = vadd.f32 %v1653_v7, %v3454_v46  ;;  %v2114_v16 = vmul.f32 %v1651_v60, %v1651_v60  ;;  %v2117_v63 = vmul.f32 %v1662_v4, %v1662_v4 }
 0x1ce   : > { %2789 = vst [vmem:[%s3474_s28 + $0xb8] sm:$0xff] %v2725_v21   ;;  %v2032_v51 = vadd.f32 %v2031_v17, %v3553_v2  ;;  %v2164_v48 = vadd.f32 %v2163_v39, %v2101_v22  ;;  %2797 = vst [vmem:[%s3474_s28 + $0xf8] sm:$0xff] %v2765_v44   ;;  %v2187_v39 = vlaneseq }
 0x1cf   : > { %v2760_v54 = vpack.c.bf16 %v1654_v37, %v1651_v60  ;;  %v2115_v58 = vmul.f32 %v1654_v37, %v1654_v37 }
 0x1d0   : > { %v2033_v15 = vadd.f32 %v2032_v51, %v3556_v57  ;;  %v2165_v3 = vadd.f32 %v2164_v48, %v2102_v50  ;;  %v2188_v22 = vshrl.u32 %v2187_v39, 7 }
 0x1d1   : > { %2796 = vst [vmem:[%s3474_s28 + $0xf0] sm:$0xff] %v2760_v54  }
 0x1d2   : > { %v2034_v46 = vadd.f32 %v2033_v15, %v3545_v55  ;;  %v2166_v19 = vadd.f32 %v2165_v3, %v2103_v11  ;;  %v2108_v55 = vmul.f32 %v3565_v56, %v3565_v56  ;;  %vm2190_vm0 = vcmp.eq.s32.totalorder %v2188_v22, 1 }
 0x1d3   : > { %vm2189_vm1 = vcmp.eq.s32.totalorder %v2188_v22, 0 }
 0x1d4   : > { %v2035_v2 = vadd.f32 %v2034_v46, %v3548_v47  ;;  %v2167_v13 = vadd.f32 %v2166_v19, %v2104_v42  ;;  %v2109_v47 = vmul.f32 %v3569_v53, %v3569_v53 }
 0x1d6   : > { %v2036_v14 = vadd.f32 %v2035_v2, %v3574_v18  ;;  %v2168_v57 = vadd.f32 %v2167_v13, %v2105_v10  ;;  %v2110_v18 = vmul.f32 %v1635_v34, %v1635_v34 }
 0x1d8   : > { %v2037_v31 = vadd.f32 %v2036_v14, %v3577_v49  ;;  %v2169_v40 = vadd.f32 %v2168_v57, %v2106_v1  ;;  %v2112_v49 = vmul.f32 %v3586_v41, %v3586_v41 }
 0x1da   : > { %v2170_v61 = vadd.f32 %v2169_v40, %v2107_v28  ;;  %v2038_v45 = vadd.f32 %v2037_v31, %v3565_v56  ;;  %v2113_v56 = vmul.f32 %v3590_v5, %v3590_v5 }
 0x1dc   : > { %v2039_v6 = vadd.f32 %v2038_v45, %v3569_v53  ;;  %v2171_v8 = vadd.f32 %v2170_v61, %v2108_v55 }
 0x1de   : > { %v2040_v0 = vadd.f32 %v2039_v6, %v1635_v34  ;;  %v2172_v12 = vadd.f32 %v2171_v8, %v2109_v47 }
 0x1e0   : > { %v2041_v36 = vadd.f32 %v2040_v0, %v1638_v23  ;;  %v2173_v43 = vadd.f32 %v2172_v12, %v2110_v18 }
 0x1e2   : > { %v2042_v29 = vadd.f32 %v2041_v36, %v3586_v41  ;;  %v2174_v38 = vadd.f32 %v2173_v43, %v2111_v35 }
 0x1e4   : > { %v2043_v27 = vadd.f32 %v2042_v29, %v3590_v5  ;;  %v2175_v53 = vadd.f32 %v2174_v38, %v2112_v49 }
 0x1e6   : > { %v2044_v25 = vadd.f32 %v2043_v27, %v1651_v60  ;;  %v2176_v34 = vadd.f32 %v2175_v53, %v2113_v56 }
 0x1e8   : > { %v2045_v32 = vadd.f32 %v2044_v25, %v1654_v37  ;;  %v2177_v23 = vadd.f32 %v2176_v34, %v2114_v16 }
 0x1ea   : > { %v2046_v62 = vadd.f32 %v2045_v32, %v1659_v30  ;;  %v2178_v59 = vadd.f32 %v2177_v23, %v2115_v58 }
 0x1ec   : > { %v2047_v41 = vadd.f32 %v2046_v62, %v1662_v4  ;;  %v2179_v26 = vadd.f32 %v2178_v59, %v2116_v33 }
 0x1ee   : > { %v2048_v24 = vrot.slane %v2047_v41, 4  ;;  %v2180_v9 = vadd.f32 %v2179_v26, %v2117_v63 }
 0x1f0   : > { %v2049_v52 = vadd.f32 %v2048_v24, %v2047_v41  ;;  %v2181_v5 = vrot.slane %v2180_v9, 4 }
 0x1f2   : > { %v2050_v20 = vrot.slane %v2049_v52, 2  ;;  %v2182_v7 = vadd.f32 %v2181_v5, %v2180_v9 }
 0x1f4   : > { %v2051_v21 = vadd.f32 %v2050_v20, %v2049_v52  ;;  %v2183_v17 = vrot.slane %v2182_v7, 2 }
 0x1f6   : > { %v2184_v44 = vadd.f32 %v2183_v17, %v2182_v7  ;;  %v2052_v60 = vrot.slane %v2051_v21, 1 }
 0x1f8   : > { %v2185_v30 = vrot.slane %v2184_v44, 1  ;;  %v2053_v4 = vadd.f32 %v2052_v60, %v2051_v21 }
 0x1fa   : > { %v2186_v37 = vadd.f32 %v2185_v30, %v2184_v44 }
 0x1fc   : > { %v2191_v50 = vsel %vm2190_vm0, %v2186_v37, 0.0 }
 0x1fd   : > { %v2192_v51 = vsel %vm2189_vm1, %v2053_v4, %v2191_v50 }
 0x1fe   : > { %2193 = vst [vmem:[%s253_s5] sm:$0xff] %v2192_v51 }
 0x1ff PF: > { %s14_s14 = sadd.s32 1, %s3150_s14   ;;  %s3656_s12 = smov %s3146_s13 }
 0x200   : > { %p11_p6 = scmp.ge.s32.totalorder %s14_s14, 8   ;;  %s3657_s13 = smov %s3659_s15 }
 0x202   :  { %13 = sbr.rel (!%p11_p6) target bundleno = 2 (0x2), region = 73 }

// kernel: video_reconstructor_forward.19
= control target key start
LH: loop header
LB: loop body
LE: loop exit
PB: predicated region body
PF: predicated region fallthrough
CT: control target
= control target key end

     0   :  { %s1638_s12 = smov 0   ;;  %s1640_s13 = smov 0   ;;  %s1885_s0 = inlined_call_operand.vmem [shape: bf16[1,3072,128], index: 0, kind: input, shape index: {}]   ;;  %s1886_s1 = inlined_call_operand.vmem [shape: f32[1,128], index: 1, kind: input, shape index: {}]   ;;  %s1887_s2 = inlined_call_operand.vmem [shape: f32[1,128], index: 2, kind: input, shape index: {}]   ;;  %s1888_s3 = inlined_call_operand.vmem [shape: bf16[1,3072,128], index: 3, kind: output, shape index: {}]  }
   0x1   :  { %s1642_s14 = smov 0  }
   0x2 LB: > { %s22_s15 = sadd.s32 1, %s1612_s13  ;;  %p1083_p0 = scmp.ge.s32.totalorder %s1616_s14, 1  ;;  %s1616_s14 = sphi %s1642_s14, %s13_s14   ;;  %s1612_s13 = sphi %s1640_s13, %s1890_s13   ;;  %s1608_s12 = sphi %s1638_s12, %s1889_s12  }
   0x3   : > { %p23_p1 = scmp.ge.s32.totalorder %s22_s15, 6  ;;  %p158_p2 = scmp.lt.s32.totalorder %s1616_s14, 7 }
   0x5   : > { %s1892_s15 = smov (%p23_p1, %s22_s15), 0  ;;  %p159_p3 = pnand %p1083_p0, %p158_p2 }
   0x6   : > { %s1084_s16 = sshll.u32 (!%p159_p3), %s1608_s12, 6 }
   0x7   : > { %162 = sbr.rel (%p159_p3) target bundleno = 128 (0x80), region = 32  ;;  %p193_p4 = scmp.lt.s32.totalorder (!%p159_p3), %s1084_s16, 383 }
   0xc   : > { %s1894_s16 = smov (!%p193_p4, %s1084_s16), 383  ;;  %v1669_v0 = vld [vmem:[%s1886_s1] ss:$0 sm:$0xff] }
   0xd   : > { %s1085_s17 = sshll.u32 %s1894_s16, 2  ;;  %v1678_v9 = vld [vmem:[%s1887_s2] ss:$0 sm:$0xff] }
   0xe   : > { %s1664_s20 = scalar_lea.vmem %s1885_s0, %s1085_s17  ;;  %s1701_s27 = scalar_lea.vmem %s1888_s3, %s1085_s17 }
   0xf   : > { %v1221_v1 = vld [vmem:[%s1664_s20] sm:$0xff]   ;;  %v1508_v2 = vld [vmem:[%s1664_s20 + $0x8] sm:$0xff]   ;;  %v1509_v3 = vld [vmem:[%s1664_s20 + $0x10] sm:$0xff]  }
  0x10   : > { %v1222_v4 = vunpack.c.l.bf16 %v1221_v1  ;;  %v1223_v5 = vunpack.c.h.bf16 %v1221_v1  ;;  %v1226_v6 = vunpack.c.l.bf16 %v1508_v2  ;;  %v1227_v7 = vunpack.c.h.bf16 %v1508_v2  ;;  %v1510_v8 = vld [vmem:[%s1664_s20 + $0x18] sm:$0xff]   ;;  %v1511_v36 = vld [vmem:[%s1664_s20 + $0x20] sm:$0xff]   ;;  %v1512_v41 = vld [vmem:[%s1664_s20 + $0x28] sm:$0xff]  }
  0x11   : > { %v1230_v10 = vunpack.c.l.bf16 %v1509_v3  ;;  %v1231_v11 = vunpack.c.h.bf16 %v1509_v3  ;;  %v1234_v12 = vunpack.c.l.bf16 %v1510_v8  ;;  %v1235_v13 = vunpack.c.h.bf16 %v1510_v8  ;;  %v1513_v52 = vld [vmem:[%s1664_s20 + $0x30] sm:$0xff]   ;;  %v1514_v53 = vld [vmem:[%s1664_s20 + $0x38] sm:$0xff]  }
  0x12   : > { %v345_v14 = vmul.f32 %v1222_v4, %v1669_v0  ;;  %v346_v15 = vmul.f32 %v1223_v5, %v1669_v0  ;;  %v347_v16 = vmul.f32 %v1226_v6, %v1669_v0  ;;  %v348_v17 = vmul.f32 %v1227_v7, %v1669_v0 }
  0x13   : > { %v349_v18 = vmul.f32 %v1230_v10, %v1669_v0  ;;  %v350_v19 = vmul.f32 %v1231_v11, %v1669_v0  ;;  %v351_v20 = vmul.f32 %v1234_v12, %v1669_v0  ;;  %v352_v21 = vmul.f32 %v1235_v13, %v1669_v0 }
  0x14   : > { %v416_v22 = vadd.f32 %v1678_v9, %v345_v14  ;;  %v417_v23 = vadd.f32 %v1678_v9, %v346_v15  ;;  %v418_v24 = vadd.f32 %v1678_v9, %v347_v16  ;;  %v419_v25 = vadd.f32 %v1678_v9, %v348_v17 }
  0x15   : > { %v420_v26 = vadd.f32 %v1678_v9, %v349_v18  ;;  %v421_v27 = vadd.f32 %v1678_v9, %v350_v19  ;;  %v422_v28 = vadd.f32 %v1678_v9, %v351_v20  ;;  %v423_v29 = vadd.f32 %v1678_v9, %v352_v21  ;;  %v1515_v20 = vld [vmem:[%s1664_s20 + $0x40] sm:$0xff]  }
  0x16   : > { %vm480_vm0 = vcmp.gt.f32.partialorder %v416_v22, 0.0  ;;  %vm481_vm1 = vcmp.gt.f32.partialorder %v417_v23, 0.0  ;;  %v544_v30 = vmul.f32 0.2, %v416_v22  ;;  %v545_v31 = vmul.f32 0.2, %v417_v23 }
  0x17   : > { %vm482_vm2 = vcmp.gt.f32.partialorder %v418_v24, 0.0  ;;  %vm483_vm3 = vcmp.gt.f32.partialorder %v419_v25, 0.0  ;;  %v546_v32 = vmul.f32 0.2, %v418_v24  ;;  %v547_v33 = vmul.f32 0.2, %v419_v25 }
  0x18   : > { %v608_v34 = vsel %vm480_vm0, %v416_v22, %v544_v30  ;;  %v609_v35 = vsel %vm481_vm1, %v417_v23, %v545_v31  ;;  %vm484_vm4 = vcmp.gt.f32.partialorder %v420_v26, 0.0  ;;  %vm485_vm5 = vcmp.gt.f32.partialorder %v421_v27, 0.0 }
  0x19   : > { %v1351_v37 = vpack.c.bf16 %v609_v35, %v608_v34  ;;  %v610_v38 = vsel %vm482_vm2, %v418_v24, %v546_v32  ;;  %v611_v39 = vsel %vm483_vm3, %v419_v25, %v547_v33  ;;  %v548_v40 = vmul.f32 0.2, %v420_v26  ;;  %v1516_v24 = vld [vmem:[%s1664_s20 + $0x48] sm:$0xff]  }
  0x1a   : > { %v1356_v42 = vpack.c.bf16 %v611_v39, %v610_v38  ;;  %v549_v43 = vmul.f32 0.2, %v421_v27  ;;  %vm486_vm6 = vcmp.gt.f32.partialorder %v422_v28, 0.0  ;;  %vm487_vm7 = vcmp.gt.f32.partialorder %v423_v29, 0.0 }
  0x1b   : > { %1352 = vst [vmem:[%s1701_s27] sm:$0xff] %v1351_v37   ;;  %v612_v44 = vsel %vm484_vm4, %v420_v26, %v548_v40  ;;  %v550_v45 = vmul.f32 0.2, %v422_v28  ;;  %v551_v46 = vmul.f32 0.2, %v423_v29  ;;  %v1238_v47 = vunpack.c.l.bf16 %v1511_v36 }
  0x1c   : > { %1539 = vst [vmem:[%s1701_s27 + $0x8] sm:$0xff] %v1356_v42   ;;  %v613_v48 = vsel %vm485_vm5, %v421_v27, %v549_v43  ;;  %v1239_v49 = vunpack.c.h.bf16 %v1511_v36  ;;  %v1242_v50 = vunpack.c.l.bf16 %v1512_v41  ;;  %v1243_v51 = vunpack.c.h.bf16 %v1512_v41  ;;  %v1517_v36 = vld [vmem:[%s1664_s20 + $0x50] sm:$0xff]  }
  0x1d   : > { %v1361_v54 = vpack.c.bf16 %v613_v48, %v612_v44  ;;  %v614_v55 = vsel %vm486_vm6, %v422_v28, %v550_v45  ;;  %v615_v56 = vsel %vm487_vm7, %v423_v29, %v551_v46  ;;  %v353_v57 = vmul.f32 %v1238_v47, %v1669_v0 }
  0x1e   : > { %v1366_v58 = vpack.c.bf16 %v615_v56, %v614_v55  ;;  %v354_v59 = vmul.f32 %v1239_v49, %v1669_v0  ;;  %v355_v60 = vmul.f32 %v1242_v50, %v1669_v0  ;;  %v356_v61 = vmul.f32 %v1243_v51, %v1669_v0  ;;  %v1518_v55 = vld [vmem:[%s1664_s20 + $0x58] sm:$0xff]  }
  0x1f   : > { %1540 = vst [vmem:[%s1701_s27 + $0x10] sm:$0xff] %v1361_v54   ;;  %v424_v62 = vadd.f32 %v1678_v9, %v353_v57  ;;  %v1246_v63 = vunpack.c.l.bf16 %v1513_v52  ;;  %v1247_v1 = vunpack.c.h.bf16 %v1513_v52  ;;  %v1250_v2 = vunpack.c.l.bf16 %v1514_v53 }
  0x20   : > { %1541 = vst [vmem:[%s1701_s27 + $0x18] sm:$0xff] %v1366_v58   ;;  %v425_v3 = vadd.f32 %v1678_v9, %v354_v59  ;;  %v426_v4 = vadd.f32 %v1678_v9, %v355_v60  ;;  %v427_v5 = vadd.f32 %v1678_v9, %v356_v61  ;;  %v1251_v6 = vunpack.c.h.bf16 %v1514_v53 }
  0x21   : > { %vm488_vm8 = vcmp.gt.f32.partialorder %v424_v62, 0.0  ;;  %v552_v7 = vmul.f32 0.2, %v424_v62  ;;  %v357_v8 = vmul.f32 %v1246_v63, %v1669_v0  ;;  %v358_v10 = vmul.f32 %v1247_v1, %v1669_v0  ;;  %v1519_v1 = vld [vmem:[%s1664_s20 + $0x60] sm:$0xff]  }
  0x22   : > { %vm489_vm9 = vcmp.gt.f32.partialorder %v425_v3, 0.0  ;;  %v553_v11 = vmul.f32 0.2, %v425_v3  ;;  %vm490_vm10 = vcmp.gt.f32.partialorder %v426_v4, 0.0  ;;  %vm491_vm11 = vcmp.gt.f32.partialorder %v427_v5, 0.0 }
  0x23   : > { %v616_v12 = vsel %vm488_vm8, %v424_v62, %v552_v7  ;;  %v554_v13 = vmul.f32 0.2, %v426_v4  ;;  %v555_v14 = vmul.f32 0.2, %v427_v5  ;;  %v428_v15 = vadd.f32 %v1678_v9, %v357_v8 }
  0x24   : > { %v617_v16 = vsel %vm489_vm9, %v425_v3, %v553_v11  ;;  %v429_v17 = vadd.f32 %v1678_v9, %v358_v10  ;;  %v359_v18 = vmul.f32 %v1250_v2, %v1669_v0  ;;  %v360_v19 = vmul.f32 %v1251_v6, %v1669_v0  ;;  %v1520_v6 = vld [vmem:[%s1664_s20 + $0x68] sm:$0xff]  }
  0x25   : > { %v1371_v21 = vpack.c.bf16 %v617_v16, %v616_v12  ;;  %v618_v22 = vsel %vm490_vm10, %v426_v4, %v554_v13  ;;  %v619_v23 = vsel %vm491_vm11, %v427_v5, %v555_v14  ;;  %vm492_vm12 = vcmp.gt.f32.partialorder %v428_v15, 0.0 }
  0x26   : > { %v1376_v25 = vpack.c.bf16 %v619_v23, %v618_v22  ;;  %vm493_vm13 = vcmp.gt.f32.partialorder %v429_v17, 0.0  ;;  %v556_v26 = vmul.f32 0.2, %v428_v15  ;;  %v557_v27 = vmul.f32 0.2, %v429_v17  ;;  %v1521_v22 = vld [vmem:[%s1664_s20 + $0x70] sm:$0xff]  }
  0x27   : > { %1542 = vst [vmem:[%s1701_s27 + $0x20] sm:$0xff] %v1371_v21   ;;  %v430_v28 = vadd.f32 %v1678_v9, %v359_v18  ;;  %v431_v29 = vadd.f32 %v1678_v9, %v360_v19  ;;  %v1254_v30 = vunpack.c.l.bf16 %v1515_v20  ;;  %v1255_v31 = vunpack.c.h.bf16 %v1515_v20 }
  0x28   : > { %1543 = vst [vmem:[%s1701_s27 + $0x28] sm:$0xff] %v1376_v25   ;;  %v620_v32 = vsel %vm492_vm12, %v428_v15, %v556_v26  ;;  %v621_v33 = vsel %vm493_vm13, %v429_v17, %v557_v27  ;;  %v1258_v34 = vunpack.c.l.bf16 %v1516_v24  ;;  %v1259_v35 = vunpack.c.h.bf16 %v1516_v24 }
  0x29   : > { %v1381_v37 = vpack.c.bf16 %v621_v33, %v620_v32  ;;  %vm494_vm14 = vcmp.gt.f32.partialorder %v430_v28, 0.0  ;;  %vm495_vm15 = vcmp.gt.f32.partialorder %v431_v29, 0.0  ;;  %v558_v38 = vmul.f32 0.2, %v430_v28 }
  0x2a   : > { %v559_v39 = vmul.f32 0.2, %v431_v29  ;;  %v361_v40 = vmul.f32 %v1254_v30, %v1669_v0  ;;  %v362_v41 = vmul.f32 %v1255_v31, %v1669_v0  ;;  %v363_v42 = vmul.f32 %v1258_v34, %v1669_v0 }
  0x2b   : > { %1544 = vst [vmem:[%s1701_s27 + $0x30] sm:$0xff] %v1381_v37   ;;  %v622_v43 = vsel %vm494_vm14, %v430_v28, %v558_v38  ;;  %v364_v44 = vmul.f32 %v1259_v35, %v1669_v0  ;;  %v1262_v45 = vunpack.c.l.bf16 %v1517_v36  ;;  %v1263_v46 = vunpack.c.h.bf16 %v1517_v36 }
  0x2c   : > { %v623_v47 = vsel %vm495_vm15, %v431_v29, %v559_v39  ;;  %v432_v48 = vadd.f32 %v1678_v9, %v361_v40  ;;  %v433_v49 = vadd.f32 %v1678_v9, %v362_v41  ;;  %v434_v50 = vadd.f32 %v1678_v9, %v363_v42  ;;  %v1522_v41 = vld [vmem:[%s1664_s20 + $0x78] sm:$0xff]  }
  0x2d   : > { %v1386_v51 = vpack.c.bf16 %v623_v47, %v622_v43  ;;  %v435_v52 = vadd.f32 %v1678_v9, %v364_v44  ;;  %v365_v53 = vmul.f32 %v1262_v45, %v1669_v0  ;;  %v366_v54 = vmul.f32 %v1263_v46, %v1669_v0  ;;  %v1523_v46 = vld [vmem:[%s1664_s20 + $0x80] sm:$0xff]   ;;  %v1524_v47 = vld [vmem:[%s1664_s20 + $0x88] sm:$0xff]  }
  0x2e   : > { %vm496_vm0 = vcmp.gt.f32.partialorder %v432_v48, 0.0  ;;  %vm497_vm1 = vcmp.gt.f32.partialorder %v433_v49, 0.0  ;;  %v560_v56 = vmul.f32 0.2, %v432_v48  ;;  %v561_v57 = vmul.f32 0.2, %v433_v49 }
  0x2f   : > { %1545 = vst [vmem:[%s1701_s27 + $0x38] sm:$0xff] %v1386_v51   ;;  %vm498_vm2 = vcmp.gt.f32.partialorder %v434_v50, 0.0  ;;  %vm499_vm3 = vcmp.gt.f32.partialorder %v435_v52, 0.0  ;;  %v562_v58 = vmul.f32 0.2, %v434_v50  ;;  %v436_v62 = vadd.f32 %v1678_v9, %v365_v53 }
  0x30   : > { %v563_v59 = vmul.f32 0.2, %v435_v52  ;;  %v624_v60 = vsel %vm496_vm0, %v432_v48, %v560_v56  ;;  %v625_v61 = vsel %vm497_vm1, %v433_v49, %v561_v57  ;;  %v437_v63 = vadd.f32 %v1678_v9, %v366_v54 }
  0x31   : > { %v1391_v2 = vpack.c.bf16 %v625_v61, %v624_v60  ;;  %v626_v3 = vsel %vm498_vm2, %v434_v50, %v562_v58  ;;  %v1266_v5 = vunpack.c.l.bf16 %v1518_v55  ;;  %vm500_vm4 = vcmp.gt.f32.partialorder %v436_v62, 0.0 }
  0x32   : > { %v627_v4 = vsel %vm499_vm3, %v435_v52, %v563_v59  ;;  %vm501_vm5 = vcmp.gt.f32.partialorder %v437_v63, 0.0  ;;  %v564_v8 = vmul.f32 0.2, %v436_v62  ;;  %v565_v10 = vmul.f32 0.2, %v437_v63 }
  0x33   : > { %v1396_v7 = vpack.c.bf16 %v627_v4, %v626_v3  ;;  %1546 = vst [vmem:[%s1701_s27 + $0x40] sm:$0xff] %v1391_v2   ;;  %v1267_v11 = vunpack.c.h.bf16 %v1518_v55  ;;  %v367_v12 = vmul.f32 %v1266_v5, %v1669_v0  ;;  %v1270_v13 = vunpack.c.l.bf16 %v1519_v1 }
  0x34   : > { %v628_v14 = vsel %vm500_vm4, %v436_v62, %v564_v8  ;;  %v1271_v15 = vunpack.c.h.bf16 %v1519_v1  ;;  %v1274_v16 = vunpack.c.l.bf16 %v1520_v6  ;;  %v1275_v17 = vunpack.c.h.bf16 %v1520_v6 }
  0x35   : > { %1547 = vst [vmem:[%s1701_s27 + $0x48] sm:$0xff] %v1396_v7   ;;  %v629_v18 = vsel %vm501_vm5, %v437_v63, %v565_v10  ;;  %v368_v19 = vmul.f32 %v1267_v11, %v1669_v0  ;;  %v438_v20 = vadd.f32 %v1678_v9, %v367_v12  ;;  %v369_v21 = vmul.f32 %v1270_v13, %v1669_v0 }
  0x36   : > { %v1401_v23 = vpack.c.bf16 %v629_v18, %v628_v14  ;;  %v370_v24 = vmul.f32 %v1271_v15, %v1669_v0  ;;  %v371_v25 = vmul.f32 %v1274_v16, %v1669_v0  ;;  %v372_v26 = vmul.f32 %v1275_v17, %v1669_v0  ;;  %v1525_v14 = vld [vmem:[%s1664_s20 + $0x90] sm:$0xff]  }
  0x37   : > { %v439_v27 = vadd.f32 %v1678_v9, %v368_v19  ;;  %vm502_vm6 = vcmp.gt.f32.partialorder %v438_v20, 0.0  ;;  %v566_v28 = vmul.f32 0.2, %v438_v20  ;;  %v440_v29 = vadd.f32 %v1678_v9, %v369_v21 }
  0x38   : > { %1548 = vst [vmem:[%s1701_s27 + $0x50] sm:$0xff] %v1401_v23   ;;  %v441_v30 = vadd.f32 %v1678_v9, %v370_v24  ;;  %v442_v31 = vadd.f32 %v1678_v9, %v371_v25  ;;  %v443_v32 = vadd.f32 %v1678_v9, %v372_v26  ;;  %v1278_v33 = vunpack.c.l.bf16 %v1521_v22  ;;  %v1526_v25 = vld [vmem:[%s1664_s20 + $0x98] sm:$0xff]  }
  0x39   : > { %vm503_vm7 = vcmp.gt.f32.partialorder %v439_v27, 0.0  ;;  %v567_v34 = vmul.f32 0.2, %v439_v27  ;;  %v630_v35 = vsel %vm502_vm6, %v438_v20, %v566_v28  ;;  %vm504_vm8 = vcmp.gt.f32.partialorder %v440_v29, 0.0 }
  0x3a   : > { %vm505_vm9 = vcmp.gt.f32.partialorder %v441_v30, 0.0  ;;  %v568_v36 = vmul.f32 0.2, %v440_v29  ;;  %v569_v37 = vmul.f32 0.2, %v441_v30  ;;  %vm506_vm10 = vcmp.gt.f32.partialorder %v442_v31, 0.0 }
  0x3b   : > { %v631_v38 = vsel %vm503_vm7, %v439_v27, %v567_v34  ;;  %vm507_vm11 = vcmp.gt.f32.partialorder %v443_v32, 0.0  ;;  %v570_v39 = vmul.f32 0.2, %v442_v31  ;;  %v571_v40 = vmul.f32 0.2, %v443_v32 }
  0x3c   : > { %v1406_v42 = vpack.c.bf16 %v631_v38, %v630_v35  ;;  %v632_v43 = vsel %vm504_vm8, %v440_v29, %v568_v36  ;;  %v633_v44 = vsel %vm505_vm9, %v441_v30, %v569_v37  ;;  %v1279_v45 = vunpack.c.h.bf16 %v1521_v22  ;;  %v1527_v30 = vld [vmem:[%s1664_s20 + $0xa0] sm:$0xff]  }
  0x3d   : > { %v1411_v48 = vpack.c.bf16 %v633_v44, %v632_v43  ;;  %v634_v49 = vsel %vm506_vm10, %v442_v31, %v570_v39  ;;  %v635_v50 = vsel %vm507_vm11, %v443_v32, %v571_v40  ;;  %v373_v51 = vmul.f32 %v1278_v33, %v1669_v0 }
  0x3e   : > { %1549 = vst [vmem:[%s1701_s27 + $0x58] sm:$0xff] %v1406_v42   ;;  %v1416_v52 = vpack.c.bf16 %v635_v50, %v634_v49  ;;  %v374_v53 = vmul.f32 %v1279_v45, %v1669_v0  ;;  %v1282_v54 = vunpack.c.l.bf16 %v1522_v41  ;;  %v1283_v55 = vunpack.c.h.bf16 %v1522_v41  ;;  %v1528_v45 = vld [vmem:[%s1664_s20 + $0xa8] sm:$0xff]  }
  0x3f   : > { %1550 = vst [vmem:[%s1701_s27 + $0x60] sm:$0xff] %v1411_v48   ;;  %v444_v56 = vadd.f32 %v1678_v9, %v373_v51  ;;  %v1286_v57 = vunpack.c.l.bf16 %v1523_v46  ;;  %v1287_v58 = vunpack.c.h.bf16 %v1523_v46  ;;  %v1290_v59 = vunpack.c.l.bf16 %v1524_v47 }
  0x40   : > { %1551 = vst [vmem:[%s1701_s27 + $0x68] sm:$0xff] %v1416_v52   ;;  %v445_v60 = vadd.f32 %v1678_v9, %v374_v53  ;;  %v375_v61 = vmul.f32 %v1282_v54, %v1669_v0  ;;  %v376_v62 = vmul.f32 %v1283_v55, %v1669_v0  ;;  %v1291_v63 = vunpack.c.h.bf16 %v1524_v47 }
  0x41   : > { %vm508_vm12 = vcmp.gt.f32.partialorder %v444_v56, 0.0  ;;  %v572_v1 = vmul.f32 0.2, %v444_v56  ;;  %v377_v2 = vmul.f32 %v1286_v57, %v1669_v0  ;;  %v378_v3 = vmul.f32 %v1287_v58, %v1669_v0 }
  0x42   : > { %vm509_vm13 = vcmp.gt.f32.partialorder %v445_v60, 0.0  ;;  %v573_v4 = vmul.f32 0.2, %v445_v60  ;;  %v446_v5 = vadd.f32 %v1678_v9, %v375_v61  ;;  %v447_v6 = vadd.f32 %v1678_v9, %v376_v62  ;;  %v1529_v62 = vld [vmem:[%s1664_s20 + $0xb0] sm:$0xff]  }
  0x43   : > { %v636_v7 = vsel %vm508_vm12, %v444_v56, %v572_v1  ;;  %v448_v8 = vadd.f32 %v1678_v9, %v377_v2  ;;  %v449_v10 = vadd.f32 %v1678_v9, %v378_v3  ;;  %v379_v11 = vmul.f32 %v1290_v59, %v1669_v0  ;;  %v1530_v3 = vld [vmem:[%s1664_s20 + $0xb8] sm:$0xff]  }
  0x44   : > { %v637_v12 = vsel %vm509_vm13, %v445_v60, %v573_v4  ;;  %vm510_vm14 = vcmp.gt.f32.partialorder %v446_v5, 0.0  ;;  %vm511_vm15 = vcmp.gt.f32.partialorder %v447_v6, 0.0  ;;  %v574_v13 = vmul.f32 0.2, %v446_v5 }
  0x45   : > { %v1421_v15 = vpack.c.bf16 %v637_v12, %v636_v7  ;;  %v575_v16 = vmul.f32 0.2, %v447_v6  ;;  %vm512_vm0 = vcmp.gt.f32.partialorder %v448_v8, 0.0  ;;  %vm513_vm1 = vcmp.gt.f32.partialorder %v449_v10, 0.0 }
  0x46   : > { %v638_v17 = vsel %vm510_vm14, %v446_v5, %v574_v13  ;;  %v576_v18 = vmul.f32 0.2, %v448_v8  ;;  %v577_v19 = vmul.f32 0.2, %v449_v10  ;;  %v380_v20 = vmul.f32 %v1291_v63, %v1669_v0 }
  0x47   : > { %1552 = vst [vmem:[%s1701_s27 + $0x70] sm:$0xff] %v1421_v15   ;;  %v639_v21 = vsel %vm511_vm15, %v447_v6, %v575_v16  ;;  %v450_v22 = vadd.f32 %v1678_v9, %v379_v11  ;;  %v1294_v23 = vunpack.c.l.bf16 %v1525_v14  ;;  %v1295_v24 = vunpack.c.h.bf16 %v1525_v14 }
  0x48   : > { %v1426_v26 = vpack.c.bf16 %v639_v21, %v638_v17  ;;  %v640_v27 = vsel %vm512_vm0, %v448_v8, %v576_v18  ;;  %v641_v28 = vsel %vm513_vm1, %v449_v10, %v577_v19  ;;  %v451_v29 = vadd.f32 %v1678_v9, %v380_v20  ;;  %v1531_v20 = vld [vmem:[%s1664_s20 + $0xc0] sm:$0xff]  }
  0x49   : > { %v1431_v31 = vpack.c.bf16 %v641_v28, %v640_v27  ;;  %vm514_vm2 = vcmp.gt.f32.partialorder %v450_v22, 0.0  ;;  %v578_v32 = vmul.f32 0.2, %v450_v22  ;;  %v381_v33 = vmul.f32 %v1294_v23, %v1669_v0 }
  0x4a   : > { %1553 = vst [vmem:[%s1701_s27 + $0x78] sm:$0xff] %v1426_v26   ;;  %vm515_vm3 = vcmp.gt.f32.partialorder %v451_v29, 0.0  ;;  %v579_v34 = vmul.f32 0.2, %v451_v29  ;;  %v382_v35 = vmul.f32 %v1295_v24, %v1669_v0  ;;  %v1298_v36 = vunpack.c.l.bf16 %v1526_v25 }
  0x4b   : > { %1554 = vst [vmem:[%s1701_s27 + $0x80] sm:$0xff] %v1431_v31   ;;  %v642_v37 = vsel %vm514_vm2, %v450_v22, %v578_v32  ;;  %v452_v38 = vadd.f32 %v1678_v9, %v381_v33  ;;  %v1299_v39 = vunpack.c.h.bf16 %v1526_v25  ;;  %v1302_v40 = vunpack.c.l.bf16 %v1527_v30 }
  0x4c   : > { %v643_v41 = vsel %vm515_vm3, %v451_v29, %v579_v34  ;;  %v453_v42 = vadd.f32 %v1678_v9, %v382_v35  ;;  %v383_v43 = vmul.f32 %v1298_v36, %v1669_v0  ;;  %v1303_v44 = vunpack.c.h.bf16 %v1527_v30  ;;  %v1532_v34 = vld [vmem:[%s1664_s20 + $0xc8] sm:$0xff]  }
  0x4d   : > { %v1436_v46 = vpack.c.bf16 %v643_v41, %v642_v37  ;;  %vm516_vm4 = vcmp.gt.f32.partialorder %v452_v38, 0.0  ;;  %v580_v47 = vmul.f32 0.2, %v452_v38  ;;  %v384_v48 = vmul.f32 %v1299_v39, %v1669_v0 }
  0x4e   : > { %vm517_vm5 = vcmp.gt.f32.partialorder %v453_v42, 0.0  ;;  %v581_v49 = vmul.f32 0.2, %v453_v42  ;;  %v454_v50 = vadd.f32 %v1678_v9, %v383_v43  ;;  %v385_v51 = vmul.f32 %v1302_v40, %v1669_v0 }
  0x4f   : > { %1555 = vst [vmem:[%s1701_s27 + $0x88] sm:$0xff] %v1436_v46   ;;  %v644_v52 = vsel %vm516_vm4, %v452_v38, %v580_v47  ;;  %v455_v53 = vadd.f32 %v1678_v9, %v384_v48  ;;  %v386_v54 = vmul.f32 %v1303_v44, %v1669_v0  ;;  %v1306_v55 = vunpack.c.l.bf16 %v1528_v45  ;;  %v1533_v44 = vld [vmem:[%s1664_s20 + $0xd0] sm:$0xff]  }
  0x50   : > { %v645_v56 = vsel %vm517_vm5, %v453_v42, %v581_v49  ;;  %vm518_vm6 = vcmp.gt.f32.partialorder %v454_v50, 0.0  ;;  %v582_v57 = vmul.f32 0.2, %v454_v50  ;;  %v456_v58 = vadd.f32 %v1678_v9, %v385_v51 }
  0x51   : > { %v1441_v59 = vpack.c.bf16 %v645_v56, %v644_v52  ;;  %vm519_vm7 = vcmp.gt.f32.partialorder %v455_v53, 0.0  ;;  %v583_v60 = vmul.f32 0.2, %v455_v53  ;;  %v457_v61 = vadd.f32 %v1678_v9, %v386_v54 }
  0x52   : > { %v646_v63 = vsel %vm518_vm6, %v454_v50, %v582_v57  ;;  %vm520_vm8 = vcmp.gt.f32.partialorder %v456_v58, 0.0  ;;  %v584_v1 = vmul.f32 0.2, %v456_v58  ;;  %v1307_v2 = vunpack.c.h.bf16 %v1528_v45  ;;  %v1534_v45 = vld [vmem:[%s1664_s20 + $0xd8] sm:$0xff]  }
  0x53   : > { %1556 = vst [vmem:[%s1701_s27 + $0x90] sm:$0xff] %v1441_v59   ;;  %v647_v4 = vsel %vm519_vm7, %v455_v53, %v583_v60  ;;  %vm521_vm9 = vcmp.gt.f32.partialorder %v457_v61, 0.0  ;;  %v585_v5 = vmul.f32 0.2, %v457_v61  ;;  %v387_v6 = vmul.f32 %v1306_v55, %v1669_v0 }
  0x54   : > { %v1446_v7 = vpack.c.bf16 %v647_v4, %v646_v63  ;;  %v648_v8 = vsel %vm520_vm8, %v456_v58, %v584_v1  ;;  %v388_v10 = vmul.f32 %v1307_v2, %v1669_v0  ;;  %v1310_v11 = vunpack.c.l.bf16 %v1529_v62 }
  0x55   : > { %v649_v12 = vsel %vm521_vm9, %v457_v61, %v585_v5  ;;  %v458_v13 = vadd.f32 %v1678_v9, %v387_v6  ;;  %v1311_v14 = vunpack.c.h.bf16 %v1529_v62  ;;  %v1314_v15 = vunpack.c.l.bf16 %v1530_v3 }
  0x56   : > { %1557 = vst [vmem:[%s1701_s27 + $0x98] sm:$0xff] %v1446_v7   ;;  %v1451_v16 = vpack.c.bf16 %v649_v12, %v648_v8  ;;  %v459_v17 = vadd.f32 %v1678_v9, %v388_v10  ;;  %v389_v18 = vmul.f32 %v1310_v11, %v1669_v0  ;;  %v1315_v19 = vunpack.c.h.bf16 %v1530_v3  ;;  %v1535_v12 = vld [vmem:[%s1664_s20 + $0xe0] sm:$0xff]  }
  0x57   : > { %vm522_vm10 = vcmp.gt.f32.partialorder %v458_v13, 0.0  ;;  %v586_v21 = vmul.f32 0.2, %v458_v13  ;;  %v390_v22 = vmul.f32 %v1311_v14, %v1669_v0  ;;  %v391_v23 = vmul.f32 %v1314_v15, %v1669_v0 }
  0x58   : > { %1558 = vst [vmem:[%s1701_s27 + $0xa0] sm:$0xff] %v1451_v16   ;;  %vm523_vm11 = vcmp.gt.f32.partialorder %v459_v17, 0.0  ;;  %v587_v24 = vmul.f32 0.2, %v459_v17  ;;  %v460_v25 = vadd.f32 %v1678_v9, %v389_v18  ;;  %v392_v26 = vmul.f32 %v1315_v19, %v1669_v0  ;;  %v1536_v16 = vld [vmem:[%s1664_s20 + $0xe8] sm:$0xff]  }
  0x59   : > { %v650_v27 = vsel %vm522_vm10, %v458_v13, %v586_v21  ;;  %v461_v28 = vadd.f32 %v1678_v9, %v390_v22  ;;  %v462_v29 = vadd.f32 %v1678_v9, %v391_v23  ;;  %v1318_v30 = vunpack.c.l.bf16 %v1531_v20 }
  0x5a   : > { %v651_v31 = vsel %vm523_vm11, %v459_v17, %v587_v24  ;;  %vm524_vm12 = vcmp.gt.f32.partialorder %v460_v25, 0.0  ;;  %v588_v32 = vmul.f32 0.2, %v460_v25  ;;  %v463_v33 = vadd.f32 %v1678_v9, %v392_v26 }
  0x5b   : > { %v1456_v35 = vpack.c.bf16 %v651_v31, %v650_v27  ;;  %vm525_vm13 = vcmp.gt.f32.partialorder %v461_v28, 0.0  ;;  %v589_v36 = vmul.f32 0.2, %v461_v28  ;;  %vm526_vm14 = vcmp.gt.f32.partialorder %v462_v29, 0.0 }
  0x5c   : > { %v652_v37 = vsel %vm524_vm12, %v460_v25, %v588_v32  ;;  %vm527_vm15 = vcmp.gt.f32.partialorder %v463_v33, 0.0  ;;  %v590_v38 = vmul.f32 0.2, %v462_v29  ;;  %v591_v39 = vmul.f32 0.2, %v463_v33 }
  0x5d   : > { %1559 = vst [vmem:[%s1701_s27 + $0xa8] sm:$0xff] %v1456_v35   ;;  %v653_v40 = vsel %vm525_vm13, %v461_v28, %v589_v36  ;;  %v1319_v41 = vunpack.c.h.bf16 %v1531_v20  ;;  %v393_v42 = vmul.f32 %v1318_v30, %v1669_v0  ;;  %v1322_v43 = vunpack.c.l.bf16 %v1532_v34  ;;  %v1537_v28 = vld [vmem:[%s1664_s20 + $0xf0] sm:$0xff]  }
  0x5e   : > { %v1461_v46 = vpack.c.bf16 %v653_v40, %v652_v37  ;;  %v654_v47 = vsel %vm526_vm14, %v462_v29, %v590_v38  ;;  %v655_v48 = vsel %vm527_vm15, %v463_v33, %v591_v39  ;;  %v1323_v49 = vunpack.c.h.bf16 %v1532_v34 }
  0x5f   : > { %v1466_v50 = vpack.c.bf16 %v655_v48, %v654_v47  ;;  %v394_v51 = vmul.f32 %v1319_v41, %v1669_v0  ;;  %v464_v52 = vadd.f32 %v1678_v9, %v393_v42  ;;  %v395_v53 = vmul.f32 %v1322_v43, %v1669_v0  ;;  %v1538_v47 = vld [vmem:[%s1664_s20 + $0xf8] sm:$0xff]  }
  0x60   : > { %1560 = vst [vmem:[%s1701_s27 + $0xb0] sm:$0xff] %v1461_v46   ;;  %v396_v54 = vmul.f32 %v1323_v49, %v1669_v0  ;;  %v1326_v55 = vunpack.c.l.bf16 %v1533_v44  ;;  %v1327_v56 = vunpack.c.h.bf16 %v1533_v44  ;;  %v1330_v57 = vunpack.c.l.bf16 %v1534_v45 }
  0x61   : > { %1561 = vst [vmem:[%s1701_s27 + $0xb8] sm:$0xff] %v1466_v50   ;;  %v465_v58 = vadd.f32 %v1678_v9, %v394_v51  ;;  %vm528_vm0 = vcmp.gt.f32.partialorder %v464_v52, 0.0  ;;  %v592_v59 = vmul.f32 0.2, %v464_v52  ;;  %v466_v60 = vadd.f32 %v1678_v9, %v395_v53 }
  0x62   : > { %v467_v61 = vadd.f32 %v1678_v9, %v396_v54  ;;  %v397_v62 = vmul.f32 %v1326_v55, %v1669_v0  ;;  %v398_v63 = vmul.f32 %v1327_v56, %v1669_v0  ;;  %v1331_v1 = vunpack.c.h.bf16 %v1534_v45 }
  0x63   : > { %vm529_vm1 = vcmp.gt.f32.partialorder %v465_v58, 0.0  ;;  %v593_v2 = vmul.f32 0.2, %v465_v58  ;;  %v656_v3 = vsel %vm528_vm0, %v464_v52, %v592_v59  ;;  %vm530_vm2 = vcmp.gt.f32.partialorder %v466_v60, 0.0 }
  0x64   : > { %vm531_vm3 = vcmp.gt.f32.partialorder %v467_v61, 0.0  ;;  %v594_v4 = vmul.f32 0.2, %v466_v60  ;;  %v595_v5 = vmul.f32 0.2, %v467_v61  ;;  %v468_v6 = vadd.f32 %v1678_v9, %v397_v62 }
  0x65   : > { %v657_v7 = vsel %vm529_vm1, %v465_v58, %v593_v2  ;;  %v469_v8 = vadd.f32 %v1678_v9, %v398_v63  ;;  %v399_v10 = vmul.f32 %v1330_v57, %v1669_v0  ;;  %v400_v11 = vmul.f32 %v1331_v1, %v1669_v0 }
  0x66   : > { %v1471_v13 = vpack.c.bf16 %v657_v7, %v656_v3  ;;  %v658_v14 = vsel %vm530_vm2, %v466_v60, %v594_v4  ;;  %v659_v15 = vsel %vm531_vm3, %v467_v61, %v595_v5  ;;  %vm532_vm4 = vcmp.gt.f32.partialorder %v468_v6, 0.0 }
  0x67   : > { %v1476_v17 = vpack.c.bf16 %v659_v15, %v658_v14  ;;  %vm533_vm5 = vcmp.gt.f32.partialorder %v469_v8, 0.0  ;;  %v596_v18 = vmul.f32 0.2, %v468_v6  ;;  %v597_v19 = vmul.f32 0.2, %v469_v8 }
  0x68   : > { %1562 = vst [vmem:[%s1701_s27 + $0xc0] sm:$0xff] %v1471_v13   ;;  %v470_v20 = vadd.f32 %v1678_v9, %v399_v10  ;;  %v471_v21 = vadd.f32 %v1678_v9, %v400_v11  ;;  %v1334_v22 = vunpack.c.l.bf16 %v1535_v12  ;;  %v1335_v23 = vunpack.c.h.bf16 %v1535_v12 }
  0x69   : > { %1563 = vst [vmem:[%s1701_s27 + $0xc8] sm:$0xff] %v1476_v17   ;;  %v660_v24 = vsel %vm532_vm4, %v468_v6, %v596_v18  ;;  %v661_v25 = vsel %vm533_vm5, %v469_v8, %v597_v19  ;;  %v1338_v26 = vunpack.c.l.bf16 %v1536_v16  ;;  %v1339_v27 = vunpack.c.h.bf16 %v1536_v16 }
  0x6a   : > { %v1481_v29 = vpack.c.bf16 %v661_v25, %v660_v24  ;;  %vm534_vm6 = vcmp.gt.f32.partialorder %v470_v20, 0.0  ;;  %vm535_vm7 = vcmp.gt.f32.partialorder %v471_v21, 0.0  ;;  %v598_v30 = vmul.f32 0.2, %v470_v20 }
  0x6b   : > { %v599_v31 = vmul.f32 0.2, %v471_v21  ;;  %v401_v32 = vmul.f32 %v1334_v22, %v1669_v0  ;;  %v402_v33 = vmul.f32 %v1335_v23, %v1669_v0  ;;  %v403_v34 = vmul.f32 %v1338_v26, %v1669_v0 }
  0x6c   : > { %1564 = vst [vmem:[%s1701_s27 + $0xd0] sm:$0xff] %v1481_v29   ;;  %v662_v35 = vsel %vm534_vm6, %v470_v20, %v598_v30  ;;  %v404_v36 = vmul.f32 %v1339_v27, %v1669_v0  ;;  %v1342_v37 = vunpack.c.l.bf16 %v1537_v28  ;;  %v1343_v38 = vunpack.c.h.bf16 %v1537_v28 }
  0x6d   : > { %v663_v39 = vsel %vm535_vm7, %v471_v21, %v599_v31  ;;  %v472_v40 = vadd.f32 %v1678_v9, %v401_v32  ;;  %v473_v41 = vadd.f32 %v1678_v9, %v402_v33  ;;  %v474_v42 = vadd.f32 %v1678_v9, %v403_v34 }
  0x6e   : > { %v1486_v43 = vpack.c.bf16 %v663_v39, %v662_v35  ;;  %v475_v44 = vadd.f32 %v1678_v9, %v404_v36  ;;  %v405_v45 = vmul.f32 %v1342_v37, %v1669_v0  ;;  %v406_v46 = vmul.f32 %v1343_v38, %v1669_v0 }
  0x6f   : > { %vm536_vm8 = vcmp.gt.f32.partialorder %v472_v40, 0.0  ;;  %vm537_vm9 = vcmp.gt.f32.partialorder %v473_v41, 0.0  ;;  %v600_v48 = vmul.f32 0.2, %v472_v40  ;;  %v601_v49 = vmul.f32 0.2, %v473_v41 }
  0x70   : > { %1565 = vst [vmem:[%s1701_s27 + $0xd8] sm:$0xff] %v1486_v43   ;;  %vm538_vm10 = vcmp.gt.f32.partialorder %v474_v42, 0.0  ;;  %vm539_vm11 = vcmp.gt.f32.partialorder %v475_v44, 0.0  ;;  %v602_v50 = vmul.f32 0.2, %v474_v42  ;;  %v476_v54 = vadd.f32 %v1678_v9, %v405_v45 }
  0x71   : > { %v603_v51 = vmul.f32 0.2, %v475_v44  ;;  %v664_v52 = vsel %vm536_vm8, %v472_v40, %v600_v48  ;;  %v665_v53 = vsel %vm537_vm9, %v473_v41, %v601_v49  ;;  %v477_v55 = vadd.f32 %v1678_v9, %v406_v46 }
  0x72   : > { %v1491_v56 = vpack.c.bf16 %v665_v53, %v664_v52  ;;  %v666_v57 = vsel %vm538_vm10, %v474_v42, %v602_v50  ;;  %v1346_v59 = vunpack.c.l.bf16 %v1538_v47  ;;  %vm540_vm12 = vcmp.gt.f32.partialorder %v476_v54, 0.0 }
  0x73   : > { %v667_v58 = vsel %vm539_vm11, %v475_v44, %v603_v51  ;;  %vm541_vm13 = vcmp.gt.f32.partialorder %v477_v55, 0.0  ;;  %v604_v61 = vmul.f32 0.2, %v476_v54  ;;  %v605_v62 = vmul.f32 0.2, %v477_v55 }
  0x74   : > { %v1496_v60 = vpack.c.bf16 %v667_v58, %v666_v57  ;;  %1566 = vst [vmem:[%s1701_s27 + $0xe0] sm:$0xff] %v1491_v56   ;;  %v1347_v63 = vunpack.c.h.bf16 %v1538_v47  ;;  %v407_v1 = vmul.f32 %v1346_v59, %v1669_v0 }
  0x75   : > { %v668_v2 = vsel %vm540_vm12, %v476_v54, %v604_v61  ;;  %v669_v3 = vsel %vm541_vm13, %v477_v55, %v605_v62 }
  0x76   : > { %1567 = vst [vmem:[%s1701_s27 + $0xe8] sm:$0xff] %v1496_v60   ;;  %v408_v4 = vmul.f32 %v1347_v63, %v1669_v0  ;;  %v478_v5 = vadd.f32 %v1678_v9, %v407_v1  ;;  %v1501_v6 = vpack.c.bf16 %v669_v3, %v668_v2 }
  0x78   : > { %v479_v7 = vadd.f32 %v1678_v9, %v408_v4  ;;  %vm542_vm14 = vcmp.gt.f32.partialorder %v478_v5, 0.0  ;;  %v606_v8 = vmul.f32 0.2, %v478_v5  ;;  %1568 = vst [vmem:[%s1701_s27 + $0xf0] sm:$0xff] %v1501_v6  }
  0x7a   : > { %vm543_vm15 = vcmp.gt.f32.partialorder %v479_v7, 0.0  ;;  %v607_v10 = vmul.f32 0.2, %v479_v7  ;;  %v670_v11 = vsel %vm542_vm14, %v478_v5, %v606_v8 }
  0x7c   : > { %v671_v12 = vsel %vm543_vm15, %v479_v7, %v607_v10 }
  0x7d   : > { %v1506_v13 = vpack.c.bf16 %v671_v12, %v670_v11 }
  0x7f   : > { %1569 = vst [vmem:[%s1701_s27 + $0xf8] sm:$0xff] %v1506_v13  }
  0x80 PF: > { %s13_s14 = sadd.s32 1, %s1616_s14   ;;  %s1889_s12 = smov %s1612_s13 }
  0x81   : > { %p10_p5 = scmp.ge.s32.totalorder %s13_s14, 8   ;;  %s1890_s13 = smov %s1892_s15 }
  0x83   :  { %12 = sbr.rel (!%p10_p5) target bundleno = 2 (0x2), region = 62 }

// kernel: video_reconstructor_forward.20
= control target key start
LH: loop header
LB: loop body
LE: loop exit
PB: predicated region body
PF: predicated region fallthrough
CT: control target
= control target key end

     0   :  { %s3052_s12 = smov 0   ;;  %s3054_s13 = smov 0   ;;  %s3477_s0 = inlined_call_operand.vmem [shape: bf16[1,512,768], index: 0, kind: input, shape index: {}]   ;;  %s3478_s1 = inlined_call_operand.vmem [shape: bf16[1,768,128], index: 1, kind: input, shape index: {}]   ;;  %s3479_s2 = inlined_call_operand.vmem [shape: bf16[1,512,128], index: 2, kind: output, shape index: {0}]   ;;  %s3480_s3 = inlined_call_operand.vmem [shape: f32[1,16,128], index: 3, kind: output, shape index: {1}]  }
   0x1   :  { %s3056_s14 = smov 0  }
   0x2 LB: > { %s23_s15 = sadd.s32 1, %s3026_s13  ;;  %p2128_p0 = scmp.ge.s32.totalorder %s3030_s14, 1  ;;  %s3030_s14 = sphi %s3056_s14, %s14_s14   ;;  %s3026_s13 = sphi %s3054_s13, %s3482_s13   ;;  %s3022_s12 = sphi %s3052_s12, %s3481_s12  }
   0x3   : > { %p24_p1 = scmp.ge.s32.totalorder %s23_s15, 2  ;;  %p174_p2 = scmp.lt.s32.totalorder %s3030_s14, 3 }
   0x5   : > { %s3484_s15 = smov (%p24_p1, %s23_s15), 0  ;;  %p175_p3 = pnand %p2128_p0, %p174_p2 }
   0x6   : > { %s2129_s18 = sshll.u32 (!%p175_p3), %s3022_s12, 5  ;;  %p248_p5 = scmp.lt.s32.totalorder (!%p175_p3), %s3022_s12, 1 }
   0x7   : > { %178 = sbr.rel (%p175_p3) target bundleno = 453 (0x1c5), region = 28  ;;  %p223_p4 = scmp.lt.s32.totalorder (!%p175_p3), %s2129_s18, 63 }
   0xc   : > { %v2816_v0 = vld [vmem:[%s3478_s1 + $0x78] sm:$0xff]   ;;  %v2818_v2 = vld [vmem:[%s3478_s1 + $0x70] sm:$0xff]   ;;  %v2820_v4 = vld [vmem:[%s3478_s1 + $0x68] sm:$0xff]   ;;  %s3486_s18 = smov (!%p223_p4, %s2129_s18), 63  ;;  %s3488_s12 = smov (!%p248_p5, %s3022_s12), 1 }
   0xd   : > { %v2817_v1 = vld [vmem:[%s3478_s1 + $0x38] sm:$0xff]   ;;  %2439 = vmatprep.subr.bf16.mxu0 %v2816_v0  ;;  %2775 = vmatprep.subr.bf16.mxu1 %v2816_v0  ;;  %v2819_v3 = vld [vmem:[%s3478_s1 + $0x30] sm:$0xff]   ;;  %v2821_v5 = vld [vmem:[%s3478_s1 + $0x28] sm:$0xff]   ;;  %s2791_s4 = smul.u32 24, %s3486_s18 }
   0xe   : > { %2440 = vmatpush3.bf16.msra.mxu0 %v2817_v1  ;;  %2783 = vmatpush3.bf16.msra.mxu1 %v2817_v1  ;;  %v2822_v6 = vld [vmem:[%s3478_s1 + $0x60] sm:$0xff]   ;;  %v2824_v8 = vld [vmem:[%s3478_s1 + $0x58] sm:$0xff]   ;;  %v2826_v10 = vld [vmem:[%s3478_s1 + $0x50] sm:$0xff]  }
   0xf   : > { %2441 = vmatprep.subr.bf16.mxu0 %v2818_v2  ;;  %2776 = vmatprep.subr.bf16.mxu1 %v2818_v2  ;;  %v2823_v7 = vld [vmem:[%s3478_s1 + $0x20] sm:$0xff]   ;;  %s3106_s11 = scalar_lea.vmem %s3477_s0, %s2791_s4  ;;  %v2825_v9 = vld [vmem:[%s3478_s1 + $0x18] sm:$0xff]   ;;  %v2827_v13 = vld [vmem:[%s3478_s1 + $0x10] sm:$0xff]  }
  0x10   : > { %v2834_v11 = vld [vmem:[%s3106_s11 + $0x4] ss:$24 sps:$4 sm:$0xff]   ;;  %v2828_v14 = vld [vmem:[%s3478_s1 + $0x48] sm:$0xff]   ;;  %v2832_v19 = vld [vmem:[%s3106_s11] ss:$24 sps:$4 sm:$0xff]  }
  0x11   : > { %v2837_v12 = vld [vmem:[%s3106_s11 + $0x184] ss:$24 sps:$4 sm:$0xff]   ;;  %1247 = vmatprep.mubr.bf16.mxu0 %v2834_v11  ;;  %v2829_v15 = vld [vmem:[%s3478_s1 + $0x8] sm:$0xff]   ;;  %v2835_v21 = vld [vmem:[%s3106_s11 + $0x180] ss:$24 sps:$4 sm:$0xff]  }
  0x12   : > { %2442 = vmatpush3.bf16.msra.mxu0 %v2819_v3  ;;  %2784 = vmatpush3.bf16.msra.mxu1 %v2819_v3  ;;  %v2830_v16 = vld [vmem:[%s3478_s1 + $0x40] sm:$0xff]   ;;  %v2838_v18 = vld [vmem:[%s3478_s1 + $0xf8] sm:$0xff]   ;;  %v2842_v24 = vld [vmem:[%s3106_s11 + $0x34] ss:$24 sps:$4 sm:$0xff]  }
  0x13   : > { %2443 = vmatprep.subr.bf16.mxu0 %v2820_v4  ;;  %2777 = vmatprep.subr.bf16.mxu1 %v2820_v4  ;;  %v2831_v17 = vld [vmem:[%s3478_s1] sm:$0xff]   ;;  %v2840_v20 = vld [vmem:[%s3478_s1 + $0x178] sm:$0xff]   ;;  %v2844_v25 = vld [vmem:[%s3106_s11 + $0x1b4] ss:$24 sps:$4 sm:$0xff]  }
  0x14   : > { %1311 = vmatprep.mubr.bf16.mxu1 %v2837_v12  ;;  %v2839_v22 = vld [vmem:[%s3478_s1 + $0xb8] sm:$0xff]   ;;  %v2848_v26 = vld [vmem:[%s3478_s1 + $0xf0] sm:$0xff]   ;;  %v2858_v30 = vld [vmem:[%s3478_s1 + $0xe8] sm:$0xff]  }
  0x15   : > { %v2841_v23 = vld [vmem:[%s3478_s1 + $0x138] sm:$0xff]   ;;  %v2849_v27 = vld [vmem:[%s3478_s1 + $0xb0] sm:$0xff]   ;;  %v2860_v33 = vld [vmem:[%s3478_s1 + $0x168] sm:$0xff]  }
  0x16   : > { %2444 = vmatpush3.bf16.msra.mxu0 %v2821_v5  ;;  %2785 = vmatpush3.bf16.msra.mxu1 %v2821_v5  ;;  %v2850_v28 = vld [vmem:[%s3478_s1 + $0x170] sm:$0xff]   ;;  %v2852_v34 = vld [vmem:[%s3106_s11 + $0x64] ss:$24 sps:$4 sm:$0xff]   ;;  %v2859_v36 = vld [vmem:[%s3478_s1 + $0xa8] sm:$0xff]  }
  0x17   : > { %2445 = vmatprep.subr.bf16.mxu0 %v2822_v6  ;;  %2778 = vmatprep.subr.bf16.mxu1 %v2822_v6  ;;  %v2851_v29 = vld [vmem:[%s3478_s1 + $0x130] sm:$0xff]   ;;  %v2854_v35 = vld [vmem:[%s3106_s11 + $0x1e4] ss:$24 sps:$4 sm:$0xff]   ;;  %v2861_v37 = vld [vmem:[%s3478_s1 + $0x128] sm:$0xff]  }
  0x18   : > { %v2846_v31 = vld [vmem:[%s3106_s11 + $0x30] ss:$24 sps:$4 sm:$0xff]   ;;  %v2868_v38 = vld [vmem:[%s3478_s1 + $0xe0] sm:$0xff]   ;;  %v2862_v44 = vld [vmem:[%s3106_s11 + $0x94] ss:$24 sps:$4 sm:$0xff]  }
  0x19   : > { %v2847_v32 = vld [vmem:[%s3106_s11 + $0x1b0] ss:$24 sps:$4 sm:$0xff]   ;;  %v2870_v39 = vld [vmem:[%s3478_s1 + $0x160] sm:$0xff]   ;;  %v2864_v45 = vld [vmem:[%s3106_s11 + $0x214] ss:$24 sps:$4 sm:$0xff]  }
  0x1a   : > { %2446 = vmatpush3.bf16.msra.mxu0 %v2823_v7  ;;  %2786 = vmatpush3.bf16.msra.mxu1 %v2823_v7  ;;  %v2856_v40 = vld [vmem:[%s3106_s11 + $0x60] ss:$24 sps:$4 sm:$0xff]   ;;  %v2866_v50 = vld [vmem:[%s3106_s11 + $0x90] ss:$24 sps:$4 sm:$0xff]   ;;  %v2872_v53 = vld [vmem:[%s3106_s11 + $0xc4] ss:$24 sps:$4 sm:$0xff]  }
  0x1b   : > { %2447 = vmatprep.subr.bf16.mxu0 %v2824_v8  ;;  %2779 = vmatprep.subr.bf16.mxu1 %v2824_v8  ;;  %v2857_v41 = vld [vmem:[%s3106_s11 + $0x1e0] ss:$24 sps:$4 sm:$0xff]   ;;  %v2867_v51 = vld [vmem:[%s3106_s11 + $0x210] ss:$24 sps:$4 sm:$0xff]   ;;  %v2874_v54 = vld [vmem:[%s3106_s11 + $0x244] ss:$24 sps:$4 sm:$0xff]  }
  0x1c   : > { %v2869_v42 = vld [vmem:[%s3478_s1 + $0xa0] sm:$0xff]   ;;  %v2878_v46 = vld [vmem:[%s3478_s1 + $0xd8] sm:$0xff]   ;;  %v2888_v52 = vld [vmem:[%s3478_s1 + $0xd0] sm:$0xff]  }
  0x1d   : > { %v2871_v43 = vld [vmem:[%s3478_s1 + $0x120] sm:$0xff]   ;;  %v2879_v47 = vld [vmem:[%s3478_s1 + $0x98] sm:$0xff]   ;;  %v2889_v55 = vld [vmem:[%s3478_s1 + $0x90] sm:$0xff]  }
  0x1e   : > { %2448 = vmatpush3.bf16.msra.mxu0 %v2825_v9  ;;  %2787 = vmatpush3.bf16.msra.mxu1 %v2825_v9  ;;  %v2880_v48 = vld [vmem:[%s3478_s1 + $0x158] sm:$0xff]   ;;  %v2890_v56 = vld [vmem:[%s3478_s1 + $0x150] sm:$0xff]   ;;  %v2898_v58 = vld [vmem:[%s3478_s1 + $0xc8] sm:$0xff]  }
  0x1f   : > { %2449 = vmatprep.subr.bf16.mxu0 %v2826_v10  ;;  %2780 = vmatprep.subr.bf16.mxu1 %v2826_v10  ;;  %v2881_v49 = vld [vmem:[%s3478_s1 + $0x118] sm:$0xff]   ;;  %v2891_v57 = vld [vmem:[%s3478_s1 + $0x110] sm:$0xff]   ;;  %v2899_v61 = vld [vmem:[%s3478_s1 + $0x88] sm:$0xff]  }
  0x20   : > { %v2876_v59 = vld [vmem:[%s3106_s11 + $0xc0] ss:$24 sps:$4 sm:$0xff]   ;;  %v2882_v62 = vld [vmem:[%s3106_s11 + $0xf4] ss:$24 sps:$4 sm:$0xff]   ;;  %v2886_v6 = vld [vmem:[%s3106_s11 + $0xf0] ss:$24 sps:$4 sm:$0xff]  }
  0x21   : > { %v2877_v60 = vld [vmem:[%s3106_s11 + $0x240] ss:$24 sps:$4 sm:$0xff]   ;;  %v2900_v63 = vld [vmem:[%s3478_s1 + $0x148] sm:$0xff]   ;;  %v2892_v8 = vld [vmem:[%s3106_s11 + $0x124] ss:$24 sps:$4 sm:$0xff]  }
  0x22   : > { %2450 = vmatpush3.bf16.msra.mxu0 %v2827_v13  ;;  %2788 = vmatpush3.bf16.msra.mxu1 %v2827_v13  ;;  %v2901_v0 = vld [vmem:[%s3478_s1 + $0x108] sm:$0xff]   ;;  %v2908_v2 = vld [vmem:[%s3478_s1 + $0xc0] sm:$0xff]  }
  0x23   : > { %2451 = vmatprep.subr.bf16.mxu0 %v2828_v14  ;;  %2781 = vmatprep.subr.bf16.mxu1 %v2828_v14  ;;  %v2884_v1 = vld [vmem:[%s3106_s11 + $0x274] ss:$24 sps:$4 sm:$0xff]   ;;  %v2909_v3 = vld [vmem:[%s3478_s1 + $0x80] sm:$0xff]   ;;  %v2887_v7 = vld [vmem:[%s3106_s11 + $0x270] ss:$24 sps:$4 sm:$0xff]  }
  0x24   : > { %v2910_v4 = vld [vmem:[%s3478_s1 + $0x140] sm:$0xff]   ;;  %v2902_v12 = vld [vmem:[%s3106_s11 + $0x154] ss:$24 sps:$4 sm:$0xff]   ;;  %v2906_v14 = vld [vmem:[%s3106_s11 + $0x150] ss:$24 sps:$4 sm:$0xff]  }
  0x25   : > { %v2911_v5 = vld [vmem:[%s3478_s1 + $0x100] sm:$0xff]   ;;  %v2904_v13 = vld [vmem:[%s3106_s11 + $0x2d4] ss:$24 sps:$4 sm:$0xff]  }
  0x26   : > { %2452 = vmatpush3.bf16.msra.mxu0 %v2829_v15  ;;  %2789 = vmatpush3.bf16.msra.mxu1 %v2829_v15  ;;  %v2894_v9 = vld [vmem:[%s3106_s11 + $0x2a4] ss:$24 sps:$4 sm:$0xff]   ;;  %v2896_v10 = vld [vmem:[%s3106_s11 + $0x120] ss:$24 sps:$4 sm:$0xff]   ;;  %v2907_v15 = vld [vmem:[%s3106_s11 + $0x2d0] ss:$24 sps:$4 sm:$0xff]  }
  0x27   : > { %2453 = vmatprep.subr.bf16.mxu0 %v2830_v16  ;;  %2782 = vmatprep.subr.bf16.mxu1 %v2830_v16  ;;  %v2897_v11 = vld [vmem:[%s3106_s11 + $0x2a0] ss:$24 sps:$4 sm:$0xff]   ;;  %v2914_v16 = vld [vmem:[%s3106_s11 + $0xc] ss:$24 sps:$4 sm:$0xff]  }
  0x2a   : > { %2454 = vmatpush3.bf16.msra.mxu0 %v2831_v17  ;;  %2790 = vmatpush3.bf16.msra.mxu1 %v2831_v17  ;;  %v2917_v17 = vld [vmem:[%s3106_s11 + $0x14] ss:$24 sps:$4 sm:$0xff]  }
  0x2b   : > { %2551 = vmatprep.subr.bf16.mxu1 %v2838_v18  ;;  %2663 = vmatprep.subr.bf16.mxu0 %v2840_v20  ;;  %v2912_v18 = vld [vmem:[%s3106_s11 + $0x8] ss:$24 sps:$4 sm:$0xff]   ;;  %v2918_v20 = vld [vmem:[%s3106_s11 + $0x3c] ss:$24 sps:$4 sm:$0xff]  }
  0x2d   : > { %1248 = vmatmul.mubr.bf16.vlgmr.msra.gmra.mxu0 %v2832_v19  ;;  %1312 = vmatmul.mubr.bf16.vlgmr.msra.gmra.mxu1 %v2835_v21  ;;  %v2915_v19 = vld [vmem:[%s3106_s11 + $0x10] ss:$24 sps:$4 sm:$0xff]   ;;  %v2920_v21 = vld [vmem:[%s3106_s11 + $0x44] ss:$24 sps:$4 sm:$0xff]  }
  0x2e   : > { %2552 = vmatpush3.bf16.msra.mxu1 %v2839_v22  ;;  %2664 = vmatpush3.bf16.msra.mxu0 %v2841_v23  ;;  %v2922_v22 = vld [vmem:[%s3106_s11 + $0x38] ss:$24 sps:$4 sm:$0xff]  }
  0x2f   : > { %1255 = vmatprep.mubr.bf16.mxu0 %v2842_v24  ;;  %1319 = vmatprep.mubr.bf16.mxu1 %v2844_v25  ;;  %v2923_v23 = vld [vmem:[%s3106_s11 + $0x40] ss:$24 sps:$4 sm:$0xff]   ;;  %v2924_v24 = vld [vmem:[%s3106_s11 + $0x6c] ss:$24 sps:$4 sm:$0xff]  }
  0x30   : > { %2553 = vmatprep.subr.bf16.mxu1 %v2848_v26  ;;  %2665 = vmatprep.subr.bf16.mxu0 %v2850_v28  ;;  %v2926_v25 = vld [vmem:[%s3106_s11 + $0x74] ss:$24 sps:$4 sm:$0xff]   ;;  %v2928_v26 = vld [vmem:[%s3106_s11 + $0x68] ss:$24 sps:$4 sm:$0xff]  }
  0x31   : > { %v2930_v28 = vld [vmem:[%s3106_s11 + $0x9c] ss:$24 sps:$4 sm:$0xff]  }
  0x32   : > { %2554 = vmatpush3.bf16.msra.mxu1 %v2849_v27  ;;  %2666 = vmatpush3.bf16.msra.mxu0 %v2851_v29  ;;  %v2929_v27 = vld [vmem:[%s3106_s11 + $0x70] ss:$24 sps:$4 sm:$0xff]   ;;  %v2932_v29 = vld [vmem:[%s3106_s11 + $0xa4] ss:$24 sps:$4 sm:$0xff]  }
  0x33   : > { %2555 = vmatprep.subr.bf16.mxu1 %v2858_v30  ;;  %2667 = vmatprep.subr.bf16.mxu0 %v2860_v33  ;;  %v2934_v30 = vld [vmem:[%s3106_s11 + $0x98] ss:$24 sps:$4 sm:$0xff]   ;;  %v2938_v33 = vld [vmem:[%s3106_s11 + $0xd4] ss:$24 sps:$4 sm:$0xff]  }
  0x35   : > { %1256 = vmatmul.mubr.bf16.gmra.mxu0 %v2846_v31  ;;  %1320 = vmatmul.mubr.bf16.gmra.mxu1 %v2847_v32  ;;  %v2935_v31 = vld [vmem:[%s3106_s11 + $0xa0] ss:$24 sps:$4 sm:$0xff]   ;;  %v2936_v32 = vld [vmem:[%s3106_s11 + $0xcc] ss:$24 sps:$4 sm:$0xff]  }
  0x36   : > { %1263 = vmatprep.mubr.bf16.mxu0 %v2852_v34  ;;  %1327 = vmatprep.mubr.bf16.mxu1 %v2854_v35  ;;  %v2940_v34 = vld [vmem:[%s3106_s11 + $0xc8] ss:$24 sps:$4 sm:$0xff]  }
  0x37   : > { %2556 = vmatpush3.bf16.msra.mxu1 %v2859_v36  ;;  %2668 = vmatpush3.bf16.msra.mxu0 %v2861_v37  ;;  %v2941_v35 = vld [vmem:[%s3106_s11 + $0xd0] ss:$24 sps:$4 sm:$0xff]   ;;  %v2942_v36 = vld [vmem:[%s3106_s11 + $0xfc] ss:$24 sps:$4 sm:$0xff]  }
  0x38   : > { %2557 = vmatprep.subr.bf16.mxu1 %v2868_v38  ;;  %2669 = vmatprep.subr.bf16.mxu0 %v2870_v39  ;;  %v2944_v37 = vld [vmem:[%s3106_s11 + $0x104] ss:$24 sps:$4 sm:$0xff]   ;;  %v2946_v38 = vld [vmem:[%s3106_s11 + $0xf8] ss:$24 sps:$4 sm:$0xff]  }
  0x39   : > { %v2947_v39 = vld [vmem:[%s3106_s11 + $0x100] ss:$24 sps:$4 sm:$0xff]  }
  0x3b   : > { %2558 = vmatpush3.bf16.msra.mxu1 %v2869_v42  ;;  %2670 = vmatpush3.bf16.msra.mxu0 %v2871_v43  ;;  %v2952_v42 = vld [vmem:[%s3106_s11 + $0x128] ss:$24 sps:$4 sm:$0xff]  }
  0x3c   : > { %2559 = vmatprep.subr.bf16.mxu1 %v2878_v46  ;;  %2671 = vmatprep.subr.bf16.mxu0 %v2880_v48  ;;  %v2953_v43 = vld [vmem:[%s3106_s11 + $0x130] ss:$24 sps:$4 sm:$0xff]   ;;  %v2960_v48 = vld [vmem:[%s3106_s11 + $0x18c] ss:$24 sps:$4 sm:$0xff]  }
  0x3d   : > { %1264 = vmatmul.mubr.bf16.gmra.mxu0 %v2856_v40  ;;  %1328 = vmatmul.mubr.bf16.gmra.mxu1 %v2857_v41  ;;  %v2948_v40 = vld [vmem:[%s3106_s11 + $0x12c] ss:$24 sps:$4 sm:$0xff]   ;;  %v2958_v46 = vld [vmem:[%s3106_s11 + $0x158] ss:$24 sps:$4 sm:$0xff]  }
  0x3e   : > { %1271 = vmatprep.mubr.bf16.mxu0 %v2862_v44  ;;  %1335 = vmatprep.mubr.bf16.mxu1 %v2864_v45  ;;  %v2950_v41 = vld [vmem:[%s3106_s11 + $0x134] ss:$24 sps:$4 sm:$0xff]   ;;  %v2956_v45 = vld [vmem:[%s3106_s11 + $0x164] ss:$24 sps:$4 sm:$0xff]  }
  0x3f   : > { %2560 = vmatpush3.bf16.msra.mxu1 %v2879_v47  ;;  %2672 = vmatpush3.bf16.msra.mxu0 %v2881_v49  ;;  %v2954_v44 = vld [vmem:[%s3106_s11 + $0x15c] ss:$24 sps:$4 sm:$0xff]   ;;  %v2959_v47 = vld [vmem:[%s3106_s11 + $0x160] ss:$24 sps:$4 sm:$0xff]  }
  0x40   : > { %2561 = vmatprep.subr.bf16.mxu1 %v2888_v52  ;;  %2673 = vmatprep.subr.bf16.mxu0 %v2890_v56  ;;  %v2962_v49 = vld [vmem:[%s3106_s11 + $0x194] ss:$24 sps:$4 sm:$0xff]  }
  0x41   : > { %v2966_v52 = vld [vmem:[%s3106_s11 + $0x1bc] ss:$24 sps:$4 sm:$0xff]   ;;  %v2972_v56 = vld [vmem:[%s3106_s11 + $0x1ec] ss:$24 sps:$4 sm:$0xff]  }
  0x43   : > { %2562 = vmatpush3.bf16.msra.mxu1 %v2889_v55  ;;  %2674 = vmatpush3.bf16.msra.mxu0 %v2891_v57  ;;  %v2971_v55 = vld [vmem:[%s3106_s11 + $0x1c0] ss:$24 sps:$4 sm:$0xff]   ;;  %v2974_v57 = vld [vmem:[%s3106_s11 + $0x1f4] ss:$24 sps:$4 sm:$0xff]  }
  0x44   : > { %2563 = vmatprep.subr.bf16.mxu1 %v2898_v58  ;;  %2675 = vmatprep.subr.bf16.mxu0 %v2900_v63  ;;  %v2976_v58 = vld [vmem:[%s3106_s11 + $0x1e8] ss:$24 sps:$4 sm:$0xff]  }
  0x45   : > { %1272 = vmatmul.mubr.bf16.gmra.mxu0 %v2866_v50  ;;  %1336 = vmatmul.mubr.bf16.gmra.mxu1 %v2867_v51  ;;  %v2964_v50 = vld [vmem:[%s3106_s11 + $0x188] ss:$24 sps:$4 sm:$0xff]  }
  0x46   : > { %1279 = vmatprep.mubr.bf16.mxu0 %v2872_v53  ;;  %1343 = vmatprep.mubr.bf16.mxu1 %v2874_v54  ;;  %v2965_v51 = vld [vmem:[%s3106_s11 + $0x190] ss:$24 sps:$4 sm:$0xff]   ;;  %v2968_v53 = vld [vmem:[%s3106_s11 + $0x1c4] ss:$24 sps:$4 sm:$0xff]   ;;  %v2983_v63 = vld [vmem:[%s3106_s11 + $0x220] ss:$24 sps:$4 sm:$0xff]  }
  0x47   : > { %2564 = vmatpush3.bf16.msra.mxu1 %v2899_v61  ;;  %2676 = vmatpush3.bf16.msra.mxu0 %v2901_v0  ;;  %v2970_v54 = vld [vmem:[%s3106_s11 + $0x1b8] ss:$24 sps:$4 sm:$0xff]   ;;  %v2980_v61 = vld [vmem:[%s3106_s11 + $0x224] ss:$24 sps:$4 sm:$0xff]  }
  0x48   : > { %2565 = vmatprep.subr.bf16.mxu1 %v2908_v2  ;;  %2677 = vmatprep.subr.bf16.mxu0 %v2910_v4  ;;  %v2984_v0 = vld [vmem:[%s3106_s11 + $0x24c] ss:$24 sps:$4 sm:$0xff]   ;;  %v2988_v2 = vld [vmem:[%s3106_s11 + $0x248] ss:$24 sps:$4 sm:$0xff]   ;;  %v2990_v4 = vld [vmem:[%s3106_s11 + $0x27c] ss:$24 sps:$4 sm:$0xff]  }
  0x4b   : > { %2566 = vmatpush3.bf16.msra.mxu1 %v2909_v3  ;;  %2678 = vmatpush3.bf16.msra.mxu0 %v2911_v5  ;;  %v2989_v3 = vld [vmem:[%s3106_s11 + $0x250] ss:$24 sps:$4 sm:$0xff]   ;;  %v2992_v5 = vld [vmem:[%s3106_s11 + $0x284] ss:$24 sps:$4 sm:$0xff]  }
  0x4d   : > { %1280 = vmatmul.mubr.bf16.gmra.mxu0 %v2876_v59  ;;  %1344 = vmatmul.mubr.bf16.gmra.mxu1 %v2877_v60  ;;  %v2977_v59 = vld [vmem:[%s3106_s11 + $0x1f0] ss:$24 sps:$4 sm:$0xff]   ;;  %v2978_v60 = vld [vmem:[%s3106_s11 + $0x21c] ss:$24 sps:$4 sm:$0xff]  }
  0x4e   : > { %1287 = vmatprep.mubr.bf16.mxu0 %v2882_v62  ;;  %1351 = vmatprep.mubr.bf16.mxu1 %v2884_v1  ;;  %v2982_v62 = vld [vmem:[%s3106_s11 + $0x218] ss:$24 sps:$4 sm:$0xff]   ;;  %v2986_v1 = vld [vmem:[%s3106_s11 + $0x254] ss:$24 sps:$4 sm:$0xff]  }
  0x55   : > { %1288 = vmatmul.mubr.bf16.gmra.mxu0 %v2886_v6  ;;  %1352 = vmatmul.mubr.bf16.gmra.mxu1 %v2887_v7  ;;  %v2994_v6 = vld [vmem:[%s3106_s11 + $0x278] ss:$24 sps:$4 sm:$0xff]  }
  0x56   : > { %1295 = vmatprep.mubr.bf16.mxu0 %v2892_v8  ;;  %1359 = vmatprep.mubr.bf16.mxu1 %v2894_v9  ;;  %v2995_v7 = vld [vmem:[%s3106_s11 + $0x280] ss:$24 sps:$4 sm:$0xff]   ;;  %v2996_v8 = vld [vmem:[%s3106_s11 + $0x2ac] ss:$24 sps:$4 sm:$0xff]  }
  0x57   : > { %v2998_v9 = vld [vmem:[%s3106_s11 + $0x2b4] ss:$24 sps:$4 sm:$0xff]  }
  0x5d   : > { %1296 = vmatmul.mubr.bf16.gmra.mxu0 %v2896_v10  ;;  %1360 = vmatmul.mubr.bf16.gmra.mxu1 %v2897_v11  ;;  %v3000_v10 = vld [vmem:[%s3106_s11 + $0x2a8] ss:$24 sps:$4 sm:$0xff]  }
  0x5e   : > { %1303 = vmatprep.mubr.bf16.mxu0 %v2902_v12  ;;  %1367 = vmatprep.mubr.bf16.mxu1 %v2904_v13  ;;  %v3001_v11 = vld [vmem:[%s3106_s11 + $0x2b0] ss:$24 sps:$4 sm:$0xff]   ;;  %v3002_v12 = vld [vmem:[%s3106_s11 + $0x2dc] ss:$24 sps:$4 sm:$0xff]  }
  0x5f   : > { %v3004_v13 = vld [vmem:[%s3106_s11 + $0x2e4] ss:$24 sps:$4 sm:$0xff]  }
  0x65   : > { %1304 = vmatmul.mubr.bf16.gmra.mxu0 %v2906_v14  ;;  %1368 = vmatmul.mubr.bf16.gmra.mxu1 %v2907_v15  ;;  %v3006_v14 = vld [vmem:[%s3106_s11 + $0x2d8] ss:$24 sps:$4 sm:$0xff]  }
  0x66   : > { %1408 = vmatprep.mubr.bf16.mxu1 %v2914_v16  ;;  %1569 = vmatprep.mubr.bf16.mxu0 %v2917_v17  ;;  %v3007_v15 = vld [vmem:[%s3106_s11 + $0x2e0] ss:$24 sps:$4 sm:$0xff]   ;;  %s2132_s11 = sshll.u32 %s3486_s18, 2  ;;  %s2133_s18 = sshll.u32 %s3488_s12, 3 }
  0x67   : > { %s3408_s7 = scalar_lea.vmem %s3479_s2, %s2132_s11  ;;  %s253_s10 = scalar_lea.vmem %s3480_s3, %s2133_s18 }
  0x6d   : > { %1409 = vmatmul.mubr.bf16.vlgmr.msra.gmra.mxu1 %v2912_v18  ;;  %1570 = vmatmul.mubr.bf16.vlgmr.msra.gmra.mxu0 %v2915_v19 }
  0x6e   : > { %1416 = vmatprep.mubr.bf16.mxu1 %v2918_v20  ;;  %1577 = vmatprep.mubr.bf16.mxu0 %v2920_v21 }
  0x75   : > { %1417 = vmatmul.mubr.bf16.gmra.mxu1 %v2922_v22  ;;  %1578 = vmatmul.mubr.bf16.gmra.mxu0 %v2923_v23 }
  0x76   : > { %1424 = vmatprep.mubr.bf16.mxu1 %v2924_v24  ;;  %1585 = vmatprep.mubr.bf16.mxu0 %v2926_v25 }
  0x7d   : > { %1425 = vmatmul.mubr.bf16.gmra.mxu1 %v2928_v26  ;;  %1586 = vmatmul.mubr.bf16.gmra.mxu0 %v2929_v27 }
  0x7e   : > { %1432 = vmatprep.mubr.bf16.mxu1 %v2930_v28  ;;  %1593 = vmatprep.mubr.bf16.mxu0 %v2932_v29 }
  0x85   : > { %1433 = vmatmul.mubr.bf16.gmra.mxu1 %v2934_v30  ;;  %1594 = vmatmul.mubr.bf16.gmra.mxu0 %v2935_v31 }
  0x86   : > { %1440 = vmatprep.mubr.bf16.mxu1 %v2936_v32  ;;  %1601 = vmatprep.mubr.bf16.mxu0 %v2938_v33 }
  0x8d   : > { %1441 = vmatmul.mubr.bf16.gmra.mxu1 %v2940_v34  ;;  %1602 = vmatmul.mubr.bf16.gmra.mxu0 %v2941_v35 }
  0x8e   : > { %1448 = vmatprep.mubr.bf16.mxu1 %v2942_v36  ;;  %1609 = vmatprep.mubr.bf16.mxu0 %v2944_v37 }
  0x95   : > { %1449 = vmatmul.mubr.bf16.gmra.mxu1 %v2946_v38  ;;  %1610 = vmatmul.mubr.bf16.gmra.mxu0 %v2947_v39 }
  0x96   : > { %1456 = vmatprep.mubr.bf16.mxu1 %v2948_v40  ;;  %1617 = vmatprep.mubr.bf16.mxu0 %v2950_v41 }
  0x9d   : > { %1457 = vmatmul.mubr.bf16.gmra.mxu1 %v2952_v42  ;;  %1618 = vmatmul.mubr.bf16.gmra.mxu0 %v2953_v43 }
  0x9e   : > { %1464 = vmatprep.mubr.bf16.mxu1 %v2954_v44  ;;  %1625 = vmatprep.mubr.bf16.mxu0 %v2956_v45 }
  0xa5   : > { %1465 = vmatmul.mubr.bf16.gmra.mxu1 %v2958_v46  ;;  %1626 = vmatmul.mubr.bf16.gmra.mxu0 %v2959_v47 }
  0xa6   : > { %1472 = vmatprep.mubr.bf16.mxu1 %v2960_v48  ;;  %1633 = vmatprep.mubr.bf16.mxu0 %v2962_v49 }
  0xad   : > { %1473 = vmatmul.mubr.bf16.gmra.mxu1 %v2964_v50  ;;  %1634 = vmatmul.mubr.bf16.gmra.mxu0 %v2965_v51 }
  0xae   : > { %1480 = vmatprep.mubr.bf16.mxu1 %v2966_v52  ;;  %1641 = vmatprep.mubr.bf16.mxu0 %v2968_v53 }
  0xb5   : > { %1481 = vmatmul.mubr.bf16.gmra.mxu1 %v2970_v54  ;;  %1642 = vmatmul.mubr.bf16.gmra.mxu0 %v2971_v55 }
  0xb6   : > { %1488 = vmatprep.mubr.bf16.mxu1 %v2972_v56  ;;  %1649 = vmatprep.mubr.bf16.mxu0 %v2974_v57 }
  0xbd   : > { %1489 = vmatmul.mubr.bf16.gmra.mxu1 %v2976_v58  ;;  %1650 = vmatmul.mubr.bf16.gmra.mxu0 %v2977_v59 }
  0xbe   : > { %1496 = vmatprep.mubr.bf16.mxu1 %v2978_v60  ;;  %1657 = vmatprep.mubr.bf16.mxu0 %v2980_v61 }
  0xc5   : > { %1497 = vmatmul.mubr.bf16.gmra.mxu1 %v2982_v62  ;;  %1658 = vmatmul.mubr.bf16.gmra.mxu0 %v2983_v63 }
  0xc6   : > { %1504 = vmatprep.mubr.bf16.mxu1 %v2984_v0  ;;  %1665 = vmatprep.mubr.bf16.mxu0 %v2986_v1 }
  0xcd   : > { %1505 = vmatmul.mubr.bf16.gmra.mxu1 %v2988_v2  ;;  %1666 = vmatmul.mubr.bf16.gmra.mxu0 %v2989_v3 }
  0xce   : > { %1512 = vmatprep.mubr.bf16.mxu1 %v2990_v4  ;;  %1673 = vmatprep.mubr.bf16.mxu0 %v2992_v5 }
  0xd5   : > { %1513 = vmatmul.mubr.bf16.gmra.mxu1 %v2994_v6  ;;  %1674 = vmatmul.mubr.bf16.gmra.mxu0 %v2995_v7 }
  0xd6   : > { %1520 = vmatprep.mubr.bf16.mxu1 %v2996_v8  ;;  %1681 = vmatprep.mubr.bf16.mxu0 %v2998_v9 }
  0xdd   : > { %1521 = vmatmul.mubr.bf16.gmra.mxu1 %v3000_v10  ;;  %1682 = vmatmul.mubr.bf16.gmra.mxu0 %v3001_v11 }
  0xde   : > { %1528 = vmatprep.mubr.bf16.mxu1 %v3002_v12  ;;  %1689 = vmatprep.mubr.bf16.mxu0 %v3004_v13 }
  0xe5   : > { %1529 = vmatmul.mubr.bf16.gmra.mxu1 %v3006_v14  ;;  %1690 = vmatmul.mubr.bf16.gmra.mxu0 %v3007_v15 }
  0xed   : > { %v2455_v16 = vpop.f32.mrf.mxu0  ;;  %v2503_v17 = vpop.f32.mrf.mxu1 }
  0xef   : > { %v2456_v18 = vpop.f32.mrf.mxu0  ;;  %v2504_v19 = vpop.f32.mrf.mxu1 }
  0xf0   : > { %v3321_v20 = vadd.f32 %v2456_v18, %v2455_v16  ;;  %v3323_v21 = vadd.f32 %v2504_v19, %v2503_v17 }
  0xf1   : > { %v3325_v22 = vpop.f32.mrf.mxu0  ;;  %v2506_v23 = vpop.f32.mrf.mxu1 }
  0xf3   : > { %v3327_v24 = vpop.f32.mrf.mxu0  ;;  %v2507_v25 = vpop.f32.mrf.mxu1 }
  0xf4   : > { %v3329_v26 = vadd.f32 %v2507_v25, %v2506_v23 }
  0xf5   : > { %v2461_v27 = vpop.f32.mrf.mxu0  ;;  %v2509_v28 = vpop.f32.mrf.mxu1 }
  0xf7   : > { %v2462_v29 = vpop.f32.mrf.mxu0  ;;  %v2510_v30 = vpop.f32.mrf.mxu1 }
  0xf8   : > { %v3331_v31 = vadd.f32 %v2462_v29, %v2461_v27  ;;  %v3333_v32 = vadd.f32 %v2510_v30, %v2509_v28 }
  0xf9   : > { %v3335_v33 = vpop.f32.mrf.mxu0  ;;  %v2512_v34 = vpop.f32.mrf.mxu1 }
  0xfb   : > { %v3337_v35 = vpop.f32.mrf.mxu0  ;;  %v2513_v36 = vpop.f32.mrf.mxu1 }
  0xfc   : > { %v3339_v37 = vadd.f32 %v2513_v36, %v2512_v34 }
  0xfd   : > { %v2467_v38 = vpop.f32.mrf.mxu0  ;;  %v2515_v39 = vpop.f32.mrf.mxu1 }
  0xff   : > { %v2468_v40 = vpop.f32.mrf.mxu0  ;;  %v2516_v41 = vpop.f32.mrf.mxu1 }
 0x100   : > { %v3341_v42 = vadd.f32 %v2468_v40, %v2467_v38  ;;  %v3343_v43 = vadd.f32 %v2516_v41, %v2515_v39 }
 0x101   : > { %v3345_v44 = vpop.f32.mrf.mxu0  ;;  %v2518_v45 = vpop.f32.mrf.mxu1 }
 0x103   : > { %v3347_v46 = vpop.f32.mrf.mxu0  ;;  %v2519_v47 = vpop.f32.mrf.mxu1 }
 0x104   : > { %v3349_v48 = vadd.f32 %v2519_v47, %v2518_v45 }
 0x105   : > { %v2473_v49 = vpop.f32.mrf.mxu0  ;;  %v2521_v50 = vpop.f32.mrf.mxu1 }
 0x107   : > { %v2474_v51 = vpop.f32.mrf.mxu0  ;;  %v2522_v52 = vpop.f32.mrf.mxu1 }
 0x108   : > { %v3351_v53 = vadd.f32 %v2474_v51, %v2473_v49  ;;  %v3353_v54 = vadd.f32 %v2522_v52, %v2521_v50 }
 0x109   : > { %v3355_v55 = vpop.f32.mrf.mxu0  ;;  %v2524_v56 = vpop.f32.mrf.mxu1 }
 0x10b   : > { %v3357_v57 = vpop.f32.mrf.mxu0  ;;  %v2525_v58 = vpop.f32.mrf.mxu1 }
 0x10c   : > { %v3359_v59 = vadd.f32 %v2525_v58, %v2524_v56 }
 0x10d   : > { %v2479_v60 = vpop.f32.mrf.mxu0  ;;  %v2527_v61 = vpop.f32.mrf.mxu1 }
 0x10f   : > { %v2480_v62 = vpop.f32.mrf.mxu0  ;;  %v2528_v63 = vpop.f32.mrf.mxu1 }
 0x110   : > { %v3361_v0 = vadd.f32 %v2480_v62, %v2479_v60  ;;  %v3363_v1 = vadd.f32 %v2528_v63, %v2527_v61 }
 0x111   : > { %v3365_v2 = vpop.f32.mrf.mxu0  ;;  %v2530_v3 = vpop.f32.mrf.mxu1 }
 0x113   : > { %v3367_v4 = vpop.f32.mrf.mxu0  ;;  %v2531_v5 = vpop.f32.mrf.mxu1 }
 0x114   : > { %v3369_v6 = vadd.f32 %v2531_v5, %v2530_v3 }
 0x115   : > { %v2485_v7 = vpop.f32.mrf.mxu0  ;;  %v2533_v8 = vpop.f32.mrf.mxu1 }
 0x117   : > { %v2486_v9 = vpop.f32.mrf.mxu0  ;;  %v2534_v10 = vpop.f32.mrf.mxu1 }
 0x118   : > { %v3371_v11 = vadd.f32 %v2486_v9, %v2485_v7  ;;  %v3373_v12 = vadd.f32 %v2534_v10, %v2533_v8 }
 0x119   : > { %v3375_v13 = vpop.f32.mrf.mxu0  ;;  %v2536_v14 = vpop.f32.mrf.mxu1 }
 0x11b   : > { %v3377_v15 = vpop.f32.mrf.mxu0  ;;  %v2537_v16 = vpop.f32.mrf.mxu1 }
 0x11c   : > { %v3379_v17 = vadd.f32 %v2537_v16, %v2536_v14  ;;  %v2460_v16 = vadd.f32 %v3327_v24, %v3325_v22 }
 0x11d   : > { %v2491_v18 = vpop.f32.mrf.mxu0  ;;  %v2539_v19 = vpop.f32.mrf.mxu1 }
 0x11f   : > { %v2492_v23 = vpop.f32.mrf.mxu0  ;;  %v2540_v25 = vpop.f32.mrf.mxu1 }
 0x120   : > { %v3381_v27 = vadd.f32 %v2492_v23, %v2491_v18  ;;  %v3383_v28 = vadd.f32 %v2540_v25, %v2539_v19 }
 0x121   : > { %v3385_v29 = vpop.f32.mrf.mxu0  ;;  %v2542_v30 = vpop.f32.mrf.mxu1 }
 0x123   : > { %v3387_v34 = vpop.f32.mrf.mxu0  ;;  %v2543_v36 = vpop.f32.mrf.mxu1 }
 0x124   : > { %v3389_v38 = vadd.f32 %v2543_v36, %v2542_v30 }
 0x125   : > { %v2497_v39 = vpop.f32.mrf.mxu0  ;;  %v2545_v40 = vpop.f32.mrf.mxu1 }
 0x127   : > { %v2498_v41 = vpop.f32.mrf.mxu0  ;;  %v2546_v45 = vpop.f32.mrf.mxu1 }
 0x128   : > { %v3391_v47 = vadd.f32 %v2498_v41, %v2497_v39  ;;  %v3393_v49 = vadd.f32 %v2546_v45, %v2545_v40 }
 0x129   : > { %v3395_v50 = vpop.f32.mrf.mxu0  ;;  %v2548_v51 = vpop.f32.mrf.mxu1 }
 0x12b   : > { %v3397_v52 = vpop.f32.mrf.mxu0  ;;  %v2549_v56 = vpop.f32.mrf.mxu1 }
 0x12c   : > { %v3399_v58 = vadd.f32 %v2549_v56, %v2548_v51 }
 0x12d   : > { %v2567_v60 = vpop.f32.mrf.mxu1  ;;  %v2679_v61 = vpop.f32.mrf.mxu0 }
 0x12f   : > { %v2568_v62 = vpop.f32.mrf.mxu1  ;;  %v2680_v63 = vpop.f32.mrf.mxu0 }
 0x130   : > { %v2569_v3 = vadd.f32 %v2568_v62, %v2567_v60  ;;  %v2681_v9 = vadd.f32 %v2680_v63, %v2679_v61 }
 0x131   : > { %v2570_v5 = vpop.f32.mrf.mxu1  ;;  %v2682_v7 = vpop.f32.mrf.mxu0 }
 0x132   : > { %v1411_v8 = vadd.f32 %v2569_v3, %v3321_v20 }
 0x133   : > { %v2571_v10 = vpop.f32.mrf.mxu1  ;;  %v2683_v14 = vpop.f32.mrf.mxu0 }
 0x134   : > { %v2572_v18 = vadd.f32 %v2571_v10, %v2570_v5  ;;  %v1572_v19 = vadd.f32 %v2681_v9, %v1411_v8  ;;  %v2684_v36 = vadd.f32 %v2683_v14, %v2682_v7  ;;  %v2466_v5 = vadd.f32 %v3337_v35, %v3335_v33 }
 0x135   : > { %v2573_v23 = vpop.f32.mrf.mxu1  ;;  %v2685_v25 = vpop.f32.mrf.mxu0 }
 0x136   : > { %v1414_v30 = vadd.f32 %v2572_v18, %v2460_v16  ;;  %v1895_v51 = vmul.f32 %v1572_v19, %v1572_v19 }
 0x137   : > { %v2574_v39 = vpop.f32.mrf.mxu1  ;;  %v2686_v40 = vpop.f32.mrf.mxu0 }
 0x138   : > { %v1575_v41 = vadd.f32 %v2684_v36, %v1414_v30  ;;  %v2575_v45 = vadd.f32 %v2574_v39, %v2573_v23  ;;  %v2687_v20 = vadd.f32 %v2686_v40, %v2685_v25 }
 0x139   : > { %v2576_v22 = vpop.f32.mrf.mxu1  ;;  %v2688_v24 = vpop.f32.mrf.mxu0 }
 0x13a   : > { %v2347_v56 = vpack.c.bf16 %v1575_v41, %v1572_v19  ;;  %v1858_v60 = vadd.f32 %v1575_v41, %v1572_v19  ;;  %v1896_v61 = vmul.f32 %v1575_v41, %v1575_v41  ;;  %v1419_v62 = vadd.f32 %v2575_v45, %v3331_v31 }
 0x13b   : > { %v2577_v63 = vpop.f32.mrf.mxu1  ;;  %v2689_v3 = vpop.f32.mrf.mxu0 }
 0x13c   : > { %2348 = vst [vmem:[%s3408_s7] sm:$0xff] %v2347_v56   ;;  %v1927_v7 = vadd.f32 %v1896_v61, %v1895_v51  ;;  %v1580_v8 = vadd.f32 %v2687_v20, %v1419_v62  ;;  %v2578_v9 = vadd.f32 %v2577_v63, %v2576_v22  ;;  %v2690_v25 = vadd.f32 %v2689_v3, %v2688_v24 }
 0x13d   : > { %v2579_v10 = vpop.f32.mrf.mxu1  ;;  %v2691_v14 = vpop.f32.mrf.mxu0 }
 0x13e   : > { %v1859_v16 = vadd.f32 %v1858_v60, %v1580_v8  ;;  %v1897_v18 = vmul.f32 %v1580_v8, %v1580_v8  ;;  %v1422_v23 = vadd.f32 %v2578_v9, %v2466_v5  ;;  %v2472_v60 = vadd.f32 %v3347_v46, %v3345_v44 }
 0x13f   : > { %v2580_v19 = vpop.f32.mrf.mxu1  ;;  %v2692_v30 = vpop.f32.mrf.mxu0 }
 0x140   : > { %v1928_v36 = vadd.f32 %v1927_v7, %v1897_v18  ;;  %v1583_v31 = vadd.f32 %v2690_v25, %v1422_v23  ;;  %v2581_v39 = vadd.f32 %v2580_v19, %v2579_v10  ;;  %v2693_v40 = vadd.f32 %v2692_v30, %v2691_v14 }
 0x141   : > { %v2582_v41 = vpop.f32.mrf.mxu1  ;;  %v2694_v45 = vpop.f32.mrf.mxu0 }
 0x142   : > { %v2352_v33 = vpack.c.bf16 %v1583_v31, %v1580_v8  ;;  %v1860_v35 = vadd.f32 %v1859_v16, %v1583_v31  ;;  %v1898_v51 = vmul.f32 %v1583_v31, %v1583_v31  ;;  %v1427_v20 = vadd.f32 %v2581_v39, %v3341_v42 }
 0x143   : > { %v2583_v22 = vpop.f32.mrf.mxu1  ;;  %v2695_v56 = vpop.f32.mrf.mxu0 }
 0x144   : > { %2424 = vst [vmem:[%s3408_s7 + $0x8] sm:$0xff] %v2352_v33   ;;  %v1929_v24 = vadd.f32 %v1928_v36, %v1898_v51  ;;  %v1588_v61 = vadd.f32 %v2693_v40, %v1427_v20  ;;  %v2584_v62 = vadd.f32 %v2583_v22, %v2582_v41  ;;  %v2696_v10 = vadd.f32 %v2695_v56, %v2694_v45 }
 0x145   : > { %v2585_v63 = vpop.f32.mrf.mxu1  ;;  %v2697_v3 = vpop.f32.mrf.mxu0  ;;  %v2478_v40 = vadd.f32 %v3357_v57, %v3355_v55 }
 0x146   : > { %v1861_v5 = vadd.f32 %v1860_v35, %v1588_v61  ;;  %v1899_v7 = vmul.f32 %v1588_v61, %v1588_v61  ;;  %v1430_v9 = vadd.f32 %v2584_v62, %v2472_v60 }
 0x147   : > { %v2586_v8 = vpop.f32.mrf.mxu1  ;;  %v2698_v14 = vpop.f32.mrf.mxu0 }
 0x148   : > { %v1930_v16 = vadd.f32 %v1929_v24, %v1899_v7  ;;  %v1591_v42 = vadd.f32 %v2696_v10, %v1430_v9  ;;  %v2587_v18 = vadd.f32 %v2586_v8, %v2585_v63  ;;  %v2699_v23 = vadd.f32 %v2698_v14, %v2697_v3 }
 0x149   : > { %v2588_v25 = vpop.f32.mrf.mxu1  ;;  %v2700_v19 = vpop.f32.mrf.mxu0 }
 0x14a   : > { %v2357_v44 = vpack.c.bf16 %v1591_v42, %v1588_v61  ;;  %v1862_v46 = vadd.f32 %v1861_v5, %v1591_v42  ;;  %v1900_v30 = vmul.f32 %v1591_v42, %v1591_v42  ;;  %v1435_v36 = vadd.f32 %v2587_v18, %v3351_v53 }
 0x14b   : > { %v2589_v31 = vpop.f32.mrf.mxu1  ;;  %v2701_v39 = vpop.f32.mrf.mxu0 }
 0x14c   : > { %2425 = vst [vmem:[%s3408_s7 + $0x10] sm:$0xff] %v2357_v44   ;;  %v1931_v41 = vadd.f32 %v1930_v16, %v1900_v30  ;;  %v1596_v45 = vadd.f32 %v2699_v23, %v1435_v36  ;;  %v2590_v33 = vadd.f32 %v2589_v31, %v2588_v25  ;;  %v2702_v60 = vadd.f32 %v2701_v39, %v2700_v19 }
 0x14d   : > { %v2591_v35 = vpop.f32.mrf.mxu1  ;;  %v2703_v51 = vpop.f32.mrf.mxu0  ;;  %v2484_v16 = vadd.f32 %v3367_v4, %v3365_v2 }
 0x14e   : > { %v1863_v20 = vadd.f32 %v1862_v46, %v1596_v45  ;;  %v1901_v22 = vmul.f32 %v1596_v45, %v1596_v45  ;;  %v1438_v56 = vadd.f32 %v2590_v33, %v2478_v40 }
 0x14f   : > { %v2592_v24 = vpop.f32.mrf.mxu1  ;;  %v2704_v61 = vpop.f32.mrf.mxu0 }
 0x150   : > { %v1932_v62 = vadd.f32 %v1931_v41, %v1901_v22  ;;  %v1599_v53 = vadd.f32 %v2702_v60, %v1438_v56  ;;  %v2593_v63 = vadd.f32 %v2592_v24, %v2591_v35  ;;  %v2705_v3 = vadd.f32 %v2704_v61, %v2703_v51 }
 0x151   : > { %v2594_v5 = vpop.f32.mrf.mxu1  ;;  %v2706_v7 = vpop.f32.mrf.mxu0  ;;  %v2490_v60 = vadd.f32 %v3377_v15, %v3375_v13 }
 0x152   : > { %v2362_v55 = vpack.c.bf16 %v1599_v53, %v1596_v45  ;;  %v1864_v57 = vadd.f32 %v1863_v20, %v1599_v53  ;;  %v1902_v9 = vmul.f32 %v1599_v53, %v1599_v53  ;;  %v1443_v10 = vadd.f32 %v2593_v63, %v3361_v0 }
 0x153   : > { %v2595_v8 = vpop.f32.mrf.mxu1  ;;  %v2707_v14 = vpop.f32.mrf.mxu0 }
 0x154   : > { %2426 = vst [vmem:[%s3408_s7 + $0x18] sm:$0xff] %v2362_v55   ;;  %v1933_v42 = vadd.f32 %v1932_v62, %v1902_v9  ;;  %v1604_v18 = vadd.f32 %v2705_v3, %v1443_v10  ;;  %v2596_v23 = vadd.f32 %v2595_v8, %v2594_v5  ;;  %v2708_v36 = vadd.f32 %v2707_v14, %v2706_v7 }
 0x155   : > { %v2597_v25 = vpop.f32.mrf.mxu1  ;;  %v2709_v19 = vpop.f32.mrf.mxu0 }
 0x156   : > { %v1865_v44 = vadd.f32 %v1864_v57, %v1604_v18  ;;  %v1903_v46 = vmul.f32 %v1604_v18, %v1604_v18  ;;  %v1446_v30 = vadd.f32 %v2596_v23, %v2484_v16 }
 0x157   : > { %v2598_v31 = vpop.f32.mrf.mxu1  ;;  %v2710_v39 = vpop.f32.mrf.mxu0 }
 0x158   : > { %v1934_v40 = vadd.f32 %v1933_v42, %v1903_v46  ;;  %v1607_v0 = vadd.f32 %v2708_v36, %v1446_v30  ;;  %v2599_v41 = vadd.f32 %v2598_v31, %v2597_v25  ;;  %v2711_v45 = vadd.f32 %v2710_v39, %v2709_v19 }
 0x159   : > { %v2600_v33 = vpop.f32.mrf.mxu1  ;;  %v2712_v35 = vpop.f32.mrf.mxu0 }
 0x15a   : > { %v2367_v2 = vpack.c.bf16 %v1607_v0, %v1604_v18  ;;  %v1866_v4 = vadd.f32 %v1865_v44, %v1607_v0  ;;  %v1904_v51 = vmul.f32 %v1607_v0, %v1607_v0  ;;  %v1451_v20 = vadd.f32 %v2599_v41, %v3371_v11 }
 0x15b   : > { %v2601_v22 = vpop.f32.mrf.mxu1  ;;  %v2713_v56 = vpop.f32.mrf.mxu0  ;;  %v2496_v44 = vadd.f32 %v3387_v34, %v3385_v29 }
 0x15c   : > { %2427 = vst [vmem:[%s3408_s7 + $0x20] sm:$0xff] %v2367_v2   ;;  %v1935_v24 = vadd.f32 %v1934_v40, %v1904_v51  ;;  %v1612_v61 = vadd.f32 %v2711_v45, %v1451_v20  ;;  %v2602_v62 = vadd.f32 %v2601_v22, %v2600_v33  ;;  %v2714_v55 = vadd.f32 %v2713_v56, %v2712_v35 }
 0x15d   : > { %v2603_v53 = vpop.f32.mrf.mxu1  ;;  %v2715_v63 = vpop.f32.mrf.mxu0 }
 0x15e   : > { %v1867_v3 = vadd.f32 %v1866_v4, %v1612_v61  ;;  %v1905_v5 = vmul.f32 %v1612_v61, %v1612_v61  ;;  %v1454_v7 = vadd.f32 %v2602_v62, %v2490_v60  ;;  %v2502_v62 = vadd.f32 %v3397_v52, %v3395_v50 }
 0x15f   : > { %v2604_v57 = vpop.f32.mrf.mxu1  ;;  %v2716_v9 = vpop.f32.mrf.mxu0 }
 0x160   : > { %v1936_v10 = vadd.f32 %v1935_v24, %v1905_v5  ;;  %v1615_v11 = vadd.f32 %v2714_v55, %v1454_v7  ;;  %v2605_v8 = vadd.f32 %v2604_v57, %v2603_v53  ;;  %v2717_v14 = vadd.f32 %v2716_v9, %v2715_v63 }
 0x161   : > { %v2606_v16 = vpop.f32.mrf.mxu1  ;;  %v2718_v42 = vpop.f32.mrf.mxu0 }
 0x162   : > { %v2372_v13 = vpack.c.bf16 %v1615_v11, %v1612_v61  ;;  %v1868_v15 = vadd.f32 %v1867_v3, %v1615_v11  ;;  %v1906_v18 = vmul.f32 %v1615_v11, %v1615_v11  ;;  %v1459_v23 = vadd.f32 %v2605_v8, %v3381_v27 }
 0x163   : > { %v2607_v25 = vpop.f32.mrf.mxu1  ;;  %v2719_v19 = vpop.f32.mrf.mxu0 }
 0x164   : > { %2428 = vst [vmem:[%s3408_s7 + $0x28] sm:$0xff] %v2372_v13   ;;  %v1937_v46 = vadd.f32 %v1936_v10, %v1906_v18  ;;  %v1620_v30 = vadd.f32 %v2717_v14, %v1459_v23  ;;  %v2608_v36 = vadd.f32 %v2607_v25, %v2606_v16  ;;  %v2720_v45 = vadd.f32 %v2719_v19, %v2718_v42 }
 0x165   : > { %v2609_v31 = vpop.f32.mrf.mxu1  ;;  %v2721_v39 = vpop.f32.mrf.mxu0 }
 0x166   : > { %v1869_v40 = vadd.f32 %v1868_v15, %v1620_v30  ;;  %v1907_v0 = vmul.f32 %v1620_v30, %v1620_v30  ;;  %v1462_v41 = vadd.f32 %v2608_v36, %v2496_v44 }
 0x167   : > { %v2610_v33 = vpop.f32.mrf.mxu1  ;;  %v2722_v35 = vpop.f32.mrf.mxu0 }
 0x168   : > { %v1938_v2 = vadd.f32 %v1937_v46, %v1907_v0  ;;  %v1623_v27 = vadd.f32 %v2720_v45, %v1462_v41  ;;  %v2611_v4 = vadd.f32 %v2610_v33, %v2609_v31  ;;  %v2723_v51 = vadd.f32 %v2722_v35, %v2721_v39 }
 0x169   : > { %v2612_v20 = vpop.f32.mrf.mxu1  ;;  %v2724_v22 = vpop.f32.mrf.mxu0 }
 0x16a   : > { %v2377_v29 = vpack.c.bf16 %v1623_v27, %v1620_v30  ;;  %v1870_v34 = vadd.f32 %v1869_v40, %v1623_v27  ;;  %v1908_v56 = vmul.f32 %v1623_v27, %v1623_v27  ;;  %v1467_v60 = vadd.f32 %v2611_v4, %v3391_v47 }
 0x16b   : > { %v2613_v24 = vpop.f32.mrf.mxu1  ;;  %v2725_v61 = vpop.f32.mrf.mxu0 }
 0x16c   : > { %2429 = vst [vmem:[%s3408_s7 + $0x30] sm:$0xff] %v2377_v29   ;;  %v1939_v53 = vadd.f32 %v1938_v2, %v1908_v56  ;;  %v1628_v63 = vadd.f32 %v2723_v51, %v1467_v60  ;;  %v2614_v3 = vadd.f32 %v2613_v24, %v2612_v20  ;;  %v2726_v10 = vadd.f32 %v2725_v61, %v2724_v22 }
 0x16d   : > { %v2615_v5 = vpop.f32.mrf.mxu1  ;;  %v2727_v7 = vpop.f32.mrf.mxu0 }
 0x16e   : > { %v1871_v55 = vadd.f32 %v1870_v34, %v1628_v63  ;;  %v1909_v57 = vmul.f32 %v1628_v63, %v1628_v63  ;;  %v1470_v9 = vadd.f32 %v2614_v3, %v2502_v62 }
 0x16f   : > { %v2616_v11 = vpop.f32.mrf.mxu1  ;;  %v2728_v8 = vpop.f32.mrf.mxu0 }
 0x170   : > { %v1940_v14 = vadd.f32 %v1939_v53, %v1909_v57  ;;  %v1631_v47 = vadd.f32 %v2726_v10, %v1470_v9  ;;  %v2617_v16 = vadd.f32 %v2616_v11, %v2615_v5  ;;  %v2729_v42 = vadd.f32 %v2728_v8, %v2727_v7 }
 0x171   : > { %v2618_v13 = vpop.f32.mrf.mxu1  ;;  %v2730_v15 = vpop.f32.mrf.mxu0 }
 0x172   : > { %v2382_v50 = vpack.c.bf16 %v1631_v47, %v1628_v63  ;;  %v1872_v52 = vadd.f32 %v1871_v55, %v1631_v47  ;;  %v1910_v18 = vmul.f32 %v1631_v47, %v1631_v47  ;;  %v1475_v23 = vadd.f32 %v2617_v16, %v3323_v21 }
 0x173   : > { %v2619_v25 = vpop.f32.mrf.mxu1  ;;  %v2731_v19 = vpop.f32.mrf.mxu0 }
 0x174   : > { %2430 = vst [vmem:[%s3408_s7 + $0x38] sm:$0xff] %v2382_v50   ;;  %v1941_v44 = vadd.f32 %v1940_v14, %v1910_v18  ;;  %v1636_v46 = vadd.f32 %v2729_v42, %v1475_v23  ;;  %v2620_v30 = vadd.f32 %v2619_v25, %v2618_v13  ;;  %v2732_v41 = vadd.f32 %v2731_v19, %v2730_v15 }
 0x175   : > { %v2621_v36 = vpop.f32.mrf.mxu1  ;;  %v2733_v31 = vpop.f32.mrf.mxu0 }
 0x176   : > { %v1873_v39 = vadd.f32 %v1872_v52, %v1636_v46  ;;  %v1911_v40 = vmul.f32 %v1636_v46, %v1636_v46  ;;  %v1478_v0 = vadd.f32 %v2620_v30, %v3329_v26 }
 0x177   : > { %v2622_v45 = vpop.f32.mrf.mxu1  ;;  %v2734_v33 = vpop.f32.mrf.mxu0 }
 0x178   : > { %v1942_v35 = vadd.f32 %v1941_v44, %v1911_v40  ;;  %v1639_v2 = vadd.f32 %v2732_v41, %v1478_v0  ;;  %v2623_v27 = vadd.f32 %v2622_v45, %v2621_v36  ;;  %v2735_v21 = vadd.f32 %v2734_v33, %v2733_v31 }
 0x179   : > { %v2624_v4 = vpop.f32.mrf.mxu1  ;;  %v2736_v51 = vpop.f32.mrf.mxu0 }
 0x17a   : > { %v2387_v20 = vpack.c.bf16 %v1639_v2, %v1636_v46  ;;  %v1874_v22 = vadd.f32 %v1873_v39, %v1639_v2  ;;  %v1912_v29 = vmul.f32 %v1639_v2, %v1639_v2  ;;  %v1483_v34 = vadd.f32 %v2623_v27, %v3333_v32 }
 0x17b   : > { %v2625_v56 = vpop.f32.mrf.mxu1  ;;  %v2737_v60 = vpop.f32.mrf.mxu0 }
 0x17c   : > { %2431 = vst [vmem:[%s3408_s7 + $0x40] sm:$0xff] %v2387_v20   ;;  %v1943_v24 = vadd.f32 %v1942_v35, %v1912_v29  ;;  %v1644_v26 = vadd.f32 %v2735_v21, %v1483_v34  ;;  %v2626_v61 = vadd.f32 %v2625_v56, %v2624_v4  ;;  %v2738_v7 = vadd.f32 %v2737_v60, %v2736_v51 }
 0x17d   : > { %v2627_v62 = vpop.f32.mrf.mxu1  ;;  %v2739_v53 = vpop.f32.mrf.mxu0 }
 0x17e   : > { %v1875_v63 = vadd.f32 %v1874_v22, %v1644_v26  ;;  %v1913_v3 = vmul.f32 %v1644_v26, %v1644_v26  ;;  %v1486_v5 = vadd.f32 %v2626_v61, %v3339_v37 }
 0x17f   : > { %v2628_v55 = vpop.f32.mrf.mxu1  ;;  %v2740_v57 = vpop.f32.mrf.mxu0 }
 0x180   : > { %v1944_v9 = vadd.f32 %v1943_v24, %v1913_v3  ;;  %v1647_v10 = vadd.f32 %v2738_v7, %v1486_v5  ;;  %v2629_v11 = vadd.f32 %v2628_v55, %v2627_v62  ;;  %v2741_v32 = vadd.f32 %v2740_v57, %v2739_v53 }
 0x181   : > { %v2630_v8 = vpop.f32.mrf.mxu1  ;;  %v2742_v14 = vpop.f32.mrf.mxu0 }
 0x182   : > { %v2392_v47 = vpack.c.bf16 %v1647_v10, %v1644_v26  ;;  %v1876_v16 = vadd.f32 %v1875_v63, %v1647_v10  ;;  %v1914_v42 = vmul.f32 %v1647_v10, %v1647_v10  ;;  %v1491_v13 = vadd.f32 %v2629_v11, %v3343_v43 }
 0x183   : > { %v2631_v15 = vpop.f32.mrf.mxu1  ;;  %v2743_v50 = vpop.f32.mrf.mxu0 }
 0x184   : > { %2432 = vst [vmem:[%s3408_s7 + $0x48] sm:$0xff] %v2392_v47   ;;  %v1945_v52 = vadd.f32 %v1944_v9, %v1914_v42  ;;  %v1652_v37 = vadd.f32 %v2741_v32, %v1491_v13  ;;  %v2632_v18 = vadd.f32 %v2631_v15, %v2630_v8  ;;  %v2744_v30 = vadd.f32 %v2743_v50, %v2742_v14 }
 0x185   : > { %v2633_v23 = vpop.f32.mrf.mxu1  ;;  %v2745_v25 = vpop.f32.mrf.mxu0 }
 0x186   : > { %v1877_v19 = vadd.f32 %v1876_v16, %v1652_v37  ;;  %v1915_v44 = vmul.f32 %v1652_v37, %v1652_v37  ;;  %v1494_v46 = vadd.f32 %v2632_v18, %v3349_v48 }
 0x187   : > { %v2634_v36 = vpop.f32.mrf.mxu1  ;;  %v2746_v31 = vpop.f32.mrf.mxu0 }
 0x188   : > { %v1946_v39 = vadd.f32 %v1945_v52, %v1915_v44  ;;  %v1655_v40 = vadd.f32 %v2744_v30, %v1494_v46  ;;  %v2635_v0 = vadd.f32 %v2634_v36, %v2633_v23  ;;  %v2747_v43 = vadd.f32 %v2746_v31, %v2745_v25 }
 0x189   : > { %v2636_v41 = vpop.f32.mrf.mxu1  ;;  %v2748_v45 = vpop.f32.mrf.mxu0 }
 0x18a   : > { %v2397_v33 = vpack.c.bf16 %v1655_v40, %v1652_v37  ;;  %v1878_v35 = vadd.f32 %v1877_v19, %v1655_v40  ;;  %v1916_v2 = vmul.f32 %v1655_v40, %v1655_v40  ;;  %v1499_v27 = vadd.f32 %v2635_v0, %v3353_v54 }
 0x18b   : > { %v2637_v21 = vpop.f32.mrf.mxu1  ;;  %v2749_v4 = vpop.f32.mrf.mxu0 }
 0x18c   : > { %2433 = vst [vmem:[%s3408_s7 + $0x50] sm:$0xff] %v2397_v33   ;;  %v1947_v51 = vadd.f32 %v1946_v39, %v1916_v2  ;;  %v1660_v48 = vadd.f32 %v2747_v43, %v1499_v27  ;;  %v2638_v20 = vadd.f32 %v2637_v21, %v2636_v41  ;;  %v2750_v24 = vadd.f32 %v2749_v4, %v2748_v45 }
 0x18d   : > { %v2639_v22 = vpop.f32.mrf.mxu1  ;;  %v2751_v29 = vpop.f32.mrf.mxu0 }
 0x18e   : > { %v1879_v34 = vadd.f32 %v1878_v35, %v1660_v48  ;;  %v1917_v56 = vmul.f32 %v1660_v48, %v1660_v48  ;;  %v1502_v60 = vadd.f32 %v2638_v20, %v3359_v59 }
 0x18f   : > { %v2640_v26 = vpop.f32.mrf.mxu1  ;;  %v2752_v61 = vpop.f32.mrf.mxu0 }
 0x190   : > { %v1948_v62 = vadd.f32 %v1947_v51, %v1917_v56  ;;  %v1663_v53 = vadd.f32 %v2750_v24, %v1502_v60  ;;  %v2641_v63 = vadd.f32 %v2640_v26, %v2639_v22  ;;  %v2753_v54 = vadd.f32 %v2752_v61, %v2751_v29 }
 0x191   : > { %v2642_v3 = vpop.f32.mrf.mxu1  ;;  %v2754_v5 = vpop.f32.mrf.mxu0 }
 0x192   : > { %v2402_v7 = vpack.c.bf16 %v1663_v53, %v1660_v48  ;;  %v1880_v55 = vadd.f32 %v1879_v34, %v1663_v53  ;;  %v1918_v57 = vmul.f32 %v1663_v53, %v1663_v53  ;;  %v1507_v9 = vadd.f32 %v2641_v63, %v3363_v1 }
 0x193   : > { %v2643_v10 = vpop.f32.mrf.mxu1  ;;  %v2755_v11 = vpop.f32.mrf.mxu0 }
 0x194   : > { %2434 = vst [vmem:[%s3408_s7 + $0x58] sm:$0xff] %v2402_v7   ;;  %v1949_v32 = vadd.f32 %v1948_v62, %v1918_v57  ;;  %v1668_v59 = vadd.f32 %v2753_v54, %v1507_v9  ;;  %v2644_v8 = vadd.f32 %v2643_v10, %v2642_v3  ;;  %v2756_v15 = vadd.f32 %v2755_v11, %v2754_v5 }
 0x195   : > { %v2645_v14 = vpop.f32.mrf.mxu1  ;;  %v2757_v47 = vpop.f32.mrf.mxu0 }
 0x196   : > { %v1881_v16 = vadd.f32 %v1880_v55, %v1668_v59  ;;  %v1919_v42 = vmul.f32 %v1668_v59, %v1668_v59  ;;  %v1510_v13 = vadd.f32 %v2644_v8, %v3369_v6 }
 0x197   : > { %v2646_v50 = vpop.f32.mrf.mxu1  ;;  %v2758_v52 = vpop.f32.mrf.mxu0 }
 0x198   : > { %v1950_v37 = vadd.f32 %v1949_v32, %v1919_v42  ;;  %v1671_v18 = vadd.f32 %v2756_v15, %v1510_v13  ;;  %v2647_v23 = vadd.f32 %v2646_v50, %v2645_v14  ;;  %v2759_v1 = vadd.f32 %v2758_v52, %v2757_v47 }
 0x199   : > { %v2648_v25 = vpop.f32.mrf.mxu1  ;;  %v2760_v19 = vpop.f32.mrf.mxu0 }
 0x19a   : > { %v2407_v44 = vpack.c.bf16 %v1671_v18, %v1668_v59  ;;  %v1882_v46 = vadd.f32 %v1881_v16, %v1671_v18  ;;  %v1920_v30 = vmul.f32 %v1671_v18, %v1671_v18  ;;  %v1515_v36 = vadd.f32 %v2647_v23, %v3373_v12 }
 0x19b   : > { %v2649_v31 = vpop.f32.mrf.mxu1  ;;  %v2761_v39 = vpop.f32.mrf.mxu0 }
 0x19c   : > { %2435 = vst [vmem:[%s3408_s7 + $0x60] sm:$0xff] %v2407_v44   ;;  %v1951_v40 = vadd.f32 %v1950_v37, %v1920_v30  ;;  %v1676_v6 = vadd.f32 %v2759_v1, %v1515_v36  ;;  %v2650_v0 = vadd.f32 %v2649_v31, %v2648_v25  ;;  %v2762_v2 = vadd.f32 %v2761_v39, %v2760_v19 }
 0x19d   : > { %v2651_v43 = vpop.f32.mrf.mxu1  ;;  %v2763_v41 = vpop.f32.mrf.mxu0  ;;  %v1964_v39 = vlaneseq }
 0x19e   : > { %v1883_v45 = vadd.f32 %v1882_v46, %v1676_v6  ;;  %v1921_v33 = vmul.f32 %v1676_v6, %v1676_v6  ;;  %v1518_v35 = vadd.f32 %v2650_v0, %v3379_v17 }
 0x19f   : > { %v2652_v27 = vpop.f32.mrf.mxu1  ;;  %v2764_v21 = vpop.f32.mrf.mxu0 }
 0x1a0   : > { %v1952_v4 = vadd.f32 %v1951_v40, %v1921_v33  ;;  %v1679_v51 = vadd.f32 %v2762_v2, %v1518_v35  ;;  %v2653_v48 = vadd.f32 %v2652_v27, %v2651_v43  ;;  %v2765_v12 = vadd.f32 %v2764_v21, %v2763_v41 }
 0x1a1   : > { %v2654_v20 = vpop.f32.mrf.mxu1  ;;  %v2766_v22 = vpop.f32.mrf.mxu0 }
 0x1a2   : > { %v2412_v29 = vpack.c.bf16 %v1679_v51, %v1676_v6  ;;  %v1884_v34 = vadd.f32 %v1883_v45, %v1679_v51  ;;  %v1922_v56 = vmul.f32 %v1679_v51, %v1679_v51  ;;  %v1523_v60 = vadd.f32 %v2653_v48, %v3383_v28 }
 0x1a3   : > { %v2655_v24 = vpop.f32.mrf.mxu1  ;;  %v2767_v26 = vpop.f32.mrf.mxu0 }
 0x1a4   : > { %2436 = vst [vmem:[%s3408_s7 + $0x68] sm:$0xff] %v2412_v29   ;;  %v1953_v61 = vadd.f32 %v1952_v4, %v1922_v56  ;;  %v1684_v17 = vadd.f32 %v2765_v12, %v1523_v60  ;;  %v2656_v62 = vadd.f32 %v2655_v24, %v2654_v20  ;;  %v2768_v7 = vadd.f32 %v2767_v26, %v2766_v22 }
 0x1a5   : > { %v2657_v53 = vpop.f32.mrf.mxu1  ;;  %v2769_v63 = vpop.f32.mrf.mxu0 }
 0x1a6   : > { %v1885_v54 = vadd.f32 %v1884_v34, %v1684_v17  ;;  %v1923_v3 = vmul.f32 %v1684_v17, %v1684_v17  ;;  %v1526_v5 = vadd.f32 %v2656_v62, %v3389_v38 }
 0x1a7   : > { %v2658_v55 = vpop.f32.mrf.mxu1  ;;  %v2770_v57 = vpop.f32.mrf.mxu0 }
 0x1a8   : > { %v1954_v9 = vadd.f32 %v1953_v61, %v1923_v3  ;;  %v1687_v10 = vadd.f32 %v2768_v7, %v1526_v5  ;;  %v2659_v11 = vadd.f32 %v2658_v55, %v2657_v53  ;;  %v2771_v28 = vadd.f32 %v2770_v57, %v2769_v63 }
 0x1a9   : > { %v2660_v32 = vpop.f32.mrf.mxu1  ;;  %v2772_v59 = vpop.f32.mrf.mxu0 }
 0x1aa   : > { %v2417_v8 = vpack.c.bf16 %v1687_v10, %v1684_v17  ;;  %v1886_v14 = vadd.f32 %v1885_v54, %v1687_v10  ;;  %v1924_v47 = vmul.f32 %v1687_v10, %v1687_v10  ;;  %v1531_v16 = vadd.f32 %v2659_v11, %v3393_v49 }
 0x1ab   : > { %v2661_v42 = vpop.f32.mrf.mxu1  ;;  %v2773_v13 = vpop.f32.mrf.mxu0 }
 0x1ac   : > { %2437 = vst [vmem:[%s3408_s7 + $0x70] sm:$0xff] %v2417_v8   ;;  %v1955_v38 = vadd.f32 %v1954_v9, %v1924_v47  ;;  %v1692_v15 = vadd.f32 %v2771_v28, %v1531_v16  ;;  %v2662_v50 = vadd.f32 %v2661_v42, %v2660_v32  ;;  %v2774_v23 = vadd.f32 %v2773_v13, %v2772_v59 }
 0x1ae   : > { %v1887_v52 = vadd.f32 %v1886_v14, %v1692_v15  ;;  %v1925_v37 = vmul.f32 %v1692_v15, %v1692_v15  ;;  %v1534_v18 = vadd.f32 %v2662_v50, %v3399_v58  ;;  %v1965_v58 = vshrl.u32 %v1964_v39, 7 }
 0x1b0   : > { %v1956_v1 = vadd.f32 %v1955_v38, %v1925_v37  ;;  %v1695_v25 = vadd.f32 %v2774_v23, %v1534_v18  ;;  %vm1967_vm0 = vcmp.eq.s32.totalorder %v1965_v58, 1  ;;  %vm1966_vm1 = vcmp.eq.s32.totalorder %v1965_v58, 0 }
 0x1b2   : > { %v2422_v19 = vpack.c.bf16 %v1695_v25, %v1692_v15  ;;  %v1888_v44 = vadd.f32 %v1887_v52, %v1695_v25  ;;  %v1926_v46 = vmul.f32 %v1695_v25, %v1695_v25 }
 0x1b4   : > { %2438 = vst [vmem:[%s3408_s7 + $0x78] sm:$0xff] %v2422_v19   ;;  %v1889_v49 = vrot.slane %v1888_v44, 4  ;;  %v1957_v30 = vadd.f32 %v1956_v1, %v1926_v46 }
 0x1b6   : > { %v1890_v36 = vadd.f32 %v1889_v49, %v1888_v44  ;;  %v1958_v31 = vrot.slane %v1957_v30, 4 }
 0x1b8   : > { %v1891_v40 = vrot.slane %v1890_v36, 2  ;;  %v1959_v6 = vadd.f32 %v1958_v31, %v1957_v30 }
 0x1ba   : > { %v1892_v0 = vadd.f32 %v1891_v40, %v1890_v36  ;;  %v1960_v43 = vrot.slane %v1959_v6, 2 }
 0x1bc   : > { %v1961_v41 = vadd.f32 %v1960_v43, %v1959_v6  ;;  %v1893_v45 = vrot.slane %v1892_v0, 1 }
 0x1be   : > { %v1962_v33 = vrot.slane %v1961_v41, 1  ;;  %v1894_v2 = vadd.f32 %v1893_v45, %v1892_v0 }
 0x1c0   : > { %v1963_v35 = vadd.f32 %v1962_v33, %v1961_v41 }
 0x1c2   : > { %v1968_v27 = vsel %vm1967_vm0, %v1963_v35, 0.0 }
 0x1c3   : > { %v1969_v21 = vsel %vm1966_vm1, %v1894_v2, %v1968_v27 }
 0x1c4   : > { %1970 = vst [vmem:[%s253_s10] sm:$0xff] %v1969_v21 }
 0x1c5 PF: > { %s14_s14 = sadd.s32 1, %s3030_s14   ;;  %s3481_s12 = smov %s3026_s13 }
 0x1c6   : > { %p11_p6 = scmp.ge.s32.totalorder %s14_s14, 4   ;;  %s3482_s13 = smov %s3484_s15 }
 0x1c8   :  { %13 = sbr.rel (!%p11_p6) target bundleno = 2 (0x2), region = 73 }

// kernel: video_reconstructor_forward.21
= control target key start
LH: loop header
LB: loop body
LE: loop exit
PB: predicated region body
PF: predicated region fallthrough
CT: control target
= control target key end

     0   :  { %s1014_s12 = smov 0   ;;  %s1016_s13 = smov 0   ;;  %s1165_s0 = inlined_call_operand.vmem [shape: bf16[1,512,128], index: 0, kind: input, shape index: {}]   ;;  %s1166_s1 = inlined_call_operand.vmem [shape: f32[1,128], index: 1, kind: input, shape index: {}]   ;;  %s1167_s2 = inlined_call_operand.vmem [shape: f32[1,128], index: 2, kind: input, shape index: {}]   ;;  %s1168_s3 = inlined_call_operand.vmem [shape: bf16[1,512,128], index: 3, kind: output, shape index: {}]  }
   0x1   :  { %s1018_s14 = smov 0  }
   0x2 LB: > { %s22_s15 = sadd.s32 1, %s988_s13  ;;  %p699_p0 = scmp.ge.s32.totalorder %s992_s14, 1  ;;  %s992_s14 = sphi %s1018_s14, %s13_s14   ;;  %s988_s13 = sphi %s1016_s13, %s1170_s13   ;;  %s984_s12 = sphi %s1014_s12, %s1169_s12  }
   0x3   : > { %p23_p1 = scmp.ge.s32.totalorder %s22_s15, 2  ;;  %p158_p2 = scmp.lt.s32.totalorder %s992_s14, 3 }
   0x5   : > { %s1172_s15 = smov (%p23_p1, %s22_s15), 0  ;;  %p159_p3 = pnand %p699_p0, %p158_p2 }
   0x6   : > { %s700_s16 = sshll.u32 (!%p159_p3), %s984_s12, 5 }
   0x7   : > { %162 = sbr.rel (%p159_p3) target bundleno = 75 (0x4b), region = 32  ;;  %p193_p4 = scmp.lt.s32.totalorder (!%p159_p3), %s700_s16, 63 }
   0xc   : > { %s1174_s16 = smov (!%p193_p4, %s700_s16), 63  ;;  %v1045_v0 = vld [vmem:[%s1166_s1] ss:$0 sm:$0xff] }
   0xd   : > { %s701_s17 = sshll.u32 %s1174_s16, 2  ;;  %v1054_v9 = vld [vmem:[%s1167_s2] ss:$0 sm:$0xff] }
   0xe   : > { %s1040_s20 = scalar_lea.vmem %s1165_s0, %s701_s17  ;;  %s1077_s27 = scalar_lea.vmem %s1168_s3, %s701_s17 }
   0xf   : > { %v773_v1 = vld [vmem:[%s1040_s20] sm:$0xff]   ;;  %v916_v2 = vld [vmem:[%s1040_s20 + $0x8] sm:$0xff]   ;;  %v917_v3 = vld [vmem:[%s1040_s20 + $0x10] sm:$0xff]  }
  0x10   : > { %v774_v4 = vunpack.c.l.bf16 %v773_v1  ;;  %v775_v5 = vunpack.c.h.bf16 %v773_v1  ;;  %v778_v6 = vunpack.c.l.bf16 %v916_v2  ;;  %v779_v7 = vunpack.c.h.bf16 %v916_v2  ;;  %v918_v8 = vld [vmem:[%s1040_s20 + $0x18] sm:$0xff]   ;;  %v919_v36 = vld [vmem:[%s1040_s20 + $0x20] sm:$0xff]   ;;  %v920_v41 = vld [vmem:[%s1040_s20 + $0x28] sm:$0xff]  }
  0x11   : > { %v782_v10 = vunpack.c.l.bf16 %v917_v3  ;;  %v783_v11 = vunpack.c.h.bf16 %v917_v3  ;;  %v786_v12 = vunpack.c.l.bf16 %v918_v8  ;;  %v787_v13 = vunpack.c.h.bf16 %v918_v8  ;;  %v921_v52 = vld [vmem:[%s1040_s20 + $0x30] sm:$0xff]   ;;  %v922_v53 = vld [vmem:[%s1040_s20 + $0x38] sm:$0xff]  }
  0x12   : > { %v281_v14 = vmul.f32 %v774_v4, %v1045_v0  ;;  %v282_v15 = vmul.f32 %v775_v5, %v1045_v0  ;;  %v283_v16 = vmul.f32 %v778_v6, %v1045_v0  ;;  %v284_v17 = vmul.f32 %v779_v7, %v1045_v0 }
  0x13   : > { %v285_v18 = vmul.f32 %v782_v10, %v1045_v0  ;;  %v286_v19 = vmul.f32 %v783_v11, %v1045_v0  ;;  %v287_v20 = vmul.f32 %v786_v12, %v1045_v0  ;;  %v288_v21 = vmul.f32 %v787_v13, %v1045_v0 }
  0x14   : > { %v320_v22 = vadd.f32 %v1054_v9, %v281_v14  ;;  %v321_v23 = vadd.f32 %v1054_v9, %v282_v15  ;;  %v322_v24 = vadd.f32 %v1054_v9, %v283_v16  ;;  %v323_v25 = vadd.f32 %v1054_v9, %v284_v17 }
  0x15   : > { %v324_v26 = vadd.f32 %v1054_v9, %v285_v18  ;;  %v325_v27 = vadd.f32 %v1054_v9, %v286_v19  ;;  %v326_v28 = vadd.f32 %v1054_v9, %v287_v20  ;;  %v327_v29 = vadd.f32 %v1054_v9, %v288_v21  ;;  %v923_v20 = vld [vmem:[%s1040_s20 + $0x40] sm:$0xff]  }
  0x16   : > { %vm352_vm0 = vcmp.gt.f32.partialorder %v320_v22, 0.0  ;;  %vm353_vm1 = vcmp.gt.f32.partialorder %v321_v23, 0.0  ;;  %v384_v30 = vmul.f32 0.2, %v320_v22  ;;  %v385_v31 = vmul.f32 0.2, %v321_v23 }
  0x17   : > { %vm354_vm2 = vcmp.gt.f32.partialorder %v322_v24, 0.0  ;;  %vm355_vm3 = vcmp.gt.f32.partialorder %v323_v25, 0.0  ;;  %v386_v32 = vmul.f32 0.2, %v322_v24  ;;  %v387_v33 = vmul.f32 0.2, %v323_v25 }
  0x18   : > { %v416_v34 = vsel %vm352_vm0, %v320_v22, %v384_v30  ;;  %v417_v35 = vsel %vm353_vm1, %v321_v23, %v385_v31  ;;  %vm356_vm4 = vcmp.gt.f32.partialorder %v324_v26, 0.0  ;;  %vm357_vm5 = vcmp.gt.f32.partialorder %v325_v27, 0.0 }
  0x19   : > { %v839_v37 = vpack.c.bf16 %v417_v35, %v416_v34  ;;  %v418_v38 = vsel %vm354_vm2, %v322_v24, %v386_v32  ;;  %v419_v39 = vsel %vm355_vm3, %v323_v25, %v387_v33  ;;  %v388_v40 = vmul.f32 0.2, %v324_v26  ;;  %v924_v24 = vld [vmem:[%s1040_s20 + $0x48] sm:$0xff]  }
  0x1a   : > { %v844_v42 = vpack.c.bf16 %v419_v39, %v418_v38  ;;  %v389_v43 = vmul.f32 0.2, %v325_v27  ;;  %vm358_vm6 = vcmp.gt.f32.partialorder %v326_v28, 0.0  ;;  %vm359_vm7 = vcmp.gt.f32.partialorder %v327_v29, 0.0 }
  0x1b   : > { %840 = vst [vmem:[%s1077_s27] sm:$0xff] %v839_v37   ;;  %v420_v44 = vsel %vm356_vm4, %v324_v26, %v388_v40  ;;  %v390_v45 = vmul.f32 0.2, %v326_v28  ;;  %v391_v46 = vmul.f32 0.2, %v327_v29  ;;  %v790_v47 = vunpack.c.l.bf16 %v919_v36 }
  0x1c   : > { %931 = vst [vmem:[%s1077_s27 + $0x8] sm:$0xff] %v844_v42   ;;  %v421_v48 = vsel %vm357_vm5, %v325_v27, %v389_v43  ;;  %v791_v49 = vunpack.c.h.bf16 %v919_v36  ;;  %v794_v50 = vunpack.c.l.bf16 %v920_v41  ;;  %v795_v51 = vunpack.c.h.bf16 %v920_v41  ;;  %v925_v36 = vld [vmem:[%s1040_s20 + $0x50] sm:$0xff]  }
  0x1d   : > { %v849_v54 = vpack.c.bf16 %v421_v48, %v420_v44  ;;  %v422_v55 = vsel %vm358_vm6, %v326_v28, %v390_v45  ;;  %v423_v56 = vsel %vm359_vm7, %v327_v29, %v391_v46  ;;  %v289_v57 = vmul.f32 %v790_v47, %v1045_v0 }
  0x1e   : > { %v854_v58 = vpack.c.bf16 %v423_v56, %v422_v55  ;;  %v290_v59 = vmul.f32 %v791_v49, %v1045_v0  ;;  %v291_v60 = vmul.f32 %v794_v50, %v1045_v0  ;;  %v292_v61 = vmul.f32 %v795_v51, %v1045_v0  ;;  %v926_v55 = vld [vmem:[%s1040_s20 + $0x58] sm:$0xff]  }
  0x1f   : > { %932 = vst [vmem:[%s1077_s27 + $0x10] sm:$0xff] %v849_v54   ;;  %v328_v62 = vadd.f32 %v1054_v9, %v289_v57  ;;  %v798_v63 = vunpack.c.l.bf16 %v921_v52  ;;  %v799_v1 = vunpack.c.h.bf16 %v921_v52  ;;  %v802_v2 = vunpack.c.l.bf16 %v922_v53 }
  0x20   : > { %933 = vst [vmem:[%s1077_s27 + $0x18] sm:$0xff] %v854_v58   ;;  %v329_v3 = vadd.f32 %v1054_v9, %v290_v59  ;;  %v330_v4 = vadd.f32 %v1054_v9, %v291_v60  ;;  %v331_v5 = vadd.f32 %v1054_v9, %v292_v61  ;;  %v803_v6 = vunpack.c.h.bf16 %v922_v53 }
  0x21   : > { %vm360_vm8 = vcmp.gt.f32.partialorder %v328_v62, 0.0  ;;  %v392_v7 = vmul.f32 0.2, %v328_v62  ;;  %v293_v8 = vmul.f32 %v798_v63, %v1045_v0  ;;  %v294_v10 = vmul.f32 %v799_v1, %v1045_v0  ;;  %v927_v1 = vld [vmem:[%s1040_s20 + $0x60] sm:$0xff]  }
  0x22   : > { %vm361_vm9 = vcmp.gt.f32.partialorder %v329_v3, 0.0  ;;  %v393_v11 = vmul.f32 0.2, %v329_v3  ;;  %vm362_vm10 = vcmp.gt.f32.partialorder %v330_v4, 0.0  ;;  %vm363_vm11 = vcmp.gt.f32.partialorder %v331_v5, 0.0 }
  0x23   : > { %v424_v12 = vsel %vm360_vm8, %v328_v62, %v392_v7  ;;  %v394_v13 = vmul.f32 0.2, %v330_v4  ;;  %v395_v14 = vmul.f32 0.2, %v331_v5  ;;  %v332_v15 = vadd.f32 %v1054_v9, %v293_v8 }
  0x24   : > { %v425_v16 = vsel %vm361_vm9, %v329_v3, %v393_v11  ;;  %v333_v17 = vadd.f32 %v1054_v9, %v294_v10  ;;  %v295_v18 = vmul.f32 %v802_v2, %v1045_v0  ;;  %v296_v19 = vmul.f32 %v803_v6, %v1045_v0  ;;  %v928_v6 = vld [vmem:[%s1040_s20 + $0x68] sm:$0xff]  }
  0x25   : > { %v859_v21 = vpack.c.bf16 %v425_v16, %v424_v12  ;;  %v426_v22 = vsel %vm362_vm10, %v330_v4, %v394_v13  ;;  %v427_v23 = vsel %vm363_vm11, %v331_v5, %v395_v14  ;;  %vm364_vm12 = vcmp.gt.f32.partialorder %v332_v15, 0.0 }
  0x26   : > { %v864_v25 = vpack.c.bf16 %v427_v23, %v426_v22  ;;  %vm365_vm13 = vcmp.gt.f32.partialorder %v333_v17, 0.0  ;;  %v396_v26 = vmul.f32 0.2, %v332_v15  ;;  %v397_v27 = vmul.f32 0.2, %v333_v17  ;;  %v929_v22 = vld [vmem:[%s1040_s20 + $0x70] sm:$0xff]  }
  0x27   : > { %934 = vst [vmem:[%s1077_s27 + $0x20] sm:$0xff] %v859_v21   ;;  %v334_v28 = vadd.f32 %v1054_v9, %v295_v18  ;;  %v335_v29 = vadd.f32 %v1054_v9, %v296_v19  ;;  %v806_v30 = vunpack.c.l.bf16 %v923_v20  ;;  %v807_v31 = vunpack.c.h.bf16 %v923_v20 }
  0x28   : > { %935 = vst [vmem:[%s1077_s27 + $0x28] sm:$0xff] %v864_v25   ;;  %v428_v32 = vsel %vm364_vm12, %v332_v15, %v396_v26  ;;  %v429_v33 = vsel %vm365_vm13, %v333_v17, %v397_v27  ;;  %v810_v34 = vunpack.c.l.bf16 %v924_v24  ;;  %v811_v35 = vunpack.c.h.bf16 %v924_v24 }
  0x29   : > { %v869_v37 = vpack.c.bf16 %v429_v33, %v428_v32  ;;  %vm366_vm14 = vcmp.gt.f32.partialorder %v334_v28, 0.0  ;;  %vm367_vm15 = vcmp.gt.f32.partialorder %v335_v29, 0.0  ;;  %v398_v38 = vmul.f32 0.2, %v334_v28 }
  0x2a   : > { %v399_v39 = vmul.f32 0.2, %v335_v29  ;;  %v297_v40 = vmul.f32 %v806_v30, %v1045_v0  ;;  %v298_v41 = vmul.f32 %v807_v31, %v1045_v0  ;;  %v299_v42 = vmul.f32 %v810_v34, %v1045_v0 }
  0x2b   : > { %936 = vst [vmem:[%s1077_s27 + $0x30] sm:$0xff] %v869_v37   ;;  %v430_v43 = vsel %vm366_vm14, %v334_v28, %v398_v38  ;;  %v300_v44 = vmul.f32 %v811_v35, %v1045_v0  ;;  %v814_v45 = vunpack.c.l.bf16 %v925_v36  ;;  %v815_v46 = vunpack.c.h.bf16 %v925_v36 }
  0x2c   : > { %v431_v47 = vsel %vm367_vm15, %v335_v29, %v399_v39  ;;  %v336_v48 = vadd.f32 %v1054_v9, %v297_v40  ;;  %v337_v49 = vadd.f32 %v1054_v9, %v298_v41  ;;  %v338_v50 = vadd.f32 %v1054_v9, %v299_v42  ;;  %v930_v41 = vld [vmem:[%s1040_s20 + $0x78] sm:$0xff]  }
  0x2d   : > { %v874_v51 = vpack.c.bf16 %v431_v47, %v430_v43  ;;  %v339_v52 = vadd.f32 %v1054_v9, %v300_v44  ;;  %v301_v53 = vmul.f32 %v814_v45, %v1045_v0  ;;  %v302_v54 = vmul.f32 %v815_v46, %v1045_v0 }
  0x2e   : > { %vm368_vm0 = vcmp.gt.f32.partialorder %v336_v48, 0.0  ;;  %vm369_vm1 = vcmp.gt.f32.partialorder %v337_v49, 0.0  ;;  %v400_v56 = vmul.f32 0.2, %v336_v48  ;;  %v401_v57 = vmul.f32 0.2, %v337_v49 }
  0x2f   : > { %937 = vst [vmem:[%s1077_s27 + $0x38] sm:$0xff] %v874_v51   ;;  %vm370_vm2 = vcmp.gt.f32.partialorder %v338_v50, 0.0  ;;  %vm371_vm3 = vcmp.gt.f32.partialorder %v339_v52, 0.0  ;;  %v402_v58 = vmul.f32 0.2, %v338_v50  ;;  %v340_v62 = vadd.f32 %v1054_v9, %v301_v53 }
  0x30   : > { %v403_v59 = vmul.f32 0.2, %v339_v52  ;;  %v432_v60 = vsel %vm368_vm0, %v336_v48, %v400_v56  ;;  %v433_v61 = vsel %vm369_vm1, %v337_v49, %v401_v57  ;;  %v341_v63 = vadd.f32 %v1054_v9, %v302_v54 }
  0x31   : > { %v879_v2 = vpack.c.bf16 %v433_v61, %v432_v60  ;;  %v434_v3 = vsel %vm370_vm2, %v338_v50, %v402_v58  ;;  %v818_v5 = vunpack.c.l.bf16 %v926_v55  ;;  %vm372_vm4 = vcmp.gt.f32.partialorder %v340_v62, 0.0 }
  0x32   : > { %v435_v4 = vsel %vm371_vm3, %v339_v52, %v403_v59  ;;  %vm373_vm5 = vcmp.gt.f32.partialorder %v341_v63, 0.0  ;;  %v404_v8 = vmul.f32 0.2, %v340_v62  ;;  %v405_v10 = vmul.f32 0.2, %v341_v63 }
  0x33   : > { %v884_v7 = vpack.c.bf16 %v435_v4, %v434_v3  ;;  %938 = vst [vmem:[%s1077_s27 + $0x40] sm:$0xff] %v879_v2   ;;  %v819_v11 = vunpack.c.h.bf16 %v926_v55  ;;  %v303_v12 = vmul.f32 %v818_v5, %v1045_v0  ;;  %v822_v13 = vunpack.c.l.bf16 %v927_v1 }
  0x34   : > { %v436_v14 = vsel %vm372_vm4, %v340_v62, %v404_v8  ;;  %v823_v15 = vunpack.c.h.bf16 %v927_v1  ;;  %v826_v16 = vunpack.c.l.bf16 %v928_v6  ;;  %v827_v17 = vunpack.c.h.bf16 %v928_v6 }
  0x35   : > { %939 = vst [vmem:[%s1077_s27 + $0x48] sm:$0xff] %v884_v7   ;;  %v437_v18 = vsel %vm373_vm5, %v341_v63, %v405_v10  ;;  %v304_v19 = vmul.f32 %v819_v11, %v1045_v0  ;;  %v342_v20 = vadd.f32 %v1054_v9, %v303_v12  ;;  %v305_v21 = vmul.f32 %v822_v13, %v1045_v0 }
  0x36   : > { %v889_v23 = vpack.c.bf16 %v437_v18, %v436_v14  ;;  %v306_v24 = vmul.f32 %v823_v15, %v1045_v0  ;;  %v307_v25 = vmul.f32 %v826_v16, %v1045_v0  ;;  %v308_v26 = vmul.f32 %v827_v17, %v1045_v0 }
  0x37   : > { %v343_v27 = vadd.f32 %v1054_v9, %v304_v19  ;;  %vm374_vm6 = vcmp.gt.f32.partialorder %v342_v20, 0.0  ;;  %v406_v28 = vmul.f32 0.2, %v342_v20  ;;  %v344_v29 = vadd.f32 %v1054_v9, %v305_v21 }
  0x38   : > { %940 = vst [vmem:[%s1077_s27 + $0x50] sm:$0xff] %v889_v23   ;;  %v345_v30 = vadd.f32 %v1054_v9, %v306_v24  ;;  %v346_v31 = vadd.f32 %v1054_v9, %v307_v25  ;;  %v347_v32 = vadd.f32 %v1054_v9, %v308_v26  ;;  %v830_v33 = vunpack.c.l.bf16 %v929_v22 }
  0x39   : > { %vm375_vm7 = vcmp.gt.f32.partialorder %v343_v27, 0.0  ;;  %v407_v34 = vmul.f32 0.2, %v343_v27  ;;  %v438_v35 = vsel %vm374_vm6, %v342_v20, %v406_v28  ;;  %vm376_vm8 = vcmp.gt.f32.partialorder %v344_v29, 0.0 }
  0x3a   : > { %vm377_vm9 = vcmp.gt.f32.partialorder %v345_v30, 0.0  ;;  %v408_v36 = vmul.f32 0.2, %v344_v29  ;;  %v409_v37 = vmul.f32 0.2, %v345_v30  ;;  %vm378_vm10 = vcmp.gt.f32.partialorder %v346_v31, 0.0 }
  0x3b   : > { %v439_v38 = vsel %vm375_vm7, %v343_v27, %v407_v34  ;;  %vm379_vm11 = vcmp.gt.f32.partialorder %v347_v32, 0.0  ;;  %v410_v39 = vmul.f32 0.2, %v346_v31  ;;  %v411_v40 = vmul.f32 0.2, %v347_v32 }
  0x3c   : > { %v894_v42 = vpack.c.bf16 %v439_v38, %v438_v35  ;;  %v440_v43 = vsel %vm376_vm8, %v344_v29, %v408_v36  ;;  %v441_v44 = vsel %vm377_vm9, %v345_v30, %v409_v37  ;;  %v831_v45 = vunpack.c.h.bf16 %v929_v22 }
  0x3d   : > { %v899_v46 = vpack.c.bf16 %v441_v44, %v440_v43  ;;  %v442_v47 = vsel %vm378_vm10, %v346_v31, %v410_v39  ;;  %v443_v48 = vsel %vm379_vm11, %v347_v32, %v411_v40  ;;  %v309_v49 = vmul.f32 %v830_v33, %v1045_v0 }
  0x3e   : > { %941 = vst [vmem:[%s1077_s27 + $0x58] sm:$0xff] %v894_v42   ;;  %v904_v50 = vpack.c.bf16 %v443_v48, %v442_v47  ;;  %v310_v51 = vmul.f32 %v831_v45, %v1045_v0  ;;  %v834_v52 = vunpack.c.l.bf16 %v930_v41  ;;  %v835_v53 = vunpack.c.h.bf16 %v930_v41 }
  0x3f   : > { %942 = vst [vmem:[%s1077_s27 + $0x60] sm:$0xff] %v899_v46   ;;  %v348_v54 = vadd.f32 %v1054_v9, %v309_v49 }
  0x40   : > { %943 = vst [vmem:[%s1077_s27 + $0x68] sm:$0xff] %v904_v50   ;;  %v349_v55 = vadd.f32 %v1054_v9, %v310_v51  ;;  %v311_v56 = vmul.f32 %v834_v52, %v1045_v0  ;;  %v312_v57 = vmul.f32 %v835_v53, %v1045_v0 }
  0x41   : > { %vm380_vm12 = vcmp.gt.f32.partialorder %v348_v54, 0.0  ;;  %v412_v58 = vmul.f32 0.2, %v348_v54 }
  0x42   : > { %vm381_vm13 = vcmp.gt.f32.partialorder %v349_v55, 0.0  ;;  %v413_v59 = vmul.f32 0.2, %v349_v55  ;;  %v350_v60 = vadd.f32 %v1054_v9, %v311_v56  ;;  %v351_v61 = vadd.f32 %v1054_v9, %v312_v57 }
  0x43   : > { %v444_v62 = vsel %vm380_vm12, %v348_v54, %v412_v58 }
  0x44   : > { %v445_v63 = vsel %vm381_vm13, %v349_v55, %v413_v59  ;;  %vm382_vm14 = vcmp.gt.f32.partialorder %v350_v60, 0.0  ;;  %vm383_vm15 = vcmp.gt.f32.partialorder %v351_v61, 0.0  ;;  %v414_v1 = vmul.f32 0.2, %v350_v60 }
  0x45   : > { %v909_v2 = vpack.c.bf16 %v445_v63, %v444_v62  ;;  %v415_v3 = vmul.f32 0.2, %v351_v61 }
  0x46   : > { %v446_v4 = vsel %vm382_vm14, %v350_v60, %v414_v1 }
  0x47   : > { %944 = vst [vmem:[%s1077_s27 + $0x70] sm:$0xff] %v909_v2   ;;  %v447_v5 = vsel %vm383_vm15, %v351_v61, %v415_v3 }
  0x48   : > { %v914_v0 = vpack.c.bf16 %v447_v5, %v446_v4 }
  0x4a   : > { %945 = vst [vmem:[%s1077_s27 + $0x78] sm:$0xff] %v914_v0  }
  0x4b PF: > { %s13_s14 = sadd.s32 1, %s992_s14   ;;  %s1169_s12 = smov %s988_s13 }
  0x4c   : > { %p10_p5 = scmp.ge.s32.totalorder %s13_s14, 4   ;;  %s1170_s13 = smov %s1172_s15 }
  0x4e   :  { %12 = sbr.rel (!%p10_p5) target bundleno = 2 (0x2), region = 62 }

// kernel: video_reconstructor_forward.22
= control target key start
LH: loop header
LB: loop body
LE: loop exit
PB: predicated region body
PF: predicated region fallthrough
CT: control target
= control target key end

     0   :  { %s2730_s1 = inlined_call_operand.vmem [shape: bf16[1,1536,128], index: 1, kind: input, shape index: {}]   ;;  %s2731_s0 = inlined_call_operand.vmem [shape: bf16[1,64,1536], index: 0, kind: input, shape index: {}]   ;;  %s2732_s2 = inlined_call_operand.vmem [shape: bf16[1,64,128], index: 2, kind: output, shape index: {0}]   ;;  %s2733_s3 = inlined_call_operand.vmem [shape: f32[1,8,128], index: 3, kind: output, shape index: {1}]  }
   0x1   :  { %v1972_v0 = vld [vmem:[%s2730_s1 + $0x78] sm:$0xff]   ;;  %v1976_v4 = vld [vmem:[%s2730_s1 + $0x70] sm:$0xff]   ;;  %v1980_v8 = vld [vmem:[%s2730_s1 + $0x68] sm:$0xff]  }
   0x2   :  { %v1973_v1 = vld [vmem:[%s2730_s1 + $0xf8] sm:$0xff]   ;;  %1732 = vmatprep.subr.bf16.mxu0 %v1972_v0  ;;  %v1977_v5 = vld [vmem:[%s2730_s1 + $0xf0] sm:$0xff]   ;;  %v1981_v9 = vld [vmem:[%s2730_s1 + $0xe8] sm:$0xff]  }
   0x3   :  { %v1974_v2 = vld [vmem:[%s2730_s1 + $0x38] sm:$0xff]   ;;  %1772 = vmatprep.subr.bf16.mxu1 %v1973_v1  ;;  %v1978_v6 = vld [vmem:[%s2730_s1 + $0x30] sm:$0xff]   ;;  %v1982_v10 = vld [vmem:[%s2730_s1 + $0x28] sm:$0xff]  }
   0x4   :  { %v1975_v3 = vld [vmem:[%s2730_s1 + $0xb8] sm:$0xff]   ;;  %1733 = vmatpush3.bf16.msra.mxu0 %v1974_v2  ;;  %v1979_v7 = vld [vmem:[%s2730_s1 + $0xb0] sm:$0xff]   ;;  %v1983_v11 = vld [vmem:[%s2730_s1 + $0xa8] sm:$0xff]  }
   0x5   :  { %1773 = vmatpush3.bf16.msra.mxu1 %v1975_v3  ;;  %1734 = vmatprep.subr.bf16.mxu0 %v1976_v4  ;;  %v1984_v12 = vld [vmem:[%s2730_s1 + $0x60] sm:$0xff]   ;;  %v1988_v16 = vld [vmem:[%s2730_s1 + $0x58] sm:$0xff]   ;;  %v1992_v20 = vld [vmem:[%s2730_s1 + $0x50] sm:$0xff]  }
   0x6   :  { %1774 = vmatprep.subr.bf16.mxu1 %v1977_v5  ;;  %v1985_v13 = vld [vmem:[%s2730_s1 + $0xe0] sm:$0xff]   ;;  %v1989_v17 = vld [vmem:[%s2730_s1 + $0xd8] sm:$0xff]   ;;  %v1993_v21 = vld [vmem:[%s2730_s1 + $0xd0] sm:$0xff]  }
   0x7   :  { %v1986_v14 = vld [vmem:[%s2730_s1 + $0x20] sm:$0xff]   ;;  %v1990_v18 = vld [vmem:[%s2730_s1 + $0x18] sm:$0xff]   ;;  %v1994_v22 = vld [vmem:[%s2730_s1 + $0x10] sm:$0xff]  }
   0x8   :  { %1735 = vmatpush3.bf16.msra.mxu0 %v1978_v6  ;;  %v1987_v15 = vld [vmem:[%s2730_s1 + $0xa0] sm:$0xff]   ;;  %v1991_v19 = vld [vmem:[%s2730_s1 + $0x98] sm:$0xff]   ;;  %v1995_v23 = vld [vmem:[%s2730_s1 + $0x90] sm:$0xff]  }
   0x9   :  { %1775 = vmatpush3.bf16.msra.mxu1 %v1979_v7  ;;  %1736 = vmatprep.subr.bf16.mxu0 %v1980_v8  ;;  %v1996_v24 = vld [vmem:[%s2730_s1 + $0x48] sm:$0xff]   ;;  %v2000_v28 = vld [vmem:[%s2730_s1 + $0x40] sm:$0xff]   ;;  %v2010_v36 = vld [vmem:[%s2730_s1 + $0x178] sm:$0xff]  }
   0xa   :  { %1776 = vmatprep.subr.bf16.mxu1 %v1981_v9  ;;  %v1997_v25 = vld [vmem:[%s2730_s1 + $0xc8] sm:$0xff]   ;;  %v2001_v29 = vld [vmem:[%s2730_s1 + $0xc0] sm:$0xff]   ;;  %v2011_v37 = vld [vmem:[%s2730_s1 + $0x1f8] sm:$0xff]  }
   0xb   :  { %v1998_v26 = vld [vmem:[%s2730_s1 + $0x8] sm:$0xff]   ;;  %v2002_v30 = vld [vmem:[%s2730_s1] sm:$0xff]   ;;  %v2012_v38 = vld [vmem:[%s2730_s1 + $0x138] sm:$0xff]  }
   0xc   :  { %1737 = vmatpush3.bf16.msra.mxu0 %v1982_v10  ;;  %v1999_v27 = vld [vmem:[%s2730_s1 + $0x88] sm:$0xff]   ;;  %v2003_v31 = vld [vmem:[%s2730_s1 + $0x80] sm:$0xff]   ;;  %v2013_v39 = vld [vmem:[%s2730_s1 + $0x1b8] sm:$0xff]  }
   0xd   :  { %1777 = vmatpush3.bf16.msra.mxu1 %v1983_v11  ;;  %1738 = vmatprep.subr.bf16.mxu0 %v1984_v12  ;;  %v2004_v32 = vld [vmem:[%s2731_s0] ss:$48 sps:$4 sm:$0xff]   ;;  %v2006_v33 = vld [vmem:[%s2731_s0 + $0x4] ss:$48 sps:$4 sm:$0xff]   ;;  %v2007_v34 = vld [vmem:[%s2731_s0 + $0x8] ss:$48 sps:$4 sm:$0xff]  }
   0xe   :  { %1778 = vmatprep.subr.bf16.mxu1 %v1985_v13  ;;  %v2009_v35 = vld [vmem:[%s2731_s0 + $0xc] ss:$48 sps:$4 sm:$0xff]   ;;  %1102 = vmatprep.mubr.bf16.mxu0 %v2006_v33  ;;  %v2014_v40 = vld [vmem:[%s2730_s1 + $0x170] sm:$0xff]   ;;  %v2023_v47 = vld [vmem:[%s2731_s0 + $0x68] ss:$48 sps:$4 sm:$0xff]  }
   0xf   :  { %1167 = vmatprep.mubr.bf16.mxu1 %v2009_v35  ;;  %v2015_v41 = vld [vmem:[%s2730_s1 + $0x1f0] sm:$0xff]   ;;  %v2020_v45 = vld [vmem:[%s2731_s0 + $0x6c] ss:$48 sps:$4 sm:$0xff]   ;;  %v2028_v52 = vld [vmem:[%s2730_s1 + $0x160] sm:$0xff]  }
  0x10   :  { %1739 = vmatpush3.bf16.msra.mxu0 %v1986_v14  ;;  %v2016_v42 = vld [vmem:[%s2730_s1 + $0x130] sm:$0xff]   ;;  %v2024_v48 = vld [vmem:[%s2730_s1 + $0x168] sm:$0xff]   ;;  %v2029_v53 = vld [vmem:[%s2730_s1 + $0x1e0] sm:$0xff]  }
  0x11   :  { %1779 = vmatpush3.bf16.msra.mxu1 %v1987_v15  ;;  %1740 = vmatprep.subr.bf16.mxu0 %v1988_v16  ;;  %v2017_v43 = vld [vmem:[%s2730_s1 + $0x1b0] sm:$0xff]   ;;  %v2025_v49 = vld [vmem:[%s2730_s1 + $0x1e8] sm:$0xff]   ;;  %v2030_v54 = vld [vmem:[%s2730_s1 + $0x120] sm:$0xff]  }
  0x12   :  { %1780 = vmatprep.subr.bf16.mxu1 %v1989_v17  ;;  %v2018_v44 = vld [vmem:[%s2731_s0 + $0x64] ss:$48 sps:$4 sm:$0xff]   ;;  %v2022_v46 = vld [vmem:[%s2731_s0 + $0x60] ss:$48 sps:$4 sm:$0xff]   ;;  %v2026_v50 = vld [vmem:[%s2730_s1 + $0x128] sm:$0xff]  }
  0x13   :  { %v2027_v51 = vld [vmem:[%s2730_s1 + $0x1a8] sm:$0xff]   ;;  %v2031_v55 = vld [vmem:[%s2730_s1 + $0x1a0] sm:$0xff]   ;;  %v2038_v60 = vld [vmem:[%s2730_s1 + $0x158] sm:$0xff]  }
  0x14   :  { %1741 = vmatpush3.bf16.msra.mxu0 %v1990_v18  ;;  %v2032_v56 = vld [vmem:[%s2731_s0 + $0xc4] ss:$48 sps:$4 sm:$0xff]   ;;  %v2034_v57 = vld [vmem:[%s2731_s0 + $0xcc] ss:$48 sps:$4 sm:$0xff]   ;;  %v2036_v58 = vld [vmem:[%s2731_s0 + $0xc0] ss:$48 sps:$4 sm:$0xff]  }
  0x15   :  { %1781 = vmatpush3.bf16.msra.mxu1 %v1991_v19  ;;  %1742 = vmatprep.subr.bf16.mxu0 %v1992_v20  ;;  %v2037_v59 = vld [vmem:[%s2731_s0 + $0xc8] ss:$48 sps:$4 sm:$0xff]   ;;  %v2042_v0 = vld [vmem:[%s2730_s1 + $0x150] sm:$0xff]   ;;  %v2048_v5 = vld [vmem:[%s2731_s0 + $0x12c] ss:$48 sps:$4 sm:$0xff]  }
  0x16   :  { %1782 = vmatprep.subr.bf16.mxu1 %v1993_v21  ;;  %v2039_v61 = vld [vmem:[%s2730_s1 + $0x1d8] sm:$0xff]   ;;  %v2043_v1 = vld [vmem:[%s2730_s1 + $0x1d0] sm:$0xff]   ;;  %v2052_v8 = vld [vmem:[%s2730_s1 + $0x148] sm:$0xff]  }
  0x17   :  { %v2040_v62 = vld [vmem:[%s2730_s1 + $0x118] sm:$0xff]   ;;  %v2044_v2 = vld [vmem:[%s2730_s1 + $0x110] sm:$0xff]   ;;  %v2053_v9 = vld [vmem:[%s2730_s1 + $0x1c8] sm:$0xff]  }
  0x18   :  { %1743 = vmatpush3.bf16.msra.mxu0 %v1994_v22  ;;  %v2041_v63 = vld [vmem:[%s2730_s1 + $0x198] sm:$0xff]   ;;  %v2045_v3 = vld [vmem:[%s2730_s1 + $0x190] sm:$0xff]   ;;  %v2054_v10 = vld [vmem:[%s2730_s1 + $0x108] sm:$0xff]  }
  0x19   :  { %1783 = vmatpush3.bf16.msra.mxu1 %v1995_v23  ;;  %1744 = vmatprep.subr.bf16.mxu0 %v1996_v24  ;;  %v2046_v4 = vld [vmem:[%s2731_s0 + $0x124] ss:$48 sps:$4 sm:$0xff]   ;;  %v2050_v6 = vld [vmem:[%s2731_s0 + $0x120] ss:$48 sps:$4 sm:$0xff]   ;;  %v2051_v7 = vld [vmem:[%s2731_s0 + $0x128] ss:$48 sps:$4 sm:$0xff]  }
  0x1a   :  { %1784 = vmatprep.subr.bf16.mxu1 %v1997_v25  ;;  %v2055_v11 = vld [vmem:[%s2730_s1 + $0x188] sm:$0xff]   ;;  %v2056_v12 = vld [vmem:[%s2730_s1 + $0x140] sm:$0xff]   ;;  %v2066_v20 = vld [vmem:[%s2730_s1 + $0x278] sm:$0xff]  }
  0x1b   :  { %v2057_v13 = vld [vmem:[%s2730_s1 + $0x1c0] sm:$0xff]   ;;  %v2063_v18 = vld [vmem:[%s2731_s0 + $0x18] ss:$48 sps:$4 sm:$0xff]   ;;  %v2065_v19 = vld [vmem:[%s2731_s0 + $0x1c] ss:$48 sps:$4 sm:$0xff]  }
  0x1c   :  { %1745 = vmatpush3.bf16.msra.mxu0 %v1998_v26  ;;  %v2058_v14 = vld [vmem:[%s2730_s1 + $0x100] sm:$0xff]   ;;  %v2067_v21 = vld [vmem:[%s2730_s1 + $0x2f8] sm:$0xff]   ;;  %v2070_v24 = vld [vmem:[%s2730_s1 + $0x270] sm:$0xff]  }
  0x1d   :  { %1785 = vmatpush3.bf16.msra.mxu1 %v1999_v27  ;;  %1746 = vmatprep.subr.bf16.mxu0 %v2000_v28  ;;  %v2059_v15 = vld [vmem:[%s2730_s1 + $0x180] sm:$0xff]   ;;  %v2068_v22 = vld [vmem:[%s2730_s1 + $0x238] sm:$0xff]   ;;  %v2071_v25 = vld [vmem:[%s2730_s1 + $0x2f0] sm:$0xff]  }
  0x1e   :  { %1786 = vmatprep.subr.bf16.mxu1 %v2001_v29  ;;  %v2060_v16 = vld [vmem:[%s2731_s0 + $0x10] ss:$48 sps:$4 sm:$0xff]   ;;  %v2062_v17 = vld [vmem:[%s2731_s0 + $0x14] ss:$48 sps:$4 sm:$0xff]   ;;  %v2069_v23 = vld [vmem:[%s2730_s1 + $0x2b8] sm:$0xff]  }
  0x1f   :  { %v2072_v26 = vld [vmem:[%s2730_s1 + $0x230] sm:$0xff]   ;;  %v2076_v29 = vld [vmem:[%s2731_s0 + $0x7c] ss:$48 sps:$4 sm:$0xff]  }
  0x20   :  { %1747 = vmatpush3.bf16.msra.mxu0 %v2002_v30  ;;  %v2073_v27 = vld [vmem:[%s2730_s1 + $0x2b0] sm:$0xff]   ;;  %v2081_v33 = vld [vmem:[%s2730_s1 + $0x2e8] sm:$0xff]  }
  0x21   :  { %1787 = vmatpush3.bf16.msra.mxu1 %v2003_v31  ;;  %1812 = vmatprep.subr.bf16.mxu0 %v2010_v36  ;;  %v2074_v28 = vld [vmem:[%s2731_s0 + $0x74] ss:$48 sps:$4 sm:$0xff]   ;;  %v2078_v30 = vld [vmem:[%s2731_s0 + $0x70] ss:$48 sps:$4 sm:$0xff]   ;;  %v2079_v31 = vld [vmem:[%s2731_s0 + $0x78] ss:$48 sps:$4 sm:$0xff]  }
  0x22   :  { %1852 = vmatprep.subr.bf16.mxu1 %v2011_v37  ;;  %v2083_v35 = vld [vmem:[%s2730_s1 + $0x2a8] sm:$0xff]   ;;  %v2084_v36 = vld [vmem:[%s2730_s1 + $0x260] sm:$0xff]  }
  0x23   :  { %1103 = vmatmul.mubr.bf16.vlgmr.msra.gmra.mxu0 %v2004_v32  ;;  %v2080_v32 = vld [vmem:[%s2730_s1 + $0x268] sm:$0xff]   ;;  %v2085_v37 = vld [vmem:[%s2730_s1 + $0x2e0] sm:$0xff]  }
  0x24   :  { %1168 = vmatmul.mubr.bf16.vlgmr.msra.gmra.mxu1 %v2007_v34  ;;  %1813 = vmatpush3.bf16.msra.mxu0 %v2012_v38  ;;  %v2082_v34 = vld [vmem:[%s2730_s1 + $0x228] sm:$0xff]   ;;  %v2086_v38 = vld [vmem:[%s2730_s1 + $0x220] sm:$0xff]  }
  0x25   :  { %1853 = vmatpush3.bf16.msra.mxu1 %v2013_v39  ;;  %1814 = vmatprep.subr.bf16.mxu0 %v2014_v40  ;;  %v2087_v39 = vld [vmem:[%s2730_s1 + $0x2a0] sm:$0xff]  }
  0x26   :  { %1854 = vmatprep.subr.bf16.mxu1 %v2015_v41  ;;  %1110 = vmatprep.mubr.bf16.mxu0 %v2018_v44  ;;  %v2088_v40 = vld [vmem:[%s2731_s0 + $0xd4] ss:$48 sps:$4 sm:$0xff]   ;;  %v2090_v41 = vld [vmem:[%s2731_s0 + $0xdc] ss:$48 sps:$4 sm:$0xff]  }
  0x27   :  { %1175 = vmatprep.mubr.bf16.mxu1 %v2020_v45  ;;  %v2094_v44 = vld [vmem:[%s2730_s1 + $0x258] sm:$0xff]  }
  0x28   :  { %1815 = vmatpush3.bf16.msra.mxu0 %v2016_v42  ;;  %v2092_v42 = vld [vmem:[%s2731_s0 + $0xd0] ss:$48 sps:$4 sm:$0xff]   ;;  %v2095_v45 = vld [vmem:[%s2730_s1 + $0x2d8] sm:$0xff]  }
  0x29   :  { %1855 = vmatpush3.bf16.msra.mxu1 %v2017_v43  ;;  %1816 = vmatprep.subr.bf16.mxu0 %v2024_v48  ;;  %v2093_v43 = vld [vmem:[%s2731_s0 + $0xd8] ss:$48 sps:$4 sm:$0xff]   ;;  %v2098_v48 = vld [vmem:[%s2730_s1 + $0x250] sm:$0xff]  }
  0x2a   :  { %1856 = vmatprep.subr.bf16.mxu1 %v2025_v49  ;;  %v2099_v49 = vld [vmem:[%s2730_s1 + $0x2d0] sm:$0xff]  }
  0x2b   :  { %1111 = vmatmul.mubr.bf16.gmra.mxu0 %v2022_v46  ;;  %v2096_v46 = vld [vmem:[%s2730_s1 + $0x218] sm:$0xff]  }
  0x2c   :  { %1176 = vmatmul.mubr.bf16.gmra.mxu1 %v2023_v47  ;;  %1817 = vmatpush3.bf16.msra.mxu0 %v2026_v50  ;;  %v2097_v47 = vld [vmem:[%s2730_s1 + $0x298] sm:$0xff]   ;;  %v2100_v50 = vld [vmem:[%s2730_s1 + $0x210] sm:$0xff]  }
  0x2d   :  { %1857 = vmatpush3.bf16.msra.mxu1 %v2027_v51  ;;  %1818 = vmatprep.subr.bf16.mxu0 %v2028_v52  ;;  %v2101_v51 = vld [vmem:[%s2730_s1 + $0x290] sm:$0xff]  }
  0x2e   :  { %1858 = vmatprep.subr.bf16.mxu1 %v2029_v53  ;;  %1118 = vmatprep.mubr.bf16.mxu0 %v2032_v56  ;;  %v2102_v52 = vld [vmem:[%s2731_s0 + $0x134] ss:$48 sps:$4 sm:$0xff]   ;;  %v2104_v53 = vld [vmem:[%s2731_s0 + $0x13c] ss:$48 sps:$4 sm:$0xff]  }
  0x2f   :  { %1183 = vmatprep.mubr.bf16.mxu1 %v2034_v57  ;;  %v2108_v56 = vld [vmem:[%s2730_s1 + $0x248] sm:$0xff]  }
  0x30   :  { %1819 = vmatpush3.bf16.msra.mxu0 %v2030_v54  ;;  %v2106_v54 = vld [vmem:[%s2731_s0 + $0x130] ss:$48 sps:$4 sm:$0xff]   ;;  %v2109_v57 = vld [vmem:[%s2730_s1 + $0x2c8] sm:$0xff]  }
  0x31   :  { %1859 = vmatpush3.bf16.msra.mxu1 %v2031_v55  ;;  %1820 = vmatprep.subr.bf16.mxu0 %v2038_v60  ;;  %v2107_v55 = vld [vmem:[%s2731_s0 + $0x138] ss:$48 sps:$4 sm:$0xff]   ;;  %v2112_v60 = vld [vmem:[%s2730_s1 + $0x240] sm:$0xff]  }
  0x32   :  { %1860 = vmatprep.subr.bf16.mxu1 %v2039_v61  ;;  %v2113_v61 = vld [vmem:[%s2730_s1 + $0x2c0] sm:$0xff]  }
  0x33   :  { %1119 = vmatmul.mubr.bf16.gmra.mxu0 %v2036_v58  ;;  %v2110_v58 = vld [vmem:[%s2730_s1 + $0x208] sm:$0xff]  }
  0x34   :  { %1184 = vmatmul.mubr.bf16.gmra.mxu1 %v2037_v59  ;;  %1821 = vmatpush3.bf16.msra.mxu0 %v2040_v62  ;;  %v2111_v59 = vld [vmem:[%s2730_s1 + $0x288] sm:$0xff]   ;;  %v2114_v62 = vld [vmem:[%s2730_s1 + $0x200] sm:$0xff]  }
  0x35   :  { %1861 = vmatpush3.bf16.msra.mxu1 %v2041_v63  ;;  %1822 = vmatprep.subr.bf16.mxu0 %v2042_v0  ;;  %v2115_v63 = vld [vmem:[%s2730_s1 + $0x280] sm:$0xff]  }
  0x36   :  { %1862 = vmatprep.subr.bf16.mxu1 %v2043_v1  ;;  %1126 = vmatprep.mubr.bf16.mxu0 %v2046_v4  ;;  %v2116_v0 = vld [vmem:[%s2731_s0 + $0x20] ss:$48 sps:$4 sm:$0xff]   ;;  %v2118_v1 = vld [vmem:[%s2731_s0 + $0x24] ss:$48 sps:$4 sm:$0xff]  }
  0x37   :  { %1191 = vmatprep.mubr.bf16.mxu1 %v2048_v5  ;;  %v2122_v4 = vld [vmem:[%s2731_s0 + $0x84] ss:$48 sps:$4 sm:$0xff]   ;;  %v2124_v5 = vld [vmem:[%s2731_s0 + $0x8c] ss:$48 sps:$4 sm:$0xff]  }
  0x38   :  { %1823 = vmatpush3.bf16.msra.mxu0 %v2044_v2  ;;  %v2119_v2 = vld [vmem:[%s2731_s0 + $0x28] ss:$48 sps:$4 sm:$0xff]  }
  0x39   :  { %1863 = vmatpush3.bf16.msra.mxu1 %v2045_v3  ;;  %1824 = vmatprep.subr.bf16.mxu0 %v2052_v8  ;;  %v2121_v3 = vld [vmem:[%s2731_s0 + $0x2c] ss:$48 sps:$4 sm:$0xff]   ;;  %v2128_v8 = vld [vmem:[%s2731_s0 + $0xe4] ss:$48 sps:$4 sm:$0xff]  }
  0x3a   :  { %1864 = vmatprep.subr.bf16.mxu1 %v2053_v9  ;;  %v2130_v9 = vld [vmem:[%s2731_s0 + $0xec] ss:$48 sps:$4 sm:$0xff]  }
  0x3b   :  { %1127 = vmatmul.mubr.bf16.gmra.mxu0 %v2050_v6  ;;  %v2126_v6 = vld [vmem:[%s2731_s0 + $0x80] ss:$48 sps:$4 sm:$0xff]  }
  0x3c   :  { %1192 = vmatmul.mubr.bf16.gmra.mxu1 %v2051_v7  ;;  %1825 = vmatpush3.bf16.msra.mxu0 %v2054_v10  ;;  %v2127_v7 = vld [vmem:[%s2731_s0 + $0x88] ss:$48 sps:$4 sm:$0xff]   ;;  %v2132_v10 = vld [vmem:[%s2731_s0 + $0xe0] ss:$48 sps:$4 sm:$0xff]  }
  0x3d   :  { %1865 = vmatpush3.bf16.msra.mxu1 %v2055_v11  ;;  %1826 = vmatprep.subr.bf16.mxu0 %v2056_v12  ;;  %v2133_v11 = vld [vmem:[%s2731_s0 + $0xe8] ss:$48 sps:$4 sm:$0xff]   ;;  %v2134_v12 = vld [vmem:[%s2731_s0 + $0x144] ss:$48 sps:$4 sm:$0xff]  }
  0x3e   :  { %1866 = vmatprep.subr.bf16.mxu1 %v2057_v13  ;;  %1232 = vmatprep.mubr.bf16.mxu0 %v2062_v17  ;;  %v2136_v13 = vld [vmem:[%s2731_s0 + $0x14c] ss:$48 sps:$4 sm:$0xff]  }
  0x3f   :  { %1297 = vmatprep.mubr.bf16.mxu1 %v2065_v19 }
  0x40   :  { %1827 = vmatpush3.bf16.msra.mxu0 %v2058_v14  ;;  %v2138_v14 = vld [vmem:[%s2731_s0 + $0x140] ss:$48 sps:$4 sm:$0xff]  }
  0x41   :  { %1867 = vmatpush3.bf16.msra.mxu1 %v2059_v15  ;;  %1892 = vmatprep.subr.bf16.mxu0 %v2066_v20  ;;  %v2139_v15 = vld [vmem:[%s2731_s0 + $0x148] ss:$48 sps:$4 sm:$0xff]  }
  0x42   :  { %1932 = vmatprep.subr.bf16.mxu1 %v2067_v21 }
  0x43   :  { %1233 = vmatmul.mubr.bf16.vlgmr.msra.gmra.mxu0 %v2060_v16 }
  0x44   :  { %1298 = vmatmul.mubr.bf16.vlgmr.msra.gmra.mxu1 %v2063_v18  ;;  %1893 = vmatpush3.bf16.msra.mxu0 %v2068_v22 }
  0x45   :  { %1933 = vmatpush3.bf16.msra.mxu1 %v2069_v23  ;;  %1894 = vmatprep.subr.bf16.mxu0 %v2070_v24 }
  0x46   :  { %1934 = vmatprep.subr.bf16.mxu1 %v2071_v25  ;;  %1240 = vmatprep.mubr.bf16.mxu0 %v2074_v28 }
  0x47   :  { %1305 = vmatprep.mubr.bf16.mxu1 %v2076_v29 }
  0x48   :  { %1895 = vmatpush3.bf16.msra.mxu0 %v2072_v26 }
  0x49   :  { %1935 = vmatpush3.bf16.msra.mxu1 %v2073_v27  ;;  %1896 = vmatprep.subr.bf16.mxu0 %v2080_v32 }
  0x4a   :  { %1936 = vmatprep.subr.bf16.mxu1 %v2081_v33 }
  0x4b   :  { %1241 = vmatmul.mubr.bf16.gmra.mxu0 %v2078_v30 }
  0x4c   :  { %1306 = vmatmul.mubr.bf16.gmra.mxu1 %v2079_v31  ;;  %1897 = vmatpush3.bf16.msra.mxu0 %v2082_v34 }
  0x4d   :  { %1937 = vmatpush3.bf16.msra.mxu1 %v2083_v35  ;;  %1898 = vmatprep.subr.bf16.mxu0 %v2084_v36 }
  0x4e   :  { %1938 = vmatprep.subr.bf16.mxu1 %v2085_v37  ;;  %1248 = vmatprep.mubr.bf16.mxu0 %v2088_v40 }
  0x4f   :  { %1313 = vmatprep.mubr.bf16.mxu1 %v2090_v41 }
  0x50   :  { %1899 = vmatpush3.bf16.msra.mxu0 %v2086_v38 }
  0x51   :  { %1939 = vmatpush3.bf16.msra.mxu1 %v2087_v39  ;;  %1900 = vmatprep.subr.bf16.mxu0 %v2094_v44 }
  0x52   :  { %1940 = vmatprep.subr.bf16.mxu1 %v2095_v45 }
  0x53   :  { %1249 = vmatmul.mubr.bf16.gmra.mxu0 %v2092_v42 }
  0x54   :  { %1314 = vmatmul.mubr.bf16.gmra.mxu1 %v2093_v43  ;;  %1901 = vmatpush3.bf16.msra.mxu0 %v2096_v46 }
  0x55   :  { %1941 = vmatpush3.bf16.msra.mxu1 %v2097_v47  ;;  %1902 = vmatprep.subr.bf16.mxu0 %v2098_v48 }
  0x56   :  { %1942 = vmatprep.subr.bf16.mxu1 %v2099_v49  ;;  %1256 = vmatprep.mubr.bf16.mxu0 %v2102_v52 }
  0x57   :  { %1321 = vmatprep.mubr.bf16.mxu1 %v2104_v53 }
  0x58   :  { %1903 = vmatpush3.bf16.msra.mxu0 %v2100_v50 }
  0x59   :  { %1943 = vmatpush3.bf16.msra.mxu1 %v2101_v51  ;;  %1904 = vmatprep.subr.bf16.mxu0 %v2108_v56 }
  0x5a   :  { %1944 = vmatprep.subr.bf16.mxu1 %v2109_v57 }
  0x5b   :  { %1257 = vmatmul.mubr.bf16.gmra.mxu0 %v2106_v54 }
  0x5c   :  { %1322 = vmatmul.mubr.bf16.gmra.mxu1 %v2107_v55  ;;  %1905 = vmatpush3.bf16.msra.mxu0 %v2110_v58 }
  0x5d   :  { %1945 = vmatpush3.bf16.msra.mxu1 %v2111_v59  ;;  %1906 = vmatprep.subr.bf16.mxu0 %v2112_v60 }
  0x5e   :  { %1946 = vmatprep.subr.bf16.mxu1 %v2113_v61  ;;  %1362 = vmatprep.mubr.bf16.mxu0 %v2118_v1 }
  0x5f   :  { %1427 = vmatprep.mubr.bf16.mxu1 %v2121_v3 }
  0x60   :  { %1907 = vmatpush3.bf16.msra.mxu0 %v2114_v62 }
  0x61   :  { %1947 = vmatpush3.bf16.msra.mxu1 %v2115_v63 }
  0x63   :  { %1363 = vmatmul.mubr.bf16.vlgmr.msra.gmra.mxu0 %v2116_v0 }
  0x64   :  { %1428 = vmatmul.mubr.bf16.vlgmr.msra.gmra.mxu1 %v2119_v2  ;;  %1370 = vmatprep.mubr.bf16.mxu0 %v2122_v4 }
  0x65   :  { %1435 = vmatprep.mubr.bf16.mxu1 %v2124_v5 }
  0x6b   :  { %1371 = vmatmul.mubr.bf16.gmra.mxu0 %v2126_v6 }
  0x6c   :  { %1436 = vmatmul.mubr.bf16.gmra.mxu1 %v2127_v7  ;;  %1378 = vmatprep.mubr.bf16.mxu0 %v2128_v8 }
  0x6d   :  { %1443 = vmatprep.mubr.bf16.mxu1 %v2130_v9 }
  0x73   :  { %1379 = vmatmul.mubr.bf16.gmra.mxu0 %v2132_v10 }
  0x74   :  { %1444 = vmatmul.mubr.bf16.gmra.mxu1 %v2133_v11  ;;  %1386 = vmatprep.mubr.bf16.mxu0 %v2134_v12 }
  0x75   :  { %1451 = vmatprep.mubr.bf16.mxu1 %v2136_v13 }
  0x7b   :  { %1387 = vmatmul.mubr.bf16.gmra.mxu0 %v2138_v14 }
  0x7c   :  { %1452 = vmatmul.mubr.bf16.gmra.mxu1 %v2139_v15 }
  0xe3   :  { %v1748_v16 = vpop.f32.mrf.mxu0 }
  0xe4   :  { %v1788_v17 = vpop.f32.mrf.mxu1 }
  0xe5   :  { %v1749_v18 = vpop.f32.mrf.mxu0 }
  0xe6   :  { %v1789_v19 = vpop.f32.mrf.mxu1  ;;  %v1750_v13 = vadd.f32 %v1749_v18, %v1748_v16 }
  0xe7   :  { %v1751_v20 = vpop.f32.mrf.mxu0  ;;  %v1790_v14 = vadd.f32 %v1789_v19, %v1788_v17 }
  0xe8   :  { %v1791_v21 = vpop.f32.mrf.mxu1 }
  0xe9   :  { %v1752_v22 = vpop.f32.mrf.mxu0 }
  0xea   :  { %v1792_v23 = vpop.f32.mrf.mxu1 }
  0xeb   :  { %v2592_v24 = vpop.f32.mrf.mxu0 }
  0xec   :  { %v2594_v25 = vpop.f32.mrf.mxu1 }
  0xed   :  { %v2596_v26 = vpop.f32.mrf.mxu0 }
  0xee   :  { %v2598_v27 = vpop.f32.mrf.mxu1 }
  0xef   :  { %v2600_v28 = vpop.f32.mrf.mxu0  ;;  %v1796_v16 = vadd.f32 %v2598_v27, %v2594_v25 }
  0xf0   :  { %v2602_v29 = vpop.f32.mrf.mxu1 }
  0xf1   :  { %v2604_v30 = vpop.f32.mrf.mxu0 }
  0xf2   :  { %v2606_v31 = vpop.f32.mrf.mxu1 }
  0xf3   :  { %v2608_v32 = vpop.f32.mrf.mxu0 }
  0xf4   :  { %v2610_v33 = vpop.f32.mrf.mxu1 }
  0xf5   :  { %v2612_v34 = vpop.f32.mrf.mxu0 }
  0xf6   :  { %v2614_v35 = vpop.f32.mrf.mxu1 }
  0xf7   :  { %v2616_v36 = vpop.f32.mrf.mxu0 }
  0xf8   :  { %v2618_v37 = vpop.f32.mrf.mxu1 }
  0xf9   :  { %v2620_v38 = vpop.f32.mrf.mxu0 }
  0xfa   :  { %v2622_v39 = vpop.f32.mrf.mxu1 }
  0xfb   :  { %v2624_v40 = vpop.f32.mrf.mxu0 }
  0xfc   :  { %v2626_v41 = vpop.f32.mrf.mxu1 }
  0xfd   :  { %v2628_v42 = vpop.f32.mrf.mxu0 }
  0xfe   :  { %v2630_v43 = vpop.f32.mrf.mxu1 }
  0xff   :  { %v2632_v44 = vpop.f32.mrf.mxu0 }
 0x100   :  { %2734 = vst [vmem:[#allocation2_spill] sm:$0xff] %v2632_v44  ;;  %v2634_v45 = vpop.f32.mrf.mxu1  ;;  %v1170_v44 = vadd.f32 %v1790_v14, %v1750_v13 }
 0x101   :  { %2735 = vst [vmem:[#allocation3_spill] sm:$0xff] %v2634_v45  ;;  %v2636_v46 = vpop.f32.mrf.mxu0  ;;  %v1753_v45 = vadd.f32 %v1752_v22, %v1751_v20  ;;  %v1759_v22 = vadd.f32 %v2604_v30, %v2600_v28  ;;  %v1802_v28 = vadd.f32 %v2614_v35, %v2610_v33 }
 0x102   :  { %2736 = vst [vmem:[#allocation4_spill] sm:$0xff] %v2636_v46  ;;  %v2638_v47 = vpop.f32.mrf.mxu1  ;;  %v1793_v46 = vadd.f32 %v1792_v23, %v1791_v21  ;;  %v1799_v23 = vadd.f32 %v2606_v31, %v2602_v29 }
 0x103   :  { %2737 = vst [vmem:[#allocation5_spill] sm:$0xff] %v2638_v47  ;;  %v1828_v48 = vpop.f32.mrf.mxu0 }
 0x104   :  { %v1868_v49 = vpop.f32.mrf.mxu1 }
 0x105   :  { %v1829_v50 = vpop.f32.mrf.mxu0 }
 0x106   :  { %v1869_v51 = vpop.f32.mrf.mxu1  ;;  %v1830_v47 = vadd.f32 %v1829_v50, %v1828_v48 }
 0x107   :  { %v1831_v52 = vpop.f32.mrf.mxu0  ;;  %v1870_v18 = vadd.f32 %v1869_v51, %v1868_v49 }
 0x108   :  { %v1871_v53 = vpop.f32.mrf.mxu1 }
 0x109   :  { %v1832_v54 = vpop.f32.mrf.mxu0 }
 0x10a   :  { %v1872_v55 = vpop.f32.mrf.mxu1 }
 0x10b   :  { %v1834_v56 = vpop.f32.mrf.mxu0 }
 0x10c   :  { %v1874_v57 = vpop.f32.mrf.mxu1 }
 0x10d   :  { %v1835_v58 = vpop.f32.mrf.mxu0 }
 0x10e   :  { %v1875_v59 = vpop.f32.mrf.mxu1  ;;  %v1836_v50 = vadd.f32 %v1835_v58, %v1834_v56  ;;  %v1181_v56 = vadd.f32 %v1799_v23, %v1759_v22  ;;  %v1762_v58 = vadd.f32 %v2612_v34, %v2608_v32 }
 0x10f   :  { %v1837_v60 = vpop.f32.mrf.mxu0  ;;  %v1876_v31 = vadd.f32 %v1875_v59, %v1874_v57 }
 0x110   :  { %v2640_v61 = vpop.f32.mrf.mxu1  ;;  %v1186_v13 = vadd.f32 %v1802_v28, %v1762_v58  ;;  %v2750_v28 = vld [vmem:[#allocation3_spill] sm:$0xff] }
 0x111   :  { %v1838_v62 = vpop.f32.mrf.mxu0 }
 0x112   :  { %v2642_v63 = vpop.f32.mrf.mxu1 }
 0x113   :  { %v2644_v0 = vpop.f32.mrf.mxu0  ;;  %v1879_v57 = vadd.f32 %v2642_v63, %v2640_v61 }
 0x114   :  { %v2646_v1 = vpop.f32.mrf.mxu1 }
 0x115   :  { %v1841_v2 = vpop.f32.mrf.mxu0 }
 0x116   :  { %v2648_v3 = vpop.f32.mrf.mxu1  ;;  %v1842_v32 = vadd.f32 %v1841_v2, %v2644_v0 }
 0x117   :  { %2738 = vst [vmem:[#allocation6_spill] sm:$0xff] %v2648_v3  ;;  %v2650_v4 = vpop.f32.mrf.mxu0 }
 0x118   :  { %v2652_v5 = vpop.f32.mrf.mxu1  ;;  %v1251_v2 = vadd.f32 %v1842_v32, %v1186_v13 }
 0x119   :  { %2739 = vst [vmem:[#allocation7_spill] sm:$0xff] %v2652_v5  ;;  %v2654_v6 = vpop.f32.mrf.mxu0 }
 0x11a   :  { %v2656_v7 = vpop.f32.mrf.mxu1 }
 0x11b   :  { %2740 = vst [vmem:[#allocation8_spill] sm:$0xff] %v2656_v7  ;;  %v2658_v8 = vpop.f32.mrf.mxu0 }
 0x11c   :  { %2741 = vst [vmem:[#allocation9_spill] sm:$0xff] %v2658_v8  ;;  %v2660_v9 = vpop.f32.mrf.mxu1  ;;  %v1833_v8 = vadd.f32 %v1832_v54, %v1831_v52 }
 0x11d   :  { %2742 = vst [vmem:[#allocation10_spill] sm:$0xff] %v2660_v9  ;;  %v2662_v10 = vpop.f32.mrf.mxu0  ;;  %v1235_v9 = vadd.f32 %v1830_v47, %v1170_v44  ;;  %v1839_v47 = vadd.f32 %v1838_v62, %v1837_v60  ;;  %v1765_v60 = vadd.f32 %v2620_v38, %v2616_v36  ;;  %v1805_v62 = vadd.f32 %v2622_v39, %v2618_v37 }
 0x11e   :  { %2743 = vst [vmem:[#allocation11_spill] sm:$0xff] %v2662_v10  ;;  %v2664_v11 = vpop.f32.mrf.mxu1  ;;  %v1173_v10 = vadd.f32 %v1793_v46, %v1753_v45  ;;  %v2745_v22 = vld [vmem:[#allocation6_spill] sm:$0xff] }
 0x11f   :  { %2744 = vst [vmem:[#allocation12_spill] sm:$0xff] %v2664_v11  ;;  %v2666_v12 = vpop.f32.mrf.mxu0  ;;  %v1756_v11 = vadd.f32 %v2596_v26, %v2592_v24  ;;  %v1300_v44 = vadd.f32 %v1870_v18, %v1235_v9  ;;  %v1873_v24 = vadd.f32 %v1872_v55, %v1871_v53  ;;  %v1189_v37 = vadd.f32 %v1805_v62, %v1765_v60 }
 0x120   :  { %v2668_v15 = vpop.f32.mrf.mxu1  ;;  %v1238_v48 = vadd.f32 %v1833_v8, %v1173_v10  ;;  %v1246_v8 = vadd.f32 %v1839_v47, %v1181_v56  ;;  %v1845_v18 = vadd.f32 %v2654_v6, %v2650_v4  ;;  %v1882_v4 = vadd.f32 %v2745_v22, %v2646_v1  ;;  %v2748_v56 = vld [vmem:[#allocation2_spill] sm:$0xff]  ;;  %v2749_v1 = vld [vmem:[#allocation4_spill] sm:$0xff] }
 0x121   :  { %v2670_v5 = vpop.f32.mrf.mxu0  ;;  %v1178_v46 = vadd.f32 %v1796_v16, %v1756_v11  ;;  %v1771_v58 = vadd.f32 %v2749_v1, %v2748_v56 }
 0x122   :  { %v2672_v7 = vpop.f32.mrf.mxu1  ;;  %v1303_v49 = vadd.f32 %v1873_v24, %v1238_v48  ;;  %v1311_v39 = vadd.f32 %v1879_v57, %v1246_v8  ;;  %v1254_v47 = vadd.f32 %v1845_v18, %v1189_v37 }
 0x123   :  { %v1908_v3 = vpop.f32.mrf.mxu0  ;;  %v1243_v51 = vadd.f32 %v1836_v50, %v1178_v46  ;;  %v1891_v22 = vadd.f32 %v2672_v7, %v2668_v15 }
 0x124   :  { %v1948_v17 = vpop.f32.mrf.mxu1 }
 0x125   :  { %v1909_v19 = vpop.f32.mrf.mxu0  ;;  %v1308_v11 = vadd.f32 %v1876_v31, %v1243_v51  ;;  %v2752_v31 = vld [vmem:[#allocation7_spill] sm:$0xff] }
 0x126   :  { %v1910_v20 = vadd.f32 %v1909_v19, %v1908_v3  ;;  %v1949_v21 = vpop.f32.mrf.mxu1 }
 0x127   :  { %v1911_v45 = vpop.f32.mrf.mxu0  ;;  %v1950_v29 = vadd.f32 %v1949_v21, %v1948_v17  ;;  %v1808_v21 = vadd.f32 %v2630_v43, %v2626_v41 }
 0x128   :  { %v1951_v26 = vpop.f32.mrf.mxu1  ;;  %v1365_v25 = vadd.f32 %v1910_v20, %v1300_v44  ;;  %v1768_v20 = vadd.f32 %v2628_v42, %v2624_v40 }
 0x129   :  { %v1912_v27 = vpop.f32.mrf.mxu0 }
 0x12a   :  { %v1913_v52 = vadd.f32 %v1912_v27, %v1911_v45  ;;  %v1952_v54 = vpop.f32.mrf.mxu1  ;;  %v1430_v9 = vadd.f32 %v1950_v29, %v1365_v25  ;;  %v2746_v25 = vld [vmem:[#allocation9_spill] sm:$0xff]  ;;  %v2747_v27 = vld [vmem:[#allocation11_spill] sm:$0xff]  ;;  %v1194_v43 = vadd.f32 %v1808_v21, %v1768_v20 }
 0x12b   :  { %v1914_v30 = vpop.f32.mrf.mxu0  ;;  %v1953_v53 = vadd.f32 %v1952_v54, %v1951_v26  ;;  %v2751_v29 = vld [vmem:[#allocation5_spill] sm:$0xff] }
 0x12c   :  { %v1368_v3 = vadd.f32 %v1913_v52, %v1303_v49  ;;  %v1954_v55 = vpop.f32.mrf.mxu1  ;;  %v1513_v19 = vmul.f32 %v1430_v9, %v1430_v9  ;;  %v1848_v49 = vadd.f32 %v2747_v27, %v2746_v25  ;;  %v1316_v52 = vadd.f32 %v1882_v4, %v1251_v2 }
 0x12d   :  { %v1915_v10 = vpop.f32.mrf.mxu0 }
 0x12e   :  { %v1433_v34 = vadd.f32 %v1953_v53, %v1368_v3  ;;  %v1916_v33 = vadd.f32 %v1915_v10, %v1914_v30  ;;  %v1955_v35 = vpop.f32.mrf.mxu1  ;;  %v1811_v30 = vadd.f32 %v2751_v29, %v2750_v28  ;;  %v2753_v3 = vld [vmem:[#allocation8_spill] sm:$0xff]  ;;  %v1259_v32 = vadd.f32 %v1848_v49, %v1194_v43 }
 0x12f   :  { %v1917_v59 = vpop.f32.mrf.mxu0  ;;  %v1956_v38 = vadd.f32 %v1955_v35, %v1954_v55  ;;  %v1885_v53 = vadd.f32 %v2753_v3, %v2752_v31  ;;  %v1534_v29 = vlaneseq }
 0x130   :  { %v1712_v14 = vpack.c.bf16 %v1433_v34, %v1430_v9  ;;  %v1514_v16 = vmul.f32 %v1433_v34, %v1433_v34  ;;  %v1373_v36 = vadd.f32 %v1916_v33, %v1308_v11  ;;  %v1957_v17 = vpop.f32.mrf.mxu1  ;;  %v1500_v48 = vadd.f32 %v1433_v34, %v1430_v9 }
 0x131   :  { %v1918_v0 = vpop.f32.mrf.mxu0  ;;  %v1319_v11 = vadd.f32 %v1885_v53, %v1254_v47  ;;  %v1851_v33 = vadd.f32 %v2670_v5, %v2666_v12 }
 0x132   :  { %1713 = vst [vmem:[%s2732_s2] sm:$0xff] %v1712_v14   ;;  %v1438_v61 = vadd.f32 %v1956_v38, %v1373_v36  ;;  %v1919_v63 = vadd.f32 %v1918_v0, %v1917_v59  ;;  %v1958_v50 = vpop.f32.mrf.mxu1  ;;  %v1521_v6 = vadd.f32 %v1514_v16, %v1513_v19  ;;  %v1197_v14 = vadd.f32 %v1811_v30, %v1771_v58  ;;  %v2754_v16 = vld [vmem:[#allocation10_spill] sm:$0xff]  ;;  %v2755_v36 = vld [vmem:[#allocation12_spill] sm:$0xff] }
 0x133   :  { %v1920_v23 = vpop.f32.mrf.mxu0  ;;  %v1959_v24 = vadd.f32 %v1958_v50, %v1957_v17  ;;  %v1888_v38 = vadd.f32 %v2755_v36, %v2754_v16 }
 0x134   :  { %v1501_v44 = vadd.f32 %v1500_v48, %v1438_v61  ;;  %v1515_v45 = vmul.f32 %v1438_v61, %v1438_v61  ;;  %v1376_v46 = vadd.f32 %v1919_v63, %v1311_v39  ;;  %v1960_v26 = vpop.f32.mrf.mxu1  ;;  %v1262_v48 = vadd.f32 %v1851_v33, %v1197_v14 }
 0x135   :  { %v1921_v51 = vpop.f32.mrf.mxu0  ;;  %v1324_v5 = vadd.f32 %v1888_v38, %v1259_v32 }
 0x136   :  { %v1522_v40 = vadd.f32 %v1521_v6, %v1515_v45  ;;  %v1441_v42 = vadd.f32 %v1959_v24, %v1376_v46  ;;  %v1922_v54 = vadd.f32 %v1921_v51, %v1920_v23  ;;  %v1961_v41 = vpop.f32.mrf.mxu1  ;;  %v1327_v46 = vadd.f32 %v1891_v22, %v1262_v48 }
 0x137   :  { %v1923_v55 = vpop.f32.mrf.mxu0  ;;  %v1962_v9 = vadd.f32 %v1961_v41, %v1960_v26 }
 0x138   :  { %v1717_v60 = vpack.c.bf16 %v1441_v42, %v1438_v61  ;;  %v1516_v62 = vmul.f32 %v1441_v42, %v1441_v42  ;;  %v1381_v8 = vadd.f32 %v1922_v54, %v1316_v52  ;;  %v1963_v10 = vpop.f32.mrf.mxu1  ;;  %v1502_v35 = vadd.f32 %v1501_v44, %v1441_v42 }
 0x139   :  { %v1924_v34 = vpop.f32.mrf.mxu0 }
 0x13a   :  { %1729 = vst [vmem:[%s2732_s2 + $0x8] sm:$0xff] %v1717_v60   ;;  %v1446_v13 = vadd.f32 %v1962_v9, %v1381_v8  ;;  %v1925_v57 = vadd.f32 %v1924_v34, %v1923_v55  ;;  %v1964_v59 = vpop.f32.mrf.mxu1  ;;  %v1523_v17 = vadd.f32 %v1522_v40, %v1516_v62  ;;  %v1535_v55 = vshrl.u32 %v1534_v29, 7 }
 0x13b   :  { %v1926_v37 = vpop.f32.mrf.mxu0  ;;  %v1965_v0 = vadd.f32 %v1964_v59, %v1963_v10 }
 0x13c   :  { %v1503_v39 = vadd.f32 %v1502_v35, %v1446_v13  ;;  %v1517_v18 = vmul.f32 %v1446_v13, %v1446_v13  ;;  %v1384_v19 = vadd.f32 %v1925_v57, %v1319_v11  ;;  %v1966_v2 = vpop.f32.mrf.mxu1  ;;  %vm1537_vm0 = vcmp.eq.s32.totalorder %v1535_v55, 1 }
 0x13d   :  { %v1927_v12 = vpop.f32.mrf.mxu0  ;;  %vm1536_vm1 = vcmp.eq.s32.totalorder %v1535_v55, 0 }
 0x13e   :  { %v1524_v61 = vadd.f32 %v1523_v17, %v1517_v18  ;;  %v1449_v63 = vadd.f32 %v1965_v0, %v1384_v19  ;;  %v1928_v50 = vadd.f32 %v1927_v12, %v1926_v37  ;;  %v1967_v20 = vpop.f32.mrf.mxu1 }
 0x13f   :  { %v1929_v21 = vpop.f32.mrf.mxu0  ;;  %v1968_v23 = vadd.f32 %v1967_v20, %v1966_v2 }
 0x140   :  { %v1722_v4 = vpack.c.bf16 %v1449_v63, %v1446_v13  ;;  %v1389_v6 = vadd.f32 %v1928_v50, %v1324_v5  ;;  %v1969_v44 = vpop.f32.mrf.mxu1  ;;  %v1518_v24 = vmul.f32 %v1449_v63, %v1449_v63  ;;  %v1504_v27 = vadd.f32 %v1503_v39, %v1449_v63 }
 0x141   :  { %v1930_v45 = vpop.f32.mrf.mxu0 }
 0x142   :  { %1730 = vst [vmem:[%s2732_s2 + $0x10] sm:$0xff] %v1722_v4   ;;  %v1454_v26 = vadd.f32 %v1968_v23, %v1389_v6  ;;  %v1931_v47 = vadd.f32 %v1930_v45, %v1929_v21  ;;  %v1970_v25 = vpop.f32.mrf.mxu1  ;;  %v1525_v40 = vadd.f32 %v1524_v61, %v1518_v24 }
 0x143   :  { %v1971_v52 = vadd.f32 %v1970_v25, %v1969_v44 }
 0x144   :  { %v1519_v49 = vmul.f32 %v1454_v26, %v1454_v26  ;;  %v1392_v51 = vadd.f32 %v1931_v47, %v1327_v46  ;;  %v1505_v7 = vadd.f32 %v1504_v27, %v1454_v26 }
 0x146   :  { %v1457_v15 = vadd.f32 %v1971_v52, %v1392_v51  ;;  %v1526_v42 = vadd.f32 %v1525_v40, %v1519_v49 }
 0x148   :  { %v1727_v54 = vpack.c.bf16 %v1457_v15, %v1454_v26  ;;  %v1506_v41 = vadd.f32 %v1505_v7, %v1457_v15  ;;  %v1520_v43 = vmul.f32 %v1457_v15, %v1457_v15 }
 0x14a   :  { %1731 = vst [vmem:[%s2732_s2 + $0x18] sm:$0xff] %v1727_v54   ;;  %v1507_v56 = vrot.slane %v1506_v41, 4  ;;  %v1527_v1 = vadd.f32 %v1526_v42, %v1520_v43 }
 0x14c   :  { %v1508_v58 = vadd.f32 %v1507_v56, %v1506_v41  ;;  %v1528_v28 = vrot.slane %v1527_v1, 4 }
 0x14e   :  { %v1509_v30 = vrot.slane %v1508_v58, 2  ;;  %v1529_v31 = vadd.f32 %v1528_v28, %v1527_v1 }
 0x150   :  { %v1510_v3 = vadd.f32 %v1509_v30, %v1508_v58  ;;  %v1530_v53 = vrot.slane %v1529_v31, 2 }
 0x152   :  { %v1531_v60 = vadd.f32 %v1530_v53, %v1529_v31  ;;  %v1511_v62 = vrot.slane %v1510_v3, 1 }
 0x154   :  { %v1532_v8 = vrot.slane %v1531_v60, 1  ;;  %v1512_v10 = vadd.f32 %v1511_v62, %v1510_v3 }
 0x156   :  { %v1533_v9 = vadd.f32 %v1532_v8, %v1531_v60 }
 0x158   :  { %v1538_v11 = vsel %vm1537_vm0, %v1533_v9, 0.0 }
 0x159   :  { %v1539_v32 = vsel %vm1536_vm1, %v1512_v10, %v1538_v11 }
 0x15a   :  { %1540 = vst [vmem:[%s2733_s3] sm:$0xff] %v1539_v32 }

// kernel: video_reconstructor_forward.23
= control target key start
LH: loop header
LB: loop body
LE: loop exit
PB: predicated region body
PF: predicated region fallthrough
CT: control target
= control target key end

     0   :  { %s238_s0 = inlined_call_operand.vmem [shape: bf16[1,64,128], index: 0, kind: input, shape index: {}]   ;;  %s239_s1 = inlined_call_operand.vmem [shape: f32[1,128], index: 1, kind: input, shape index: {}]   ;;  %s240_s2 = inlined_call_operand.vmem [shape: f32[1,128], index: 2, kind: input, shape index: {}]   ;;  %s241_s3 = inlined_call_operand.vmem [shape: bf16[1,64,128], index: 3, kind: output, shape index: {}]  }
   0x1   :  { %v147_v0 = vld [vmem:[%s238_s0] sm:$0xff]   ;;  %v182_v4 = vld [vmem:[%s238_s0 + $0x8] sm:$0xff]   ;;  %v183_v5 = vld [vmem:[%s238_s0 + $0x10] sm:$0xff]  }
   0x2   :  { %v128_v1 = vld [vmem:[%s239_s1] ss:$0 sm:$0xff]  ;;  %v148_v2 = vunpack.c.l.bf16 %v147_v0  ;;  %v149_v3 = vunpack.c.h.bf16 %v147_v0  ;;  %v184_v6 = vld [vmem:[%s238_s0 + $0x18] sm:$0xff]   ;;  %v152_v8 = vunpack.c.l.bf16 %v182_v4  ;;  %v153_v9 = vunpack.c.h.bf16 %v182_v4 }
   0x3   :  { %v129_v7 = vld [vmem:[%s240_s2] ss:$0 sm:$0xff]  ;;  %v156_v10 = vunpack.c.l.bf16 %v183_v5  ;;  %v157_v11 = vunpack.c.h.bf16 %v183_v5  ;;  %v160_v14 = vunpack.c.l.bf16 %v184_v6  ;;  %v161_v15 = vunpack.c.h.bf16 %v184_v6 }
   0x4   :  { %v37_v12 = vmul.f32 %v148_v2, %v128_v1  ;;  %v38_v13 = vmul.f32 %v149_v3, %v128_v1  ;;  %v39_v16 = vmul.f32 %v152_v8, %v128_v1  ;;  %v40_v17 = vmul.f32 %v153_v9, %v128_v1 }
   0x5   :  { %v41_v18 = vmul.f32 %v156_v10, %v128_v1  ;;  %v42_v19 = vmul.f32 %v157_v11, %v128_v1  ;;  %v43_v22 = vmul.f32 %v160_v14, %v128_v1  ;;  %v44_v23 = vmul.f32 %v161_v15, %v128_v1 }
   0x6   :  { %v52_v20 = vadd.f32 %v129_v7, %v37_v12  ;;  %v53_v21 = vadd.f32 %v129_v7, %v38_v13  ;;  %v54_v24 = vadd.f32 %v129_v7, %v39_v16  ;;  %v55_v25 = vadd.f32 %v129_v7, %v40_v17 }
   0x7   :  { %v56_v26 = vadd.f32 %v129_v7, %v41_v18  ;;  %v57_v27 = vadd.f32 %v129_v7, %v42_v19  ;;  %v58_v40 = vadd.f32 %v129_v7, %v43_v22  ;;  %v59_v41 = vadd.f32 %v129_v7, %v44_v23 }
   0x8   :  { %vm60_vm0 = vcmp.gt.f32.partialorder %v52_v20, 0.0  ;;  %vm61_vm1 = vcmp.gt.f32.partialorder %v53_v21, 0.0  ;;  %v68_v28 = vmul.f32 0.2, %v52_v20  ;;  %v69_v29 = vmul.f32 0.2, %v53_v21 }
   0x9   :  { %vm62_vm2 = vcmp.gt.f32.partialorder %v54_v24, 0.0  ;;  %vm63_vm3 = vcmp.gt.f32.partialorder %v55_v25, 0.0  ;;  %v70_v30 = vmul.f32 0.2, %v54_v24  ;;  %v71_v31 = vmul.f32 0.2, %v55_v25 }
   0xa   :  { %v76_v32 = vsel %vm60_vm0, %v52_v20, %v68_v28  ;;  %v77_v33 = vsel %vm61_vm1, %v53_v21, %v69_v29  ;;  %vm64_vm4 = vcmp.gt.f32.partialorder %v56_v26, 0.0  ;;  %vm65_vm5 = vcmp.gt.f32.partialorder %v57_v27, 0.0 }
   0xb   :  { %v165_v34 = vpack.c.bf16 %v77_v33, %v76_v32  ;;  %v78_v35 = vsel %vm62_vm2, %v54_v24, %v70_v30  ;;  %v79_v36 = vsel %vm63_vm3, %v55_v25, %v71_v31  ;;  %v72_v37 = vmul.f32 0.2, %v56_v26 }
   0xc   :  { %v170_v38 = vpack.c.bf16 %v79_v36, %v78_v35  ;;  %v73_v39 = vmul.f32 0.2, %v57_v27  ;;  %vm66_vm6 = vcmp.gt.f32.partialorder %v58_v40, 0.0  ;;  %vm67_vm7 = vcmp.gt.f32.partialorder %v59_v41, 0.0 }
   0xd   :  { %166 = vst [vmem:[%s241_s3] sm:$0xff] %v165_v34   ;;  %v80_v42 = vsel %vm64_vm4, %v56_v26, %v72_v37  ;;  %v74_v44 = vmul.f32 0.2, %v58_v40  ;;  %v75_v46 = vmul.f32 0.2, %v59_v41 }
   0xe   :  { %185 = vst [vmem:[%s241_s3 + $0x8] sm:$0xff] %v170_v38   ;;  %v81_v43 = vsel %vm65_vm5, %v57_v27, %v73_v39 }
   0xf   :  { %v175_v45 = vpack.c.bf16 %v81_v43, %v80_v42  ;;  %v82_v47 = vsel %vm66_vm6, %v58_v40, %v74_v44  ;;  %v83_v48 = vsel %vm67_vm7, %v59_v41, %v75_v46 }
  0x10   :  { %v180_v49 = vpack.c.bf16 %v83_v48, %v82_v47 }
  0x11   :  { %186 = vst [vmem:[%s241_s3 + $0x10] sm:$0xff] %v175_v45  }
  0x12   :  { %187 = vst [vmem:[%s241_s3 + $0x18] sm:$0xff] %v180_v49  }

// kernel: video_reconstructor_forward.24
= control target key start
LH: loop header
LB: loop body
LE: loop exit
PB: predicated region body
PF: predicated region fallthrough
CT: control target
= control target key end

     0   :  { %s2381_s1 = inlined_call_operand.vmem [shape: bf16[1,2048,128], index: 1, kind: input, shape index: {}]   ;;  %s2382_s0 = inlined_call_operand.vmem [shape: bf16[1,16,2048], index: 0, kind: input, shape index: {}]   ;;  %s2383_s2 = inlined_call_operand.vmem [shape: bf16[1,16,128], index: 2, kind: output, shape index: {}]  }
   0x1   :  { %v1803_v0 = vld [vmem:[%s2381_s1 + $0x78] sm:$0xff]   ;;  %v1807_v4 = vld [vmem:[%s2381_s1 + $0x70] sm:$0xff]   ;;  %v1811_v8 = vld [vmem:[%s2381_s1 + $0x68] sm:$0xff]  }
   0x2   :  { %v1804_v1 = vld [vmem:[%s2381_s1 + $0xf8] sm:$0xff]   ;;  %1627 = vmatprep.subr.bf16.mxu0 %v1803_v0  ;;  %v1808_v5 = vld [vmem:[%s2381_s1 + $0xf0] sm:$0xff]   ;;  %v1812_v9 = vld [vmem:[%s2381_s1 + $0xe8] sm:$0xff]  }
   0x3   :  { %v1805_v2 = vld [vmem:[%s2381_s1 + $0x38] sm:$0xff]   ;;  %1649 = vmatprep.subr.bf16.mxu1 %v1804_v1  ;;  %v1809_v6 = vld [vmem:[%s2381_s1 + $0x30] sm:$0xff]   ;;  %v1813_v10 = vld [vmem:[%s2381_s1 + $0x28] sm:$0xff]  }
   0x4   :  { %v1806_v3 = vld [vmem:[%s2381_s1 + $0xb8] sm:$0xff]   ;;  %1628 = vmatpush3.bf16.msra.mxu0 %v1805_v2  ;;  %v1810_v7 = vld [vmem:[%s2381_s1 + $0xb0] sm:$0xff]   ;;  %v1814_v11 = vld [vmem:[%s2381_s1 + $0xa8] sm:$0xff]  }
   0x5   :  { %1650 = vmatpush3.bf16.msra.mxu1 %v1806_v3  ;;  %1629 = vmatprep.subr.bf16.mxu0 %v1807_v4  ;;  %v1815_v12 = vld [vmem:[%s2381_s1 + $0x60] sm:$0xff]   ;;  %v1819_v16 = vld [vmem:[%s2381_s1 + $0x58] sm:$0xff]   ;;  %v1823_v20 = vld [vmem:[%s2381_s1 + $0x50] sm:$0xff]  }
   0x6   :  { %1651 = vmatprep.subr.bf16.mxu1 %v1808_v5  ;;  %v1816_v13 = vld [vmem:[%s2381_s1 + $0xe0] sm:$0xff]   ;;  %v1820_v17 = vld [vmem:[%s2381_s1 + $0xd8] sm:$0xff]   ;;  %v1824_v21 = vld [vmem:[%s2381_s1 + $0xd0] sm:$0xff]  }
   0x7   :  { %v1817_v14 = vld [vmem:[%s2381_s1 + $0x20] sm:$0xff]   ;;  %v1821_v18 = vld [vmem:[%s2381_s1 + $0x18] sm:$0xff]   ;;  %v1825_v22 = vld [vmem:[%s2381_s1 + $0x10] sm:$0xff]  }
   0x8   :  { %1630 = vmatpush3.bf16.msra.mxu0 %v1809_v6  ;;  %v1818_v15 = vld [vmem:[%s2381_s1 + $0xa0] sm:$0xff]   ;;  %v1822_v19 = vld [vmem:[%s2381_s1 + $0x98] sm:$0xff]   ;;  %v1826_v23 = vld [vmem:[%s2381_s1 + $0x90] sm:$0xff]  }
   0x9   :  { %1652 = vmatpush3.bf16.msra.mxu1 %v1810_v7  ;;  %1631 = vmatprep.subr.bf16.mxu0 %v1811_v8  ;;  %v1827_v24 = vld [vmem:[%s2381_s1 + $0x48] sm:$0xff]   ;;  %v1831_v28 = vld [vmem:[%s2381_s1 + $0x40] sm:$0xff]   ;;  %v1835_v40 = vld [vmem:[%s2381_s1 + $0x178] sm:$0xff]  }
   0xa   :  { %1653 = vmatprep.subr.bf16.mxu1 %v1812_v9  ;;  %v1828_v25 = vld [vmem:[%s2381_s1 + $0xc8] sm:$0xff]   ;;  %v1832_v29 = vld [vmem:[%s2381_s1 + $0xc0] sm:$0xff]   ;;  %v1836_v41 = vld [vmem:[%s2381_s1 + $0x1f8] sm:$0xff]  }
   0xb   :  { %v1829_v26 = vld [vmem:[%s2381_s1 + $0x8] sm:$0xff]   ;;  %v1833_v30 = vld [vmem:[%s2381_s1] sm:$0xff]   ;;  %v1837_v42 = vld [vmem:[%s2381_s1 + $0x138] sm:$0xff]  }
   0xc   :  { %1632 = vmatpush3.bf16.msra.mxu0 %v1813_v10  ;;  %v1830_v27 = vld [vmem:[%s2381_s1 + $0x88] sm:$0xff]   ;;  %v1834_v31 = vld [vmem:[%s2381_s1 + $0x80] sm:$0xff]   ;;  %v1838_v43 = vld [vmem:[%s2381_s1 + $0x1b8] sm:$0xff]  }
   0xd   :  { %1654 = vmatpush3.bf16.msra.mxu1 %v1814_v11  ;;  %1633 = vmatprep.subr.bf16.mxu0 %v1815_v12  ;;  %v12_v32 = vld [vmem:[%s2382_s0] sm:$0xff]  ;;  %v13_v34 = vld [vmem:[%s2382_s0 + $0x8] sm:$0xff]  ;;  %v1839_v44 = vld [vmem:[%s2381_s1 + $0x170] sm:$0xff]  }
   0xe   :  { %1655 = vmatprep.subr.bf16.mxu1 %v1816_v13  ;;  %v20_v33 = vld [vmem:[%s2382_s0 + $0x40] sm:$0xff]  ;;  %v21_v37 = vld [vmem:[%s2382_s0 + $0x48] sm:$0xff]  ;;  %v1840_v45 = vld [vmem:[%s2381_s1 + $0x1f0] sm:$0xff]  }
   0xf   :  { %v1474_v35 = vcombine.low %v12_v32, %v20_v33  ;;  %v1475_v36 = vcombine.high %v12_v32, %v20_v33  ;;  %v1476_v38 = vcombine.low %v13_v34, %v21_v37  ;;  %v1477_v39 = vcombine.high %v13_v34, %v21_v37  ;;  %v1841_v46 = vld [vmem:[%s2381_s1 + $0x130] sm:$0xff]   ;;  %v1843_v48 = vld [vmem:[%s2381_s1 + $0x168] sm:$0xff]   ;;  %v1847_v52 = vld [vmem:[%s2381_s1 + $0x160] sm:$0xff]  }
  0x10   :  { %1634 = vmatpush3.bf16.msra.mxu0 %v1817_v14  ;;  %v1842_v47 = vld [vmem:[%s2381_s1 + $0x1b0] sm:$0xff]   ;;  %v1844_v49 = vld [vmem:[%s2381_s1 + $0x1e8] sm:$0xff]   ;;  %v1848_v53 = vld [vmem:[%s2381_s1 + $0x1e0] sm:$0xff]  }
  0x11   :  { %1656 = vmatpush3.bf16.msra.mxu1 %v1818_v15  ;;  %1635 = vmatprep.subr.bf16.mxu0 %v1819_v16  ;;  %v1845_v50 = vld [vmem:[%s2381_s1 + $0x128] sm:$0xff]   ;;  %v1849_v54 = vld [vmem:[%s2381_s1 + $0x120] sm:$0xff]   ;;  %v1851_v56 = vld [vmem:[%s2381_s1 + $0x158] sm:$0xff]  }
  0x12   :  { %1657 = vmatprep.subr.bf16.mxu1 %v1820_v17  ;;  %1164 = vmatprep.mubr.bf16.mxu0 %v1475_v36  ;;  %v1846_v51 = vld [vmem:[%s2381_s1 + $0x1a8] sm:$0xff]   ;;  %v1850_v55 = vld [vmem:[%s2381_s1 + $0x1a0] sm:$0xff]   ;;  %v1852_v57 = vld [vmem:[%s2381_s1 + $0x1d8] sm:$0xff]  }
  0x13   :  { %1205 = vmatprep.mubr.bf16.mxu1 %v1477_v39  ;;  %v1853_v58 = vld [vmem:[%s2381_s1 + $0x118] sm:$0xff]   ;;  %v1855_v60 = vld [vmem:[%s2381_s1 + $0x150] sm:$0xff]   ;;  %v1859_v0 = vld [vmem:[%s2381_s1 + $0x148] sm:$0xff]  }
  0x14   :  { %1636 = vmatpush3.bf16.msra.mxu0 %v1821_v18  ;;  %v1854_v59 = vld [vmem:[%s2381_s1 + $0x198] sm:$0xff]   ;;  %v1856_v61 = vld [vmem:[%s2381_s1 + $0x1d0] sm:$0xff]   ;;  %v1860_v1 = vld [vmem:[%s2381_s1 + $0x1c8] sm:$0xff]  }
  0x15   :  { %1658 = vmatpush3.bf16.msra.mxu1 %v1822_v19  ;;  %1637 = vmatprep.subr.bf16.mxu0 %v1823_v20  ;;  %v1857_v62 = vld [vmem:[%s2381_s1 + $0x110] sm:$0xff]   ;;  %v1861_v2 = vld [vmem:[%s2381_s1 + $0x108] sm:$0xff]   ;;  %v1863_v4 = vld [vmem:[%s2381_s1 + $0x140] sm:$0xff]  }
  0x16   :  { %1659 = vmatprep.subr.bf16.mxu1 %v1824_v21  ;;  %v1858_v63 = vld [vmem:[%s2381_s1 + $0x190] sm:$0xff]   ;;  %v1862_v3 = vld [vmem:[%s2381_s1 + $0x188] sm:$0xff]   ;;  %v1864_v5 = vld [vmem:[%s2381_s1 + $0x1c0] sm:$0xff]  }
  0x17   :  { %v1865_v6 = vld [vmem:[%s2381_s1 + $0x100] sm:$0xff]   ;;  %v14_v8 = vld [vmem:[%s2382_s0 + $0x10] sm:$0xff]  ;;  %v15_v12 = vld [vmem:[%s2382_s0 + $0x18] sm:$0xff] }
  0x18   :  { %1638 = vmatpush3.bf16.msra.mxu0 %v1825_v22  ;;  %v1866_v7 = vld [vmem:[%s2381_s1 + $0x180] sm:$0xff]   ;;  %v22_v9 = vld [vmem:[%s2382_s0 + $0x50] sm:$0xff]  ;;  %v23_v13 = vld [vmem:[%s2382_s0 + $0x58] sm:$0xff] }
  0x19   :  { %1660 = vmatpush3.bf16.msra.mxu1 %v1826_v23  ;;  %1639 = vmatprep.subr.bf16.mxu0 %v1827_v24  ;;  %v1478_v10 = vcombine.low %v14_v8, %v22_v9  ;;  %v1479_v11 = vcombine.high %v14_v8, %v22_v9  ;;  %v1480_v14 = vcombine.low %v15_v12, %v23_v13  ;;  %v1867_v16 = vld [vmem:[%s2381_s1 + $0x278] sm:$0xff]   ;;  %v1871_v20 = vld [vmem:[%s2381_s1 + $0x270] sm:$0xff]   ;;  %v1875_v24 = vld [vmem:[%s2381_s1 + $0x268] sm:$0xff]  }
  0x1a   :  { %1661 = vmatprep.subr.bf16.mxu1 %v1828_v25  ;;  %v1481_v15 = vcombine.high %v15_v12, %v23_v13  ;;  %v1868_v17 = vld [vmem:[%s2381_s1 + $0x2f8] sm:$0xff]   ;;  %v1872_v21 = vld [vmem:[%s2381_s1 + $0x2f0] sm:$0xff]   ;;  %v1876_v25 = vld [vmem:[%s2381_s1 + $0x2e8] sm:$0xff]  }
  0x1b   :  { %v1869_v18 = vld [vmem:[%s2381_s1 + $0x238] sm:$0xff]   ;;  %v1873_v22 = vld [vmem:[%s2381_s1 + $0x230] sm:$0xff]  }
  0x1c   :  { %1640 = vmatpush3.bf16.msra.mxu0 %v1829_v26  ;;  %v1870_v19 = vld [vmem:[%s2381_s1 + $0x2b8] sm:$0xff]   ;;  %v1874_v23 = vld [vmem:[%s2381_s1 + $0x2b0] sm:$0xff]   ;;  %v1877_v26 = vld [vmem:[%s2381_s1 + $0x228] sm:$0xff]  }
  0x1d   :  { %1662 = vmatpush3.bf16.msra.mxu1 %v1830_v27  ;;  %1641 = vmatprep.subr.bf16.mxu0 %v1831_v28  ;;  %v1878_v27 = vld [vmem:[%s2381_s1 + $0x2a8] sm:$0xff]   ;;  %v1879_v28 = vld [vmem:[%s2381_s1 + $0x260] sm:$0xff]   ;;  %v1883_v32 = vld [vmem:[%s2381_s1 + $0x258] sm:$0xff]  }
  0x1e   :  { %1663 = vmatprep.subr.bf16.mxu1 %v1832_v29  ;;  %v1880_v29 = vld [vmem:[%s2381_s1 + $0x2e0] sm:$0xff]   ;;  %v1884_v33 = vld [vmem:[%s2381_s1 + $0x2d8] sm:$0xff]   ;;  %v1887_v36 = vld [vmem:[%s2381_s1 + $0x250] sm:$0xff]  }
  0x1f   :  { %v1885_v34 = vld [vmem:[%s2381_s1 + $0x218] sm:$0xff]   ;;  %v1888_v37 = vld [vmem:[%s2381_s1 + $0x2d0] sm:$0xff]  }
  0x20   :  { %1642 = vmatpush3.bf16.msra.mxu0 %v1833_v30  ;;  %v1881_v30 = vld [vmem:[%s2381_s1 + $0x220] sm:$0xff]   ;;  %v1890_v39 = vld [vmem:[%s2381_s1 + $0x290] sm:$0xff]   ;;  %v1915_v8 = vld [vmem:[%s2381_s1 + $0x358] sm:$0xff]  }
  0x21   :  { %1664 = vmatpush3.bf16.msra.mxu1 %v1834_v31  ;;  %1671 = vmatprep.subr.bf16.mxu0 %v1835_v40  ;;  %v1882_v31 = vld [vmem:[%s2381_s1 + $0x2a0] sm:$0xff]   ;;  %v1891_v40 = vld [vmem:[%s2381_s1 + $0x248] sm:$0xff]   ;;  %v1916_v9 = vld [vmem:[%s2381_s1 + $0x3d8] sm:$0xff]  }
  0x22   :  { %1693 = vmatprep.subr.bf16.mxu1 %v1836_v41  ;;  %v1892_v41 = vld [vmem:[%s2381_s1 + $0x2c8] sm:$0xff]   ;;  %v1919_v12 = vld [vmem:[%s2381_s1 + $0x350] sm:$0xff]  }
  0x23   :  { %1165 = vmatmul.mubr.bf16.vlgmr.msra.gmra.mxu0 %v1474_v35  ;;  %v1886_v35 = vld [vmem:[%s2381_s1 + $0x298] sm:$0xff]   ;;  %v1920_v13 = vld [vmem:[%s2381_s1 + $0x3d0] sm:$0xff]  }
  0x24   :  { %1206 = vmatmul.mubr.bf16.vlgmr.msra.gmra.mxu1 %v1476_v38  ;;  %1672 = vmatpush3.bf16.msra.mxu0 %v1837_v42  ;;  %v1889_v38 = vld [vmem:[%s2381_s1 + $0x210] sm:$0xff]   ;;  %v1893_v42 = vld [vmem:[%s2381_s1 + $0x208] sm:$0xff]  }
  0x25   :  { %1694 = vmatpush3.bf16.msra.mxu1 %v1838_v43  ;;  %1673 = vmatprep.subr.bf16.mxu0 %v1839_v44  ;;  %v1894_v43 = vld [vmem:[%s2381_s1 + $0x288] sm:$0xff]   ;;  %v1895_v44 = vld [vmem:[%s2381_s1 + $0x240] sm:$0xff]  }
  0x26   :  { %1695 = vmatprep.subr.bf16.mxu1 %v1840_v45  ;;  %1246 = vmatprep.mubr.bf16.mxu0 %v1479_v11  ;;  %v1896_v45 = vld [vmem:[%s2381_s1 + $0x2c0] sm:$0xff]   ;;  %v1918_v11 = vld [vmem:[%s2381_s1 + $0x398] sm:$0xff]  }
  0x27   :  { %1287 = vmatprep.mubr.bf16.mxu1 %v1481_v15  ;;  %v1922_v15 = vld [vmem:[%s2381_s1 + $0x390] sm:$0xff]  }
  0x28   :  { %1674 = vmatpush3.bf16.msra.mxu0 %v1841_v46  ;;  %v1897_v46 = vld [vmem:[%s2381_s1 + $0x200] sm:$0xff]  }
  0x29   :  { %1696 = vmatpush3.bf16.msra.mxu1 %v1842_v47  ;;  %1675 = vmatprep.subr.bf16.mxu0 %v1843_v48  ;;  %v1898_v47 = vld [vmem:[%s2381_s1 + $0x280] sm:$0xff]  }
  0x2a   :  { %1697 = vmatprep.subr.bf16.mxu1 %v1844_v49  ;;  %v16_v48 = vld [vmem:[%s2382_s0 + $0x20] sm:$0xff] }
  0x2b   :  { %v24_v49 = vld [vmem:[%s2382_s0 + $0x60] sm:$0xff] }
  0x2c   :  { %1676 = vmatpush3.bf16.msra.mxu0 %v1845_v50  ;;  %v17_v50 = vld [vmem:[%s2382_s0 + $0x28] sm:$0xff] }
  0x2d   :  { %1698 = vmatpush3.bf16.msra.mxu1 %v1846_v51  ;;  %1677 = vmatprep.subr.bf16.mxu0 %v1847_v52  ;;  %v25_v51 = vld [vmem:[%s2382_s0 + $0x68] sm:$0xff]  ;;  %v1482_v52 = vcombine.low %v16_v48, %v24_v49 }
  0x2e   :  { %1699 = vmatprep.subr.bf16.mxu1 %v1848_v53  ;;  %v1483_v53 = vcombine.high %v16_v48, %v24_v49 }
  0x30   :  { %1678 = vmatpush3.bf16.msra.mxu0 %v1849_v54  ;;  %v1484_v54 = vcombine.low %v17_v50, %v25_v51 }
  0x31   :  { %1700 = vmatpush3.bf16.msra.mxu1 %v1850_v55  ;;  %1679 = vmatprep.subr.bf16.mxu0 %v1851_v56  ;;  %v1485_v55 = vcombine.high %v17_v50, %v25_v51  ;;  %v1899_v56 = vld [vmem:[%s2381_s1 + $0x378] sm:$0xff]  }
  0x32   :  { %1701 = vmatprep.subr.bf16.mxu1 %v1852_v57  ;;  %v1900_v57 = vld [vmem:[%s2381_s1 + $0x3f8] sm:$0xff]  }
  0x34   :  { %1680 = vmatpush3.bf16.msra.mxu0 %v1853_v58  ;;  %v1901_v58 = vld [vmem:[%s2381_s1 + $0x338] sm:$0xff]  }
  0x35   :  { %1702 = vmatpush3.bf16.msra.mxu1 %v1854_v59  ;;  %1681 = vmatprep.subr.bf16.mxu0 %v1855_v60  ;;  %v1902_v59 = vld [vmem:[%s2381_s1 + $0x3b8] sm:$0xff]   ;;  %v1903_v60 = vld [vmem:[%s2381_s1 + $0x370] sm:$0xff]  }
  0x36   :  { %1703 = vmatprep.subr.bf16.mxu1 %v1856_v61  ;;  %v1904_v61 = vld [vmem:[%s2381_s1 + $0x3f0] sm:$0xff]  }
  0x38   :  { %1682 = vmatpush3.bf16.msra.mxu0 %v1857_v62  ;;  %v1905_v62 = vld [vmem:[%s2381_s1 + $0x330] sm:$0xff]  }
  0x39   :  { %1704 = vmatpush3.bf16.msra.mxu1 %v1858_v63  ;;  %1683 = vmatprep.subr.bf16.mxu0 %v1859_v0  ;;  %v1906_v63 = vld [vmem:[%s2381_s1 + $0x3b0] sm:$0xff]   ;;  %v1907_v0 = vld [vmem:[%s2381_s1 + $0x368] sm:$0xff]  }
  0x3a   :  { %1705 = vmatprep.subr.bf16.mxu1 %v1860_v1  ;;  %v1908_v1 = vld [vmem:[%s2381_s1 + $0x3e8] sm:$0xff]  }
  0x3c   :  { %1684 = vmatpush3.bf16.msra.mxu0 %v1861_v2  ;;  %v1909_v2 = vld [vmem:[%s2381_s1 + $0x328] sm:$0xff]  }
  0x3d   :  { %1706 = vmatpush3.bf16.msra.mxu1 %v1862_v3  ;;  %1685 = vmatprep.subr.bf16.mxu0 %v1863_v4  ;;  %v1910_v3 = vld [vmem:[%s2381_s1 + $0x3a8] sm:$0xff]   ;;  %v1911_v4 = vld [vmem:[%s2381_s1 + $0x360] sm:$0xff]  }
  0x3e   :  { %1707 = vmatprep.subr.bf16.mxu1 %v1864_v5  ;;  %v1912_v5 = vld [vmem:[%s2381_s1 + $0x3e0] sm:$0xff]  }
  0x40   :  { %1686 = vmatpush3.bf16.msra.mxu0 %v1865_v6  ;;  %v1913_v6 = vld [vmem:[%s2381_s1 + $0x320] sm:$0xff]  }
  0x41   :  { %1708 = vmatpush3.bf16.msra.mxu1 %v1866_v7  ;;  %1715 = vmatprep.subr.bf16.mxu0 %v1867_v16  ;;  %v1914_v7 = vld [vmem:[%s2381_s1 + $0x3a0] sm:$0xff]   ;;  %v1923_v16 = vld [vmem:[%s2381_s1 + $0x348] sm:$0xff]  }
  0x42   :  { %1737 = vmatprep.subr.bf16.mxu1 %v1868_v17  ;;  %v1924_v17 = vld [vmem:[%s2381_s1 + $0x3c8] sm:$0xff]  }
  0x43   :  { %1247 = vmatmul.mubr.bf16.vlgmr.msra.gmra.mxu0 %v1478_v10  ;;  %v1917_v10 = vld [vmem:[%s2381_s1 + $0x318] sm:$0xff]  }
  0x44   :  { %1288 = vmatmul.mubr.bf16.vlgmr.msra.gmra.mxu1 %v1480_v14  ;;  %1716 = vmatpush3.bf16.msra.mxu0 %v1869_v18  ;;  %v1921_v14 = vld [vmem:[%s2381_s1 + $0x310] sm:$0xff]   ;;  %v1925_v18 = vld [vmem:[%s2381_s1 + $0x308] sm:$0xff]  }
  0x45   :  { %1738 = vmatpush3.bf16.msra.mxu1 %v1870_v19  ;;  %1717 = vmatprep.subr.bf16.mxu0 %v1871_v20  ;;  %v1926_v19 = vld [vmem:[%s2381_s1 + $0x388] sm:$0xff]   ;;  %v1927_v20 = vld [vmem:[%s2381_s1 + $0x340] sm:$0xff]  }
  0x46   :  { %1739 = vmatprep.subr.bf16.mxu1 %v1872_v21  ;;  %1328 = vmatprep.mubr.bf16.mxu0 %v1483_v53  ;;  %v1928_v21 = vld [vmem:[%s2381_s1 + $0x3c0] sm:$0xff]  }
  0x47   :  { %1369 = vmatprep.mubr.bf16.mxu1 %v1485_v55 }
  0x48   :  { %1718 = vmatpush3.bf16.msra.mxu0 %v1873_v22  ;;  %v1929_v22 = vld [vmem:[%s2381_s1 + $0x300] sm:$0xff]  }
  0x49   :  { %1740 = vmatpush3.bf16.msra.mxu1 %v1874_v23  ;;  %1719 = vmatprep.subr.bf16.mxu0 %v1875_v24  ;;  %v1930_v23 = vld [vmem:[%s2381_s1 + $0x380] sm:$0xff]   ;;  %v18_v24 = vld [vmem:[%s2382_s0 + $0x30] sm:$0xff] }
  0x4a   :  { %1741 = vmatprep.subr.bf16.mxu1 %v1876_v25  ;;  %v26_v25 = vld [vmem:[%s2382_s0 + $0x70] sm:$0xff] }
  0x4c   :  { %1720 = vmatpush3.bf16.msra.mxu0 %v1877_v26  ;;  %v19_v26 = vld [vmem:[%s2382_s0 + $0x38] sm:$0xff] }
  0x4d   :  { %1742 = vmatpush3.bf16.msra.mxu1 %v1878_v27  ;;  %1721 = vmatprep.subr.bf16.mxu0 %v1879_v28  ;;  %v1486_v27 = vcombine.low %v18_v24, %v26_v25  ;;  %v1487_v28 = vcombine.high %v18_v24, %v26_v25 }
  0x4e   :  { %1743 = vmatprep.subr.bf16.mxu1 %v1880_v29  ;;  %v27_v29 = vld [vmem:[%s2382_s0 + $0x78] sm:$0xff] }
  0x50   :  { %1722 = vmatpush3.bf16.msra.mxu0 %v1881_v30  ;;  %v1488_v30 = vcombine.low %v19_v26, %v27_v29 }
  0x51   :  { %1744 = vmatpush3.bf16.msra.mxu1 %v1882_v31  ;;  %1723 = vmatprep.subr.bf16.mxu0 %v1883_v32  ;;  %v1489_v31 = vcombine.high %v19_v26, %v27_v29 }
  0x52   :  { %1745 = vmatprep.subr.bf16.mxu1 %v1884_v33 }
  0x54   :  { %1724 = vmatpush3.bf16.msra.mxu0 %v1885_v34 }
  0x55   :  { %1746 = vmatpush3.bf16.msra.mxu1 %v1886_v35  ;;  %1725 = vmatprep.subr.bf16.mxu0 %v1887_v36 }
  0x56   :  { %1747 = vmatprep.subr.bf16.mxu1 %v1888_v37 }
  0x58   :  { %1726 = vmatpush3.bf16.msra.mxu0 %v1889_v38 }
  0x59   :  { %1748 = vmatpush3.bf16.msra.mxu1 %v1890_v39  ;;  %1727 = vmatprep.subr.bf16.mxu0 %v1891_v40 }
  0x5a   :  { %1749 = vmatprep.subr.bf16.mxu1 %v1892_v41 }
  0x5c   :  { %1728 = vmatpush3.bf16.msra.mxu0 %v1893_v42 }
  0x5d   :  { %1750 = vmatpush3.bf16.msra.mxu1 %v1894_v43  ;;  %1729 = vmatprep.subr.bf16.mxu0 %v1895_v44 }
  0x5e   :  { %1751 = vmatprep.subr.bf16.mxu1 %v1896_v45 }
  0x60   :  { %1730 = vmatpush3.bf16.msra.mxu0 %v1897_v46 }
  0x61   :  { %1752 = vmatpush3.bf16.msra.mxu1 %v1898_v47  ;;  %1759 = vmatprep.subr.bf16.mxu0 %v1899_v56 }
  0x62   :  { %1781 = vmatprep.subr.bf16.mxu1 %v1900_v57 }
  0x63   :  { %1329 = vmatmul.mubr.bf16.vlgmr.msra.gmra.mxu0 %v1482_v52 }
  0x64   :  { %1370 = vmatmul.mubr.bf16.vlgmr.msra.gmra.mxu1 %v1484_v54  ;;  %1760 = vmatpush3.bf16.msra.mxu0 %v1901_v58 }
  0x65   :  { %1782 = vmatpush3.bf16.msra.mxu1 %v1902_v59  ;;  %1761 = vmatprep.subr.bf16.mxu0 %v1903_v60 }
  0x66   :  { %1783 = vmatprep.subr.bf16.mxu1 %v1904_v61  ;;  %1410 = vmatprep.mubr.bf16.mxu0 %v1487_v28 }
  0x67   :  { %1451 = vmatprep.mubr.bf16.mxu1 %v1489_v31 }
  0x68   :  { %1762 = vmatpush3.bf16.msra.mxu0 %v1905_v62 }
  0x69   :  { %1784 = vmatpush3.bf16.msra.mxu1 %v1906_v63  ;;  %1763 = vmatprep.subr.bf16.mxu0 %v1907_v0 }
  0x6a   :  { %1785 = vmatprep.subr.bf16.mxu1 %v1908_v1 }
  0x6c   :  { %1764 = vmatpush3.bf16.msra.mxu0 %v1909_v2 }
  0x6d   :  { %1786 = vmatpush3.bf16.msra.mxu1 %v1910_v3  ;;  %1765 = vmatprep.subr.bf16.mxu0 %v1911_v4 }
  0x6e   :  { %1787 = vmatprep.subr.bf16.mxu1 %v1912_v5 }
  0x70   :  { %1766 = vmatpush3.bf16.msra.mxu0 %v1913_v6 }
  0x71   :  { %1788 = vmatpush3.bf16.msra.mxu1 %v1914_v7  ;;  %1767 = vmatprep.subr.bf16.mxu0 %v1915_v8 }
  0x72   :  { %1789 = vmatprep.subr.bf16.mxu1 %v1916_v9 }
  0x74   :  { %1768 = vmatpush3.bf16.msra.mxu0 %v1917_v10 }
  0x75   :  { %1790 = vmatpush3.bf16.msra.mxu1 %v1918_v11  ;;  %1769 = vmatprep.subr.bf16.mxu0 %v1919_v12 }
  0x76   :  { %1791 = vmatprep.subr.bf16.mxu1 %v1920_v13 }
  0x78   :  { %1770 = vmatpush3.bf16.msra.mxu0 %v1921_v14 }
  0x79   :  { %1792 = vmatpush3.bf16.msra.mxu1 %v1922_v15  ;;  %1771 = vmatprep.subr.bf16.mxu0 %v1923_v16 }
  0x7a   :  { %1793 = vmatprep.subr.bf16.mxu1 %v1924_v17 }
  0x7c   :  { %1772 = vmatpush3.bf16.msra.mxu0 %v1925_v18 }
  0x7d   :  { %1794 = vmatpush3.bf16.msra.mxu1 %v1926_v19  ;;  %1773 = vmatprep.subr.bf16.mxu0 %v1927_v20 }
  0x7e   :  { %1795 = vmatprep.subr.bf16.mxu1 %v1928_v21 }
  0x80   :  { %1774 = vmatpush3.bf16.msra.mxu0 %v1929_v22 }
  0x81   :  { %1796 = vmatpush3.bf16.msra.mxu1 %v1930_v23 }
  0x83   :  { %1411 = vmatmul.mubr.bf16.vlgmr.msra.gmra.mxu0 %v1486_v27 }
  0x84   :  { %1452 = vmatmul.mubr.bf16.vlgmr.msra.gmra.mxu1 %v1488_v30 }
  0xe3   :  { %v1643_v32 = vpop.f32.mrf.mxu0 }
  0xe4   :  { %v1665_v33 = vpop.f32.mrf.mxu1 }
  0xe5   :  { %v1644_v34 = vpop.f32.mrf.mxu0 }
  0xe6   :  { %v1666_v35 = vpop.f32.mrf.mxu1  ;;  %v1645_v51 = vadd.f32 %v1644_v34, %v1643_v32 }
  0xe7   :  { %v1646_v36 = vpop.f32.mrf.mxu0  ;;  %v1667_v52 = vadd.f32 %v1666_v35, %v1665_v33 }
  0xe8   :  { %v1668_v37 = vpop.f32.mrf.mxu1 }
  0xe9   :  { %v1647_v38 = vpop.f32.mrf.mxu0  ;;  %v1208_v58 = vadd.f32 %v1667_v52, %v1645_v51 }
  0xea   :  { %v1669_v40 = vpop.f32.mrf.mxu1  ;;  %v1648_v53 = vadd.f32 %v1647_v38, %v1646_v36 }
  0xeb   :  { %v1670_v54 = vadd.f32 %v1669_v40, %v1668_v37 }
  0xed   :  { %v1211_v60 = vadd.f32 %v1670_v54, %v1648_v53 }
 0x103   :  { %v1687_v39 = vpop.f32.mrf.mxu0 }
 0x104   :  { %v1709_v41 = vpop.f32.mrf.mxu1 }
 0x105   :  { %v1688_v42 = vpop.f32.mrf.mxu0 }
 0x106   :  { %v1710_v43 = vpop.f32.mrf.mxu1  ;;  %v1689_v55 = vadd.f32 %v1688_v42, %v1687_v39 }
 0x107   :  { %v1690_v44 = vpop.f32.mrf.mxu0  ;;  %v1711_v62 = vadd.f32 %v1710_v43, %v1709_v41 }
 0x108   :  { %v1712_v45 = vpop.f32.mrf.mxu1  ;;  %v1249_v61 = vadd.f32 %v1689_v55, %v1208_v58 }
 0x109   :  { %v1691_v46 = vpop.f32.mrf.mxu0 }
 0x10a   :  { %v1713_v48 = vpop.f32.mrf.mxu1  ;;  %v1692_v59 = vadd.f32 %v1691_v46, %v1690_v44  ;;  %v1290_v3 = vadd.f32 %v1711_v62, %v1249_v61 }
 0x10b   :  { %v1714_v4 = vadd.f32 %v1713_v48, %v1712_v45 }
 0x10c   :  { %v1252_v1 = vadd.f32 %v1692_v59, %v1211_v60 }
 0x10e   :  { %v1293_v8 = vadd.f32 %v1714_v4, %v1252_v1 }
 0x123   :  { %v1731_v47 = vpop.f32.mrf.mxu0 }
 0x124   :  { %v1753_v49 = vpop.f32.mrf.mxu1 }
 0x125   :  { %v1732_v50 = vpop.f32.mrf.mxu0 }
 0x126   :  { %v1754_v56 = vpop.f32.mrf.mxu1  ;;  %v1733_v2 = vadd.f32 %v1732_v50, %v1731_v47 }
 0x127   :  { %v1734_v57 = vpop.f32.mrf.mxu0  ;;  %v1755_v10 = vadd.f32 %v1754_v56, %v1753_v49 }
 0x128   :  { %v1756_v63 = vpop.f32.mrf.mxu1  ;;  %v1331_v9 = vadd.f32 %v1733_v2, %v1290_v3 }
 0x129   :  { %v1735_v0 = vpop.f32.mrf.mxu0 }
 0x12a   :  { %v1736_v5 = vadd.f32 %v1735_v0, %v1734_v57  ;;  %v1757_v6 = vpop.f32.mrf.mxu1  ;;  %v1372_v17 = vadd.f32 %v1755_v10, %v1331_v9 }
 0x12b   :  { %v1758_v18 = vadd.f32 %v1757_v6, %v1756_v63 }
 0x12c   :  { %v1334_v13 = vadd.f32 %v1736_v5, %v1293_v8 }
 0x12e   :  { %v1375_v21 = vadd.f32 %v1758_v18, %v1334_v13 }
 0x143   :  { %v1775_v7 = vpop.f32.mrf.mxu0 }
 0x144   :  { %v1797_v11 = vpop.f32.mrf.mxu1 }
 0x145   :  { %v1776_v12 = vpop.f32.mrf.mxu0 }
 0x146   :  { %v1777_v14 = vadd.f32 %v1776_v12, %v1775_v7  ;;  %v1798_v15 = vpop.f32.mrf.mxu1 }
 0x147   :  { %v1778_v16 = vpop.f32.mrf.mxu0  ;;  %v1799_v25 = vadd.f32 %v1798_v15, %v1797_v11 }
 0x148   :  { %v1800_v19 = vpop.f32.mrf.mxu1  ;;  %v1413_v22 = vadd.f32 %v1777_v14, %v1372_v17 }
 0x149   :  { %v1779_v20 = vpop.f32.mrf.mxu0 }
 0x14a   :  { %v1780_v23 = vadd.f32 %v1779_v20, %v1778_v16  ;;  %v1801_v24 = vpop.f32.mrf.mxu1  ;;  %v1454_v28 = vadd.f32 %v1799_v25, %v1413_v22 }
 0x14b   :  { %v1802_v27 = vadd.f32 %v1801_v24, %v1800_v19 }
 0x14c   :  { %v1416_v26 = vadd.f32 %v1780_v23, %v1375_v21 }
 0x14e   :  { %v1457_v29 = vadd.f32 %v1802_v27, %v1416_v26 }
 0x150   :  { %v1625_v30 = vpack.c.bf16 %v1457_v29, %v1454_v28 }
 0x152   :  { %1626 = vst [vmem:[%s2383_s2] sm:$0xff] %v1625_v30  }

// kernel: video_reconstructor_forward.26
= control target key start
LH: loop header
LB: loop body
LE: loop exit
PB: predicated region body
PF: predicated region fallthrough
CT: control target
= control target key end

     0   :  { %s140_s0 = inlined_call_operand.vmem [shape: bf16[1,32,128], index: 0, kind: input, shape index: {}]   ;;  %s141_s1 = inlined_call_operand.vmem [shape: f32[1,128], index: 1, kind: input, shape index: {}]   ;;  %s142_s2 = inlined_call_operand.vmem [shape: f32[1,128], index: 2, kind: input, shape index: {}]   ;;  %s143_s3 = inlined_call_operand.vmem [shape: bf16[1,32,128], index: 3, kind: output, shape index: {}]  }
   0x1   :  { %v83_v0 = vld [vmem:[%s140_s0] sm:$0xff]   ;;  %v100_v4 = vld [vmem:[%s140_s0 + $0x8] sm:$0xff]  }
   0x2   :  { %v72_v1 = vld [vmem:[%s141_s1] ss:$0 sm:$0xff]  ;;  %v84_v2 = vunpack.c.l.bf16 %v83_v0  ;;  %v85_v3 = vunpack.c.h.bf16 %v83_v0  ;;  %v88_v6 = vunpack.c.l.bf16 %v100_v4  ;;  %v89_v7 = vunpack.c.h.bf16 %v100_v4 }
   0x3   :  { %v73_v5 = vld [vmem:[%s142_s2] ss:$0 sm:$0xff] }
   0x4   :  { %v29_v8 = vmul.f32 %v84_v2, %v72_v1  ;;  %v30_v9 = vmul.f32 %v85_v3, %v72_v1  ;;  %v31_v10 = vmul.f32 %v88_v6, %v72_v1  ;;  %v32_v11 = vmul.f32 %v89_v7, %v72_v1 }
   0x6   :  { %v40_v12 = vadd.f32 %v73_v5, %v29_v8  ;;  %v41_v13 = vadd.f32 %v73_v5, %v30_v9  ;;  %v42_v14 = vadd.f32 %v73_v5, %v31_v10  ;;  %v43_v15 = vadd.f32 %v73_v5, %v32_v11 }
   0x8   :  { %v44_v16 = vmax.f32 %v40_v12, 0.0  ;;  %v45_v17 = vmax.f32 %v41_v13, 0.0  ;;  %v46_v18 = vmax.f32 %v42_v14, 0.0  ;;  %v47_v19 = vmax.f32 %v43_v15, 0.0 }
   0xa   :  { %v93_v20 = vpack.c.bf16 %v45_v17, %v44_v16  ;;  %v98_v21 = vpack.c.bf16 %v47_v19, %v46_v18 }
   0xc   :  { %94 = vst [vmem:[%s143_s3] sm:$0xff] %v93_v20   ;;  %101 = vst [vmem:[%s143_s3 + $0x8] sm:$0xff] %v98_v21  }

// kernel: video_reconstructor_forward.25
= control target key start
LH: loop header
LB: loop body
LE: loop exit
PB: predicated region body
PF: predicated region fallthrough
CT: control target
= control target key end

     0   :  { %v257_v47 = vlaneseq  ;;  %s466_s1 = inlined_call_operand.vmem [shape: bf16[1,256,128], index: 1, kind: input, shape index: {}]   ;;  %s467_s0 = inlined_call_operand.vmem [shape: bf16[1,32,256], index: 0, kind: input, shape index: {}]   ;;  %s468_s2 = inlined_call_operand.vmem [shape: bf16[1,32,128], index: 2, kind: output, shape index: {0}]   ;;  %s469_s3 = inlined_call_operand.vmem [shape: f32[1,8,128], index: 3, kind: output, shape index: {1}]  }
   0x1   :  { %v355_v0 = vld [vmem:[%s466_s1 + $0x78] sm:$0xff]   ;;  %v357_v2 = vld [vmem:[%s466_s1 + $0x70] sm:$0xff]   ;;  %v359_v4 = vld [vmem:[%s466_s1 + $0x68] sm:$0xff]  }
   0x2   :  { %v356_v1 = vld [vmem:[%s466_s1 + $0x38] sm:$0xff]   ;;  %311 = vmatprep.subr.bf16.mxu0 %v355_v0  ;;  %339 = vmatprep.subr.bf16.mxu1 %v355_v0  ;;  %v358_v3 = vld [vmem:[%s466_s1 + $0x30] sm:$0xff]   ;;  %v360_v5 = vld [vmem:[%s466_s1 + $0x28] sm:$0xff]   ;;  %v258_v52 = vshrl.u32 %v257_v47, 7 }
   0x3   :  { %312 = vmatpush3.bf16.msra.mxu0 %v356_v1  ;;  %347 = vmatpush3.bf16.msra.mxu1 %v356_v1  ;;  %v361_v6 = vld [vmem:[%s466_s1 + $0x60] sm:$0xff]   ;;  %v363_v8 = vld [vmem:[%s466_s1 + $0x58] sm:$0xff]   ;;  %v365_v10 = vld [vmem:[%s466_s1 + $0x50] sm:$0xff]  }
   0x4   :  { %313 = vmatprep.subr.bf16.mxu0 %v357_v2  ;;  %340 = vmatprep.subr.bf16.mxu1 %v357_v2  ;;  %v362_v7 = vld [vmem:[%s466_s1 + $0x20] sm:$0xff]   ;;  %v364_v9 = vld [vmem:[%s466_s1 + $0x18] sm:$0xff]   ;;  %v366_v13 = vld [vmem:[%s466_s1 + $0x10] sm:$0xff]   ;;  %vm260_vm0 = vcmp.eq.s32.totalorder %v258_v52, 1  ;;  %vm259_vm1 = vcmp.eq.s32.totalorder %v258_v52, 0 }
   0x5   :  { %v373_v11 = vld [vmem:[%s467_s0 + $0x4] ss:$8 sps:$4 sm:$0xff]   ;;  %v376_v12 = vld [vmem:[%s467_s0 + $0x14] ss:$8 sps:$4 sm:$0xff]   ;;  %v371_v18 = vld [vmem:[%s467_s0] ss:$8 sps:$4 sm:$0xff]  }
   0x6   :  { %v367_v14 = vld [vmem:[%s466_s1 + $0x48] sm:$0xff]   ;;  %198 = vmatprep.mubr.bf16.mxu0 %v373_v11  ;;  %206 = vmatprep.mubr.bf16.mxu1 %v376_v12  ;;  %v369_v16 = vld [vmem:[%s466_s1 + $0x40] sm:$0xff]   ;;  %v374_v19 = vld [vmem:[%s467_s0 + $0x10] ss:$8 sps:$4 sm:$0xff]  }
   0x7   :  { %314 = vmatpush3.bf16.msra.mxu0 %v358_v3  ;;  %348 = vmatpush3.bf16.msra.mxu1 %v358_v3  ;;  %v368_v15 = vld [vmem:[%s466_s1 + $0x8] sm:$0xff]   ;;  %v370_v17 = vld [vmem:[%s466_s1] sm:$0xff]  }
   0x8   :  { %315 = vmatprep.subr.bf16.mxu0 %v359_v4  ;;  %341 = vmatprep.subr.bf16.mxu1 %v359_v4 }
   0xb   :  { %316 = vmatpush3.bf16.msra.mxu0 %v360_v5  ;;  %349 = vmatpush3.bf16.msra.mxu1 %v360_v5 }
   0xc   :  { %317 = vmatprep.subr.bf16.mxu0 %v361_v6  ;;  %342 = vmatprep.subr.bf16.mxu1 %v361_v6 }
   0xf   :  { %318 = vmatpush3.bf16.msra.mxu0 %v362_v7  ;;  %350 = vmatpush3.bf16.msra.mxu1 %v362_v7 }
  0x10   :  { %319 = vmatprep.subr.bf16.mxu0 %v363_v8  ;;  %343 = vmatprep.subr.bf16.mxu1 %v363_v8 }
  0x13   :  { %320 = vmatpush3.bf16.msra.mxu0 %v364_v9  ;;  %351 = vmatpush3.bf16.msra.mxu1 %v364_v9 }
  0x14   :  { %321 = vmatprep.subr.bf16.mxu0 %v365_v10  ;;  %344 = vmatprep.subr.bf16.mxu1 %v365_v10 }
  0x17   :  { %322 = vmatpush3.bf16.msra.mxu0 %v366_v13  ;;  %352 = vmatpush3.bf16.msra.mxu1 %v366_v13 }
  0x18   :  { %323 = vmatprep.subr.bf16.mxu0 %v367_v14  ;;  %345 = vmatprep.subr.bf16.mxu1 %v367_v14 }
  0x1b   :  { %324 = vmatpush3.bf16.msra.mxu0 %v368_v15  ;;  %353 = vmatpush3.bf16.msra.mxu1 %v368_v15 }
  0x1c   :  { %325 = vmatprep.subr.bf16.mxu0 %v369_v16  ;;  %346 = vmatprep.subr.bf16.mxu1 %v369_v16 }
  0x1f   :  { %326 = vmatpush3.bf16.msra.mxu0 %v370_v17  ;;  %354 = vmatpush3.bf16.msra.mxu1 %v370_v17 }
  0x22   :  { %199 = vmatmul.mubr.bf16.vlgmr.msra.gmra.mxu0 %v371_v18  ;;  %207 = vmatmul.mubr.bf16.vlgmr.msra.gmra.mxu1 %v374_v19 }
  0xe2   :  { %v327_v20 = vpop.f32.mrf.mxu0  ;;  %v333_v21 = vpop.f32.mrf.mxu1 }
  0xe4   :  { %v328_v22 = vpop.f32.mrf.mxu0  ;;  %v334_v23 = vpop.f32.mrf.mxu1 }
  0xe5   :  { %v329_v24 = vadd.f32 %v328_v22, %v327_v20  ;;  %v335_v29 = vadd.f32 %v334_v23, %v333_v21 }
  0xe6   :  { %v330_v25 = vpop.f32.mrf.mxu0  ;;  %v336_v26 = vpop.f32.mrf.mxu1 }
  0xe7   :  { %v244_v32 = vmul.f32 %v329_v24, %v329_v24  ;;  %v246_v37 = vmul.f32 %v335_v29, %v335_v29 }
  0xe8   :  { %v331_v27 = vpop.f32.mrf.mxu0  ;;  %v337_v28 = vpop.f32.mrf.mxu1 }
  0xe9   :  { %v332_v30 = vadd.f32 %v331_v27, %v330_v25  ;;  %v338_v31 = vadd.f32 %v337_v28, %v336_v26 }
  0xeb   :  { %v303_v33 = vpack.c.bf16 %v332_v30, %v329_v24  ;;  %v235_v34 = vadd.f32 %v332_v30, %v329_v24  ;;  %v245_v35 = vmul.f32 %v332_v30, %v332_v30  ;;  %v308_v36 = vpack.c.bf16 %v338_v31, %v335_v29 }
  0xec   :  { %v247_v41 = vmul.f32 %v338_v31, %v338_v31 }
  0xed   :  { %304 = vst [vmem:[%s468_s2] sm:$0xff] %v303_v33   ;;  %v248_v38 = vadd.f32 %v245_v35, %v244_v32  ;;  %310 = vst [vmem:[%s468_s2 + $0x8] sm:$0xff] %v308_v36   ;;  %v236_v39 = vadd.f32 %v335_v29, %v235_v34 }
  0xef   :  { %v237_v40 = vadd.f32 %v338_v31, %v236_v39  ;;  %v249_v42 = vadd.f32 %v248_v38, %v246_v37 }
  0xf1   :  { %v238_v43 = vrot.slane %v237_v40, 4  ;;  %v250_v44 = vadd.f32 %v249_v42, %v247_v41 }
  0xf3   :  { %v239_v45 = vadd.f32 %v238_v43, %v237_v40  ;;  %v251_v46 = vrot.slane %v250_v44, 4 }
  0xf5   :  { %v240_v48 = vrot.slane %v239_v45, 2  ;;  %v252_v49 = vadd.f32 %v251_v46, %v250_v44 }
  0xf7   :  { %v241_v50 = vadd.f32 %v240_v48, %v239_v45  ;;  %v253_v51 = vrot.slane %v252_v49, 2 }
  0xf9   :  { %v254_v53 = vadd.f32 %v253_v51, %v252_v49  ;;  %v242_v54 = vrot.slane %v241_v50, 1 }
  0xfb   :  { %v255_v55 = vrot.slane %v254_v53, 1  ;;  %v243_v57 = vadd.f32 %v242_v54, %v241_v50 }
  0xfd   :  { %v256_v56 = vadd.f32 %v255_v55, %v254_v53 }
  0xff   :  { %v261_v58 = vsel %vm260_vm0, %v256_v56, 0.0 }
 0x100   :  { %v262_v59 = vsel %vm259_vm1, %v243_v57, %v261_v58 }
 0x101   :  { %263 = vst [vmem:[%s469_s3] sm:$0xff] %v262_v59 }

// kernel: video_reconstructor_forward.27
= control target key start
LH: loop header
LB: loop body
LE: loop exit
PB: predicated region body
PF: predicated region fallthrough
CT: control target
= control target key end

     0   :  { %s687_s9 = smov 0   ;;  %s689_s10 = smov 0   ;;  %s746_s0 = inlined_call_operand.vmem [shape: bf16[4,32,256], index: 0, kind: input, shape index: {}]   ;;  %s747_s1 = inlined_call_operand.vmem [shape: bf16[4,256,128], index: 1, kind: input, shape index: {}]   ;;  %s748_s2 = inlined_call_operand.vmem [shape: f32[4,8,128], index: 2, kind: output, shape index: {}]  }
   0x1   :  { %s691_s11 = smov 0  }
   0x2 LB: > { %s24_s12 = sadd.s32 1, %s666_s10  ;;  %p528_p0 = scmp.ge.s32.totalorder %s670_s11, 1  ;;  %s670_s11 = sphi %s691_s11, %s12_s11   ;;  %s666_s10 = sphi %s689_s10, %s750_s10   ;;  %s662_s9 = sphi %s687_s9, %s749_s9  }
   0x3   : > { %p26_p1 = scmp.ge.s32.totalorder %s24_s12, 4  ;;  %p144_p2 = scmp.lt.s32.totalorder %s670_s11, 5 }
   0x5   : > { %s752_s12 = smov (%p26_p1, %s24_s12), 0  ;;  %p145_p3 = pnand %p528_p0, %p144_p2 }
   0x6   : > { %p179_p4 = scmp.lt.s32.totalorder (!%p145_p3), %s662_s9, 3 }
   0x7   : > { %148 = sbr.rel (%p145_p3) target bundleno = 272 (0x110), region = 28 }
   0xc   : > { %s754_s9 = smov (!%p179_p4, %s662_s9), 3  ;;  %v425_v45 = vlaneseq }
   0xd   : > { %s557_s13 = sshll.u32 %s754_s9, 7  ;;  %s556_s17 = sshll.u32 %s754_s9, 5 }
   0xe   : > { %s711_s16 = scalar_lea.vmem %s747_s1, %s557_s13  ;;  %s187_s20 = scalar_lea.vmem %s746_s0, %s556_s17  ;;  %v426_v50 = vshrl.u32 %v425_v45, 7 }
   0xf   : > { %v626_v0 = vld [vmem:[%s711_s16 + $0x78] sm:$0xff]   ;;  %v628_v2 = vld [vmem:[%s711_s16 + $0x70] sm:$0xff]   ;;  %v630_v4 = vld [vmem:[%s711_s16 + $0x68] sm:$0xff]   ;;  %s533_s21 = sshll.u32 %s754_s9, 3 }
  0x10   : > { %v627_v1 = vld [vmem:[%s711_s16 + $0x38] sm:$0xff]   ;;  %558 = vmatprep.subr.bf16.mxu0 %v626_v0  ;;  %586 = vmatprep.subr.bf16.mxu1 %v626_v0  ;;  %v629_v3 = vld [vmem:[%s711_s16 + $0x30] sm:$0xff]   ;;  %v631_v5 = vld [vmem:[%s711_s16 + $0x28] sm:$0xff]   ;;  %vm428_vm0 = vcmp.eq.s32.totalorder %v426_v50, 1  ;;  %vm427_vm1 = vcmp.eq.s32.totalorder %v426_v50, 0  ;;  %s200_s24 = scalar_lea.vmem %s748_s2, %s533_s21 }
  0x11   : > { %559 = vmatpush3.bf16.msra.mxu0 %v627_v1  ;;  %594 = vmatpush3.bf16.msra.mxu1 %v627_v1  ;;  %v632_v6 = vld [vmem:[%s711_s16 + $0x60] sm:$0xff]   ;;  %v634_v8 = vld [vmem:[%s711_s16 + $0x58] sm:$0xff]   ;;  %v636_v10 = vld [vmem:[%s711_s16 + $0x50] sm:$0xff]  }
  0x12   : > { %560 = vmatprep.subr.bf16.mxu0 %v628_v2  ;;  %587 = vmatprep.subr.bf16.mxu1 %v628_v2  ;;  %v633_v7 = vld [vmem:[%s711_s16 + $0x20] sm:$0xff]   ;;  %v635_v9 = vld [vmem:[%s711_s16 + $0x18] sm:$0xff]   ;;  %v637_v13 = vld [vmem:[%s711_s16 + $0x10] sm:$0xff]  }
  0x13   : > { %v644_v11 = vld [vmem:[%s187_s20 + $0x4] ss:$8 sps:$4 sm:$0xff]   ;;  %v647_v12 = vld [vmem:[%s187_s20 + $0x14] ss:$8 sps:$4 sm:$0xff]   ;;  %v642_v18 = vld [vmem:[%s187_s20] ss:$8 sps:$4 sm:$0xff]  }
  0x14   : > { %v638_v14 = vld [vmem:[%s711_s16 + $0x48] sm:$0xff]   ;;  %386 = vmatprep.mubr.bf16.mxu0 %v644_v11  ;;  %394 = vmatprep.mubr.bf16.mxu1 %v647_v12  ;;  %v640_v16 = vld [vmem:[%s711_s16 + $0x40] sm:$0xff]   ;;  %v645_v19 = vld [vmem:[%s187_s20 + $0x10] ss:$8 sps:$4 sm:$0xff]  }
  0x15   : > { %561 = vmatpush3.bf16.msra.mxu0 %v629_v3  ;;  %595 = vmatpush3.bf16.msra.mxu1 %v629_v3  ;;  %v639_v15 = vld [vmem:[%s711_s16 + $0x8] sm:$0xff]   ;;  %v641_v17 = vld [vmem:[%s711_s16] sm:$0xff]  }
  0x16   : > { %562 = vmatprep.subr.bf16.mxu0 %v630_v4  ;;  %588 = vmatprep.subr.bf16.mxu1 %v630_v4 }
  0x19   : > { %563 = vmatpush3.bf16.msra.mxu0 %v631_v5  ;;  %596 = vmatpush3.bf16.msra.mxu1 %v631_v5 }
  0x1a   : > { %564 = vmatprep.subr.bf16.mxu0 %v632_v6  ;;  %589 = vmatprep.subr.bf16.mxu1 %v632_v6 }
  0x1d   : > { %565 = vmatpush3.bf16.msra.mxu0 %v633_v7  ;;  %597 = vmatpush3.bf16.msra.mxu1 %v633_v7 }
  0x1e   : > { %566 = vmatprep.subr.bf16.mxu0 %v634_v8  ;;  %590 = vmatprep.subr.bf16.mxu1 %v634_v8 }
  0x21   : > { %567 = vmatpush3.bf16.msra.mxu0 %v635_v9  ;;  %598 = vmatpush3.bf16.msra.mxu1 %v635_v9 }
  0x22   : > { %568 = vmatprep.subr.bf16.mxu0 %v636_v10  ;;  %591 = vmatprep.subr.bf16.mxu1 %v636_v10 }
  0x25   : > { %569 = vmatpush3.bf16.msra.mxu0 %v637_v13  ;;  %599 = vmatpush3.bf16.msra.mxu1 %v637_v13 }
  0x26   : > { %570 = vmatprep.subr.bf16.mxu0 %v638_v14  ;;  %592 = vmatprep.subr.bf16.mxu1 %v638_v14 }
  0x29   : > { %571 = vmatpush3.bf16.msra.mxu0 %v639_v15  ;;  %600 = vmatpush3.bf16.msra.mxu1 %v639_v15 }
  0x2a   : > { %572 = vmatprep.subr.bf16.mxu0 %v640_v16  ;;  %593 = vmatprep.subr.bf16.mxu1 %v640_v16 }
  0x2d   : > { %573 = vmatpush3.bf16.msra.mxu0 %v641_v17  ;;  %601 = vmatpush3.bf16.msra.mxu1 %v641_v17 }
  0x30   : > { %387 = vmatmul.mubr.bf16.vlgmr.msra.gmra.mxu0 %v642_v18  ;;  %395 = vmatmul.mubr.bf16.vlgmr.msra.gmra.mxu1 %v645_v19 }
  0xf0   : > { %v574_v20 = vpop.f32.mrf.mxu0  ;;  %v580_v21 = vpop.f32.mrf.mxu1 }
  0xf2   : > { %v575_v22 = vpop.f32.mrf.mxu0  ;;  %v581_v23 = vpop.f32.mrf.mxu1 }
  0xf3   : > { %v576_v26 = vadd.f32 %v575_v22, %v574_v20  ;;  %v582_v29 = vadd.f32 %v581_v23, %v580_v21 }
  0xf4   : > { %v577_v24 = vpop.f32.mrf.mxu0  ;;  %v583_v25 = vpop.f32.mrf.mxu1 }
  0xf5   : > { %v412_v31 = vmul.f32 %v576_v26, %v576_v26  ;;  %v414_v35 = vmul.f32 %v582_v29, %v582_v29 }
  0xf6   : > { %v578_v27 = vpop.f32.mrf.mxu0  ;;  %v584_v28 = vpop.f32.mrf.mxu1 }
  0xf7   : > { %v579_v30 = vadd.f32 %v578_v27, %v577_v24  ;;  %v585_v34 = vadd.f32 %v584_v28, %v583_v25 }
  0xf9   : > { %v403_v32 = vadd.f32 %v579_v30, %v576_v26  ;;  %v413_v33 = vmul.f32 %v579_v30, %v579_v30  ;;  %v415_v39 = vmul.f32 %v585_v34, %v585_v34 }
  0xfb   : > { %v416_v36 = vadd.f32 %v413_v33, %v412_v31  ;;  %v404_v37 = vadd.f32 %v582_v29, %v403_v32 }
  0xfd   : > { %v405_v38 = vadd.f32 %v585_v34, %v404_v37  ;;  %v417_v40 = vadd.f32 %v416_v36, %v414_v35 }
  0xff   : > { %v406_v41 = vrot.slane %v405_v38, 4  ;;  %v418_v42 = vadd.f32 %v417_v40, %v415_v39 }
 0x101   : > { %v407_v43 = vadd.f32 %v406_v41, %v405_v38  ;;  %v419_v44 = vrot.slane %v418_v42, 4 }
 0x103   : > { %v408_v46 = vrot.slane %v407_v43, 2  ;;  %v420_v47 = vadd.f32 %v419_v44, %v418_v42 }
 0x105   : > { %v409_v48 = vadd.f32 %v408_v46, %v407_v43  ;;  %v421_v49 = vrot.slane %v420_v47, 2 }
 0x107   : > { %v422_v51 = vadd.f32 %v421_v49, %v420_v47  ;;  %v410_v52 = vrot.slane %v409_v48, 1 }
 0x109   : > { %v423_v53 = vrot.slane %v422_v51, 1  ;;  %v411_v55 = vadd.f32 %v410_v52, %v409_v48 }
 0x10b   : > { %v424_v54 = vadd.f32 %v423_v53, %v422_v51 }
 0x10d   : > { %v429_v56 = vsel %vm428_vm0, %v424_v54, 0.0 }
 0x10e   : > { %v430_v57 = vsel %vm427_vm1, %v411_v55, %v429_v56 }
 0x10f   : > { %431 = vst [vmem:[%s200_s24] sm:$0xff] %v430_v57 }
 0x110 PF: > { %s12_s11 = sadd.s32 1, %s670_s11   ;;  %s749_s9 = smov %s666_s10 }
 0x111   : > { %p9_p5 = scmp.ge.s32.totalorder %s12_s11, 6   ;;  %s750_s10 = smov %s752_s12 }
 0x113   :  { %11 = sbr.rel (!%p9_p5) target bundleno = 2 (0x2), region = 61 }

// kernel: video_reconstructor_forward.28
= control target key start
LH: loop header
LB: loop body
LE: loop exit
PB: predicated region body
PF: predicated region fallthrough
CT: control target
= control target key end

     0   :  { %s806_s15 = smov 0   ;;  %s808_s16 = smov 0   ;;  %s871_s0 = inlined_call_operand.vmem [shape: bf16[4,32,256], index: 0, kind: input, shape index: {}]   ;;  %s872_s1 = inlined_call_operand.vmem [shape: bf16[4,256,128], index: 1, kind: input, shape index: {}]   ;;  %s873_s2 = inlined_call_operand.vmem [shape: f32[1,128], index: 2, kind: input, shape index: {}]   ;;  %s874_s3 = inlined_call_operand.vmem [shape: f32[1,128], index: 3, kind: input, shape index: {}]   ;;  %s875_s4 = inlined_call_operand.vmem [shape: bf16[4,32,128], index: 4, kind: output, shape index: {}]  }
   0x1   :  { %s810_s17 = smov 0  }
   0x2 LB: > { %s26_s18 = sadd.s32 1, %s775_s16  ;;  %p614_p0 = scmp.ge.s32.totalorder %s779_s17, 1  ;;  %s779_s17 = sphi %s810_s17, %s14_s17   ;;  %s775_s16 = sphi %s808_s16, %s877_s16   ;;  %s771_s15 = sphi %s806_s15, %s876_s15  }
   0x3   : > { %p28_p1 = scmp.ge.s32.totalorder %s26_s18, 4  ;;  %p194_p2 = scmp.lt.s32.totalorder %s779_s17, 5 }
   0x5   : > { %s879_s18 = smov (%p28_p1, %s26_s18), 0  ;;  %p195_p3 = pnand %p614_p0, %p194_p2 }
   0x6   : > { %p235_p4 = scmp.lt.s32.totalorder (!%p195_p3), %s771_s15, 3 }
   0x7   : > { %198 = sbr.rel (%p195_p3) target bundleno = 258 (0x102), region = 36 }
   0xc   : > { %s881_s15 = smov (!%p235_p4, %s771_s15), 3  ;;  %v641_v23 = vld [vmem:[%s873_s2] ss:$0 sm:$0xff] }
   0xd   : > { %s650_s19 = sshll.u32 %s881_s15, 7  ;;  %s649_s23 = sshll.u32 %s881_s15, 5  ;;  %v642_v31 = vld [vmem:[%s874_s3] ss:$0 sm:$0xff] }
   0xe   : > { %s830_s22 = scalar_lea.vmem %s872_s1, %s650_s19  ;;  %s243_s26 = scalar_lea.vmem %s871_s0, %s649_s23 }
   0xf   : > { %v735_v0 = vld [vmem:[%s830_s22 + $0x78] sm:$0xff]   ;;  %v737_v2 = vld [vmem:[%s830_s22 + $0x70] sm:$0xff]   ;;  %v739_v4 = vld [vmem:[%s830_s22 + $0x68] sm:$0xff]   ;;  %s651_s5 = sshll.u32 %s881_s15, 4 }
  0x10   : > { %v736_v1 = vld [vmem:[%s830_s22 + $0x38] sm:$0xff]   ;;  %667 = vmatprep.subr.bf16.mxu0 %v735_v0  ;;  %695 = vmatprep.subr.bf16.mxu1 %v735_v0  ;;  %v738_v3 = vld [vmem:[%s830_s22 + $0x30] sm:$0xff]   ;;  %v740_v5 = vld [vmem:[%s830_s22 + $0x28] sm:$0xff]   ;;  %s258_s8 = scalar_lea.vmem %s875_s4, %s651_s5 }
  0x11   : > { %668 = vmatpush3.bf16.msra.mxu0 %v736_v1  ;;  %703 = vmatpush3.bf16.msra.mxu1 %v736_v1  ;;  %v741_v6 = vld [vmem:[%s830_s22 + $0x60] sm:$0xff]   ;;  %v743_v8 = vld [vmem:[%s830_s22 + $0x58] sm:$0xff]   ;;  %v745_v10 = vld [vmem:[%s830_s22 + $0x50] sm:$0xff]  }
  0x12   : > { %669 = vmatprep.subr.bf16.mxu0 %v737_v2  ;;  %696 = vmatprep.subr.bf16.mxu1 %v737_v2  ;;  %v742_v7 = vld [vmem:[%s830_s22 + $0x20] sm:$0xff]   ;;  %v744_v9 = vld [vmem:[%s830_s22 + $0x18] sm:$0xff]   ;;  %v746_v13 = vld [vmem:[%s830_s22 + $0x10] sm:$0xff]  }
  0x13   : > { %v753_v11 = vld [vmem:[%s243_s26 + $0x4] ss:$8 sps:$4 sm:$0xff]   ;;  %v756_v12 = vld [vmem:[%s243_s26 + $0x14] ss:$8 sps:$4 sm:$0xff]   ;;  %v751_v18 = vld [vmem:[%s243_s26] ss:$8 sps:$4 sm:$0xff]  }
  0x14   : > { %v747_v14 = vld [vmem:[%s830_s22 + $0x48] sm:$0xff]   ;;  %445 = vmatprep.mubr.bf16.mxu0 %v753_v11  ;;  %453 = vmatprep.mubr.bf16.mxu1 %v756_v12  ;;  %v749_v16 = vld [vmem:[%s830_s22 + $0x40] sm:$0xff]   ;;  %v754_v19 = vld [vmem:[%s243_s26 + $0x10] ss:$8 sps:$4 sm:$0xff]  }
  0x15   : > { %670 = vmatpush3.bf16.msra.mxu0 %v738_v3  ;;  %704 = vmatpush3.bf16.msra.mxu1 %v738_v3  ;;  %v748_v15 = vld [vmem:[%s830_s22 + $0x8] sm:$0xff]   ;;  %v750_v17 = vld [vmem:[%s830_s22] sm:$0xff]  }
  0x16   : > { %671 = vmatprep.subr.bf16.mxu0 %v739_v4  ;;  %697 = vmatprep.subr.bf16.mxu1 %v739_v4 }
  0x19   : > { %672 = vmatpush3.bf16.msra.mxu0 %v740_v5  ;;  %705 = vmatpush3.bf16.msra.mxu1 %v740_v5 }
  0x1a   : > { %673 = vmatprep.subr.bf16.mxu0 %v741_v6  ;;  %698 = vmatprep.subr.bf16.mxu1 %v741_v6 }
  0x1d   : > { %674 = vmatpush3.bf16.msra.mxu0 %v742_v7  ;;  %706 = vmatpush3.bf16.msra.mxu1 %v742_v7 }
  0x1e   : > { %675 = vmatprep.subr.bf16.mxu0 %v743_v8  ;;  %699 = vmatprep.subr.bf16.mxu1 %v743_v8 }
  0x21   : > { %676 = vmatpush3.bf16.msra.mxu0 %v744_v9  ;;  %707 = vmatpush3.bf16.msra.mxu1 %v744_v9 }
  0x22   : > { %677 = vmatprep.subr.bf16.mxu0 %v745_v10  ;;  %700 = vmatprep.subr.bf16.mxu1 %v745_v10 }
  0x25   : > { %678 = vmatpush3.bf16.msra.mxu0 %v746_v13  ;;  %708 = vmatpush3.bf16.msra.mxu1 %v746_v13 }
  0x26   : > { %679 = vmatprep.subr.bf16.mxu0 %v747_v14  ;;  %701 = vmatprep.subr.bf16.mxu1 %v747_v14 }
  0x29   : > { %680 = vmatpush3.bf16.msra.mxu0 %v748_v15  ;;  %709 = vmatpush3.bf16.msra.mxu1 %v748_v15 }
  0x2a   : > { %681 = vmatprep.subr.bf16.mxu0 %v749_v16  ;;  %702 = vmatprep.subr.bf16.mxu1 %v749_v16 }
  0x2d   : > { %682 = vmatpush3.bf16.msra.mxu0 %v750_v17  ;;  %710 = vmatpush3.bf16.msra.mxu1 %v750_v17 }
  0x30   : > { %446 = vmatmul.mubr.bf16.vlgmr.msra.gmra.mxu0 %v751_v18  ;;  %454 = vmatmul.mubr.bf16.vlgmr.msra.gmra.mxu1 %v754_v19 }
  0xf0   : > { %v683_v20 = vpop.f32.mrf.mxu0  ;;  %v689_v21 = vpop.f32.mrf.mxu1 }
  0xf2   : > { %v684_v22 = vpop.f32.mrf.mxu0  ;;  %v690_v24 = vpop.f32.mrf.mxu1 }
  0xf3   : > { %v685_v25 = vadd.f32 %v684_v22, %v683_v20  ;;  %v691_v26 = vadd.f32 %v690_v24, %v689_v21 }
  0xf4   : > { %v686_v27 = vpop.f32.mrf.mxu0  ;;  %v692_v28 = vpop.f32.mrf.mxu1 }
  0xf5   : > { %v469_v29 = vmul.f32 %v685_v25, %v641_v23  ;;  %v471_v30 = vmul.f32 %v691_v26, %v641_v23 }
  0xf6   : > { %v687_v32 = vpop.f32.mrf.mxu0  ;;  %v693_v33 = vpop.f32.mrf.mxu1 }
  0xf7   : > { %v688_v34 = vadd.f32 %v687_v32, %v686_v27  ;;  %v694_v35 = vadd.f32 %v693_v33, %v692_v28  ;;  %v480_v36 = vadd.f32 %v642_v31, %v469_v29  ;;  %v482_v37 = vadd.f32 %v642_v31, %v471_v30 }
  0xf9   : > { %v470_v38 = vmul.f32 %v688_v34, %v641_v23  ;;  %v472_v39 = vmul.f32 %v694_v35, %v641_v23  ;;  %v484_v42 = vmax.f32 %v480_v36, 0.0  ;;  %v486_v43 = vmax.f32 %v482_v37, 0.0 }
  0xfb   : > { %v481_v40 = vadd.f32 %v642_v31, %v470_v38  ;;  %v483_v41 = vadd.f32 %v642_v31, %v472_v39 }
  0xfd   : > { %v485_v44 = vmax.f32 %v481_v40, 0.0  ;;  %v487_v45 = vmax.f32 %v483_v41, 0.0 }
  0xff   : > { %v659_v46 = vpack.c.bf16 %v485_v44, %v484_v42  ;;  %v664_v47 = vpack.c.bf16 %v487_v45, %v486_v43 }
 0x101   : > { %660 = vst [vmem:[%s258_s8] sm:$0xff] %v659_v46   ;;  %666 = vst [vmem:[%s258_s8 + $0x8] sm:$0xff] %v664_v47  }
 0x102 PF: > { %s14_s17 = sadd.s32 1, %s779_s17   ;;  %s876_s15 = smov %s775_s16 }
 0x103   : > { %p11_p5 = scmp.ge.s32.totalorder %s14_s17, 6   ;;  %s877_s16 = smov %s879_s18 }
 0x105   :  { %13 = sbr.rel (!%p11_p5) target bundleno = 2 (0x2), region = 69 }

// kernel: video_reconstructor_forward.29
= control target key start
LH: loop header
LB: loop body
LE: loop exit
PB: predicated region body
PF: predicated region fallthrough
CT: control target
= control target key end

     0   :  { %s751_s9 = smov 0   ;;  %s753_s10 = smov 0   ;;  %s811_s0 = inlined_call_operand.vmem [shape: bf16[4,128,128], index: 0, kind: input, shape index: {}]   ;;  %s812_s1 = inlined_call_operand.vmem [shape: bf16[4,128,128], index: 1, kind: input, shape index: {}]   ;;  %s813_s2 = inlined_call_operand.vmem [shape: f32[4,8,128], index: 2, kind: output, shape index: {}]  }
   0x1   :  { %s755_s11 = smov 0  }
   0x2 LB: > { %s24_s12 = sadd.s32 1, %s730_s10  ;;  %p582_p0 = scmp.ge.s32.totalorder %s734_s11, 1  ;;  %s734_s11 = sphi %s755_s11, %s12_s11   ;;  %s730_s10 = sphi %s753_s10, %s815_s10   ;;  %s726_s9 = sphi %s751_s9, %s814_s9  }
   0x3   : > { %p26_p1 = scmp.ge.s32.totalorder %s24_s12, 4  ;;  %p143_p2 = scmp.lt.s32.totalorder %s734_s11, 5 }
   0x5   : > { %s817_s12 = smov (%p26_p1, %s24_s12), 0  ;;  %p144_p3 = pnand %p582_p0, %p143_p2 }
   0x6   : > { %p177_p4 = scmp.lt.s32.totalorder (!%p144_p3), %s726_s9, 3 }
   0x7   : > { %147 = sbr.rel (%p144_p3) target bundleno = 294 (0x126), region = 28 }
   0xc   : > { %s819_s9 = smov (!%p177_p4, %s726_s9), 3 }
   0xd   : > { %s606_s13 = sshll.u32 %s819_s9, 6  ;;  %s587_s20 = sshll.u32 %s819_s9, 3 }
   0xe   : > { %s775_s16 = scalar_lea.vmem %s812_s1, %s606_s13  ;;  %s783_s19 = scalar_lea.vmem %s811_s0, %s606_s13 }
   0xf   : > { %v696_v0 = vld [vmem:[%s775_s16 + $0x38] sm:$0xff]   ;;  %v697_v1 = vld [vmem:[%s775_s16 + $0x30] sm:$0xff]   ;;  %v698_v2 = vld [vmem:[%s775_s16 + $0x28] sm:$0xff]   ;;  %s197_s23 = scalar_lea.vmem %s813_s2, %s587_s20 }
  0x10   : > { %624 = vmatprep.subr.bf16.mxu0 %v696_v0  ;;  %656 = vmatprep.subr.bf16.mxu1 %v696_v0  ;;  %v699_v3 = vld [vmem:[%s775_s16 + $0x20] sm:$0xff]   ;;  %v700_v5 = vld [vmem:[%s775_s16 + $0x18] sm:$0xff]   ;;  %v701_v7 = vld [vmem:[%s775_s16 + $0x10] sm:$0xff]  }
  0x11   : > { %625 = vmatpush3.bf16.msra.mxu0 %v696_v0  ;;  %664 = vmatpush3.bf16.msra.mxu1 %v696_v0  ;;  %v704_v4 = vld [vmem:[%s783_s19] sm:$0xff]   ;;  %v702_v8 = vld [vmem:[%s775_s16 + $0x8] sm:$0xff]   ;;  %v706_v12 = vld [vmem:[%s783_s19 + $0x10] sm:$0xff]  }
  0x12   : > { %626 = vmatprep.subr.bf16.mxu0 %v697_v1  ;;  %657 = vmatprep.subr.bf16.mxu1 %v697_v1  ;;  %v708_v6 = vld [vmem:[%s783_s19 + $0x20] sm:$0xff]   ;;  %v705_v10 = vld [vmem:[%s783_s19 + $0x8] sm:$0xff]   ;;  %v710_v13 = vld [vmem:[%s783_s19 + $0x30] sm:$0xff]  }
  0x13   : > { %640 = vmatprep.mubr.bf16.mxu0 %v704_v4  ;;  %648 = vmatprep.mubr.bf16.mxu1 %v708_v6  ;;  %v703_v9 = vld [vmem:[%s775_s16] sm:$0xff]   ;;  %v709_v11 = vld [vmem:[%s783_s19 + $0x28] sm:$0xff]   ;;  %v707_v14 = vld [vmem:[%s783_s19 + $0x18] sm:$0xff]  }
  0x14   : > { %v711_v15 = vld [vmem:[%s783_s19 + $0x38] sm:$0xff]  }
  0x15   : > { %627 = vmatpush3.bf16.msra.mxu0 %v697_v1  ;;  %665 = vmatpush3.bf16.msra.mxu1 %v697_v1 }
  0x16   : > { %628 = vmatprep.subr.bf16.mxu0 %v698_v2  ;;  %658 = vmatprep.subr.bf16.mxu1 %v698_v2 }
  0x19   : > { %629 = vmatpush3.bf16.msra.mxu0 %v698_v2  ;;  %666 = vmatpush3.bf16.msra.mxu1 %v698_v2 }
  0x1a   : > { %630 = vmatprep.subr.bf16.mxu0 %v699_v3  ;;  %659 = vmatprep.subr.bf16.mxu1 %v699_v3 }
  0x1d   : > { %631 = vmatpush3.bf16.msra.mxu0 %v699_v3  ;;  %667 = vmatpush3.bf16.msra.mxu1 %v699_v3 }
  0x1e   : > { %632 = vmatprep.subr.bf16.mxu0 %v700_v5  ;;  %660 = vmatprep.subr.bf16.mxu1 %v700_v5 }
  0x21   : > { %633 = vmatpush3.bf16.msra.mxu0 %v700_v5  ;;  %668 = vmatpush3.bf16.msra.mxu1 %v700_v5 }
  0x22   : > { %634 = vmatprep.subr.bf16.mxu0 %v701_v7  ;;  %661 = vmatprep.subr.bf16.mxu1 %v701_v7 }
  0x25   : > { %635 = vmatpush3.bf16.msra.mxu0 %v701_v7  ;;  %669 = vmatpush3.bf16.msra.mxu1 %v701_v7 }
  0x26   : > { %636 = vmatprep.subr.bf16.mxu0 %v702_v8  ;;  %662 = vmatprep.subr.bf16.mxu1 %v702_v8 }
  0x29   : > { %637 = vmatpush3.bf16.msra.mxu0 %v702_v8  ;;  %670 = vmatpush3.bf16.msra.mxu1 %v702_v8 }
  0x2a   : > { %638 = vmatprep.subr.bf16.mxu0 %v703_v9  ;;  %663 = vmatprep.subr.bf16.mxu1 %v703_v9 }
  0x2d   : > { %639 = vmatpush3.bf16.msra.mxu0 %v703_v9  ;;  %671 = vmatpush3.bf16.msra.mxu1 %v703_v9 }
  0x30   : > { %641 = vmatmul.mubr.bf16.vlgmr.msra.gmra.mxu0 %v705_v10  ;;  %649 = vmatmul.mubr.bf16.vlgmr.msra.gmra.mxu1 %v709_v11 }
  0x31   : > { %644 = vmatprep.mubr.bf16.mxu0 %v706_v12  ;;  %652 = vmatprep.mubr.bf16.mxu1 %v710_v13 }
  0x38   : > { %645 = vmatmul.mubr.bf16.gmra.mxu0 %v707_v14  ;;  %653 = vmatmul.mubr.bf16.gmra.mxu1 %v711_v15 }
  0xf0   : > { %v642_v16 = vpop.f32.mrf.mxu0  ;;  %v650_v17 = vpop.f32.mrf.mxu1 }
  0xf1   : > { %v447_v27 = vmul.f32 %v642_v16, %v642_v16  ;;  %v455_v58 = vmul.f32 %v650_v17, %v650_v17 }
  0xf2   : > { %v361_v18 = vpop.f32.mrf.mxu0  ;;  %v393_v20 = vpop.f32.mrf.mxu1 }
  0xf3   : > { %v445_v22 = vmul.f32 %v361_v18, %v361_v18  ;;  %v453_v51 = vmul.f32 %v393_v20, %v393_v20 }
  0xf4   : > { %v643_v19 = vpop.f32.mrf.mxu0  ;;  %v651_v26 = vpop.f32.mrf.mxu1 }
  0xf5   : > { %v448_v31 = vmul.f32 %v643_v19, %v643_v19  ;;  %v456_v61 = vmul.f32 %v651_v26, %v651_v26 }
  0xf6   : > { %v364_v21 = vpop.f32.mrf.mxu0  ;;  %v396_v35 = vpop.f32.mrf.mxu1 }
  0xf7   : > { %v424_v23 = vadd.f32 %v364_v21, %v361_v18  ;;  %v446_v24 = vmul.f32 %v364_v21, %v364_v21  ;;  %v454_v55 = vmul.f32 %v396_v35, %v396_v35 }
  0xf8   : > { %v646_v25 = vpop.f32.mrf.mxu0  ;;  %v654_v43 = vpop.f32.mrf.mxu1 }
  0xf9   : > { %v425_v28 = vadd.f32 %v642_v16, %v424_v23  ;;  %v461_v29 = vadd.f32 %v446_v24, %v445_v22  ;;  %v451_v44 = vmul.f32 %v646_v25, %v646_v25  ;;  %v459_v7 = vmul.f32 %v654_v43, %v654_v43 }
  0xfa   : > { %v377_v30 = vpop.f32.mrf.mxu0  ;;  %v409_v50 = vpop.f32.mrf.mxu1 }
  0xfb   : > { %v462_v32 = vadd.f32 %v461_v29, %v447_v27  ;;  %v426_v33 = vadd.f32 %v643_v19, %v425_v28  ;;  %v449_v37 = vmul.f32 %v377_v30, %v377_v30  ;;  %v457_v2 = vmul.f32 %v409_v50, %v409_v50 }
  0xfc   : > { %v647_v34 = vpop.f32.mrf.mxu0  ;;  %v655_v57 = vpop.f32.mrf.mxu1 }
  0xfd   : > { %v427_v36 = vadd.f32 %v426_v33, %v377_v30  ;;  %v463_v38 = vadd.f32 %v462_v32, %v448_v31  ;;  %v452_v47 = vmul.f32 %v647_v34, %v647_v34  ;;  %v460_v10 = vmul.f32 %v655_v57, %v655_v57 }
  0xfe   : > { %v380_v39 = vpop.f32.mrf.mxu0  ;;  %v412_v0 = vpop.f32.mrf.mxu1 }
  0xff   : > { %v464_v40 = vadd.f32 %v463_v38, %v449_v37  ;;  %v428_v41 = vadd.f32 %v427_v36, %v380_v39  ;;  %v450_v42 = vmul.f32 %v380_v39, %v380_v39  ;;  %v458_v6 = vmul.f32 %v412_v0, %v412_v0 }
 0x101   : > { %v429_v45 = vadd.f32 %v646_v25, %v428_v41  ;;  %v465_v46 = vadd.f32 %v464_v40, %v450_v42 }
 0x103   : > { %v430_v48 = vadd.f32 %v647_v34, %v429_v45  ;;  %v466_v49 = vadd.f32 %v465_v46, %v451_v44 }
 0x105   : > { %v467_v52 = vadd.f32 %v466_v49, %v452_v47  ;;  %v431_v53 = vadd.f32 %v430_v48, %v393_v20 }
 0x107   : > { %v432_v54 = vadd.f32 %v431_v53, %v396_v35  ;;  %v468_v56 = vadd.f32 %v467_v52, %v453_v51 }
 0x109   : > { %v433_v59 = vadd.f32 %v650_v17, %v432_v54  ;;  %v469_v60 = vadd.f32 %v468_v56, %v454_v55  ;;  %v482_v17 = vlaneseq }
 0x10b   : > { %v470_v62 = vadd.f32 %v469_v60, %v455_v58  ;;  %v434_v63 = vadd.f32 %v651_v26, %v433_v59  ;;  %v483_v22 = vshrl.u32 %v482_v17, 7 }
 0x10d   : > { %v435_v1 = vadd.f32 %v434_v63, %v409_v50  ;;  %v471_v3 = vadd.f32 %v470_v62, %v456_v61  ;;  %vm485_vm0 = vcmp.eq.s32.totalorder %v483_v22, 1  ;;  %vm484_vm1 = vcmp.eq.s32.totalorder %v483_v22, 0 }
 0x10f   : > { %v472_v4 = vadd.f32 %v471_v3, %v457_v2  ;;  %v436_v5 = vadd.f32 %v435_v1, %v412_v0 }
 0x111   : > { %v437_v8 = vadd.f32 %v654_v43, %v436_v5  ;;  %v473_v9 = vadd.f32 %v472_v4, %v458_v6 }
 0x113   : > { %v438_v11 = vadd.f32 %v655_v57, %v437_v8  ;;  %v474_v12 = vadd.f32 %v473_v9, %v459_v7 }
 0x115   : > { %v439_v13 = vrot.slane %v438_v11, 4  ;;  %v475_v14 = vadd.f32 %v474_v12, %v460_v10 }
 0x117   : > { %v440_v15 = vadd.f32 %v439_v13, %v438_v11  ;;  %v476_v16 = vrot.slane %v475_v14, 4 }
 0x119   : > { %v441_v18 = vrot.slane %v440_v15, 2  ;;  %v477_v19 = vadd.f32 %v476_v16, %v475_v14 }
 0x11b   : > { %v442_v20 = vadd.f32 %v441_v18, %v440_v15  ;;  %v478_v21 = vrot.slane %v477_v19, 2 }
 0x11d   : > { %v479_v23 = vadd.f32 %v478_v21, %v477_v19  ;;  %v443_v24 = vrot.slane %v442_v20, 1 }
 0x11f   : > { %v480_v25 = vrot.slane %v479_v23, 1  ;;  %v444_v27 = vadd.f32 %v443_v24, %v442_v20 }
 0x121   : > { %v481_v26 = vadd.f32 %v480_v25, %v479_v23 }
 0x123   : > { %v486_v28 = vsel %vm485_vm0, %v481_v26, 0.0 }
 0x124   : > { %v487_v29 = vsel %vm484_vm1, %v444_v27, %v486_v28 }
 0x125   : > { %488 = vst [vmem:[%s197_s23] sm:$0xff] %v487_v29 }
 0x126 PF: > { %s12_s11 = sadd.s32 1, %s734_s11   ;;  %s814_s9 = smov %s730_s10 }
 0x127   : > { %p9_p5 = scmp.ge.s32.totalorder %s12_s11, 6   ;;  %s815_s10 = smov %s817_s12 }
 0x129   :  { %11 = sbr.rel (!%p9_p5) target bundleno = 2 (0x2), region = 61 }

// kernel: video_reconstructor_forward.30
= control target key start
LH: loop header
LB: loop body
LE: loop exit
PB: predicated region body
PF: predicated region fallthrough
CT: control target
= control target key end

     0   :  { %s990_s15 = smov 0   ;;  %s992_s16 = smov 0   ;;  %s1067_s0 = inlined_call_operand.vmem [shape: bf16[4,128,128], index: 0, kind: input, shape index: {}]   ;;  %s1068_s1 = inlined_call_operand.vmem [shape: bf16[4,128,128], index: 1, kind: input, shape index: {}]   ;;  %s1069_s2 = inlined_call_operand.vmem [shape: f32[1,128], index: 2, kind: input, shape index: {}]   ;;  %s1070_s3 = inlined_call_operand.vmem [shape: f32[1,128], index: 3, kind: input, shape index: {}]   ;;  %s1071_s4 = inlined_call_operand.vmem [shape: bf16[4,128,128], index: 4, kind: output, shape index: {}]  }
   0x1   :  { %s994_s17 = smov 0  }
   0x2 LB: > { %s26_s18 = sadd.s32 1, %s959_s16  ;;  %p728_p0 = scmp.ge.s32.totalorder %s963_s17, 1  ;;  %s963_s17 = sphi %s994_s17, %s14_s17   ;;  %s959_s16 = sphi %s992_s16, %s1073_s16   ;;  %s955_s15 = sphi %s990_s15, %s1072_s15  }
   0x3   : > { %p28_p1 = scmp.ge.s32.totalorder %s26_s18, 4  ;;  %p193_p2 = scmp.lt.s32.totalorder %s963_s17, 5 }
   0x5   : > { %s1075_s18 = smov (%p28_p1, %s26_s18), 0  ;;  %p194_p3 = pnand %p728_p0, %p193_p2 }
   0x6   : > { %p233_p4 = scmp.lt.s32.totalorder (!%p194_p3), %s955_s15, 3 }
   0x7   : > { %197 = sbr.rel (%p194_p3) target bundleno = 264 (0x108), region = 36 }
   0xc   : > { %s1077_s15 = smov (!%p233_p4, %s955_s15), 3  ;;  %v751_v16 = vld [vmem:[%s1069_s2] ss:$0 sm:$0xff] }
   0xd   : > { %s1008_s19 = sshll.u32 %s1077_s15, 6  ;;  %v752_v21 = vld [vmem:[%s1070_s3] ss:$0 sm:$0xff] }
   0xe   : > { %s1014_s22 = scalar_lea.vmem %s1068_s1, %s1008_s19  ;;  %s1023_s25 = scalar_lea.vmem %s1067_s0, %s1008_s19 }
   0xf   : > { %v925_v0 = vld [vmem:[%s1014_s22 + $0x38] sm:$0xff]   ;;  %v926_v1 = vld [vmem:[%s1014_s22 + $0x30] sm:$0xff]   ;;  %v927_v2 = vld [vmem:[%s1014_s22 + $0x28] sm:$0xff]   ;;  %s1048_s6 = scalar_lea.vmem %s1071_s4, %s1008_s19 }
  0x10   : > { %853 = vmatprep.subr.bf16.mxu0 %v925_v0  ;;  %885 = vmatprep.subr.bf16.mxu1 %v925_v0  ;;  %v928_v3 = vld [vmem:[%s1014_s22 + $0x20] sm:$0xff]   ;;  %v929_v6 = vld [vmem:[%s1014_s22 + $0x18] sm:$0xff]   ;;  %v930_v7 = vld [vmem:[%s1014_s22 + $0x10] sm:$0xff]  }
  0x11   : > { %854 = vmatpush3.bf16.msra.mxu0 %v925_v0  ;;  %893 = vmatpush3.bf16.msra.mxu1 %v925_v0  ;;  %v933_v4 = vld [vmem:[%s1023_s25] sm:$0xff]   ;;  %v931_v8 = vld [vmem:[%s1014_s22 + $0x8] sm:$0xff]   ;;  %v937_v12 = vld [vmem:[%s1023_s25 + $0x10] sm:$0xff]  }
  0x12   : > { %855 = vmatprep.subr.bf16.mxu0 %v926_v1  ;;  %886 = vmatprep.subr.bf16.mxu1 %v926_v1  ;;  %v934_v5 = vld [vmem:[%s1023_s25 + $0x20] sm:$0xff]   ;;  %v935_v10 = vld [vmem:[%s1023_s25 + $0x8] sm:$0xff]   ;;  %v938_v13 = vld [vmem:[%s1023_s25 + $0x30] sm:$0xff]  }
  0x13   : > { %869 = vmatprep.mubr.bf16.mxu0 %v933_v4  ;;  %877 = vmatprep.mubr.bf16.mxu1 %v934_v5  ;;  %v932_v9 = vld [vmem:[%s1014_s22] sm:$0xff]   ;;  %v936_v11 = vld [vmem:[%s1023_s25 + $0x28] sm:$0xff]   ;;  %v939_v14 = vld [vmem:[%s1023_s25 + $0x18] sm:$0xff]  }
  0x14   : > { %v940_v15 = vld [vmem:[%s1023_s25 + $0x38] sm:$0xff]  }
  0x15   : > { %856 = vmatpush3.bf16.msra.mxu0 %v926_v1  ;;  %894 = vmatpush3.bf16.msra.mxu1 %v926_v1 }
  0x16   : > { %857 = vmatprep.subr.bf16.mxu0 %v927_v2  ;;  %887 = vmatprep.subr.bf16.mxu1 %v927_v2 }
  0x19   : > { %858 = vmatpush3.bf16.msra.mxu0 %v927_v2  ;;  %895 = vmatpush3.bf16.msra.mxu1 %v927_v2 }
  0x1a   : > { %859 = vmatprep.subr.bf16.mxu0 %v928_v3  ;;  %888 = vmatprep.subr.bf16.mxu1 %v928_v3 }
  0x1d   : > { %860 = vmatpush3.bf16.msra.mxu0 %v928_v3  ;;  %896 = vmatpush3.bf16.msra.mxu1 %v928_v3 }
  0x1e   : > { %861 = vmatprep.subr.bf16.mxu0 %v929_v6  ;;  %889 = vmatprep.subr.bf16.mxu1 %v929_v6 }
  0x21   : > { %862 = vmatpush3.bf16.msra.mxu0 %v929_v6  ;;  %897 = vmatpush3.bf16.msra.mxu1 %v929_v6 }
  0x22   : > { %863 = vmatprep.subr.bf16.mxu0 %v930_v7  ;;  %890 = vmatprep.subr.bf16.mxu1 %v930_v7 }
  0x25   : > { %864 = vmatpush3.bf16.msra.mxu0 %v930_v7  ;;  %898 = vmatpush3.bf16.msra.mxu1 %v930_v7 }
  0x26   : > { %865 = vmatprep.subr.bf16.mxu0 %v931_v8  ;;  %891 = vmatprep.subr.bf16.mxu1 %v931_v8 }
  0x29   : > { %866 = vmatpush3.bf16.msra.mxu0 %v931_v8  ;;  %899 = vmatpush3.bf16.msra.mxu1 %v931_v8 }
  0x2a   : > { %867 = vmatprep.subr.bf16.mxu0 %v932_v9  ;;  %892 = vmatprep.subr.bf16.mxu1 %v932_v9 }
  0x2d   : > { %868 = vmatpush3.bf16.msra.mxu0 %v932_v9  ;;  %900 = vmatpush3.bf16.msra.mxu1 %v932_v9 }
  0x30   : > { %870 = vmatmul.mubr.bf16.vlgmr.msra.gmra.mxu0 %v935_v10  ;;  %878 = vmatmul.mubr.bf16.vlgmr.msra.gmra.mxu1 %v936_v11 }
  0x31   : > { %873 = vmatprep.mubr.bf16.mxu0 %v937_v12  ;;  %881 = vmatprep.mubr.bf16.mxu1 %v938_v13 }
  0x38   : > { %874 = vmatmul.mubr.bf16.gmra.mxu0 %v939_v14  ;;  %882 = vmatmul.mubr.bf16.gmra.mxu1 %v940_v15 }
  0xf0   : > { %v871_v17 = vpop.f32.mrf.mxu0  ;;  %v879_v18 = vpop.f32.mrf.mxu1 }
  0xf1   : > { %v492_v19 = vmul.f32 %v871_v17, %v751_v16  ;;  %v500_v20 = vmul.f32 %v879_v18, %v751_v16 }
  0xf2   : > { %v420_v22 = vpop.f32.mrf.mxu0  ;;  %v452_v23 = vpop.f32.mrf.mxu1 }
  0xf3   : > { %v490_v24 = vmul.f32 %v751_v16, %v420_v22  ;;  %v498_v25 = vmul.f32 %v751_v16, %v452_v23  ;;  %v515_v28 = vadd.f32 %v752_v21, %v492_v19  ;;  %v523_v29 = vadd.f32 %v752_v21, %v500_v20 }
  0xf4   : > { %v872_v26 = vpop.f32.mrf.mxu0  ;;  %v880_v27 = vpop.f32.mrf.mxu1 }
  0xf5   : > { %v493_v30 = vmul.f32 %v872_v26, %v751_v16  ;;  %v501_v31 = vmul.f32 %v880_v27, %v751_v16  ;;  %v513_v34 = vadd.f32 %v752_v21, %v490_v24  ;;  %v521_v35 = vadd.f32 %v752_v21, %v498_v25 }
  0xf6   : > { %v423_v32 = vpop.f32.mrf.mxu0  ;;  %v455_v33 = vpop.f32.mrf.mxu1  ;;  %v531_v42 = vmax.f32 %v515_v28, 0.0  ;;  %v539_v43 = vmax.f32 %v523_v29, 0.0 }
  0xf7   : > { %v491_v36 = vmul.f32 %v751_v16, %v423_v32  ;;  %v499_v37 = vmul.f32 %v751_v16, %v455_v33  ;;  %v516_v38 = vadd.f32 %v752_v21, %v493_v30  ;;  %v524_v39 = vadd.f32 %v752_v21, %v501_v31 }
  0xf8   : > { %v875_v40 = vpop.f32.mrf.mxu0  ;;  %v883_v41 = vpop.f32.mrf.mxu1  ;;  %v529_v52 = vmax.f32 %v513_v34, 0.0  ;;  %v537_v53 = vmax.f32 %v521_v35, 0.0 }
  0xf9   : > { %v514_v44 = vadd.f32 %v752_v21, %v491_v36  ;;  %v522_v45 = vadd.f32 %v752_v21, %v499_v37  ;;  %v532_v46 = vmax.f32 %v516_v38, 0.0  ;;  %v540_v47 = vmax.f32 %v524_v39, 0.0 }
  0xfa   : > { %v496_v48 = vmul.f32 %v875_v40, %v751_v16  ;;  %v504_v49 = vmul.f32 %v883_v41, %v751_v16  ;;  %v436_v50 = vpop.f32.mrf.mxu0  ;;  %v468_v51 = vpop.f32.mrf.mxu1 }
  0xfb   : > { %v530_v54 = vmax.f32 %v514_v44, 0.0  ;;  %v538_v55 = vmax.f32 %v522_v45, 0.0  ;;  %v798_v56 = vpack.c.bf16 %v532_v46, %v531_v42  ;;  %v818_v57 = vpack.c.bf16 %v540_v47, %v539_v43 }
  0xfc   : > { %v494_v58 = vmul.f32 %v751_v16, %v436_v50  ;;  %v502_v59 = vmul.f32 %v751_v16, %v468_v51  ;;  %v876_v60 = vpop.f32.mrf.mxu0  ;;  %v884_v61 = vpop.f32.mrf.mxu1  ;;  %v519_v0 = vadd.f32 %v752_v21, %v496_v48  ;;  %v527_v1 = vadd.f32 %v752_v21, %v504_v49 }
  0xfd   : > { %v793_v62 = vpack.c.bf16 %v530_v54, %v529_v52  ;;  %v813_v63 = vpack.c.bf16 %v538_v55, %v537_v53  ;;  %830 = vst [vmem:[%s1048_s6 + $0x8] sm:$0xff] %v798_v56   ;;  %834 = vst [vmem:[%s1048_s6 + $0x28] sm:$0xff] %v818_v57   ;;  %v497_v2 = vmul.f32 %v876_v60, %v751_v16 }
  0xfe   : > { %v505_v3 = vmul.f32 %v884_v61, %v751_v16  ;;  %v439_v4 = vpop.f32.mrf.mxu0  ;;  %v471_v5 = vpop.f32.mrf.mxu1  ;;  %v517_v6 = vadd.f32 %v752_v21, %v494_v58  ;;  %v525_v7 = vadd.f32 %v752_v21, %v502_v59  ;;  %v535_v14 = vmax.f32 %v519_v0, 0.0 }
  0xff   : > { %794 = vst [vmem:[%s1048_s6] sm:$0xff] %v793_v62   ;;  %833 = vst [vmem:[%s1048_s6 + $0x20] sm:$0xff] %v813_v63   ;;  %v495_v8 = vmul.f32 %v751_v16, %v439_v4  ;;  %v503_v9 = vmul.f32 %v751_v16, %v471_v5  ;;  %v520_v10 = vadd.f32 %v752_v21, %v497_v2  ;;  %v543_v15 = vmax.f32 %v527_v1, 0.0 }
 0x100   : > { %v528_v11 = vadd.f32 %v752_v21, %v505_v3  ;;  %v533_v19 = vmax.f32 %v517_v6, 0.0  ;;  %v541_v20 = vmax.f32 %v525_v7, 0.0 }
 0x101   : > { %v518_v12 = vadd.f32 %v752_v21, %v495_v8  ;;  %v526_v13 = vadd.f32 %v752_v21, %v503_v9  ;;  %v536_v17 = vmax.f32 %v520_v10, 0.0 }
 0x102   : > { %v544_v18 = vmax.f32 %v528_v11, 0.0 }
 0x103   : > { %v534_v22 = vmax.f32 %v518_v12, 0.0  ;;  %v542_v23 = vmax.f32 %v526_v13, 0.0  ;;  %v808_v24 = vpack.c.bf16 %v536_v17, %v535_v14 }
 0x104   : > { %v828_v25 = vpack.c.bf16 %v544_v18, %v543_v15 }
 0x105   : > { %v803_v26 = vpack.c.bf16 %v534_v22, %v533_v19  ;;  %v823_v16 = vpack.c.bf16 %v542_v23, %v541_v20  ;;  %832 = vst [vmem:[%s1048_s6 + $0x18] sm:$0xff] %v808_v24  }
 0x106   : > { %836 = vst [vmem:[%s1048_s6 + $0x38] sm:$0xff] %v828_v25  }
 0x107   : > { %831 = vst [vmem:[%s1048_s6 + $0x10] sm:$0xff] %v803_v26   ;;  %835 = vst [vmem:[%s1048_s6 + $0x30] sm:$0xff] %v823_v16  }
 0x108 PF: > { %s14_s17 = sadd.s32 1, %s963_s17   ;;  %s1072_s15 = smov %s959_s16 }
 0x109   : > { %p11_p5 = scmp.ge.s32.totalorder %s14_s17, 6   ;;  %s1073_s16 = smov %s1075_s18 }
 0x10b   :  { %13 = sbr.rel (!%p11_p5) target bundleno = 2 (0x2), region = 69 }

// kernel: video_reconstructor_forward.32
= control target key start
LH: loop header
LB: loop body
LE: loop exit
PB: predicated region body
PF: predicated region fallthrough
CT: control target
= control target key end

     0   :  { %s1401_s15 = smov 0   ;;  %s1403_s16 = smov 0   ;;  %s1582_s0 = inlined_call_operand.vmem [shape: bf16[4,512,128], index: 0, kind: input, shape index: {}]   ;;  %s1583_s1 = inlined_call_operand.vmem [shape: bf16[4,128,128], index: 1, kind: input, shape index: {}]   ;;  %s1584_s2 = inlined_call_operand.vmem [shape: f32[1,128], index: 2, kind: input, shape index: {}]   ;;  %s1585_s3 = inlined_call_operand.vmem [shape: f32[1,128], index: 3, kind: input, shape index: {}]   ;;  %s1586_s4 = inlined_call_operand.vmem [shape: bf16[4,512,128], index: 4, kind: output, shape index: {}]  }
   0x1   :  { %s1405_s17 = smov 0   ;;  %s1407_s18 = smov 0  }
   0x2   :  { %s1409_s19 = smov 0  }
   0x3 LB: > { %s23_s20 = sadd.s32 1, %s1366_s17  ;;  %s26_s21 = sadd.s32 1, %s1370_s18  ;;  %s1374_s19 = sphi %s1409_s19, %s14_s19   ;;  %s1370_s18 = sphi %s1407_s18, %s1590_s18   ;;  %s1366_s17 = sphi %s1405_s17, %s1589_s17   ;;  %s1362_s16 = sphi %s1403_s16, %s1588_s16   ;;  %s1358_s15 = sphi %s1401_s15, %s1587_s15  }
   0x4   : > { %p24_p0 = scmp.ge.s32.totalorder %s23_s20, 2  ;;  %p987_p1 = scmp.ge.s32.totalorder %s1374_s19, 1 }
   0x5   : > { %p193_p2 = scmp.lt.s32.totalorder %s1374_s19, 9 }
   0x6   : > { %s1592_s20 = smov (%p24_p0, %s23_s20), 0  ;;  %s1594_s21 = smov (!%p24_p0, %s26_s21), %s1370_s18 }
   0x7   : > { %p194_p3 = pnand %p987_p1, %p193_p2  ;;  %p28_p4 = scmp.ge.s32.totalorder %s1594_s21, 4 }
   0x8   : > { %s988_s22 = sshll.u32 (!%p194_p3), %s1358_s15, 5  ;;  %p233_p5 = scmp.lt.s32.totalorder (!%p194_p3), %s1362_s16, 3 }
   0x9   : > { %s1596_s21 = smov (%p28_p4, %s1594_s21), 0  ;;  %197 = sbr.rel (%p194_p3) target bundleno = 282 (0x11a), region = 36 }
   0xa   : > { %p235_p6 = scmp.lt.s32.totalorder (!%p194_p3), %s988_s22, 63 }
   0xe   : > { %s1598_s16 = smov (!%p233_p5, %s1362_s16), 3  ;;  %s1600_s22 = smov (!%p235_p6, %s988_s22), 63  ;;  %v1473_v24 = vld [vmem:[%s1584_s2] ss:$0 sm:$0xff] }
   0xf   : > { %s989_s23 = sshll.u32 %s1598_s16, 6  ;;  %v1480_v29 = vld [vmem:[%s1585_s3] ss:$0 sm:$0xff] }
  0x10   : > { %s1431_s24 = sadd.s32 %s989_s23, %s1600_s22  ;;  %s1436_s27 = scalar_lea.vmem %s1583_s1, %s989_s23 }
  0x11   : > { %v1312_v0 = vld [vmem:[%s1436_s27 + $0x38] sm:$0xff]   ;;  %v1313_v1 = vld [vmem:[%s1436_s27 + $0x30] sm:$0xff]   ;;  %s990_s28 = sshll.u32 %s1431_s24, 2  ;;  %v1314_v2 = vld [vmem:[%s1436_s27 + $0x28] sm:$0xff]  }
  0x12   : > { %1208 = vmatprep.subr.bf16.mxu0 %v1312_v0  ;;  %1256 = vmatprep.subr.bf16.mxu1 %v1312_v0  ;;  %s1447_s5 = scalar_lea.vmem %s1582_s0, %s990_s28  ;;  %v1315_v3 = vld [vmem:[%s1436_s27 + $0x20] sm:$0xff]   ;;  %v1316_v6 = vld [vmem:[%s1436_s27 + $0x18] sm:$0xff]   ;;  %v1317_v7 = vld [vmem:[%s1436_s27 + $0x10] sm:$0xff]   ;;  %s1503_s12 = scalar_lea.vmem %s1586_s4, %s990_s28 }
  0x13   : > { %1209 = vmatpush3.bf16.msra.mxu0 %v1312_v0  ;;  %1264 = vmatpush3.bf16.msra.mxu1 %v1312_v0  ;;  %v1320_v4 = vld [vmem:[%s1447_s5] sm:$0xff]   ;;  %v1318_v8 = vld [vmem:[%s1436_s27 + $0x8] sm:$0xff]   ;;  %v1324_v12 = vld [vmem:[%s1447_s5 + $0x10] sm:$0xff]  }
  0x14   : > { %1210 = vmatprep.subr.bf16.mxu0 %v1313_v1  ;;  %1257 = vmatprep.subr.bf16.mxu1 %v1313_v1  ;;  %v1321_v5 = vld [vmem:[%s1447_s5 + $0x40] sm:$0xff]   ;;  %v1322_v10 = vld [vmem:[%s1447_s5 + $0x8] sm:$0xff]   ;;  %v1325_v13 = vld [vmem:[%s1447_s5 + $0x50] sm:$0xff]  }
  0x15   : > { %1224 = vmatprep.mubr.bf16.mxu0 %v1320_v4  ;;  %1240 = vmatprep.mubr.bf16.mxu1 %v1321_v5  ;;  %v1319_v9 = vld [vmem:[%s1436_s27] sm:$0xff]   ;;  %v1323_v11 = vld [vmem:[%s1447_s5 + $0x48] sm:$0xff]   ;;  %v1326_v14 = vld [vmem:[%s1447_s5 + $0x18] sm:$0xff]  }
  0x16   : > { %v1327_v15 = vld [vmem:[%s1447_s5 + $0x58] sm:$0xff]   ;;  %v1328_v16 = vld [vmem:[%s1447_s5 + $0x20] sm:$0xff]   ;;  %v1330_v18 = vld [vmem:[%s1447_s5 + $0x28] sm:$0xff]  }
  0x17   : > { %1211 = vmatpush3.bf16.msra.mxu0 %v1313_v1  ;;  %1265 = vmatpush3.bf16.msra.mxu1 %v1313_v1  ;;  %v1329_v17 = vld [vmem:[%s1447_s5 + $0x60] sm:$0xff]   ;;  %v1331_v19 = vld [vmem:[%s1447_s5 + $0x68] sm:$0xff]   ;;  %v1332_v20 = vld [vmem:[%s1447_s5 + $0x30] sm:$0xff]  }
  0x18   : > { %1212 = vmatprep.subr.bf16.mxu0 %v1314_v2  ;;  %1258 = vmatprep.subr.bf16.mxu1 %v1314_v2  ;;  %v1333_v21 = vld [vmem:[%s1447_s5 + $0x70] sm:$0xff]   ;;  %v1334_v22 = vld [vmem:[%s1447_s5 + $0x38] sm:$0xff]  }
  0x19   : > { %v1335_v23 = vld [vmem:[%s1447_s5 + $0x78] sm:$0xff]  }
  0x1b   : > { %1213 = vmatpush3.bf16.msra.mxu0 %v1314_v2  ;;  %1266 = vmatpush3.bf16.msra.mxu1 %v1314_v2 }
  0x1c   : > { %1214 = vmatprep.subr.bf16.mxu0 %v1315_v3  ;;  %1259 = vmatprep.subr.bf16.mxu1 %v1315_v3 }
  0x1f   : > { %1215 = vmatpush3.bf16.msra.mxu0 %v1315_v3  ;;  %1267 = vmatpush3.bf16.msra.mxu1 %v1315_v3 }
  0x20   : > { %1216 = vmatprep.subr.bf16.mxu0 %v1316_v6  ;;  %1260 = vmatprep.subr.bf16.mxu1 %v1316_v6 }
  0x23   : > { %1217 = vmatpush3.bf16.msra.mxu0 %v1316_v6  ;;  %1268 = vmatpush3.bf16.msra.mxu1 %v1316_v6 }
  0x24   : > { %1218 = vmatprep.subr.bf16.mxu0 %v1317_v7  ;;  %1261 = vmatprep.subr.bf16.mxu1 %v1317_v7 }
  0x27   : > { %1219 = vmatpush3.bf16.msra.mxu0 %v1317_v7  ;;  %1269 = vmatpush3.bf16.msra.mxu1 %v1317_v7 }
  0x28   : > { %1220 = vmatprep.subr.bf16.mxu0 %v1318_v8  ;;  %1262 = vmatprep.subr.bf16.mxu1 %v1318_v8 }
  0x2b   : > { %1221 = vmatpush3.bf16.msra.mxu0 %v1318_v8  ;;  %1270 = vmatpush3.bf16.msra.mxu1 %v1318_v8 }
  0x2c   : > { %1222 = vmatprep.subr.bf16.mxu0 %v1319_v9  ;;  %1263 = vmatprep.subr.bf16.mxu1 %v1319_v9 }
  0x2f   : > { %1223 = vmatpush3.bf16.msra.mxu0 %v1319_v9  ;;  %1271 = vmatpush3.bf16.msra.mxu1 %v1319_v9 }
  0x32   : > { %1225 = vmatmul.mubr.bf16.vlgmr.msra.gmra.mxu0 %v1322_v10  ;;  %1241 = vmatmul.mubr.bf16.vlgmr.msra.gmra.mxu1 %v1323_v11 }
  0x33   : > { %1228 = vmatprep.mubr.bf16.mxu0 %v1324_v12  ;;  %1244 = vmatprep.mubr.bf16.mxu1 %v1325_v13 }
  0x3a   : > { %1229 = vmatmul.mubr.bf16.gmra.mxu0 %v1326_v14  ;;  %1245 = vmatmul.mubr.bf16.gmra.mxu1 %v1327_v15 }
  0x3b   : > { %1232 = vmatprep.mubr.bf16.mxu0 %v1328_v16  ;;  %1248 = vmatprep.mubr.bf16.mxu1 %v1329_v17 }
  0x42   : > { %1233 = vmatmul.mubr.bf16.gmra.mxu0 %v1330_v18  ;;  %1249 = vmatmul.mubr.bf16.gmra.mxu1 %v1331_v19 }
  0x43   : > { %1236 = vmatprep.mubr.bf16.mxu0 %v1332_v20  ;;  %1252 = vmatprep.mubr.bf16.mxu1 %v1333_v21 }
  0x4a   : > { %1237 = vmatmul.mubr.bf16.gmra.mxu0 %v1334_v22  ;;  %1253 = vmatmul.mubr.bf16.gmra.mxu1 %v1335_v23 }
  0xf2   : > { %v1226_v25 = vpop.f32.mrf.mxu0  ;;  %v1242_v26 = vpop.f32.mrf.mxu1 }
  0xf3   : > { %v620_v27 = vmul.f32 %v1226_v25, %v1473_v24  ;;  %v636_v28 = vmul.f32 %v1242_v26, %v1473_v24 }
  0xf4   : > { %v484_v30 = vpop.f32.mrf.mxu0  ;;  %v548_v31 = vpop.f32.mrf.mxu1 }
  0xf5   : > { %v618_v32 = vmul.f32 %v1473_v24, %v484_v30  ;;  %v634_v33 = vmul.f32 %v1473_v24, %v548_v31  ;;  %v659_v36 = vadd.f32 %v1480_v29, %v620_v27  ;;  %v675_v37 = vadd.f32 %v1480_v29, %v636_v28 }
  0xf6   : > { %v1227_v34 = vpop.f32.mrf.mxu0  ;;  %v1243_v35 = vpop.f32.mrf.mxu1 }
  0xf7   : > { %v621_v38 = vmul.f32 %v1227_v34, %v1473_v24  ;;  %v637_v39 = vmul.f32 %v1243_v35, %v1473_v24  ;;  %v657_v42 = vadd.f32 %v1480_v29, %v618_v32  ;;  %v673_v43 = vadd.f32 %v1480_v29, %v634_v33 }
  0xf8   : > { %v487_v40 = vpop.f32.mrf.mxu0  ;;  %v551_v41 = vpop.f32.mrf.mxu1  ;;  %v691_v50 = vmax.f32 %v659_v36, 0.0  ;;  %v707_v51 = vmax.f32 %v675_v37, 0.0 }
  0xf9   : > { %v619_v44 = vmul.f32 %v1473_v24, %v487_v40  ;;  %v635_v45 = vmul.f32 %v1473_v24, %v551_v41  ;;  %v660_v46 = vadd.f32 %v1480_v29, %v621_v38  ;;  %v676_v47 = vadd.f32 %v1480_v29, %v637_v39 }
  0xfa   : > { %v1230_v48 = vpop.f32.mrf.mxu0  ;;  %v1246_v49 = vpop.f32.mrf.mxu1  ;;  %v689_v60 = vmax.f32 %v657_v42, 0.0  ;;  %v705_v61 = vmax.f32 %v673_v43, 0.0 }
  0xfb   : > { %v658_v52 = vadd.f32 %v1480_v29, %v619_v44  ;;  %v674_v53 = vadd.f32 %v1480_v29, %v635_v45  ;;  %v692_v54 = vmax.f32 %v660_v46, 0.0  ;;  %v708_v55 = vmax.f32 %v676_v47, 0.0 }
  0xfc   : > { %v624_v56 = vmul.f32 %v1230_v48, %v1473_v24  ;;  %v640_v57 = vmul.f32 %v1246_v49, %v1473_v24  ;;  %v500_v58 = vpop.f32.mrf.mxu0  ;;  %v564_v59 = vpop.f32.mrf.mxu1 }
  0xfd   : > { %v690_v62 = vmax.f32 %v658_v52, 0.0  ;;  %v706_v63 = vmax.f32 %v674_v53, 0.0  ;;  %v1097_v0 = vpack.c.bf16 %v692_v54, %v691_v50  ;;  %v1137_v1 = vpack.c.bf16 %v708_v55, %v707_v51 }
  0xfe   : > { %v622_v2 = vmul.f32 %v1473_v24, %v500_v58  ;;  %v638_v3 = vmul.f32 %v1473_v24, %v564_v59  ;;  %v1231_v4 = vpop.f32.mrf.mxu0  ;;  %v1247_v5 = vpop.f32.mrf.mxu1  ;;  %v663_v8 = vadd.f32 %v1480_v29, %v624_v56  ;;  %v679_v9 = vadd.f32 %v1480_v29, %v640_v57 }
  0xff   : > { %v1092_v6 = vpack.c.bf16 %v690_v62, %v689_v60  ;;  %v1132_v7 = vpack.c.bf16 %v706_v63, %v705_v61  ;;  %1169 = vst [vmem:[%s1503_s12 + $0x8] sm:$0xff] %v1097_v0   ;;  %1177 = vst [vmem:[%s1503_s12 + $0x48] sm:$0xff] %v1137_v1   ;;  %v625_v10 = vmul.f32 %v1231_v4, %v1473_v24 }
 0x100   : > { %v641_v11 = vmul.f32 %v1247_v5, %v1473_v24  ;;  %v503_v12 = vpop.f32.mrf.mxu0  ;;  %v567_v13 = vpop.f32.mrf.mxu1  ;;  %v661_v14 = vadd.f32 %v1480_v29, %v622_v2  ;;  %v677_v15 = vadd.f32 %v1480_v29, %v638_v3  ;;  %v695_v27 = vmax.f32 %v663_v8, 0.0 }
 0x101   : > { %1093 = vst [vmem:[%s1503_s12] sm:$0xff] %v1092_v6   ;;  %1176 = vst [vmem:[%s1503_s12 + $0x40] sm:$0xff] %v1132_v7   ;;  %v623_v16 = vmul.f32 %v1473_v24, %v503_v12  ;;  %v639_v17 = vmul.f32 %v1473_v24, %v567_v13  ;;  %v664_v18 = vadd.f32 %v1480_v29, %v625_v10  ;;  %v711_v28 = vmax.f32 %v679_v9, 0.0 }
 0x102   : > { %v680_v19 = vadd.f32 %v1480_v29, %v641_v11  ;;  %v1234_v20 = vpop.f32.mrf.mxu0  ;;  %v1250_v21 = vpop.f32.mrf.mxu1  ;;  %v693_v34 = vmax.f32 %v661_v14, 0.0  ;;  %v709_v35 = vmax.f32 %v677_v15, 0.0 }
 0x103   : > { %v662_v22 = vadd.f32 %v1480_v29, %v623_v16  ;;  %v678_v23 = vadd.f32 %v1480_v29, %v639_v17  ;;  %v628_v25 = vmul.f32 %v1234_v20, %v1473_v24  ;;  %v644_v26 = vmul.f32 %v1250_v21, %v1473_v24 }
 0x104   : > { %v696_v30 = vmax.f32 %v664_v18, 0.0  ;;  %v712_v31 = vmax.f32 %v680_v19, 0.0  ;;  %v516_v32 = vpop.f32.mrf.mxu0  ;;  %v580_v33 = vpop.f32.mrf.mxu1 }
 0x105   : > { %v694_v36 = vmax.f32 %v662_v22, 0.0  ;;  %v710_v37 = vmax.f32 %v678_v23, 0.0  ;;  %v626_v40 = vmul.f32 %v1473_v24, %v516_v32  ;;  %v642_v41 = vmul.f32 %v1473_v24, %v580_v33 }
 0x106   : > { %v1107_v38 = vpack.c.bf16 %v696_v30, %v695_v27  ;;  %v1147_v39 = vpack.c.bf16 %v712_v31, %v711_v28  ;;  %v1235_v42 = vpop.f32.mrf.mxu0  ;;  %v1251_v43 = vpop.f32.mrf.mxu1  ;;  %v667_v46 = vadd.f32 %v1480_v29, %v628_v25  ;;  %v683_v47 = vadd.f32 %v1480_v29, %v644_v26 }
 0x107   : > { %v1102_v44 = vpack.c.bf16 %v694_v36, %v693_v34  ;;  %v1142_v45 = vpack.c.bf16 %v710_v37, %v709_v35  ;;  %v629_v48 = vmul.f32 %v1235_v42, %v1473_v24  ;;  %v645_v49 = vmul.f32 %v1251_v43, %v1473_v24 }
 0x108   : > { %1171 = vst [vmem:[%s1503_s12 + $0x18] sm:$0xff] %v1107_v38   ;;  %1179 = vst [vmem:[%s1503_s12 + $0x58] sm:$0xff] %v1147_v39   ;;  %v519_v50 = vpop.f32.mrf.mxu0  ;;  %v583_v51 = vpop.f32.mrf.mxu1  ;;  %v665_v52 = vadd.f32 %v1480_v29, %v626_v40  ;;  %v681_v53 = vadd.f32 %v1480_v29, %v642_v41  ;;  %v699_v60 = vmax.f32 %v667_v46, 0.0  ;;  %v715_v61 = vmax.f32 %v683_v47, 0.0 }
 0x109   : > { %1170 = vst [vmem:[%s1503_s12 + $0x10] sm:$0xff] %v1102_v44   ;;  %1178 = vst [vmem:[%s1503_s12 + $0x50] sm:$0xff] %v1142_v45   ;;  %v627_v54 = vmul.f32 %v1473_v24, %v519_v50  ;;  %v643_v55 = vmul.f32 %v1473_v24, %v583_v51  ;;  %v668_v56 = vadd.f32 %v1480_v29, %v629_v48 }
 0x10a   : > { %v684_v57 = vadd.f32 %v1480_v29, %v645_v49  ;;  %v1238_v58 = vpop.f32.mrf.mxu0  ;;  %v1254_v59 = vpop.f32.mrf.mxu1  ;;  %v697_v6 = vmax.f32 %v665_v52, 0.0  ;;  %v713_v7 = vmax.f32 %v681_v53, 0.0 }
 0x10b   : > { %v666_v62 = vadd.f32 %v1480_v29, %v627_v54  ;;  %v682_v63 = vadd.f32 %v1480_v29, %v643_v55  ;;  %v700_v0 = vmax.f32 %v668_v56, 0.0  ;;  %v632_v2 = vmul.f32 %v1238_v58, %v1473_v24 }
 0x10c   : > { %v716_v1 = vmax.f32 %v684_v57, 0.0  ;;  %v648_v3 = vmul.f32 %v1254_v59, %v1473_v24  ;;  %v532_v4 = vpop.f32.mrf.mxu0  ;;  %v596_v5 = vpop.f32.mrf.mxu1 }
 0x10d   : > { %v698_v8 = vmax.f32 %v666_v62, 0.0  ;;  %v714_v9 = vmax.f32 %v682_v63, 0.0  ;;  %v1117_v10 = vpack.c.bf16 %v700_v0, %v699_v60  ;;  %v630_v12 = vmul.f32 %v1473_v24, %v532_v4 }
 0x10e   : > { %v1157_v11 = vpack.c.bf16 %v716_v1, %v715_v61  ;;  %v646_v13 = vmul.f32 %v1473_v24, %v596_v5  ;;  %v1239_v14 = vpop.f32.mrf.mxu0  ;;  %v1255_v15 = vpop.f32.mrf.mxu1  ;;  %v671_v18 = vadd.f32 %v1480_v29, %v632_v2  ;;  %v687_v19 = vadd.f32 %v1480_v29, %v648_v3 }
 0x10f   : > { %v1112_v16 = vpack.c.bf16 %v698_v8, %v697_v6  ;;  %v1152_v17 = vpack.c.bf16 %v714_v9, %v713_v7  ;;  %1173 = vst [vmem:[%s1503_s12 + $0x28] sm:$0xff] %v1117_v10   ;;  %v633_v20 = vmul.f32 %v1239_v14, %v1473_v24  ;;  %v649_v21 = vmul.f32 %v1255_v15, %v1473_v24 }
 0x110   : > { %1181 = vst [vmem:[%s1503_s12 + $0x68] sm:$0xff] %v1157_v11   ;;  %v535_v22 = vpop.f32.mrf.mxu0  ;;  %v599_v23 = vpop.f32.mrf.mxu1  ;;  %v669_v25 = vadd.f32 %v1480_v29, %v630_v12  ;;  %v685_v26 = vadd.f32 %v1480_v29, %v646_v13  ;;  %v703_v34 = vmax.f32 %v671_v18, 0.0  ;;  %v719_v35 = vmax.f32 %v687_v19, 0.0 }
 0x111   : > { %1172 = vst [vmem:[%s1503_s12 + $0x20] sm:$0xff] %v1112_v16   ;;  %1180 = vst [vmem:[%s1503_s12 + $0x60] sm:$0xff] %v1152_v17   ;;  %v631_v27 = vmul.f32 %v1473_v24, %v535_v22  ;;  %v647_v28 = vmul.f32 %v1473_v24, %v599_v23  ;;  %v672_v30 = vadd.f32 %v1480_v29, %v633_v20 }
 0x112   : > { %v688_v31 = vadd.f32 %v1480_v29, %v649_v21  ;;  %v701_v38 = vmax.f32 %v669_v25, 0.0  ;;  %v717_v39 = vmax.f32 %v685_v26, 0.0 }
 0x113   : > { %v670_v32 = vadd.f32 %v1480_v29, %v631_v27  ;;  %v686_v33 = vadd.f32 %v1480_v29, %v647_v28  ;;  %v704_v36 = vmax.f32 %v672_v30, 0.0 }
 0x114   : > { %v720_v37 = vmax.f32 %v688_v31, 0.0 }
 0x115   : > { %v702_v40 = vmax.f32 %v670_v32, 0.0  ;;  %v718_v24 = vmax.f32 %v686_v33, 0.0  ;;  %v1127_v41 = vpack.c.bf16 %v704_v36, %v703_v34 }
 0x116   : > { %v1167_v42 = vpack.c.bf16 %v720_v37, %v719_v35 }
 0x117   : > { %v1122_v43 = vpack.c.bf16 %v702_v40, %v701_v38  ;;  %v1162_v44 = vpack.c.bf16 %v718_v24, %v717_v39  ;;  %1175 = vst [vmem:[%s1503_s12 + $0x38] sm:$0xff] %v1127_v41  }
 0x118   : > { %1183 = vst [vmem:[%s1503_s12 + $0x78] sm:$0xff] %v1167_v42  }
 0x119   : > { %1174 = vst [vmem:[%s1503_s12 + $0x30] sm:$0xff] %v1122_v43   ;;  %1182 = vst [vmem:[%s1503_s12 + $0x70] sm:$0xff] %v1162_v44  }
 0x11a PF: > { %s14_s19 = sadd.s32 1, %s1374_s19   ;;  %s1587_s15 = smov %s1366_s17 }
 0x11b   : > { %p11_p7 = scmp.ge.s32.totalorder %s14_s19, 10   ;;  %s1588_s16 = smov %s1370_s18 }
 0x11c   : > { %s1589_s17 = smov %s1592_s20  ;;  %s1590_s18 = smov %s1596_s21 }
 0x11d   :  { %13 = sbr.rel (!%p11_p7) target bundleno = 3 (0x3), region = 69 }

// kernel: video_reconstructor_forward.31
= control target key start
LH: loop header
LB: loop body
LE: loop exit
PB: predicated region body
PF: predicated region fallthrough
CT: control target
= control target key end

     0   :  { %s1011_s9 = smov 0   ;;  %s1013_s10 = smov 0   ;;  %s1122_s0 = inlined_call_operand.vmem [shape: bf16[4,512,128], index: 0, kind: input, shape index: {}]   ;;  %s1123_s1 = inlined_call_operand.vmem [shape: bf16[4,128,128], index: 1, kind: input, shape index: {}]   ;;  %s1124_s2 = inlined_call_operand.vmem [shape: f32[4,16,128], index: 2, kind: output, shape index: {}]  }
   0x1   :  { %s1015_s11 = smov 0   ;;  %s1017_s12 = smov 0  }
   0x2   :  { %s1019_s13 = smov 0  }
   0x3 LB: > { %s21_s14 = sadd.s32 1, %s986_s11  ;;  %s24_s15 = sadd.s32 1, %s990_s12  ;;  %s994_s13 = sphi %s1019_s13, %s12_s13   ;;  %s990_s12 = sphi %s1017_s12, %s1128_s12   ;;  %s986_s11 = sphi %s1015_s11, %s1127_s11   ;;  %s982_s10 = sphi %s1013_s10, %s1126_s10   ;;  %s978_s9 = sphi %s1011_s9, %s1125_s9  }
   0x4   : > { %p22_p0 = scmp.ge.s32.totalorder %s21_s14, 2  ;;  %p769_p1 = scmp.ge.s32.totalorder %s994_s13, 1 }
   0x5   : > { %p143_p2 = scmp.lt.s32.totalorder %s994_s13, 9 }
   0x6   : > { %s1130_s14 = smov (%p22_p0, %s21_s14), 0  ;;  %s1132_s15 = smov (!%p22_p0, %s24_s15), %s990_s12 }
   0x7   : > { %p144_p3 = pnand %p769_p1, %p143_p2  ;;  %p26_p4 = scmp.ge.s32.totalorder %s1132_s15, 4 }
   0x8   : > { %s770_s16 = sshll.u32 (!%p144_p3), %s978_s9, 5  ;;  %p178_p5 = scmp.lt.s32.totalorder (!%p144_p3), %s982_s10, 3 }
   0x9   : > { %s1134_s15 = smov (%p26_p4, %s1132_s15), 0  ;;  %147 = sbr.rel (%p144_p3) target bundleno = 328 (0x148), region = 28 }
   0xa   : > { %p180_p6 = scmp.lt.s32.totalorder (!%p144_p3), %s770_s16, 63  ;;  %p194_p7 = scmp.lt.s32.totalorder (!%p144_p3), %s978_s9, 1 }
   0xe   : > { %s1136_s10 = smov (!%p178_p5, %s982_s10), 3  ;;  %s1138_s16 = smov (!%p180_p6, %s770_s16), 63 }
   0xf   : > { %s771_s17 = sshll.u32 %s1136_s10, 6  ;;  %s1140_s9 = smov (!%p194_p7, %s978_s9), 1 }
  0x10   : > { %s183_s18 = sadd.s32 %s771_s17, %s1138_s16  ;;  %s1050_s21 = scalar_lea.vmem %s1123_s1, %s771_s17 }
  0x11   : > { %v932_v0 = vld [vmem:[%s1050_s21 + $0x38] sm:$0xff]   ;;  %v933_v1 = vld [vmem:[%s1050_s21 + $0x30] sm:$0xff]   ;;  %s772_s22 = sshll.u32 %s183_s18, 2  ;;  %v934_v2 = vld [vmem:[%s1050_s21 + $0x28] sm:$0xff]   ;;  %s775_s26 = sshll.u32 %s1136_s10, 1 }
  0x12   : > { %828 = vmatprep.subr.bf16.mxu0 %v932_v0  ;;  %876 = vmatprep.subr.bf16.mxu1 %v932_v0  ;;  %s1058_s25 = scalar_lea.vmem %s1122_s0, %s772_s22  ;;  %v935_v3 = vld [vmem:[%s1050_s21 + $0x20] sm:$0xff]   ;;  %v936_v5 = vld [vmem:[%s1050_s21 + $0x18] sm:$0xff]   ;;  %v937_v6 = vld [vmem:[%s1050_s21 + $0x10] sm:$0xff]   ;;  %s197_s27 = sadd.s32 %s775_s26, %s1140_s9 }
  0x13   : > { %829 = vmatpush3.bf16.msra.mxu0 %v932_v0  ;;  %884 = vmatpush3.bf16.msra.mxu1 %v932_v0  ;;  %v940_v4 = vld [vmem:[%s1058_s25] sm:$0xff]   ;;  %v938_v8 = vld [vmem:[%s1050_s21 + $0x8] sm:$0xff]   ;;  %v942_v12 = vld [vmem:[%s1058_s25 + $0x10] sm:$0xff]   ;;  %s776_s28 = sshll.u32 %s197_s27, 3 }
  0x14   : > { %830 = vmatprep.subr.bf16.mxu0 %v933_v1  ;;  %877 = vmatprep.subr.bf16.mxu1 %v933_v1  ;;  %v948_v7 = vld [vmem:[%s1058_s25 + $0x40] sm:$0xff]   ;;  %v941_v10 = vld [vmem:[%s1058_s25 + $0x8] sm:$0xff]   ;;  %v950_v13 = vld [vmem:[%s1058_s25 + $0x50] sm:$0xff]   ;;  %s199_s3 = scalar_lea.vmem %s1124_s2, %s776_s28 }
  0x15   : > { %844 = vmatprep.mubr.bf16.mxu0 %v940_v4  ;;  %860 = vmatprep.mubr.bf16.mxu1 %v948_v7  ;;  %v939_v9 = vld [vmem:[%s1050_s21] sm:$0xff]   ;;  %v949_v11 = vld [vmem:[%s1058_s25 + $0x48] sm:$0xff]   ;;  %v943_v14 = vld [vmem:[%s1058_s25 + $0x18] sm:$0xff]  }
  0x16   : > { %v951_v15 = vld [vmem:[%s1058_s25 + $0x58] sm:$0xff]   ;;  %v944_v16 = vld [vmem:[%s1058_s25 + $0x20] sm:$0xff]   ;;  %v945_v18 = vld [vmem:[%s1058_s25 + $0x28] sm:$0xff]  }
  0x17   : > { %831 = vmatpush3.bf16.msra.mxu0 %v933_v1  ;;  %885 = vmatpush3.bf16.msra.mxu1 %v933_v1  ;;  %v952_v17 = vld [vmem:[%s1058_s25 + $0x60] sm:$0xff]   ;;  %v953_v19 = vld [vmem:[%s1058_s25 + $0x68] sm:$0xff]   ;;  %v946_v20 = vld [vmem:[%s1058_s25 + $0x30] sm:$0xff]  }
  0x18   : > { %832 = vmatprep.subr.bf16.mxu0 %v934_v2  ;;  %878 = vmatprep.subr.bf16.mxu1 %v934_v2  ;;  %v954_v21 = vld [vmem:[%s1058_s25 + $0x70] sm:$0xff]   ;;  %v947_v22 = vld [vmem:[%s1058_s25 + $0x38] sm:$0xff]  }
  0x19   : > { %v955_v23 = vld [vmem:[%s1058_s25 + $0x78] sm:$0xff]  }
  0x1b   : > { %833 = vmatpush3.bf16.msra.mxu0 %v934_v2  ;;  %886 = vmatpush3.bf16.msra.mxu1 %v934_v2 }
  0x1c   : > { %834 = vmatprep.subr.bf16.mxu0 %v935_v3  ;;  %879 = vmatprep.subr.bf16.mxu1 %v935_v3 }
  0x1f   : > { %835 = vmatpush3.bf16.msra.mxu0 %v935_v3  ;;  %887 = vmatpush3.bf16.msra.mxu1 %v935_v3 }
  0x20   : > { %836 = vmatprep.subr.bf16.mxu0 %v936_v5  ;;  %880 = vmatprep.subr.bf16.mxu1 %v936_v5 }
  0x23   : > { %837 = vmatpush3.bf16.msra.mxu0 %v936_v5  ;;  %888 = vmatpush3.bf16.msra.mxu1 %v936_v5 }
  0x24   : > { %838 = vmatprep.subr.bf16.mxu0 %v937_v6  ;;  %881 = vmatprep.subr.bf16.mxu1 %v937_v6 }
  0x27   : > { %839 = vmatpush3.bf16.msra.mxu0 %v937_v6  ;;  %889 = vmatpush3.bf16.msra.mxu1 %v937_v6 }
  0x28   : > { %840 = vmatprep.subr.bf16.mxu0 %v938_v8  ;;  %882 = vmatprep.subr.bf16.mxu1 %v938_v8 }
  0x2b   : > { %841 = vmatpush3.bf16.msra.mxu0 %v938_v8  ;;  %890 = vmatpush3.bf16.msra.mxu1 %v938_v8 }
  0x2c   : > { %842 = vmatprep.subr.bf16.mxu0 %v939_v9  ;;  %883 = vmatprep.subr.bf16.mxu1 %v939_v9 }
  0x2f   : > { %843 = vmatpush3.bf16.msra.mxu0 %v939_v9  ;;  %891 = vmatpush3.bf16.msra.mxu1 %v939_v9 }
  0x32   : > { %845 = vmatmul.mubr.bf16.vlgmr.msra.gmra.mxu0 %v941_v10  ;;  %861 = vmatmul.mubr.bf16.vlgmr.msra.gmra.mxu1 %v949_v11 }
  0x33   : > { %848 = vmatprep.mubr.bf16.mxu0 %v942_v12  ;;  %864 = vmatprep.mubr.bf16.mxu1 %v950_v13 }
  0x3a   : > { %849 = vmatmul.mubr.bf16.gmra.mxu0 %v943_v14  ;;  %865 = vmatmul.mubr.bf16.gmra.mxu1 %v951_v15 }
  0x3b   : > { %852 = vmatprep.mubr.bf16.mxu0 %v944_v16  ;;  %868 = vmatprep.mubr.bf16.mxu1 %v952_v17 }
  0x42   : > { %853 = vmatmul.mubr.bf16.gmra.mxu0 %v945_v18  ;;  %869 = vmatmul.mubr.bf16.gmra.mxu1 %v953_v19 }
  0x43   : > { %856 = vmatprep.mubr.bf16.mxu0 %v946_v20  ;;  %872 = vmatprep.mubr.bf16.mxu1 %v954_v21 }
  0x4a   : > { %857 = vmatmul.mubr.bf16.gmra.mxu0 %v947_v22  ;;  %873 = vmatmul.mubr.bf16.gmra.mxu1 %v955_v23 }
  0xf2   : > { %v846_v24 = vpop.f32.mrf.mxu0  ;;  %v1081_v25 = vpop.f32.mrf.mxu1 }
  0xf3   : > { %v593_v35 = vmul.f32 %v846_v24, %v846_v24 }
  0xf4   : > { %v427_v26 = vpop.f32.mrf.mxu0  ;;  %v1083_v28 = vpop.f32.mrf.mxu1 }
  0xf5   : > { %v591_v30 = vmul.f32 %v427_v26, %v427_v26 }
  0xf6   : > { %v847_v27 = vpop.f32.mrf.mxu0  ;;  %v1085_v34 = vpop.f32.mrf.mxu1 }
  0xf7   : > { %v594_v39 = vmul.f32 %v847_v27, %v847_v27 }
  0xf8   : > { %v430_v29 = vpop.f32.mrf.mxu0  ;;  %v494_v43 = vpop.f32.mrf.mxu1 }
  0xf9   : > { %v554_v31 = vadd.f32 %v430_v29, %v427_v26  ;;  %v592_v32 = vmul.f32 %v430_v29, %v430_v29 }
  0xfa   : > { %v850_v33 = vpop.f32.mrf.mxu0  ;;  %v1087_v52 = vpop.f32.mrf.mxu1 }
  0xfb   : > { %v555_v36 = vadd.f32 %v846_v24, %v554_v31  ;;  %v623_v37 = vadd.f32 %v592_v32, %v591_v30  ;;  %v597_v53 = vmul.f32 %v850_v33, %v850_v33 }
  0xfc   : > { %v443_v38 = vpop.f32.mrf.mxu0  ;;  %v507_v61 = vpop.f32.mrf.mxu1 }
  0xfd   : > { %v624_v40 = vadd.f32 %v623_v37, %v593_v35  ;;  %v556_v41 = vadd.f32 %v847_v27, %v555_v36  ;;  %v595_v45 = vmul.f32 %v443_v38, %v443_v38 }
  0xfe   : > { %v851_v42 = vpop.f32.mrf.mxu0  ;;  %v867_v6 = vpop.f32.mrf.mxu1 }
  0xff   : > { %v557_v44 = vadd.f32 %v556_v41, %v443_v38  ;;  %v625_v46 = vadd.f32 %v624_v40, %v594_v39  ;;  %v598_v57 = vmul.f32 %v851_v42, %v851_v42  ;;  %v608_v38 = vmul.f32 %v494_v43, %v494_v43 }
 0x100   : > { %v446_v47 = vpop.f32.mrf.mxu0  ;;  %v510_v15 = vpop.f32.mrf.mxu1  ;;  %v609_v41 = vmul.f32 %v1081_v25, %v1081_v25 }
 0x101   : > { %v626_v48 = vadd.f32 %v625_v46, %v595_v45  ;;  %v558_v49 = vadd.f32 %v557_v44, %v446_v47  ;;  %v596_v50 = vmul.f32 %v446_v47, %v446_v47  ;;  %v610_v45 = vmul.f32 %v1085_v34, %v1085_v34 }
 0x102   : > { %v854_v51 = vpop.f32.mrf.mxu0  ;;  %v870_v23 = vpop.f32.mrf.mxu1 }
 0x103   : > { %v559_v54 = vadd.f32 %v850_v33, %v558_v49  ;;  %v627_v55 = vadd.f32 %v626_v48, %v596_v50  ;;  %v601_v7 = vmul.f32 %v854_v51, %v854_v51  ;;  %v607_v33 = vmul.f32 %v1083_v28, %v1083_v28 }
 0x104   : > { %v459_v56 = vpop.f32.mrf.mxu0  ;;  %v523_v32 = vpop.f32.mrf.mxu1  ;;  %v611_v50 = vmul.f32 %v507_v61, %v507_v61 }
 0x105   : > { %v628_v58 = vadd.f32 %v627_v55, %v597_v53  ;;  %v560_v59 = vadd.f32 %v851_v42, %v559_v54  ;;  %v599_v63 = vmul.f32 %v459_v56, %v459_v56  ;;  %v612_v53 = vmul.f32 %v510_v15, %v510_v15 }
 0x106   : > { %v855_v60 = vpop.f32.mrf.mxu0  ;;  %v871_v40 = vpop.f32.mrf.mxu1  ;;  %v613_v55 = vmul.f32 %v1087_v52, %v1087_v52 }
 0x107   : > { %v561_v62 = vadd.f32 %v560_v59, %v459_v56  ;;  %v629_v0 = vadd.f32 %v628_v58, %v598_v57  ;;  %v602_v11 = vmul.f32 %v855_v60, %v855_v60  ;;  %v614_v57 = vmul.f32 %v867_v6, %v867_v6 }
 0x108   : > { %v462_v1 = vpop.f32.mrf.mxu0  ;;  %v526_v48 = vpop.f32.mrf.mxu1 }
 0x109   : > { %v630_v2 = vadd.f32 %v629_v0, %v599_v63  ;;  %v562_v3 = vadd.f32 %v561_v62, %v462_v1  ;;  %v600_v4 = vmul.f32 %v462_v1, %v462_v1  ;;  %v616_v1 = vmul.f32 %v526_v48, %v526_v48 }
 0x10a   : > { %v858_v5 = vpop.f32.mrf.mxu0  ;;  %v874_v54 = vpop.f32.mrf.mxu1 }
 0x10b   : > { %v563_v8 = vadd.f32 %v854_v51, %v562_v3  ;;  %v631_v9 = vadd.f32 %v630_v2, %v600_v4  ;;  %v605_v24 = vmul.f32 %v858_v5, %v858_v5  ;;  %v617_v3 = vmul.f32 %v870_v23, %v870_v23 }
 0x10c   : > { %v475_v10 = vpop.f32.mrf.mxu0 }
 0x10d   : > { %v632_v12 = vadd.f32 %v631_v9, %v601_v7  ;;  %v564_v13 = vadd.f32 %v855_v60, %v563_v8  ;;  %v603_v17 = vmul.f32 %v475_v10, %v475_v10  ;;  %v539_v60 = vpop.f32.mrf.mxu1  ;;  %v618_v7 = vmul.f32 %v871_v40, %v871_v40 }
 0x10e   : > { %v859_v14 = vpop.f32.mrf.mxu0 }
 0x10f   : > { %v565_v16 = vadd.f32 %v564_v13, %v475_v10  ;;  %v633_v18 = vadd.f32 %v632_v12, %v602_v11  ;;  %v606_v29 = vmul.f32 %v859_v14, %v859_v14  ;;  %v875_v2 = vpop.f32.mrf.mxu1  ;;  %v619_v11 = vmul.f32 %v539_v60, %v539_v60 }
 0x110   : > { %v478_v19 = vpop.f32.mrf.mxu0 }
 0x111   : > { %v634_v20 = vadd.f32 %v633_v18, %v603_v17  ;;  %v566_v21 = vadd.f32 %v565_v16, %v478_v19  ;;  %v604_v22 = vmul.f32 %v478_v19, %v478_v19  ;;  %v622_v18 = vmul.f32 %v875_v2, %v875_v2 }
 0x113   : > { %v567_v26 = vadd.f32 %v858_v5, %v566_v21  ;;  %v635_v27 = vadd.f32 %v634_v20, %v604_v22 }
 0x115   : > { %v568_v30 = vadd.f32 %v859_v14, %v567_v26  ;;  %v636_v31 = vadd.f32 %v635_v27, %v605_v24  ;;  %v660_v26 = vlaneseq }
 0x117   : > { %v637_v35 = vadd.f32 %v636_v31, %v606_v29  ;;  %v569_v36 = vadd.f32 %v568_v30, %v1083_v28 }
 0x119   : > { %v570_v37 = vadd.f32 %v569_v36, %v494_v43  ;;  %v638_v39 = vadd.f32 %v637_v35, %v607_v33 }
 0x11b   : > { %v571_v42 = vadd.f32 %v1081_v25, %v570_v37  ;;  %v639_v44 = vadd.f32 %v638_v39, %v608_v38 }
 0x11d   : > { %v640_v46 = vadd.f32 %v639_v44, %v609_v41  ;;  %v572_v47 = vadd.f32 %v1085_v34, %v571_v42  ;;  %v615_v34 = vmul.f32 %v523_v32, %v523_v32 }
 0x11f   : > { %v573_v49 = vadd.f32 %v572_v47, %v507_v61  ;;  %v641_v28 = vadd.f32 %v640_v46, %v610_v45 }
 0x121   : > { %v642_v51 = vadd.f32 %v641_v28, %v611_v50  ;;  %v574_v43 = vadd.f32 %v573_v49, %v510_v15  ;;  %v621_v15 = vmul.f32 %v874_v54, %v874_v54 }
 0x123   : > { %v575_v25 = vadd.f32 %v1087_v52, %v574_v43  ;;  %v643_v56 = vadd.f32 %v642_v51, %v612_v53  ;;  %v542_v52 = vpop.f32.mrf.mxu1 }
 0x124   : > { %v620_v14 = vmul.f32 %v542_v52, %v542_v52 }
 0x125   : > { %v644_v58 = vadd.f32 %v643_v56, %v613_v55  ;;  %v576_v59 = vadd.f32 %v867_v6, %v575_v25 }
 0x127   : > { %v577_v62 = vadd.f32 %v576_v59, %v523_v32  ;;  %v645_v63 = vadd.f32 %v644_v58, %v614_v57  ;;  %v661_v32 = vshrl.u32 %v660_v26, 7 }
 0x129   : > { %v646_v0 = vadd.f32 %v645_v63, %v615_v34  ;;  %v578_v61 = vadd.f32 %v577_v62, %v526_v48  ;;  %vm663_vm0 = vcmp.eq.s32.totalorder %v661_v32, 1  ;;  %vm662_vm1 = vcmp.eq.s32.totalorder %v661_v32, 0 }
 0x12b   : > { %v579_v4 = vadd.f32 %v870_v23, %v578_v61  ;;  %v647_v5 = vadd.f32 %v646_v0, %v616_v1 }
 0x12d   : > { %v648_v8 = vadd.f32 %v647_v5, %v617_v3  ;;  %v580_v9 = vadd.f32 %v871_v40, %v579_v4 }
 0x12f   : > { %v581_v10 = vadd.f32 %v580_v9, %v539_v60  ;;  %v649_v6 = vadd.f32 %v648_v8, %v618_v7 }
 0x131   : > { %v650_v12 = vadd.f32 %v649_v6, %v619_v11  ;;  %v582_v13 = vadd.f32 %v581_v10, %v542_v52 }
 0x133   : > { %v583_v16 = vadd.f32 %v874_v54, %v582_v13  ;;  %v651_v17 = vadd.f32 %v650_v12, %v620_v14 }
 0x135   : > { %v584_v19 = vadd.f32 %v875_v2, %v583_v16  ;;  %v652_v20 = vadd.f32 %v651_v17, %v621_v15 }
 0x137   : > { %v585_v21 = vrot.slane %v584_v19, 4  ;;  %v653_v22 = vadd.f32 %v652_v20, %v622_v18 }
 0x139   : > { %v586_v23 = vadd.f32 %v585_v21, %v584_v19  ;;  %v654_v24 = vrot.slane %v653_v22, 4 }
 0x13b   : > { %v587_v27 = vrot.slane %v586_v23, 2  ;;  %v655_v29 = vadd.f32 %v654_v24, %v653_v22 }
 0x13d   : > { %v588_v30 = vadd.f32 %v587_v27, %v586_v23  ;;  %v656_v31 = vrot.slane %v655_v29, 2 }
 0x13f   : > { %v657_v33 = vadd.f32 %v656_v31, %v655_v29  ;;  %v589_v35 = vrot.slane %v588_v30, 1 }
 0x141   : > { %v658_v36 = vrot.slane %v657_v33, 1  ;;  %v590_v38 = vadd.f32 %v589_v35, %v588_v30 }
 0x143   : > { %v659_v37 = vadd.f32 %v658_v36, %v657_v33 }
 0x145   : > { %v664_v39 = vsel %vm663_vm0, %v659_v37, 0.0 }
 0x146   : > { %v665_v40 = vsel %vm662_vm1, %v590_v38, %v664_v39 }
 0x147   : > { %666 = vst [vmem:[%s199_s3] sm:$0xff] %v665_v40 }
 0x148 PF: > { %s12_s13 = sadd.s32 1, %s994_s13   ;;  %s1125_s9 = smov %s986_s11 }
 0x149   : > { %p9_p8 = scmp.ge.s32.totalorder %s12_s13, 10   ;;  %s1126_s10 = smov %s990_s12 }
 0x14a   : > { %s1127_s11 = smov %s1130_s14  ;;  %s1128_s12 = smov %s1134_s15 }
 0x14b   :  { %11 = sbr.rel (!%p9_p8) target bundleno = 3 (0x3), region = 61 }

// kernel: video_reconstructor_forward.33
= control target key start
LH: loop header
LB: loop body
LE: loop exit
PB: predicated region body
PF: predicated region fallthrough
CT: control target
= control target key end

     0   :  { %s1498_s9 = smov 0   ;;  %s1500_s10 = smov 0   ;;  %s1666_s0 = inlined_call_operand.vmem [shape: bf16[4,2048,128], index: 0, kind: input, shape index: {}]   ;;  %s1667_s1 = inlined_call_operand.vmem [shape: bf16[4,128,128], index: 1, kind: input, shape index: {}]   ;;  %s1668_s2 = inlined_call_operand.vmem [shape: f32[4,2048,128], index: 2, kind: output, shape index: {}]  }
   0x1   :  { %s1502_s11 = smov 0   ;;  %s1504_s12 = smov 0  }
   0x2   :  { %s1506_s13 = smov 0  }
   0x3 LB: > { %s21_s14 = sadd.s32 1, %s1473_s11  ;;  %s24_s15 = sadd.s32 1, %s1477_s12  ;;  %s1481_s13 = sphi %s1506_s13, %s12_s13   ;;  %s1477_s12 = sphi %s1504_s12, %s1672_s12   ;;  %s1473_s11 = sphi %s1502_s11, %s1671_s11   ;;  %s1469_s10 = sphi %s1500_s10, %s1670_s10   ;;  %s1465_s9 = sphi %s1498_s9, %s1669_s9  }
   0x4   : > { %p22_p0 = scmp.ge.s32.totalorder %s21_s14, 4  ;;  %p1047_p1 = scmp.ge.s32.totalorder %s1481_s13, 1 }
   0x5   : > { %p143_p2 = scmp.lt.s32.totalorder %s1481_s13, 17 }
   0x6   : > { %s1674_s14 = smov (%p22_p0, %s21_s14), 0  ;;  %s1676_s15 = smov (!%p22_p0, %s24_s15), %s1477_s12 }
   0x7   : > { %p144_p3 = pnand %p1047_p1, %p143_p2  ;;  %p26_p4 = scmp.ge.s32.totalorder %s1676_s15, 4 }
   0x8   : > { %s1048_s16 = sshll.u32 (!%p144_p3), %s1465_s9, 6  ;;  %p179_p5 = scmp.lt.s32.totalorder (!%p144_p3), %s1469_s10, 3 }
   0x9   : > { %s1678_s15 = smov (%p26_p4, %s1676_s15), 0  ;;  %147 = sbr.rel (%p144_p3) target bundleno = 321 (0x141), region = 28 }
   0xa   : > { %p181_p6 = scmp.lt.s32.totalorder (!%p144_p3), %s1048_s16, 255 }
   0xe   : > { %s1680_s10 = smov (!%p179_p5, %s1469_s10), 3  ;;  %s1682_s16 = smov (!%p181_p6, %s1048_s16), 255 }
   0xf   : > { %s1049_s17 = sshll.u32 %s1680_s10, 8  ;;  %s1098_s18 = sshll.u32 %s1680_s10, 6 }
  0x10   : > { %s1531_s21 = scalar_lea.vmem %s1667_s1, %s1098_s18  ;;  %s1533_s22 = sadd.s32 %s1049_s17, %s1682_s16 }
  0x11   : > { %v1275_v0 = vld [vmem:[%s1531_s21 + $0x38] sm:$0xff]   ;;  %v1276_v1 = vld [vmem:[%s1531_s21 + $0x30] sm:$0xff]   ;;  %s1050_s23 = sshll.u32 %s1533_s22, 2  ;;  %v1277_v2 = vld [vmem:[%s1531_s21 + $0x28] sm:$0xff]   ;;  %s1055_s27 = sshll.u32 %s1533_s22, 3 }
  0x12   : > { %1139 = vmatprep.subr.bf16.mxu0 %v1275_v0  ;;  %1219 = vmatprep.subr.bf16.mxu1 %v1275_v0  ;;  %s1542_s26 = scalar_lea.vmem %s1666_s0, %s1050_s23  ;;  %v1278_v3 = vld [vmem:[%s1531_s21 + $0x20] sm:$0xff]   ;;  %v1279_v6 = vld [vmem:[%s1531_s21 + $0x18] sm:$0xff]   ;;  %v1280_v7 = vld [vmem:[%s1531_s21 + $0x10] sm:$0xff]   ;;  %s1585_s30 = scalar_lea.vmem %s1668_s2, %s1055_s27 }
  0x13   : > { %1140 = vmatpush3.bf16.msra.mxu0 %v1275_v0  ;;  %1227 = vmatpush3.bf16.msra.mxu1 %v1275_v0  ;;  %v1283_v4 = vld [vmem:[%s1542_s26] sm:$0xff]   ;;  %v1281_v8 = vld [vmem:[%s1531_s21 + $0x8] sm:$0xff]   ;;  %v1287_v12 = vld [vmem:[%s1542_s26 + $0x10] sm:$0xff]  }
  0x14   : > { %1141 = vmatprep.subr.bf16.mxu0 %v1276_v1  ;;  %1220 = vmatprep.subr.bf16.mxu1 %v1276_v1  ;;  %v1284_v5 = vld [vmem:[%s1542_s26 + $0x80] sm:$0xff]   ;;  %v1285_v10 = vld [vmem:[%s1542_s26 + $0x8] sm:$0xff]   ;;  %v1288_v13 = vld [vmem:[%s1542_s26 + $0x90] sm:$0xff]  }
  0x15   : > { %1155 = vmatprep.mubr.bf16.mxu0 %v1283_v4  ;;  %1187 = vmatprep.mubr.bf16.mxu1 %v1284_v5  ;;  %v1282_v9 = vld [vmem:[%s1531_s21] sm:$0xff]   ;;  %v1286_v11 = vld [vmem:[%s1542_s26 + $0x88] sm:$0xff]   ;;  %v1289_v14 = vld [vmem:[%s1542_s26 + $0x18] sm:$0xff]  }
  0x16   : > { %v1290_v15 = vld [vmem:[%s1542_s26 + $0x98] sm:$0xff]   ;;  %v1291_v16 = vld [vmem:[%s1542_s26 + $0x20] sm:$0xff]   ;;  %v1293_v18 = vld [vmem:[%s1542_s26 + $0x28] sm:$0xff]  }
  0x17   : > { %1142 = vmatpush3.bf16.msra.mxu0 %v1276_v1  ;;  %1228 = vmatpush3.bf16.msra.mxu1 %v1276_v1  ;;  %v1292_v17 = vld [vmem:[%s1542_s26 + $0xa0] sm:$0xff]   ;;  %v1294_v19 = vld [vmem:[%s1542_s26 + $0xa8] sm:$0xff]   ;;  %v1295_v20 = vld [vmem:[%s1542_s26 + $0x30] sm:$0xff]  }
  0x18   : > { %1143 = vmatprep.subr.bf16.mxu0 %v1277_v2  ;;  %1221 = vmatprep.subr.bf16.mxu1 %v1277_v2  ;;  %v1296_v21 = vld [vmem:[%s1542_s26 + $0xb0] sm:$0xff]   ;;  %v1297_v22 = vld [vmem:[%s1542_s26 + $0x38] sm:$0xff]   ;;  %v1299_v24 = vld [vmem:[%s1542_s26 + $0x40] sm:$0xff]  }
  0x19   : > { %v1298_v23 = vld [vmem:[%s1542_s26 + $0xb8] sm:$0xff]   ;;  %v1300_v25 = vld [vmem:[%s1542_s26 + $0xc0] sm:$0xff]   ;;  %v1301_v26 = vld [vmem:[%s1542_s26 + $0x48] sm:$0xff]  }
  0x1a   : > { %v1302_v27 = vld [vmem:[%s1542_s26 + $0xc8] sm:$0xff]   ;;  %v1303_v28 = vld [vmem:[%s1542_s26 + $0x50] sm:$0xff]   ;;  %v1305_v30 = vld [vmem:[%s1542_s26 + $0x58] sm:$0xff]  }
  0x1b   : > { %1144 = vmatpush3.bf16.msra.mxu0 %v1277_v2  ;;  %1229 = vmatpush3.bf16.msra.mxu1 %v1277_v2  ;;  %v1304_v29 = vld [vmem:[%s1542_s26 + $0xd0] sm:$0xff]   ;;  %v1306_v31 = vld [vmem:[%s1542_s26 + $0xd8] sm:$0xff]   ;;  %v1307_v32 = vld [vmem:[%s1542_s26 + $0x60] sm:$0xff]  }
  0x1c   : > { %1145 = vmatprep.subr.bf16.mxu0 %v1278_v3  ;;  %1222 = vmatprep.subr.bf16.mxu1 %v1278_v3  ;;  %v1308_v33 = vld [vmem:[%s1542_s26 + $0xe0] sm:$0xff]   ;;  %v1309_v34 = vld [vmem:[%s1542_s26 + $0x68] sm:$0xff]   ;;  %v1311_v36 = vld [vmem:[%s1542_s26 + $0x70] sm:$0xff]  }
  0x1d   : > { %v1310_v35 = vld [vmem:[%s1542_s26 + $0xe8] sm:$0xff]   ;;  %v1312_v37 = vld [vmem:[%s1542_s26 + $0xf0] sm:$0xff]   ;;  %v1313_v38 = vld [vmem:[%s1542_s26 + $0x78] sm:$0xff]  }
  0x1e   : > { %v1314_v39 = vld [vmem:[%s1542_s26 + $0xf8] sm:$0xff]  }
  0x1f   : > { %1146 = vmatpush3.bf16.msra.mxu0 %v1278_v3  ;;  %1230 = vmatpush3.bf16.msra.mxu1 %v1278_v3 }
  0x20   : > { %1147 = vmatprep.subr.bf16.mxu0 %v1279_v6  ;;  %1223 = vmatprep.subr.bf16.mxu1 %v1279_v6 }
  0x23   : > { %1148 = vmatpush3.bf16.msra.mxu0 %v1279_v6  ;;  %1231 = vmatpush3.bf16.msra.mxu1 %v1279_v6 }
  0x24   : > { %1149 = vmatprep.subr.bf16.mxu0 %v1280_v7  ;;  %1224 = vmatprep.subr.bf16.mxu1 %v1280_v7 }
  0x27   : > { %1150 = vmatpush3.bf16.msra.mxu0 %v1280_v7  ;;  %1232 = vmatpush3.bf16.msra.mxu1 %v1280_v7 }
  0x28   : > { %1151 = vmatprep.subr.bf16.mxu0 %v1281_v8  ;;  %1225 = vmatprep.subr.bf16.mxu1 %v1281_v8 }
  0x2b   : > { %1152 = vmatpush3.bf16.msra.mxu0 %v1281_v8  ;;  %1233 = vmatpush3.bf16.msra.mxu1 %v1281_v8 }
  0x2c   : > { %1153 = vmatprep.subr.bf16.mxu0 %v1282_v9  ;;  %1226 = vmatprep.subr.bf16.mxu1 %v1282_v9 }
  0x2f   : > { %1154 = vmatpush3.bf16.msra.mxu0 %v1282_v9  ;;  %1234 = vmatpush3.bf16.msra.mxu1 %v1282_v9 }
  0x32   : > { %1156 = vmatmul.mubr.bf16.vlgmr.msra.gmra.mxu0 %v1285_v10  ;;  %1188 = vmatmul.mubr.bf16.vlgmr.msra.gmra.mxu1 %v1286_v11 }
  0x33   : > { %1159 = vmatprep.mubr.bf16.mxu0 %v1287_v12  ;;  %1191 = vmatprep.mubr.bf16.mxu1 %v1288_v13 }
  0x3a   : > { %1160 = vmatmul.mubr.bf16.gmra.mxu0 %v1289_v14  ;;  %1192 = vmatmul.mubr.bf16.gmra.mxu1 %v1290_v15 }
  0x3b   : > { %1163 = vmatprep.mubr.bf16.mxu0 %v1291_v16  ;;  %1195 = vmatprep.mubr.bf16.mxu1 %v1292_v17 }
  0x42   : > { %1164 = vmatmul.mubr.bf16.gmra.mxu0 %v1293_v18  ;;  %1196 = vmatmul.mubr.bf16.gmra.mxu1 %v1294_v19 }
  0x43   : > { %1167 = vmatprep.mubr.bf16.mxu0 %v1295_v20  ;;  %1199 = vmatprep.mubr.bf16.mxu1 %v1296_v21 }
  0x4a   : > { %1168 = vmatmul.mubr.bf16.gmra.mxu0 %v1297_v22  ;;  %1200 = vmatmul.mubr.bf16.gmra.mxu1 %v1298_v23 }
  0x4b   : > { %1171 = vmatprep.mubr.bf16.mxu0 %v1299_v24  ;;  %1203 = vmatprep.mubr.bf16.mxu1 %v1300_v25 }
  0x52   : > { %1172 = vmatmul.mubr.bf16.gmra.mxu0 %v1301_v26  ;;  %1204 = vmatmul.mubr.bf16.gmra.mxu1 %v1302_v27 }
  0x53   : > { %1175 = vmatprep.mubr.bf16.mxu0 %v1303_v28  ;;  %1207 = vmatprep.mubr.bf16.mxu1 %v1304_v29 }
  0x5a   : > { %1176 = vmatmul.mubr.bf16.gmra.mxu0 %v1305_v30  ;;  %1208 = vmatmul.mubr.bf16.gmra.mxu1 %v1306_v31 }
  0x5b   : > { %1179 = vmatprep.mubr.bf16.mxu0 %v1307_v32  ;;  %1211 = vmatprep.mubr.bf16.mxu1 %v1308_v33 }
  0x62   : > { %1180 = vmatmul.mubr.bf16.gmra.mxu0 %v1309_v34  ;;  %1212 = vmatmul.mubr.bf16.gmra.mxu1 %v1310_v35 }
  0x63   : > { %1183 = vmatprep.mubr.bf16.mxu0 %v1311_v36  ;;  %1215 = vmatprep.mubr.bf16.mxu1 %v1312_v37 }
  0x6a   : > { %1184 = vmatmul.mubr.bf16.gmra.mxu0 %v1313_v38  ;;  %1216 = vmatmul.mubr.bf16.gmra.mxu1 %v1314_v39 }
  0xf2   : > { %v1157_v40 = vpop.f32.mrf.mxu0  ;;  %v1189_v41 = vpop.f32.mrf.mxu1 }
  0xf3   : > { %1315 = vtanh.f32 %v1157_v40 }
  0xf4   : > { %1317 = vtanh.f32 %v1189_v41  ;;  %v558_v42 = vpop.f32.mrf.mxu0  ;;  %v686_v43 = vpop.f32.mrf.mxu1 }
  0xf5   : > { %1319 = vtanh.f32 %v558_v42 }
  0xf6   : > { %1321 = vtanh.f32 %v686_v43  ;;  %v1158_v44 = vpop.f32.mrf.mxu0  ;;  %v1190_v45 = vpop.f32.mrf.mxu1 }
  0xf7   : > { %1323 = vtanh.f32 %v1158_v44 }
  0xf8   : > { %1325 = vtanh.f32 %v1190_v45  ;;  %v561_v46 = vpop.f32.mrf.mxu0  ;;  %v689_v47 = vpop.f32.mrf.mxu1 }
  0xf9   : > { %1327 = vtanh.f32 %v561_v46 }
  0xfa   : > { %1329 = vtanh.f32 %v689_v47  ;;  %v1161_v48 = vpop.f32.mrf.mxu0  ;;  %v1193_v49 = vpop.f32.mrf.mxu1 }
  0xfb   : > { %1331 = vtanh.f32 %v1161_v48 }
  0xfc   : > { %1333 = vtanh.f32 %v1193_v49  ;;  %v574_v50 = vpop.f32.mrf.mxu0  ;;  %v702_v51 = vpop.f32.mrf.mxu1 }
  0xfd   : > { %1335 = vtanh.f32 %v574_v50 }
  0xfe   : > { %1337 = vtanh.f32 %v702_v51  ;;  %v1162_v52 = vpop.f32.mrf.mxu0  ;;  %v1194_v53 = vpop.f32.mrf.mxu1 }
  0xff   : > { %1339 = vtanh.f32 %v1162_v52 }
 0x100   : > { %v1316_v54 = vpop.eup %1315  ;;  %1341 = vtanh.f32 %v1194_v53  ;;  %v577_v55 = vpop.f32.mrf.mxu0 }
 0x101   : > { %v705_v56 = vpop.f32.mrf.mxu1  ;;  %v1318_v57 = vpop.eup %1317  ;;  %879 = vst [vmem:[%s1585_s30 + $0x10] sm:$0xff] %v1316_v54  ;;  %1343 = vtanh.f32 %v577_v55 }
 0x102   : > { %v1320_v58 = vpop.eup %1319  ;;  %911 = vst [vmem:[%s1585_s30 + $0x110] sm:$0xff] %v1318_v57  ;;  %1345 = vtanh.f32 %v705_v56  ;;  %v1165_v59 = vpop.f32.mrf.mxu0 }
 0x103   : > { %v1197_v60 = vpop.f32.mrf.mxu1  ;;  %v1322_v61 = vpop.eup %1321  ;;  %877 = vst [vmem:[%s1585_s30] sm:$0xff] %v1320_v58  ;;  %1347 = vtanh.f32 %v1165_v59 }
 0x104   : > { %v1324_v62 = vpop.eup %1323  ;;  %909 = vst [vmem:[%s1585_s30 + $0x100] sm:$0xff] %v1322_v61  ;;  %1349 = vtanh.f32 %v1197_v60  ;;  %v590_v63 = vpop.f32.mrf.mxu0 }
 0x105   : > { %v718_v0 = vpop.f32.mrf.mxu1  ;;  %v1326_v1 = vpop.eup %1325  ;;  %880 = vst [vmem:[%s1585_s30 + $0x18] sm:$0xff] %v1324_v62  ;;  %1351 = vtanh.f32 %v590_v63 }
 0x106   : > { %v1328_v2 = vpop.eup %1327  ;;  %912 = vst [vmem:[%s1585_s30 + $0x118] sm:$0xff] %v1326_v1  ;;  %1353 = vtanh.f32 %v718_v0  ;;  %v1166_v3 = vpop.f32.mrf.mxu0 }
 0x107   : > { %v1198_v4 = vpop.f32.mrf.mxu1  ;;  %v1330_v5 = vpop.eup %1329  ;;  %878 = vst [vmem:[%s1585_s30 + $0x8] sm:$0xff] %v1328_v2  ;;  %1355 = vtanh.f32 %v1166_v3 }
 0x108   : > { %v1332_v6 = vpop.eup %1331  ;;  %910 = vst [vmem:[%s1585_s30 + $0x108] sm:$0xff] %v1330_v5  ;;  %1357 = vtanh.f32 %v1198_v4  ;;  %v593_v7 = vpop.f32.mrf.mxu0 }
 0x109   : > { %v721_v8 = vpop.f32.mrf.mxu1  ;;  %v1334_v9 = vpop.eup %1333  ;;  %883 = vst [vmem:[%s1585_s30 + $0x30] sm:$0xff] %v1332_v6  ;;  %1359 = vtanh.f32 %v593_v7 }
 0x10a   : > { %v1336_v10 = vpop.eup %1335  ;;  %915 = vst [vmem:[%s1585_s30 + $0x130] sm:$0xff] %v1334_v9  ;;  %1361 = vtanh.f32 %v721_v8  ;;  %v1169_v11 = vpop.f32.mrf.mxu0 }
 0x10b   : > { %v1201_v12 = vpop.f32.mrf.mxu1  ;;  %v1338_v13 = vpop.eup %1337  ;;  %881 = vst [vmem:[%s1585_s30 + $0x20] sm:$0xff] %v1336_v10  ;;  %1363 = vtanh.f32 %v1169_v11 }
 0x10c   : > { %v1340_v14 = vpop.eup %1339  ;;  %913 = vst [vmem:[%s1585_s30 + $0x120] sm:$0xff] %v1338_v13  ;;  %1365 = vtanh.f32 %v1201_v12  ;;  %v606_v15 = vpop.f32.mrf.mxu0 }
 0x10d   : > { %v734_v16 = vpop.f32.mrf.mxu1  ;;  %v1342_v17 = vpop.eup %1341  ;;  %884 = vst [vmem:[%s1585_s30 + $0x38] sm:$0xff] %v1340_v14  ;;  %1367 = vtanh.f32 %v606_v15 }
 0x10e   : > { %v1344_v18 = vpop.eup %1343  ;;  %916 = vst [vmem:[%s1585_s30 + $0x138] sm:$0xff] %v1342_v17  ;;  %1369 = vtanh.f32 %v734_v16  ;;  %v1170_v19 = vpop.f32.mrf.mxu0 }
 0x10f   : > { %v1202_v20 = vpop.f32.mrf.mxu1  ;;  %v1346_v21 = vpop.eup %1345  ;;  %882 = vst [vmem:[%s1585_s30 + $0x28] sm:$0xff] %v1344_v18  ;;  %1371 = vtanh.f32 %v1170_v19 }
 0x110   : > { %v1348_v22 = vpop.eup %1347  ;;  %914 = vst [vmem:[%s1585_s30 + $0x128] sm:$0xff] %v1346_v21  ;;  %1373 = vtanh.f32 %v1202_v20  ;;  %v609_v23 = vpop.f32.mrf.mxu0 }
 0x111   : > { %v737_v24 = vpop.f32.mrf.mxu1  ;;  %v1350_v25 = vpop.eup %1349  ;;  %887 = vst [vmem:[%s1585_s30 + $0x50] sm:$0xff] %v1348_v22  ;;  %1375 = vtanh.f32 %v609_v23 }
 0x112   : > { %v1352_v26 = vpop.eup %1351  ;;  %919 = vst [vmem:[%s1585_s30 + $0x150] sm:$0xff] %v1350_v25  ;;  %1377 = vtanh.f32 %v737_v24  ;;  %v1173_v27 = vpop.f32.mrf.mxu0 }
 0x113   : > { %v1205_v28 = vpop.f32.mrf.mxu1  ;;  %v1354_v29 = vpop.eup %1353  ;;  %885 = vst [vmem:[%s1585_s30 + $0x40] sm:$0xff] %v1352_v26  ;;  %1379 = vtanh.f32 %v1173_v27 }
 0x114   : > { %v1356_v30 = vpop.eup %1355  ;;  %917 = vst [vmem:[%s1585_s30 + $0x140] sm:$0xff] %v1354_v29  ;;  %1381 = vtanh.f32 %v1205_v28  ;;  %v622_v31 = vpop.f32.mrf.mxu0 }
 0x115   : > { %v750_v32 = vpop.f32.mrf.mxu1  ;;  %v1358_v33 = vpop.eup %1357  ;;  %888 = vst [vmem:[%s1585_s30 + $0x58] sm:$0xff] %v1356_v30  ;;  %1383 = vtanh.f32 %v622_v31 }
 0x116   : > { %v1360_v34 = vpop.eup %1359  ;;  %920 = vst [vmem:[%s1585_s30 + $0x158] sm:$0xff] %v1358_v33  ;;  %1385 = vtanh.f32 %v750_v32  ;;  %v1174_v35 = vpop.f32.mrf.mxu0 }
 0x117   : > { %v1206_v36 = vpop.f32.mrf.mxu1  ;;  %v1362_v37 = vpop.eup %1361  ;;  %886 = vst [vmem:[%s1585_s30 + $0x48] sm:$0xff] %v1360_v34  ;;  %1387 = vtanh.f32 %v1174_v35 }
 0x118   : > { %v1364_v38 = vpop.eup %1363  ;;  %918 = vst [vmem:[%s1585_s30 + $0x148] sm:$0xff] %v1362_v37  ;;  %1389 = vtanh.f32 %v1206_v36  ;;  %v625_v39 = vpop.f32.mrf.mxu0 }
 0x119   : > { %v753_v40 = vpop.f32.mrf.mxu1  ;;  %v1366_v41 = vpop.eup %1365  ;;  %891 = vst [vmem:[%s1585_s30 + $0x70] sm:$0xff] %v1364_v38  ;;  %1391 = vtanh.f32 %v625_v39 }
 0x11a   : > { %v1368_v42 = vpop.eup %1367  ;;  %923 = vst [vmem:[%s1585_s30 + $0x170] sm:$0xff] %v1366_v41  ;;  %1393 = vtanh.f32 %v753_v40  ;;  %v1177_v43 = vpop.f32.mrf.mxu0 }
 0x11b   : > { %v1209_v44 = vpop.f32.mrf.mxu1  ;;  %v1370_v45 = vpop.eup %1369  ;;  %889 = vst [vmem:[%s1585_s30 + $0x60] sm:$0xff] %v1368_v42  ;;  %1395 = vtanh.f32 %v1177_v43 }
 0x11c   : > { %v1372_v46 = vpop.eup %1371  ;;  %921 = vst [vmem:[%s1585_s30 + $0x160] sm:$0xff] %v1370_v45  ;;  %1397 = vtanh.f32 %v1209_v44  ;;  %v638_v47 = vpop.f32.mrf.mxu0 }
 0x11d   : > { %v766_v48 = vpop.f32.mrf.mxu1  ;;  %v1374_v49 = vpop.eup %1373  ;;  %892 = vst [vmem:[%s1585_s30 + $0x78] sm:$0xff] %v1372_v46  ;;  %1399 = vtanh.f32 %v638_v47 }
 0x11e   : > { %v1376_v50 = vpop.eup %1375  ;;  %924 = vst [vmem:[%s1585_s30 + $0x178] sm:$0xff] %v1374_v49  ;;  %1401 = vtanh.f32 %v766_v48  ;;  %v1178_v51 = vpop.f32.mrf.mxu0 }
 0x11f   : > { %v1210_v52 = vpop.f32.mrf.mxu1  ;;  %v1378_v53 = vpop.eup %1377  ;;  %890 = vst [vmem:[%s1585_s30 + $0x68] sm:$0xff] %v1376_v50  ;;  %1403 = vtanh.f32 %v1178_v51 }
 0x120   : > { %v1380_v54 = vpop.eup %1379  ;;  %922 = vst [vmem:[%s1585_s30 + $0x168] sm:$0xff] %v1378_v53  ;;  %1405 = vtanh.f32 %v1210_v52  ;;  %v641_v55 = vpop.f32.mrf.mxu0 }
 0x121   : > { %v769_v56 = vpop.f32.mrf.mxu1  ;;  %v1382_v57 = vpop.eup %1381  ;;  %895 = vst [vmem:[%s1585_s30 + $0x90] sm:$0xff] %v1380_v54  ;;  %1407 = vtanh.f32 %v641_v55 }
 0x122   : > { %v1384_v58 = vpop.eup %1383  ;;  %927 = vst [vmem:[%s1585_s30 + $0x190] sm:$0xff] %v1382_v57  ;;  %1409 = vtanh.f32 %v769_v56  ;;  %v1181_v59 = vpop.f32.mrf.mxu0 }
 0x123   : > { %v1213_v60 = vpop.f32.mrf.mxu1  ;;  %v1386_v61 = vpop.eup %1385  ;;  %893 = vst [vmem:[%s1585_s30 + $0x80] sm:$0xff] %v1384_v58  ;;  %1411 = vtanh.f32 %v1181_v59 }
 0x124   : > { %v1388_v62 = vpop.eup %1387  ;;  %925 = vst [vmem:[%s1585_s30 + $0x180] sm:$0xff] %v1386_v61  ;;  %1413 = vtanh.f32 %v1213_v60  ;;  %v654_v63 = vpop.f32.mrf.mxu0 }
 0x125   : > { %v782_v0 = vpop.f32.mrf.mxu1  ;;  %v1390_v1 = vpop.eup %1389  ;;  %896 = vst [vmem:[%s1585_s30 + $0x98] sm:$0xff] %v1388_v62  ;;  %1415 = vtanh.f32 %v654_v63 }
 0x126   : > { %v1392_v2 = vpop.eup %1391  ;;  %928 = vst [vmem:[%s1585_s30 + $0x198] sm:$0xff] %v1390_v1  ;;  %1417 = vtanh.f32 %v782_v0  ;;  %v1182_v3 = vpop.f32.mrf.mxu0 }
 0x127   : > { %v1214_v4 = vpop.f32.mrf.mxu1  ;;  %v1394_v5 = vpop.eup %1393  ;;  %894 = vst [vmem:[%s1585_s30 + $0x88] sm:$0xff] %v1392_v2  ;;  %1419 = vtanh.f32 %v1182_v3 }
 0x128   : > { %v1396_v6 = vpop.eup %1395  ;;  %926 = vst [vmem:[%s1585_s30 + $0x188] sm:$0xff] %v1394_v5  ;;  %1421 = vtanh.f32 %v1214_v4  ;;  %v657_v7 = vpop.f32.mrf.mxu0 }
 0x129   : > { %v785_v8 = vpop.f32.mrf.mxu1  ;;  %v1398_v9 = vpop.eup %1397  ;;  %899 = vst [vmem:[%s1585_s30 + $0xb0] sm:$0xff] %v1396_v6  ;;  %1423 = vtanh.f32 %v657_v7 }
 0x12a   : > { %v1400_v10 = vpop.eup %1399  ;;  %931 = vst [vmem:[%s1585_s30 + $0x1b0] sm:$0xff] %v1398_v9  ;;  %1425 = vtanh.f32 %v785_v8  ;;  %v1185_v11 = vpop.f32.mrf.mxu0 }
 0x12b   : > { %v1217_v12 = vpop.f32.mrf.mxu1  ;;  %v1402_v13 = vpop.eup %1401  ;;  %897 = vst [vmem:[%s1585_s30 + $0xa0] sm:$0xff] %v1400_v10  ;;  %1427 = vtanh.f32 %v1185_v11 }
 0x12c   : > { %v1404_v14 = vpop.eup %1403  ;;  %929 = vst [vmem:[%s1585_s30 + $0x1a0] sm:$0xff] %v1402_v13  ;;  %1429 = vtanh.f32 %v1217_v12  ;;  %v670_v15 = vpop.f32.mrf.mxu0 }
 0x12d   : > { %v798_v16 = vpop.f32.mrf.mxu1  ;;  %v1406_v17 = vpop.eup %1405  ;;  %900 = vst [vmem:[%s1585_s30 + $0xb8] sm:$0xff] %v1404_v14  ;;  %1431 = vtanh.f32 %v670_v15 }
 0x12e   : > { %v1408_v18 = vpop.eup %1407  ;;  %932 = vst [vmem:[%s1585_s30 + $0x1b8] sm:$0xff] %v1406_v17  ;;  %1433 = vtanh.f32 %v798_v16  ;;  %v1186_v19 = vpop.f32.mrf.mxu0 }
 0x12f   : > { %v1218_v20 = vpop.f32.mrf.mxu1  ;;  %v1410_v21 = vpop.eup %1409  ;;  %898 = vst [vmem:[%s1585_s30 + $0xa8] sm:$0xff] %v1408_v18  ;;  %1435 = vtanh.f32 %v1186_v19 }
 0x130   : > { %v1412_v22 = vpop.eup %1411  ;;  %930 = vst [vmem:[%s1585_s30 + $0x1a8] sm:$0xff] %v1410_v21  ;;  %1437 = vtanh.f32 %v1218_v20  ;;  %v673_v23 = vpop.f32.mrf.mxu0 }
 0x131   : > { %v801_v24 = vpop.f32.mrf.mxu1  ;;  %v1414_v25 = vpop.eup %1413  ;;  %903 = vst [vmem:[%s1585_s30 + $0xd0] sm:$0xff] %v1412_v22  ;;  %1439 = vtanh.f32 %v673_v23 }
 0x132   : > { %v1416_v26 = vpop.eup %1415  ;;  %935 = vst [vmem:[%s1585_s30 + $0x1d0] sm:$0xff] %v1414_v25  ;;  %1441 = vtanh.f32 %v801_v24 }
 0x133   : > { %v1418_v27 = vpop.eup %1417  ;;  %901 = vst [vmem:[%s1585_s30 + $0xc0] sm:$0xff] %v1416_v26 }
 0x134   : > { %v1420_v28 = vpop.eup %1419  ;;  %933 = vst [vmem:[%s1585_s30 + $0x1c0] sm:$0xff] %v1418_v27 }
 0x135   : > { %v1422_v29 = vpop.eup %1421  ;;  %904 = vst [vmem:[%s1585_s30 + $0xd8] sm:$0xff] %v1420_v28 }
 0x136   : > { %v1424_v30 = vpop.eup %1423  ;;  %936 = vst [vmem:[%s1585_s30 + $0x1d8] sm:$0xff] %v1422_v29 }
 0x137   : > { %v1426_v31 = vpop.eup %1425  ;;  %902 = vst [vmem:[%s1585_s30 + $0xc8] sm:$0xff] %v1424_v30 }
 0x138   : > { %v1428_v32 = vpop.eup %1427  ;;  %934 = vst [vmem:[%s1585_s30 + $0x1c8] sm:$0xff] %v1426_v31 }
 0x139   : > { %v1430_v33 = vpop.eup %1429  ;;  %907 = vst [vmem:[%s1585_s30 + $0xf0] sm:$0xff] %v1428_v32 }
 0x13a   : > { %v1432_v34 = vpop.eup %1431  ;;  %939 = vst [vmem:[%s1585_s30 + $0x1f0] sm:$0xff] %v1430_v33 }
 0x13b   : > { %v1434_v35 = vpop.eup %1433  ;;  %905 = vst [vmem:[%s1585_s30 + $0xe0] sm:$0xff] %v1432_v34 }
 0x13c   : > { %v1436_v36 = vpop.eup %1435  ;;  %937 = vst [vmem:[%s1585_s30 + $0x1e0] sm:$0xff] %v1434_v35 }
 0x13d   : > { %v1438_v37 = vpop.eup %1437  ;;  %908 = vst [vmem:[%s1585_s30 + $0xf8] sm:$0xff] %v1436_v36 }
 0x13e   : > { %v1440_v38 = vpop.eup %1439  ;;  %940 = vst [vmem:[%s1585_s30 + $0x1f8] sm:$0xff] %v1438_v37 }
 0x13f   : > { %v1442_v39 = vpop.eup %1441  ;;  %906 = vst [vmem:[%s1585_s30 + $0xe8] sm:$0xff] %v1440_v38 }
 0x140   : > { %938 = vst [vmem:[%s1585_s30 + $0x1e8] sm:$0xff] %v1442_v39 }
 0x141 PF: > { %s12_s13 = sadd.s32 1, %s1481_s13   ;;  %s1669_s9 = smov %s1473_s11 }
 0x142   : > { %p9_p7 = scmp.ge.s32.totalorder %s12_s13, 18   ;;  %s1670_s10 = smov %s1477_s12 }
 0x143   : > { %s1671_s11 = smov %s1674_s14  ;;  %s1672_s12 = smov %s1678_s15 }
 0x144   :  { %11 = sbr.rel (!%p9_p7) target bundleno = 3 (0x3), region = 61 }

</bundles_post_ra>
